<compile_context>
chip_gen: v5e
topology: v5e:2x2
jax: 0.10.0
libtpu: 0.0.40
codegen_flags: <defaults>
</compile_context>

<pallas_src>
import functools

import jax
import jax.numpy as jnp
from jax import lax
from jax.experimental import pallas as pl
from jax.experimental.pallas import tpu as pltpu


def _round_up(x, m):
    return ((x + m - 1) // m) * m


# --------------------- kernel 1: XW = X @ W1 (tiled over M, K_feat) ----------
def _xw_kernel(x_ref, w1_ref, xw_ref, acc_ref):
    @pl.when(pl.program_id(1) == 0)
    def _init():
        acc_ref[...] = jnp.zeros_like(acc_ref)

    acc_ref[...] += jnp.dot(x_ref[...], w1_ref[...],
                            preferred_element_type=jnp.float32)

    @pl.when(pl.program_id(1) == pl.num_programs(1) - 1)
    def _fin():
        xw_ref[...] = acc_ref[...].astype(xw_ref.dtype)


# ---------- kernel 2: HW = relu(A_hat @ XW + b1) @ W2 (tiled over M, K_node) --
def _layer1_kernel(a_ref, xw_ref, b1_ref, w2_ref, hw_ref, acc_ref):
    @pl.when(pl.program_id(1) == 0)
    def _init():
        acc_ref[...] = jnp.zeros_like(acc_ref)

    acc_ref[...] += jnp.dot(a_ref[...], xw_ref[...],
                            preferred_element_type=jnp.float32)

    @pl.when(pl.program_id(1) == pl.num_programs(1) - 1)
    def _fin():
        # bias + ReLU in f32 (v5e VPU has no bf16).
        h = jnp.maximum(acc_ref[...] + b1_ref[...], 0.0)
        # TODO(synk): training-mode dropout (pltpu.prng_* mask/scale) not
        # implemented; F.dropout(..., training=False) is an identity in eval.
        hw_ref[...] = jnp.dot(h.astype(jnp.bfloat16), w2_ref[...],
                              preferred_element_type=jnp.float32
                              ).astype(hw_ref.dtype)


# -- kernel 3: Z = A_hat @ HW + b2 ; out = log_softmax(Z) over real classes ---
def _layer2_kernel(a_ref, hw_ref, b2_ref, o_ref, acc_ref, *, n_classes):
    @pl.when(pl.program_id(1) == 0)
    def _init():
        acc_ref[...] = jnp.zeros_like(acc_ref)

    acc_ref[...] += jnp.dot(a_ref[...], hw_ref[...],
                            preferred_element_type=jnp.float32)

    @pl.when(pl.program_id(1) == pl.num_programs(1) - 1)
    def _fin():
        z = acc_ref[...] + b2_ref[...]
        # Mask padded class lanes before the softmax normalizer.
        cls = lax.broadcasted_iota(jnp.int32, z.shape, 1)
        z_m = jnp.where(cls < n_classes, z, -1e30)
        m = jnp.max(z_m, axis=1, keepdims=True)
        s = jnp.sum(jnp.exp(z_m - m), axis=1, keepdims=True)
        o_ref[...] = z - (m + jnp.log(s))


# --------------------------------- wrapper ------------------------------------
def gcn_forward(a_hat, x, w1, b1, w2, b2, *, tm=256, tkn=256, tk_in=512):
    n, f_in = x.shape
    f_hid = w1.shape[1]
    n_cls = w2.shape[1]

    np_ = _round_up(n, max(tm, tkn))          # node dim -> multiple of 256
    f_in_p = _round_up(f_in, tk_in)           # 1433 -> 1536
    f_hid_p = _round_up(f_hid, 128)           # 789  -> 896
    c_p = _round_up(max(n_cls, 128), 128)     # 7    -> 128 (lane-dense output)

    # Zero-pad to MXU/vreg friendly shapes, cast MXU operands to bf16.
    a_p = jnp.pad(a_hat, ((0, np_ - n), (0, np_ - n))).astype(jnp.bfloat16)
    x_p = jnp.pad(x, ((0, np_ - n), (0, f_in_p - f_in))).astype(jnp.bfloat16)
    w1_p = jnp.pad(w1, ((0, f_in_p - f_in), (0, f_hid_p - f_hid))).astype(jnp.bfloat16)
    b1_p = jnp.pad(b1, ((0, 0), (0, f_hid_p - f_hid))).astype(jnp.float32)
    w2_p = jnp.pad(w2, ((0, f_hid_p - f_hid), (0, c_p - n_cls))).astype(jnp.bfloat16)
    b2_p = jnp.pad(b2, ((0, 0), (0, c_p - n_cls))).astype(jnp.float32)

    m_tiles = np_ // tm
    kn_tiles = np_ // tkn
    kin_tiles = f_in_p // tk_in

    cparams = pltpu.CompilerParams(
        dimension_semantics=("parallel", "arbitrary"))

    # ---- stage 1: XW = X @ W1 ----
    xw = pl.pallas_call(
        _xw_kernel,
        out_shape=jax.ShapeDtypeStruct((np_, f_hid_p), jnp.bfloat16),
        grid_spec=pltpu.PrefetchScalarGridSpec(
            num_scalar_prefetch=0,
            grid=(m_tiles, kin_tiles),
            in_specs=[
                pl.BlockSpec((tm, tk_in), lambda i, k: (i, k)),
                pl.BlockSpec((tk_in, f_hid_p), lambda i, k: (k, 0)),
            ],
            out_specs=pl.BlockSpec((tm, f_hid_p), lambda i, k: (i, 0)),
            scratch_shapes=[pltpu.VMEM((tm, f_hid_p), jnp.float32)],
        ),
        compiler_params=cparams,
    )(x_p, w1_p)

    # ---- stage 2: HW = relu(A_hat @ XW + b1) @ W2 ----
    hw = pl.pallas_call(
        _layer1_kernel,
        out_shape=jax.ShapeDtypeStruct((np_, c_p), jnp.bfloat16),
        grid_spec=pltpu.PrefetchScalarGridSpec(
            num_scalar_prefetch=0,
            grid=(m_tiles, kn_tiles),
            in_specs=[
                pl.BlockSpec((tm, tkn), lambda i, k: (i, k)),
                pl.BlockSpec((tkn, f_hid_p), lambda i, k: (k, 0)),
                pl.BlockSpec((1, f_hid_p), lambda i, k: (0, 0)),
                pl.BlockSpec((f_hid_p, c_p), lambda i, k: (0, 0)),
            ],
            out_specs=pl.BlockSpec((tm, c_p), lambda i, k: (i, 0)),
            scratch_shapes=[pltpu.VMEM((tm, f_hid_p), jnp.float32)],
        ),
        compiler_params=cparams,
    )(a_p, xw, b1_p, w2_p)

    # ---- stage 3: O = log_softmax(A_hat @ HW + b2) ----
    out = pl.pallas_call(
        functools.partial(_layer2_kernel, n_classes=n_cls),
        out_shape=jax.ShapeDtypeStruct((np_, c_p), jnp.float32),
        grid_spec=pltpu.PrefetchScalarGridSpec(
            num_scalar_prefetch=0,
            grid=(m_tiles, kn_tiles),
            in_specs=[
                pl.BlockSpec((tm, tkn), lambda i, k: (i, k)),
                pl.BlockSpec((tkn, c_p), lambda i, k: (k, 0)),
                pl.BlockSpec((1, c_p), lambda i, k: (0, 0)),
            ],
            out_specs=pl.BlockSpec((tm, c_p), lambda i, k: (i, 0)),
            scratch_shapes=[pltpu.VMEM((tm, c_p), jnp.float32)],
        ),
        compiler_params=cparams,
    )(a_p, hw, b2_p)

    return out[:n, :n_cls]


# ------------------------------- JAX glue ------------------------------------
def build_normalized_adjacency(edge_index, num_nodes):
    """Dense A_hat = D^{-1/2} (A + I) D^{-1/2}, matching PyG gcn_norm.

    edge_index: int32 (2, E), row 0 = source, row 1 = target; message j->i
    contributes A_hat[i, j].  Duplicate edges scatter-ADD (like PyG), not set.
    """
    src, dst = edge_index[0], edge_index[1]
    a = jnp.zeros((num_nodes, num_nodes), jnp.float32)
    a = a.at[dst, src].add(1.0)                      # A[target, source] += 1
    a = a + jnp.eye(num_nodes, dtype=jnp.float32)    # add self-loops
    deg = jnp.sum(a, axis=1)
    d_inv_sqrt = jnp.where(deg > 0, 1.0 / jnp.sqrt(deg), 0.0)
    return d_inv_sqrt[:, None] * a * d_inv_sqrt[None, :]


def glorot(key, shape):
    fan_in, fan_out = shape
    limit = jnp.sqrt(6.0 / (fan_in + fan_out))
    return jax.random.uniform(key, shape, jnp.float32, -limit, limit)


def reference_forward(a_hat, x, w1, b1, w2, b2):
    """Plain-JAX reference using the same bf16 operands / f32 accumulation."""
    ab = a_hat.astype(jnp.bfloat16)
    xw = jnp.dot(x.astype(jnp.bfloat16), w1.astype(jnp.bfloat16),
                 preferred_element_type=jnp.float32).astype(jnp.bfloat16)
    h = jnp.maximum(jnp.dot(ab, xw, preferred_element_type=jnp.float32) + b1, 0.0)
    hw = jnp.dot(h.astype(jnp.bfloat16), w2.astype(jnp.bfloat16),
                 preferred_element_type=jnp.float32).astype(jnp.bfloat16)
    z = jnp.dot(ab, hw, preferred_element_type=jnp.float32) + b2
    return jax.nn.log_softmax(z, axis=1)


# --------------------------------- demo ---------------------------------------
if __name__ == "__main__":
    N = 512          # small node count (Cora would be 2708)
    F_IN = 1433      # feature dims fixed by the module
    F_HID = 789
    N_CLS = 7
    E = 2048

    key = jax.random.PRNGKey(0)
    kx, ke, kw1, kw2 = jax.random.split(key, 4)

    # Node features and a random undirected edge list.
    x = jax.random.normal(kx, (N, F_IN), jnp.float32)
    ends = jax.random.randint(ke, (2, E), 0, N, jnp.int32)
    edge_index = jnp.concatenate(
        [ends, jnp.stack([ends[1], ends[0]])], axis=1
    )  # (2, 2E), symmetric like Cora

    # Deterministic parameter init (GCNConv: glorot weights, zero bias).
    w1 = glorot(kw1, (F_IN, F_HID))
    b1 = jnp.zeros((1, F_HID), jnp.float32)
    w2 = glorot(kw2, (F_HID, N_CLS))
    b2 = jnp.zeros((1, N_CLS), jnp.float32)

    a_hat = build_normalized_adjacency(edge_index, N)

    y_pred = jax.block_until_ready(gcn_forward(a_hat, x, w1, b1, w2, b2))

    # Sanity check vs. plain-JAX reference (same bf16/f32 arithmetic).
    y_ref = reference_forward(a_hat, x, w1, b1, w2, b2)
    assert y_pred.shape == (N, N_CLS)
    err = float(jnp.max(jnp.abs(y_pred - y_ref)))
    assert jnp.allclose(y_pred, y_ref, atol=5e-3, rtol=5e-3), err

    print("KERNEL_OK")
</pallas_src>

<mosaic_0001>
module attributes {stable_mosaic.version = 11 : i64} {
  func.func @_xw_kernel(%arg0: i32, %arg1: i32, %arg2: memref<256x512xbf16, #tpu.memory_space<vmem>>, %arg3: memref<512x896xbf16, #tpu.memory_space<vmem>>, %arg4: memref<256x896xbf16, #tpu.memory_space<vmem>>, %arg5: memref<256x896xf32, #tpu.memory_space<vmem>>) attributes {dimension_semantics = [#tpu.dimension_semantics<parallel>, #tpu.dimension_semantics<arbitrary>], iteration_bounds = array<i64: 2, 3>, scalar_prefetch = 0 : i64, scratch_operands = 1 : i64, tpu.core_type = #tpu.core_type<tc>, window_params = [{transform_indices = @transform_0, window_bounds = array<i64: 256, 512>}, {transform_indices = @transform_1, window_bounds = array<i64: 512, 896>}, {transform_indices = @transform_2, window_bounds = array<i64: 256, 896>}]} {
    %c0_i32 = arith.constant 0 : i32
    %0 = arith.cmpi eq, %arg1, %c0_i32 : i32
    %1 = arith.extui %0 : i1 to i32
    %c0_i32_0 = arith.constant 0 : i32
    %2 = arith.cmpi ne, %1, %c0_i32_0 : i32
    scf.if %2 {
      %cst_9 = arith.constant 0.000000e+00 : f32
      %12 = vector.broadcast %cst_9 : f32 to vector<256x896xf32>
      %c0_10 = arith.constant 0 : index
      %c0_11 = arith.constant 0 : index
      %13 = vector.load %arg5[%c0_10, %c0_11] : memref<256x896xf32, #tpu.memory_space<vmem>>, vector<256x896xf32>
      tpu.vector_store %arg5[%c0_10, %c0_11], %12 {strides = array<i32>} : memref<256x896xf32, #tpu.memory_space<vmem>>, vector<256x896xf32>,
    } else {
    }
    %c0 = arith.constant 0 : index
    %c0_1 = arith.constant 0 : index
    %3 = vector.load %arg5[%c0, %c0_1] : memref<256x896xf32, #tpu.memory_space<vmem>>, vector<256x896xf32>
    %c0_2 = arith.constant 0 : index
    %c0_3 = arith.constant 0 : index
    %4 = vector.load %arg2[%c0_2, %c0_3] : memref<256x512xbf16, #tpu.memory_space<vmem>>, vector<256x512xbf16>
    %c0_4 = arith.constant 0 : index
    %c0_5 = arith.constant 0 : index
    %5 = vector.load %arg3[%c0_4, %c0_5] : memref<512x896xbf16, #tpu.memory_space<vmem>>, vector<512x896xbf16>
    %cst = arith.constant dense<0.000000e+00> : vector<256x896xf32>
    %6 = tpu.matmul %4, %5, %cst {dimension_numbers = #tpu.dot_dimension_numbers<[1], [0], [0], [1], [0, 0, 1, 1], [], []>} : vector<256x512xbf16>, vector<512x896xbf16>, vector<256x896xf32> -> vector<256x896xf32>
    %7 = arith.addf %3, %6 : vector<256x896xf32>
    %c0_6 = arith.constant 0 : index
    %c0_7 = arith.constant 0 : index
    %8 = vector.load %arg5[%c0_6, %c0_7] : memref<256x896xf32, #tpu.memory_space<vmem>>, vector<256x896xf32>
    tpu.vector_store %arg5[%c0_6, %c0_7], %7 {strides = array<i32>} : memref<256x896xf32, #tpu.memory_space<vmem>>, vector<256x896xf32>,
    %c2_i32 = arith.constant 2 : i32
    %9 = arith.cmpi eq, %arg1, %c2_i32 : i32
    %10 = arith.extui %9 : i1 to i32
    %c0_i32_8 = arith.constant 0 : i32
    %11 = arith.cmpi ne, %10, %c0_i32_8 : i32
    scf.if %11 {
      %c0_9 = arith.constant 0 : index
      %c0_10 = arith.constant 0 : index
      %12 = vector.load %arg5[%c0_9, %c0_10] : memref<256x896xf32, #tpu.memory_space<vmem>>, vector<256x896xf32>
      %13 = arith.truncf %12 : vector<256x896xf32> to vector<256x896xbf16>
      %c0_11 = arith.constant 0 : index
      %c0_12 = arith.constant 0 : index
      %14 = vector.load %arg4[%c0_11, %c0_12] : memref<256x896xbf16, #tpu.memory_space<vmem>>, vector<256x896xbf16>
      tpu.vector_store %arg4[%c0_11, %c0_12], %13 {strides = array<i32>} : memref<256x896xbf16, #tpu.memory_space<vmem>>, vector<256x896xbf16>,
    } else {
    }
    return
  }
  func.func @transform_0(%arg0: i32, %arg1: i32) -> (i32, i32) {
    %c0_i32 = arith.constant 0 : i32
    return %arg0, %arg1 : i32, i32
  }
  func.func @transform_1(%arg0: i32, %arg1: i32) -> (i32, i32) {
    %c0_i32 = arith.constant 0 : i32
    %c0_i32_0 = arith.constant 0 : i32
    return %arg1, %c0_i32 : i32, i32
  }
  func.func @transform_2(%arg0: i32, %arg1: i32) -> (i32, i32) {
    %c0_i32 = arith.constant 0 : i32
    %c0_i32_0 = arith.constant 0 : i32
    return %arg0, %c0_i32 : i32, i32
  }
}

</mosaic_0001>

<bundles_post_ra>
// kernel: tpu_custom_call.1
= control target key start
LH: loop header
LB: loop body
LE: loop exit
PB: predicated region body
PF: predicated region fallthrough
CT: control target
= control target key end

     0   :  { %s9623_s0 = inlined_call_operand.hbm [shape: bf16[512,1536], index: 0, kind: input, shape index: {}]   ;;  %s9624_s1 = inlined_call_operand.hbm [shape: bf16[1536,896], index: 1, kind: input, shape index: {}]   ;;  %s9625_s2 = inlined_call_operand.hbm [shape: bf16[512,896], index: 2, kind: output, shape index: {}]  }
   0x1   :  { %9679 = sst [smem:[#allocation43_spill]] %s9623_s0 }
   0x2   :  { %9680 = sst [smem:[#allocation44_spill]] %s9625_s2 }
   0x3   :  { %7 = vsyncpa [#allocation4], 0 }
   0x4   :  { %9 = vsyncpa [#allocation4 + $0x1], 0 }
   0x5   :  { %10 = vsyncpa [#allocation7], 0 }
   0x6   :  { %12 = vsyncpa [#allocation7 + $0x1], 0 }
   0x7   :  { %13 = vsyncpa [#allocation5], 0 }
   0x8   :  { %15 = vsyncpa [#allocation5 + $0x1], 0  ;;  %s7864_s9 = smov 0   ;;  %s7866_s10 = smov 0  }
   0x9   :  { %s7868_s11 = smov 0   ;;  %s7870_s12 = smov 0  }
   0xa   :  { %s7872_s13 = smov 0   ;;  %s7874_s14 = smov 0  }
   0xb   :  { %s7876_s15 = smov 0   ;;  %s7878_s16 = smov 0  }
   0xc   :  { %s7880_s17 = smov 0   ;;  %s7882_s18 = smov 0  }
   0xd   :  { %s7884_s19 = smov 0   ;;  %s7886_s20 = smov 0  }
   0xe   :  { %s7888_s21 = smov 0   ;;  %s7890_s22 = smov 0  }
   0xf LB: > { %9681 = sst [smem:[#allocation12_spill]] %s7819_s17  ;;  %s30_s23 = sadd.s32 1, %s7831_s20  ;;  %s7839_s22 = sphi %s7890_s22, %s21_s22   ;;  %s7835_s21 = sphi %s7888_s21, %s9864_s21   ;;  %s7831_s20 = sphi %s7886_s20, %s9863_s20   ;;  %s7827_s19 = sphi %s7884_s19, %s9862_s19   ;;  %s7823_s18 = sphi %s7882_s18, %s9875_s18   ;;  %s7819_s17 = sphi %s7880_s17, %s9874_s17   ;;  %s7815_s16 = sphi %s7878_s16, %s9873_s16   ;;  %s7811_s15 = sphi %s7876_s15, %s9872_s15   ;;  %s7807_s14 = sphi %s7874_s14, %s9871_s14   ;;  %s7803_s13 = sphi %s7872_s13, %s9870_s13   ;;  %s7799_s12 = sphi %s7870_s12, %s9869_s12   ;;  %s7795_s11 = sphi %s7868_s11, %s9868_s11   ;;  %s7791_s10 = sphi %s7866_s10, %s9867_s10   ;;  %s7787_s9 = sphi %s7864_s9, %s9866_s9  }
  0x10   : > { %9682 = sst [smem:[#allocation13_spill]] %s7827_s19  ;;  %s33_s24 = sadd.s32 1, %s7835_s21 }
  0x11   : > { %9683 = sst [smem:[#allocation14_spill]] %s7831_s20  ;;  %p31_p0 = scmp.ge.s32.totalorder %s30_s23, 3 }
  0x12   : > { %9684 = sst [smem:[#allocation15_spill]] %s7835_s21  ;;  %s42_s25 = sadd.s32 1, %s7819_s17 }
  0x13   : > { %p49_p1 = scmp.ne.s32.totalorder %s7819_s17, %s7815_s16  ;;  %p50_p2 = scmp.eq.s32.totalorder %s7839_s22, 0 }
  0x14   : > { %s9877_s23 = smov (%p31_p0, %s30_s23), 0  ;;  %s9879_s24 = smov (!%p31_p0, %s33_s24), %s7835_s21 }
  0x15   : > { %9685 = sst [smem:[#allocation16_spill]] %s9877_s23  ;;  %s7945_s26 = ssub.s32 %s7831_s20, %s9877_s23 }
  0x16   : > { %p7949_p3 = por %p50_p2, %p49_p1  ;;  %p35_p4 = scmp.ge.s32.totalorder %s9879_s24, 2 }
  0x17   : > { %p55_p5 = scmp.ne.s32.totalorder %s7815_s16, %s7811_s15  ;;  %s94_s28 = sadd.s32 1, %s7795_s11 }
  0x18   : > { %s9881_s24 = smov (%p35_p4, %s9879_s24), 0  ;;  %p9629_p6 = scmp.lt.s32.totalorder %s7839_s22, 6 }
  0x19   : > { %9687 = sst [smem:[#allocation17_spill]] %s9881_s24  ;;  %s131_s29 = sand.u32 1, %s7819_s17  }
  0x1a   : > { %s37_s30 = ssub.s32 %s7835_s21, %s9881_s24  ;;  %s6027_s4 = sshll.u32 %s131_s29, 9 }
  0x1b   : > { %s39_s3 = sor.u32 %s7945_s26, %s37_s30  ;;  %p92_p7 = scmp.eq.s32.totalorder %s37_s30, 0 }
  0x1c   : > { %p40_p8 = scmp.eq.s32.totalorder %s39_s3, 0  ;;  %s6029_s7 = sshll.u32 %s7831_s20, 2 }
  0x1d   : > { %s7964_s5 = scalar_select %p92_p7, %s7795_s11, %s94_s28  }
  0x1e   : > { %s7967_s6 = scalar_select %p40_p8, %s7819_s17, %s42_s25  }
  0x1f   : > { %s7484_s8 = smul.u32 384, %s7835_s21  ;;  %s135_s23 = scalar_lea.vmem [#allocation3], %s6027_s4 }
  0x20   : > { %9688 = sst [smem:[#allocation18_spill]] %s7967_s6  ;;  %s146_s2 = sshll.u32 %s135_s23, 4  ;;  %s147_s2 = int_to_ptr.vmem [resolvable:$true] %s146_s2 }
  0x21   : > { %p7497_p9 = pnand %p9629_p6, %p7949_p3  ;;  %s141_s24 = sadd.s32 %s7484_s8, %s6029_s7 }
  0x22   : > { %s6031_s30 = sshll.u32 %s141_s24, 2  ;;  %s9689_s0 = sld [smem:[#allocation43_spill]] }
  0x23   : > { %p6035_p10 = scmp.ge.s32.totalorder %s7839_s22, 1  ;;  %s132_s23 = scalar_lea.sflag [#allocation4], %s131_s29 }
  0x24   : > { %s7841_s27 = smov 768   ;;  %s7842_s4 = smov 256  }
  0x25   : > { %s7843_s24 = smov 16   ;;  %p177_p11 = scmp.lt.s32.totalorder %s7839_s22, 7 }
  0x26   : > { %s6023_s7 = sadd.s32 4294967295, %s7839_s22   ;;  %s6024_s8 = sadd.s32 4294967294, %s7839_s22  }
  0x27   : > { %p7980_p12 = pnand %p6035_p10, %p177_p11  ;;  %p56_p13 = scmp.eq.s32.totalorder %s6023_s7, 0 }
  0x28   : > { %s143_s25 = scalar_lea.hbm %s9689_s0, %s6031_s30  ;;  %p66_p0 = scmp.eq.s32.totalorder %s7945_s26, 0 }
  0x29   : > { %s144_s28 = sshll.u32 %s143_s25, 4  ;;  %s68_s29 = sadd.s32 1, %s7807_s14  ;;  %s145_s28 = int_to_ptr.hbm [resolvable:$true] %s144_s28 }
  0x2a   : > { %7499 = dma.hbm_to_vmem [thread:$0]  (!%p7497_p9), %s145_s28, 8192, %s147_s2, %s132_s23, %s7841_s27, %s7842_s4, %s7843_s24  }
  0x2b   : > { %s9690_s19 = scalar_select %p7980_p12, 1, 0 }
  0x2c   : > { %p75_p1 = scmp.ne.s32.totalorder %s7807_s14, %s7803_s13  ;;  %p7993_p3 = por %p56_p13, %p55_p5 }
  0x2d   : > { %p81_p4 = scmp.ne.s32.totalorder %s7803_s13, %s7799_s12  ;;  %p104_p9 = scmp.ne.s32.totalorder %s7795_s11, %s7791_s10 }
  0x2e   : > { %s8000_s2 = scalar_select %p66_p0, %s7807_s14, %s68_s29  }
  0x2f   : > { %p77_p7 = por %p75_p1, %p50_p2  ;;  %p8004_p8 = por %p81_p4, %p56_p13 }
  0x30   : > { %9692 = sst [smem:[#allocation19_spill]] %s8000_s2  ;;  %p105_p10 = scmp.eq.s32.totalorder %s6023_s7, 5 }
  0x31   : > { %p110_p11 = scmp.ne.s32.totalorder %s7791_s10, %s7787_s9  ;;  %p111_p6 = scmp.eq.s32.totalorder %s6024_s8, 5 }
  0x32   : > { %p8012_p12 = por %p105_p10, %p104_p9  ;;  %s156_s15 = sand.u32 1, %s7807_s14  }
  0x33   : > { %p8017_p5 = por %p111_p6, %p110_p11  ;;  %s7485_s12 = smul.u32 1792, %s156_s15 }
  0x34   : > { %p9696_p0 = scmp.lt.s32.totalorder %s7839_s22, 6  ;;  %s7486_s28 = smul.u32 1792, %s7831_s20 }
  0x35   : > { %s160_s24 = scalar_lea.vmem [#allocation6], %s7485_s12  ;;  %s157_s29 = scalar_lea.sflag [#allocation7], %s156_s15 }
  0x36   : > { %p7500_p2 = pnand %p9696_p0, %p77_p7  ;;  %s166_s4 = scalar_lea.hbm %s9624_s1, %s7486_s28 }
  0x37   : > { %s169_s7 = sshll.u32 %s160_s24, 4  ;;  %s167_s8 = sshll.u32 %s166_s4, 4  ;;  %s170_s7 = int_to_ptr.vmem [resolvable:$true] %s169_s7  ;;  %s168_s8 = int_to_ptr.hbm [resolvable:$true] %s167_s8 }
  0x38   : > { %s7844_s0 = smov 448   ;;  %s7845_s21 = smov 28  }
  0x39   : > { %7502 = dma.hbm_to_vmem [thread:$0]  (!%p7500_p2), %s168_s8, 28672, %s170_s7, %s157_s29, %s7844_s0, %s7844_s0, %s7845_s21  }
  0x3a   : > { %p9697_p6 = scmp.ne.s32.totalorder %s9690_s19, 0 }
  0x3c   : > { %181 = sbr.rel (%p9697_p6) target bundleno = 2420 (0x974), region = 28 }
  0x41   : > { %s183_s6 = sand.u32 1, %s7815_s16  }
  0x42   : > { %s6036_s20 = sshll.u32 %s183_s6, 9  ;;  %s184_s17 = scalar_lea.sflag [#allocation4], %s183_s6 }
  0x43   : > { %s8030_s2 = scalar_lea.vmem [#allocation3], %s6036_s20 }
  0x44   : > { %7774 = dma.done.wait (%p7993_p3), %s184_s17, 8192  }
  0x45   : > { %7776 = vsyncadd (%p7993_p3), %s184_s17, 4294959104  ;;  %s193_s15 = sand.u32 1, %s7803_s13  }
  0x46   : > { %s7487_s12 = smul.u32 1792, %s193_s15  ;;  %s194_s0 = scalar_lea.sflag [#allocation7], %s193_s15 }
  0x48   : > { %s8037_s21 = scalar_lea.vmem [#allocation6], %s7487_s12 }
  0x49   : > { %7778 = dma.done.wait (%p8004_p8), %s194_s0, 28672  }
  0x4a   : > { %7780 = vsyncadd (%p8004_p8), %s194_s0, 4294938624  ;;  %s221_s20 = sand.u32 1, %s7791_s10   ;;  %p6037_p13 = scmp.ne.s32.totalorder %s7823_s18, 0 }
  0x4b   : > { %s7488_s6 = smul.u32 896, %s221_s20 }
  0x4c   : > { %231 = sbr.rel (%p6037_p13) target bundleno = 306 (0x132), region = 40 }
  0x4d   : > { %s8046_s19 = scalar_lea.vmem [#allocation8], %s7488_s6 }
  0x51   : > { %v7846_v0 = vmov 0.0  }
  0x52   : > { %232 = vst [vmem:[#allocation2 + $0x2b0] sm:$0xff] %v7846_v0 }
  0x53   : > { %233 = vst [vmem:[#allocation2 + $0x3b0] sm:$0xff] %v7846_v0 }
  0x54   : > { %234 = vst [vmem:[#allocation2 + $0x4d8] sm:$0xff] %v7846_v0 }
  0x55   : > { %235 = vst [vmem:[#allocation2 + $0x18] sm:$0xff] %v7846_v0 }
  0x56   : > { %236 = vst [vmem:[#allocation2 + $0x450] sm:$0xff] %v7846_v0 }
  0x57   : > { %237 = vst [vmem:[#allocation2 + $0x328] sm:$0xff] %v7846_v0 }
  0x58   : > { %238 = vst [vmem:[#allocation2 + $0x440] sm:$0xff] %v7846_v0 }
  0x59   : > { %239 = vst [vmem:[#allocation2 + $0x378] sm:$0xff] %v7846_v0 }
  0x5a   : > { %240 = vst [vmem:[#allocation2 + $0x108] sm:$0xff] %v7846_v0 }
  0x5b   : > { %241 = vst [vmem:[#allocation2 + $0x510] sm:$0xff] %v7846_v0 }
  0x5c   : > { %242 = vst [vmem:[#allocation2 + $0x490] sm:$0xff] %v7846_v0 }
  0x5d   : > { %243 = vst [vmem:[#allocation2 + $0x318] sm:$0xff] %v7846_v0 }
  0x5e   : > { %244 = vst [vmem:[#allocation2 + $0x548] sm:$0xff] %v7846_v0 }
  0x5f   : > { %245 = vst [vmem:[#allocation2 + $0x500] sm:$0xff] %v7846_v0 }
  0x60   : > { %246 = vst [vmem:[#allocation2 + $0x6d0] sm:$0xff] %v7846_v0 }
  0x61   : > { %247 = vst [vmem:[#allocation2 + $0x320] sm:$0xff] %v7846_v0 }
  0x62   : > { %248 = vst [vmem:[#allocation2 + $0x2c0] sm:$0xff] %v7846_v0 }
  0x63   : > { %249 = vst [vmem:[#allocation2 + $0x588] sm:$0xff] %v7846_v0 }
  0x64   : > { %250 = vst [vmem:[#allocation2 + $0x598] sm:$0xff] %v7846_v0 }
  0x65   : > { %251 = vst [vmem:[#allocation2 + $0x60] sm:$0xff] %v7846_v0 }
  0x66   : > { %252 = vst [vmem:[#allocation2 + $0x3c8] sm:$0xff] %v7846_v0 }
  0x67   : > { %253 = vst [vmem:[#allocation2 + $0x6d8] sm:$0xff] %v7846_v0 }
  0x68   : > { %254 = vst [vmem:[#allocation2 + $0x670] sm:$0xff] %v7846_v0 }
  0x69   : > { %255 = vst [vmem:[#allocation2 + $0x348] sm:$0xff] %v7846_v0 }
  0x6a   : > { %256 = vst [vmem:[#allocation2 + $0x118] sm:$0xff] %v7846_v0 }
  0x6b   : > { %257 = vst [vmem:[#allocation2 + $0xa0] sm:$0xff] %v7846_v0 }
  0x6c   : > { %258 = vst [vmem:[#allocation2 + $0x1a0] sm:$0xff] %v7846_v0 }
  0x6d   : > { %259 = vst [vmem:[#allocation2 + $0x260] sm:$0xff] %v7846_v0 }
  0x6e   : > { %260 = vst [vmem:[#allocation2 + $0xe0] sm:$0xff] %v7846_v0 }
  0x6f   : > { %261 = vst [vmem:[#allocation2 + $0x3a0] sm:$0xff] %v7846_v0 }
  0x70   : > { %262 = vst [vmem:[#allocation2 + $0x538] sm:$0xff] %v7846_v0 }
  0x71   : > { %263 = vst [vmem:[#allocation2 + $0x3c0] sm:$0xff] %v7846_v0 }
  0x72   : > { %264 = vst [vmem:[#allocation2 + $0x5f8] sm:$0xff] %v7846_v0 }
  0x73   : > { %265 = vst [vmem:[#allocation2 + $0x4a0] sm:$0xff] %v7846_v0 }
  0x74   : > { %266 = vst [vmem:[#allocation2 + $0x4e8] sm:$0xff] %v7846_v0 }
  0x75   : > { %267 = vst [vmem:[#allocation2 + $0x3d8] sm:$0xff] %v7846_v0 }
  0x76   : > { %268 = vst [vmem:[#allocation2 + $0x680] sm:$0xff] %v7846_v0 }
  0x77   : > { %269 = vst [vmem:[#allocation2 + $0x3d0] sm:$0xff] %v7846_v0 }
  0x78   : > { %270 = vst [vmem:[#allocation2 + $0x80] sm:$0xff] %v7846_v0 }
  0x79   : > { %271 = vst [vmem:[#allocation2 + $0x6a0] sm:$0xff] %v7846_v0 }
  0x7a   : > { %272 = vst [vmem:[#allocation2 + $0x90] sm:$0xff] %v7846_v0 }
  0x7b   : > { %273 = vst [vmem:[#allocation2 + $0x5c0] sm:$0xff] %v7846_v0 }
  0x7c   : > { %274 = vst [vmem:[#allocation2 + $0x5d0] sm:$0xff] %v7846_v0 }
  0x7d   : > { %275 = vst [vmem:[#allocation2 + $0x4f0] sm:$0xff] %v7846_v0 }
  0x7e   : > { %276 = vst [vmem:[#allocation2 + $0x610] sm:$0xff] %v7846_v0 }
  0x7f   : > { %277 = vst [vmem:[#allocation2 + $0x220] sm:$0xff] %v7846_v0 }
  0x80   : > { %278 = vst [vmem:[#allocation2 + $0x58] sm:$0xff] %v7846_v0 }
  0x81   : > { %279 = vst [vmem:[#allocation2 + $0x3f0] sm:$0xff] %v7846_v0 }
  0x82   : > { %280 = vst [vmem:[#allocation2 + $0x5e8] sm:$0xff] %v7846_v0 }
  0x83   : > { %281 = vst [vmem:[#allocation2 + $0xb0] sm:$0xff] %v7846_v0 }
  0x84   : > { %282 = vst [vmem:[#allocation2 + $0x368] sm:$0xff] %v7846_v0 }
  0x85   : > { %283 = vst [vmem:[#allocation2 + $0x4b0] sm:$0xff] %v7846_v0 }
  0x86   : > { %284 = vst [vmem:[#allocation2 + $0x2d8] sm:$0xff] %v7846_v0 }
  0x87   : > { %285 = vst [vmem:[#allocation2 + $0x410] sm:$0xff] %v7846_v0 }
  0x88   : > { %286 = vst [vmem:[#allocation2 + $0x408] sm:$0xff] %v7846_v0 }
  0x89   : > { %287 = vst [vmem:[#allocation2 + $0x4e0] sm:$0xff] %v7846_v0 }
  0x8a   : > { %288 = vst [vmem:[#allocation2 + $0x358] sm:$0xff] %v7846_v0 }
  0x8b   : > { %289 = vst [vmem:[#allocation2 + $0x68] sm:$0xff] %v7846_v0 }
  0x8c   : > { %290 = vst [vmem:[#allocation2 + $0x188] sm:$0xff] %v7846_v0 }
  0x8d   : > { %291 = vst [vmem:[#allocation2 + $0x640] sm:$0xff] %v7846_v0 }
  0x8e   : > { %292 = vst [vmem:[#allocation2 + $0x528] sm:$0xff] %v7846_v0 }
  0x8f   : > { %293 = vst [vmem:[#allocation2 + $0x5d8] sm:$0xff] %v7846_v0 }
  0x90   : > { %294 = vst [vmem:[#allocation2 + $0x650] sm:$0xff] %v7846_v0 }
  0x91   : > { %295 = vst [vmem:[#allocation2 + $0x340] sm:$0xff] %v7846_v0 }
  0x92   : > { %296 = vst [vmem:[#allocation2 + $0x6b0] sm:$0xff] %v7846_v0 }
  0x93   : > { %297 = vst [vmem:[#allocation2 + $0x2b8] sm:$0xff] %v7846_v0 }
  0x94   : > { %298 = vst [vmem:[#allocation2 + $0x5b0] sm:$0xff] %v7846_v0 }
  0x95   : > { %299 = vst [vmem:[#allocation2 + $0x6f0] sm:$0xff] %v7846_v0 }
  0x96   : > { %300 = vst [vmem:[#allocation2 + $0x550] sm:$0xff] %v7846_v0 }
  0x97   : > { %301 = vst [vmem:[#allocation2 + $0x688] sm:$0xff] %v7846_v0 }
  0x98   : > { %302 = vst [vmem:[#allocation2 + $0xb8] sm:$0xff] %v7846_v0 }
  0x99   : > { %303 = vst [vmem:[#allocation2 + $0x128] sm:$0xff] %v7846_v0 }
  0x9a   : > { %304 = vst [vmem:[#allocation2 + $0x648] sm:$0xff] %v7846_v0 }
  0x9b   : > { %305 = vst [vmem:[#allocation2 + $0x190] sm:$0xff] %v7846_v0 }
  0x9c   : > { %306 = vst [vmem:[#allocation2 + $0x88] sm:$0xff] %v7846_v0 }
  0x9d   : > { %307 = vst [vmem:[#allocation2 + $0x148] sm:$0xff] %v7846_v0 }
  0x9e   : > { %308 = vst [vmem:[#allocation2 + $0x630] sm:$0xff] %v7846_v0 }
  0x9f   : > { %309 = vst [vmem:[#allocation2 + $0x130] sm:$0xff] %v7846_v0 }
  0xa0   : > { %310 = vst [vmem:[#allocation2 + $0x1e8] sm:$0xff] %v7846_v0 }
  0xa1   : > { %311 = vst [vmem:[#allocation2 + $0x1f8] sm:$0xff] %v7846_v0 }
  0xa2   : > { %312 = vst [vmem:[#allocation2 + $0x338] sm:$0xff] %v7846_v0 }
  0xa3   : > { %313 = vst [vmem:[#allocation2 + $0x228] sm:$0xff] %v7846_v0 }
  0xa4   : > { %314 = vst [vmem:[#allocation2 + $0x428] sm:$0xff] %v7846_v0 }
  0xa5   : > { %315 = vst [vmem:[#allocation2 + $0x270] sm:$0xff] %v7846_v0 }
  0xa6   : > { %316 = vst [vmem:[#allocation2 + $0x350] sm:$0xff] %v7846_v0 }
  0xa7   : > { %317 = vst [vmem:[#allocation2 + $0xf8] sm:$0xff] %v7846_v0 }
  0xa8   : > { %318 = vst [vmem:[#allocation2 + $0x20] sm:$0xff] %v7846_v0 }
  0xa9   : > { %319 = vst [vmem:[#allocation2 + $0x208] sm:$0xff] %v7846_v0 }
  0xaa   : > { %320 = vst [vmem:[#allocation2 + $0xd0] sm:$0xff] %v7846_v0 }
  0xab   : > { %321 = vst [vmem:[#allocation2 + $0x1b8] sm:$0xff] %v7846_v0 }
  0xac   : > { %322 = vst [vmem:[#allocation2 + $0x1e0] sm:$0xff] %v7846_v0 }
  0xad   : > { %323 = vst [vmem:[#allocation2 + $0x180] sm:$0xff] %v7846_v0 }
  0xae   : > { %324 = vst [vmem:[#allocation2 + $0x438] sm:$0xff] %v7846_v0 }
  0xaf   : > { %325 = vst [vmem:[#allocation2 + $0x6f8] sm:$0xff] %v7846_v0 }
  0xb0   : > { %326 = vst [vmem:[#allocation2 + $0x158] sm:$0xff] %v7846_v0 }
  0xb1   : > { %327 = vst [vmem:[#allocation2 + $0x5a0] sm:$0xff] %v7846_v0 }
  0xb2   : > { %328 = vst [vmem:[#allocation2 + $0x230] sm:$0xff] %v7846_v0 }
  0xb3   : > { %329 = vst [vmem:[#allocation2 + $0x418] sm:$0xff] %v7846_v0 }
  0xb4   : > { %330 = vst [vmem:[#allocation2 + $0x250] sm:$0xff] %v7846_v0 }
  0xb5   : > { %331 = vst [vmem:[#allocation2 + $0x568] sm:$0xff] %v7846_v0 }
  0xb6   : > { %332 = vst [vmem:[#allocation2 + $0x3b8] sm:$0xff] %v7846_v0 }
  0xb7   : > { %333 = vst [vmem:[#allocation2 + $0x268] sm:$0xff] %v7846_v0 }
  0xb8   : > { %334 = vst [vmem:[#allocation2 + $0x660] sm:$0xff] %v7846_v0 }
  0xb9   : > { %335 = vst [vmem:[#allocation2 + $0x28] sm:$0xff] %v7846_v0 }
  0xba   : > { %336 = vst [vmem:[#allocation2 + $0x5f0] sm:$0xff] %v7846_v0 }
  0xbb   : > { %337 = vst [vmem:[#allocation2 + $0x4f8] sm:$0xff] %v7846_v0 }
  0xbc   : > { %338 = vst [vmem:[#allocation2 + $0x288] sm:$0xff] %v7846_v0 }
  0xbd   : > { %339 = vst [vmem:[#allocation2 + $0x1b0] sm:$0xff] %v7846_v0 }
  0xbe   : > { %340 = vst [vmem:[#allocation2 + $0x420] sm:$0xff] %v7846_v0 }
  0xbf   : > { %341 = vst [vmem:[#allocation2 + $0x178] sm:$0xff] %v7846_v0 }
  0xc0   : > { %342 = vst [vmem:[#allocation2 + $0x390] sm:$0xff] %v7846_v0 }
  0xc1   : > { %343 = vst [vmem:[#allocation2 + $0x488] sm:$0xff] %v7846_v0 }
  0xc2   : > { %344 = vst [vmem:[#allocation2 + $0x678] sm:$0xff] %v7846_v0 }
  0xc3   : > { %345 = vst [vmem:[#allocation2 + $0x200] sm:$0xff] %v7846_v0 }
  0xc4   : > { %346 = vst [vmem:[#allocation2 + $0x5a8] sm:$0xff] %v7846_v0 }
  0xc5   : > { %347 = vst [vmem:[#allocation2 + $0x478] sm:$0xff] %v7846_v0 }
  0xc6   : > { %348 = vst [vmem:[#allocation2 + $0x388] sm:$0xff] %v7846_v0 }
  0xc7   : > { %349 = vst [vmem:[#allocation2 + $0x3f8] sm:$0xff] %v7846_v0 }
  0xc8   : > { %350 = vst [vmem:[#allocation2 + $0x370] sm:$0xff] %v7846_v0 }
  0xc9   : > { %351 = vst [vmem:[#allocation2 + $0x308] sm:$0xff] %v7846_v0 }
  0xca   : > { %352 = vst [vmem:[#allocation2 + $0x310] sm:$0xff] %v7846_v0 }
  0xcb   : > { %353 = vst [vmem:[#allocation2 + $0x4c0] sm:$0xff] %v7846_v0 }
  0xcc   : > { %354 = vst [vmem:[#allocation2 + $0x2a0] sm:$0xff] %v7846_v0 }
  0xcd   : > { %355 = vst [vmem:[#allocation2 + $0xe8] sm:$0xff] %v7846_v0 }
  0xce   : > { %356 = vst [vmem:[#allocation2 + $0x100] sm:$0xff] %v7846_v0 }
  0xcf   : > { %357 = vst [vmem:[#allocation2 + $0x380] sm:$0xff] %v7846_v0 }
  0xd0   : > { %358 = vst [vmem:[#allocation2 + $0x2e8] sm:$0xff] %v7846_v0 }
  0xd1   : > { %359 = vst [vmem:[#allocation2 + $0x6b8] sm:$0xff] %v7846_v0 }
  0xd2   : > { %360 = vst [vmem:[#allocation2 + $0x120] sm:$0xff] %v7846_v0 }
  0xd3   : > { %361 = vst [vmem:[#allocation2 + $0x8] sm:$0xff] %v7846_v0 }
  0xd4   : > { %362 = vst [vmem:[#allocation2 + $0x4b8] sm:$0xff] %v7846_v0 }
  0xd5   : > { %363 = vst [vmem:[#allocation2 + $0x298] sm:$0xff] %v7846_v0 }
  0xd6   : > { %364 = vst [vmem:[#allocation2 + $0x448] sm:$0xff] %v7846_v0 }
  0xd7   : > { %365 = vst [vmem:[#allocation2 + $0x560] sm:$0xff] %v7846_v0 }
  0xd8   : > { %366 = vst [vmem:[#allocation2 + $0x6c8] sm:$0xff] %v7846_v0 }
  0xd9   : > { %367 = vst [vmem:[#allocation2 + $0x50] sm:$0xff] %v7846_v0 }
  0xda   : > { %368 = vst [vmem:[#allocation2 + $0x6a8] sm:$0xff] %v7846_v0 }
  0xdb   : > { %369 = vst [vmem:[#allocation2 + $0x4c8] sm:$0xff] %v7846_v0 }
  0xdc   : > { %370 = vst [vmem:[#allocation2 + $0x360] sm:$0xff] %v7846_v0 }
  0xdd   : > { %371 = vst [vmem:[#allocation2 + $0xa8] sm:$0xff] %v7846_v0 }
  0xde   : > { %372 = vst [vmem:[#allocation2 + $0x690] sm:$0xff] %v7846_v0 }
  0xdf   : > { %373 = vst [vmem:[#allocation2 + $0x658] sm:$0xff] %v7846_v0 }
  0xe0   : > { %374 = vst [vmem:[#allocation2 + $0x238] sm:$0xff] %v7846_v0 }
  0xe1   : > { %375 = vst [vmem:[#allocation2 + $0x620] sm:$0xff] %v7846_v0 }
  0xe2   : > { %376 = vst [vmem:[#allocation2 + $0x110] sm:$0xff] %v7846_v0 }
  0xe3   : > { %377 = vst [vmem:[#allocation2 + $0x520] sm:$0xff] %v7846_v0 }
  0xe4   : > { %378 = vst [vmem:[#allocation2 + $0x278] sm:$0xff] %v7846_v0 }
  0xe5   : > { %379 = vst [vmem:[#allocation2] sm:$0xff] %v7846_v0 }
  0xe6   : > { %380 = vst [vmem:[#allocation2 + $0x2f0] sm:$0xff] %v7846_v0 }
  0xe7   : > { %381 = vst [vmem:[#allocation2 + $0x5c8] sm:$0xff] %v7846_v0 }
  0xe8   : > { %382 = vst [vmem:[#allocation2 + $0x498] sm:$0xff] %v7846_v0 }
  0xe9   : > { %383 = vst [vmem:[#allocation2 + $0x48] sm:$0xff] %v7846_v0 }
  0xea   : > { %384 = vst [vmem:[#allocation2 + $0x570] sm:$0xff] %v7846_v0 }
  0xeb   : > { %385 = vst [vmem:[#allocation2 + $0x1d8] sm:$0xff] %v7846_v0 }
  0xec   : > { %386 = vst [vmem:[#allocation2 + $0x5e0] sm:$0xff] %v7846_v0 }
  0xed   : > { %387 = vst [vmem:[#allocation2 + $0x6e0] sm:$0xff] %v7846_v0 }
  0xee   : > { %388 = vst [vmem:[#allocation2 + $0x78] sm:$0xff] %v7846_v0 }
  0xef   : > { %389 = vst [vmem:[#allocation2 + $0x580] sm:$0xff] %v7846_v0 }
  0xf0   : > { %390 = vst [vmem:[#allocation2 + $0x668] sm:$0xff] %v7846_v0 }
  0xf1   : > { %391 = vst [vmem:[#allocation2 + $0xf0] sm:$0xff] %v7846_v0 }
  0xf2   : > { %392 = vst [vmem:[#allocation2 + $0x150] sm:$0xff] %v7846_v0 }
  0xf3   : > { %393 = vst [vmem:[#allocation2 + $0x170] sm:$0xff] %v7846_v0 }
  0xf4   : > { %394 = vst [vmem:[#allocation2 + $0x1a8] sm:$0xff] %v7846_v0 }
  0xf5   : > { %395 = vst [vmem:[#allocation2 + $0xd8] sm:$0xff] %v7846_v0 }
  0xf6   : > { %396 = vst [vmem:[#allocation2 + $0x280] sm:$0xff] %v7846_v0 }
  0xf7   : > { %397 = vst [vmem:[#allocation2 + $0x430] sm:$0xff] %v7846_v0 }
  0xf8   : > { %398 = vst [vmem:[#allocation2 + $0x398] sm:$0xff] %v7846_v0 }
  0xf9   : > { %399 = vst [vmem:[#allocation2 + $0x240] sm:$0xff] %v7846_v0 }
  0xfa   : > { %400 = vst [vmem:[#allocation2 + $0x540] sm:$0xff] %v7846_v0 }
  0xfb   : > { %401 = vst [vmem:[#allocation2 + $0x698] sm:$0xff] %v7846_v0 }
  0xfc   : > { %402 = vst [vmem:[#allocation2 + $0x458] sm:$0xff] %v7846_v0 }
  0xfd   : > { %403 = vst [vmem:[#allocation2 + $0x590] sm:$0xff] %v7846_v0 }
  0xfe   : > { %404 = vst [vmem:[#allocation2 + $0x30] sm:$0xff] %v7846_v0 }
  0xff   : > { %405 = vst [vmem:[#allocation2 + $0x608] sm:$0xff] %v7846_v0 }
 0x100   : > { %406 = vst [vmem:[#allocation2 + $0x10] sm:$0xff] %v7846_v0 }
 0x101   : > { %407 = vst [vmem:[#allocation2 + $0x4a8] sm:$0xff] %v7846_v0 }
 0x102   : > { %408 = vst [vmem:[#allocation2 + $0x160] sm:$0xff] %v7846_v0 }
 0x103   : > { %409 = vst [vmem:[#allocation2 + $0x300] sm:$0xff] %v7846_v0 }
 0x104   : > { %410 = vst [vmem:[#allocation2 + $0x290] sm:$0xff] %v7846_v0 }
 0x105   : > { %411 = vst [vmem:[#allocation2 + $0x98] sm:$0xff] %v7846_v0 }
 0x106   : > { %412 = vst [vmem:[#allocation2 + $0x518] sm:$0xff] %v7846_v0 }
 0x107   : > { %413 = vst [vmem:[#allocation2 + $0x1c0] sm:$0xff] %v7846_v0 }
 0x108   : > { %414 = vst [vmem:[#allocation2 + $0x468] sm:$0xff] %v7846_v0 }
 0x109   : > { %415 = vst [vmem:[#allocation2 + $0x40] sm:$0xff] %v7846_v0 }
 0x10a   : > { %416 = vst [vmem:[#allocation2 + $0x248] sm:$0xff] %v7846_v0 }
 0x10b   : > { %417 = vst [vmem:[#allocation2 + $0x400] sm:$0xff] %v7846_v0 }
 0x10c   : > { %418 = vst [vmem:[#allocation2 + $0x2f8] sm:$0xff] %v7846_v0 }
 0x10d   : > { %419 = vst [vmem:[#allocation2 + $0x3e8] sm:$0xff] %v7846_v0 }
 0x10e   : > { %420 = vst [vmem:[#allocation2 + $0x168] sm:$0xff] %v7846_v0 }
 0x10f   : > { %421 = vst [vmem:[#allocation2 + $0x530] sm:$0xff] %v7846_v0 }
 0x110   : > { %422 = vst [vmem:[#allocation2 + $0x38] sm:$0xff] %v7846_v0 }
 0x111   : > { %423 = vst [vmem:[#allocation2 + $0x1d0] sm:$0xff] %v7846_v0 }
 0x112   : > { %424 = vst [vmem:[#allocation2 + $0x638] sm:$0xff] %v7846_v0 }
 0x113   : > { %425 = vst [vmem:[#allocation2 + $0x578] sm:$0xff] %v7846_v0 }
 0x114   : > { %426 = vst [vmem:[#allocation2 + $0x140] sm:$0xff] %v7846_v0 }
 0x115   : > { %427 = vst [vmem:[#allocation2 + $0x3a8] sm:$0xff] %v7846_v0 }
 0x116   : > { %428 = vst [vmem:[#allocation2 + $0x508] sm:$0xff] %v7846_v0 }
 0x117   : > { %429 = vst [vmem:[#allocation2 + $0x480] sm:$0xff] %v7846_v0 }
 0x118   : > { %430 = vst [vmem:[#allocation2 + $0x2c8] sm:$0xff] %v7846_v0 }
 0x119   : > { %431 = vst [vmem:[#allocation2 + $0x218] sm:$0xff] %v7846_v0 }
 0x11a   : > { %432 = vst [vmem:[#allocation2 + $0xc0] sm:$0xff] %v7846_v0 }
 0x11b   : > { %433 = vst [vmem:[#allocation2 + $0x138] sm:$0xff] %v7846_v0 }
 0x11c   : > { %434 = vst [vmem:[#allocation2 + $0x70] sm:$0xff] %v7846_v0 }
 0x11d   : > { %435 = vst [vmem:[#allocation2 + $0x6c0] sm:$0xff] %v7846_v0 }
 0x11e   : > { %436 = vst [vmem:[#allocation2 + $0xc8] sm:$0xff] %v7846_v0 }
 0x11f   : > { %437 = vst [vmem:[#allocation2 + $0x1c8] sm:$0xff] %v7846_v0 }
 0x120   : > { %438 = vst [vmem:[#allocation2 + $0x4d0] sm:$0xff] %v7846_v0 }
 0x121   : > { %439 = vst [vmem:[#allocation2 + $0x2a8] sm:$0xff] %v7846_v0 }
 0x122   : > { %440 = vst [vmem:[#allocation2 + $0x470] sm:$0xff] %v7846_v0 }
 0x123   : > { %441 = vst [vmem:[#allocation2 + $0x2d0] sm:$0xff] %v7846_v0 }
 0x124   : > { %442 = vst [vmem:[#allocation2 + $0x330] sm:$0xff] %v7846_v0 }
 0x125   : > { %443 = vst [vmem:[#allocation2 + $0x5b8] sm:$0xff] %v7846_v0 }
 0x126   : > { %444 = vst [vmem:[#allocation2 + $0x198] sm:$0xff] %v7846_v0 }
 0x127   : > { %445 = vst [vmem:[#allocation2 + $0x258] sm:$0xff] %v7846_v0 }
 0x128   : > { %446 = vst [vmem:[#allocation2 + $0x558] sm:$0xff] %v7846_v0 }
 0x129   : > { %447 = vst [vmem:[#allocation2 + $0x600] sm:$0xff] %v7846_v0 }
 0x12a   : > { %448 = vst [vmem:[#allocation2 + $0x618] sm:$0xff] %v7846_v0 }
 0x12b   : > { %449 = vst [vmem:[#allocation2 + $0x628] sm:$0xff] %v7846_v0 }
 0x12c   : > { %450 = vst [vmem:[#allocation2 + $0x2e0] sm:$0xff] %v7846_v0 }
 0x12d   : > { %451 = vst [vmem:[#allocation2 + $0x210] sm:$0xff] %v7846_v0 }
 0x12e   : > { %452 = vst [vmem:[#allocation2 + $0x3e0] sm:$0xff] %v7846_v0 }
 0x12f   : > { %453 = vst [vmem:[#allocation2 + $0x6e8] sm:$0xff] %v7846_v0 }
 0x130   : > { %454 = vst [vmem:[#allocation2 + $0x1f0] sm:$0xff] %v7846_v0 }
 0x131   : > { %455 = vst [vmem:[#allocation2 + $0x460] sm:$0xff] %v7846_v0 }
 0x132 PF: > { %v6492_v1 = vld [vmem:[%s8037_s21 + $0x188] sm:$0xf]  ;;  %v7312_v2 = vld [vmem:[%s8037_s21 + $0x1a0] sm:$0xf0]  ;;  %v6464_v12 = vld [vmem:[%s8037_s21 + $0x150] sm:$0xf] }
 0x133   : > { %v6716_v3 = vld [vmem:[%s8037_s21 + $0x348] sm:$0xf]  ;;  %v6493_v4 = vor.u32 %v7312_v2, %v6492_v1  ;;  %v7368_v5 = vld [vmem:[%s8037_s21 + $0x360] sm:$0xf0]  ;;  %v7305_v14 = vld [vmem:[%s8037_s21 + $0x168] sm:$0xf0] }
 0x134   : > { %v6940_v6 = vld [vmem:[%s8037_s21 + $0x508] sm:$0xf]  ;;  %v7424_v7 = vld [vmem:[%s8037_s21 + $0x520] sm:$0xf0]  ;;  %v6717_v8 = vor.u32 %v7368_v5, %v6716_v3  ;;  %v6688_v15 = vld [vmem:[%s8037_s21 + $0x310] sm:$0xf]  ;;  %v6465_v17 = vor.u32 %v7305_v14, %v6464_v12 }
 0x135   : > { %v6941_v9 = vor.u32 %v7424_v7, %v6940_v6  ;;  %v7164_v10 = vld [vmem:[%s8037_s21 + $0x6c8] sm:$0xf]  ;;  %v7480_v11 = vld [vmem:[%s8037_s21 + $0x6e0] sm:$0xf0]  ;;  %2472 = vmatpush.bf16.msra.mxu0 %v6493_v4  ;;  %v7361_v16 = vld [vmem:[%s8037_s21 + $0x328] sm:$0xf0] }
 0x136   : > { %v7165_v13 = vor.u32 %v7480_v11, %v7164_v10  ;;  %2561 = vmatpush.bf16.msra.mxu1 %v6717_v8  ;;  %v6689_v18 = vor.u32 %v7361_v16, %v6688_v15  ;;  %v6912_v19 = vld [vmem:[%s8037_s21 + $0x4d0] sm:$0xf]  ;;  %v7417_v20 = vld [vmem:[%s8037_s21 + $0x4e8] sm:$0xf0]  ;;  %v6436_v24 = vld [vmem:[%s8037_s21 + $0x118] sm:$0xf] }
 0x137   : > { %2650 = vmatpush.bf16.msra.mxu2 %v6941_v9  ;;  %v7136_v21 = vld [vmem:[%s8037_s21 + $0x690] sm:$0xf]  ;;  %v6913_v22 = vor.u32 %v7417_v20, %v6912_v19  ;;  %v7473_v23 = vld [vmem:[%s8037_s21 + $0x6a8] sm:$0xf0]  ;;  %v7298_v25 = vld [vmem:[%s8037_s21 + $0x130] sm:$0xf0] }
 0x138   : > { %2739 = vmatpush.bf16.msra.mxu3 %v7165_v13  ;;  %v7137_v26 = vor.u32 %v7473_v23, %v7136_v21  ;;  %v6660_v27 = vld [vmem:[%s8037_s21 + $0x2d8] sm:$0xf]  ;;  %v7354_v28 = vld [vmem:[%s8037_s21 + $0x2f0] sm:$0xf0]  ;;  %v6437_v30 = vor.u32 %v7298_v25, %v6436_v24  ;;  %v6408_v36 = vld [vmem:[%s8037_s21 + $0xe0] sm:$0xf] }
 0x139   : > { %v6884_v29 = vld [vmem:[%s8037_s21 + $0x498] sm:$0xf]  ;;  %2473 = vmatpush.bf16.msra.mxu0 %v6465_v17  ;;  %v7410_v31 = vld [vmem:[%s8037_s21 + $0x4b0] sm:$0xf0]  ;;  %v6661_v34 = vor.u32 %v7354_v28, %v6660_v27  ;;  %v7291_v37 = vld [vmem:[%s8037_s21 + $0xf8] sm:$0xf0] }
 0x13a   : > { %v7108_v32 = vld [vmem:[%s8037_s21 + $0x658] sm:$0xf]  ;;  %v7466_v33 = vld [vmem:[%s8037_s21 + $0x670] sm:$0xf0]  ;;  %2562 = vmatpush.bf16.msra.mxu1 %v6689_v18  ;;  %v6885_v35 = vor.u32 %v7410_v31, %v6884_v29  ;;  %v6632_v38 = vld [vmem:[%s8037_s21 + $0x2a0] sm:$0xf]  ;;  %v6409_v45 = vor.u32 %v7291_v37, %v6408_v36 }
 0x13b   : > { %2651 = vmatpush.bf16.msra.mxu2 %v6913_v22  ;;  %v7109_v39 = vor.u32 %v7466_v33, %v7108_v32  ;;  %v7347_v40 = vld [vmem:[%s8037_s21 + $0x2b8] sm:$0xf0]  ;;  %v6856_v41 = vld [vmem:[%s8037_s21 + $0x460] sm:$0xf]  ;;  %v6380_v48 = vld [vmem:[%s8037_s21 + $0xa8] sm:$0xf] }
 0x13c   : > { %2740 = vmatpush.bf16.msra.mxu3 %v7137_v26  ;;  %v7403_v42 = vld [vmem:[%s8037_s21 + $0x478] sm:$0xf0]  ;;  %v7080_v43 = vld [vmem:[%s8037_s21 + $0x620] sm:$0xf]  ;;  %v6633_v46 = vor.u32 %v7347_v40, %v6632_v38  ;;  %v7284_v49 = vld [vmem:[%s8037_s21 + $0xc0] sm:$0xf0] }
 0x13d   : > { %v7459_v44 = vld [vmem:[%s8037_s21 + $0x638] sm:$0xf0]  ;;  %2474 = vmatpush.bf16.msra.mxu0 %v6437_v30  ;;  %v6857_v47 = vor.u32 %v7403_v42, %v6856_v41  ;;  %v6604_v50 = vld [vmem:[%s8037_s21 + $0x268] sm:$0xf]  ;;  %v7340_v52 = vld [vmem:[%s8037_s21 + $0x280] sm:$0xf0]  ;;  %v6381_v57 = vor.u32 %v7284_v49, %v6380_v48 }
 0x13e   : > { %2563 = vmatpush.bf16.msra.mxu1 %v6661_v34  ;;  %v7081_v51 = vor.u32 %v7459_v44, %v7080_v43  ;;  %v6828_v53 = vld [vmem:[%s8037_s21 + $0x428] sm:$0xf]  ;;  %v7396_v54 = vld [vmem:[%s8037_s21 + $0x440] sm:$0xf0]  ;;  %v6605_v58 = vor.u32 %v7340_v52, %v6604_v50  ;;  %v6352_v60 = vld [vmem:[%s8037_s21 + $0x70] sm:$0xf] }
 0x13f   : > { %2652 = vmatpush.bf16.msra.mxu2 %v6885_v35  ;;  %v7052_v55 = vld [vmem:[%s8037_s21 + $0x5e8] sm:$0xf]  ;;  %v7452_v56 = vld [vmem:[%s8037_s21 + $0x600] sm:$0xf0]  ;;  %v6829_v59 = vor.u32 %v7396_v54, %v6828_v53  ;;  %v7277_v61 = vld [vmem:[%s8037_s21 + $0x88] sm:$0xf0] }
 0x140   : > { %2741 = vmatpush.bf16.msra.mxu3 %v7109_v39  ;;  %v6576_v62 = vld [vmem:[%s8037_s21 + $0x230] sm:$0xf]  ;;  %v7053_v63 = vor.u32 %v7452_v56, %v7052_v55  ;;  %v7333_v0 = vld [vmem:[%s8037_s21 + $0x248] sm:$0xf0]  ;;  %v6353_v5 = vor.u32 %v7277_v61, %v6352_v60  ;;  %v6324_v8 = vld [vmem:[%s8037_s21 + $0x38] sm:$0xf] }
 0x141   : > { %2475 = vmatpush.bf16.msra.mxu0 %v6409_v45  ;;  %v6800_v1 = vld [vmem:[%s8037_s21 + $0x3f0] sm:$0xf]  ;;  %v7389_v2 = vld [vmem:[%s8037_s21 + $0x408] sm:$0xf0]  ;;  %v6577_v6 = vor.u32 %v7333_v0, %v6576_v62  ;;  %v7270_v9 = vld [vmem:[%s8037_s21 + $0x50] sm:$0xf0] }
 0x142   : > { %2564 = vmatpush.bf16.msra.mxu1 %v6633_v46  ;;  %v7024_v3 = vld [vmem:[%s8037_s21 + $0x5b0] sm:$0xf]  ;;  %v7445_v4 = vld [vmem:[%s8037_s21 + $0x5c8] sm:$0xf0]  ;;  %v6801_v7 = vor.u32 %v7389_v2, %v6800_v1  ;;  %v6548_v10 = vld [vmem:[%s8037_s21 + $0x1f8] sm:$0xf]  ;;  %v6325_v18 = vor.u32 %v7270_v9, %v6324_v8 }
 0x143   : > { %2653 = vmatpush.bf16.msra.mxu2 %v6857_v47  ;;  %v7025_v11 = vor.u32 %v7445_v4, %v7024_v3  ;;  %v7326_v12 = vld [vmem:[%s8037_s21 + $0x210] sm:$0xf0]  ;;  %v6772_v13 = vld [vmem:[%s8037_s21 + $0x3b8] sm:$0xf]  ;;  %v6296_v17 = vld [vmem:[%s8037_s21] sm:$0xf] }
 0x144   : > { %2742 = vmatpush.bf16.msra.mxu3 %v7081_v51  ;;  %v7382_v14 = vld [vmem:[%s8037_s21 + $0x3d0] sm:$0xf0]  ;;  %v6996_v15 = vld [vmem:[%s8037_s21 + $0x578] sm:$0xf]  ;;  %v7263_v19 = vld [vmem:[%s8037_s21 + $0x18] sm:$0xf0]  ;;  %v6549_v22 = vor.u32 %v7326_v12, %v6548_v10 }
 0x145   : > { %2476 = vmatpush.bf16.msra.mxu0 %v6381_v57  ;;  %v7438_v16 = vld [vmem:[%s8037_s21 + $0x590] sm:$0xf0]  ;;  %v6520_v20 = vld [vmem:[%s8037_s21 + $0x1c0] sm:$0xf]  ;;  %v7319_v21 = vld [vmem:[%s8037_s21 + $0x1d8] sm:$0xf0]  ;;  %v6773_v23 = vor.u32 %v7382_v14, %v6772_v13  ;;  %v6297_v34 = vor.u32 %v7263_v19, %v6296_v17 }
 0x146   : > { %2565 = vmatpush.bf16.msra.mxu1 %v6605_v58  ;;  %v6744_v24 = vld [vmem:[%s8037_s21 + $0x380] sm:$0xf]  ;;  %v7375_v25 = vld [vmem:[%s8037_s21 + $0x398] sm:$0xf0]  ;;  %v6997_v27 = vor.u32 %v7438_v16, %v6996_v15  ;;  %v7198_v30 = vld [vmem:[%s8030_s2 + $0xc] sm:$0xf0]  ;;  %v6521_v38 = vor.u32 %v7319_v21, %v6520_v20 }
 0x147   : > { %2654 = vmatpush.bf16.msra.mxu2 %v6829_v59  ;;  %v6968_v26 = vld [vmem:[%s8037_s21 + $0x540] sm:$0xf]  ;;  %v7431_v28 = vld [vmem:[%s8037_s21 + $0x558] sm:$0xf0]  ;;  %v7196_v31 = vld [vmem:[%s8030_s2 + $0x4] sm:$0xf]  ;;  %v6745_v39 = vor.u32 %v7375_v25, %v6744_v24 }
 0x148   : > { %2743 = vmatpush.bf16.msra.mxu3 %v7053_v63  ;;  %v6040_v29 = vld [vmem:[%s8030_s2] sm:$0xf]  ;;  %v7421_v32 = vld [vmem:[%s8037_s21 + $0x50c] sm:$0xf]  ;;  %v6942_v33 = vld [vmem:[%s8037_s21 + $0x524] sm:$0xf0]  ;;  %v6969_v43 = vor.u32 %v7431_v28, %v6968_v26 }
 0x149   : > { %2477 = vmatpush.bf16.msra.mxu0 %v6353_v5  ;;  %v6042_v35 = vld [vmem:[%s8030_s2 + $0x10] sm:$0xf0]  ;;  %v7477_v36 = vld [vmem:[%s8037_s21 + $0x6cc] sm:$0xf]  ;;  %v7166_v37 = vld [vmem:[%s8037_s21 + $0x6e4] sm:$0xf0]  ;;  %v6945_v45 = vor.u32 %v7421_v32, %v6942_v33  ;;  %v8351_v48 = vor.u32 %v7198_v30, %v6040_v29 }
 0x14a   : > { %2566 = vmatpush.bf16.msra.mxu1 %v6577_v6  ;;  %v6048_v40 = vld [vmem:[%s8030_s2 + $0x8] sm:$0xf]  ;;  %v7199_v41 = vld [vmem:[%s8030_s2 + $0x14] sm:$0xf0]  ;;  %v7197_v42 = vld [vmem:[%s8030_s2 + $0xc] sm:$0xf]  ;;  %v7169_v49 = vor.u32 %v7477_v36, %v7166_v37  ;;  %v8355_v52 = vor.u32 %v7196_v31, %v6042_v35 }
 0x14b   : > { %2655 = vmatpush.bf16.msra.mxu2 %v6801_v7  ;;  %v6050_v44 = vld [vmem:[%s8030_s2 + $0x18] sm:$0xf0]  ;;  %v7309_v46 = vld [vmem:[%s8037_s21 + $0x18c] sm:$0xf]  ;;  %v6494_v47 = vld [vmem:[%s8037_s21 + $0x1a4] sm:$0xf0]  ;;  %v8357_v53 = vor.u32 %v7199_v41, %v6048_v40 }
 0x14c   : > { %2744 = vmatpush.bf16.msra.mxu3 %v7025_v11  ;;  %v7365_v50 = vld [vmem:[%s8037_s21 + $0x34c] sm:$0xf]  ;;  %v6718_v51 = vld [vmem:[%s8037_s21 + $0x364] sm:$0xf0]  ;;  %v8359_v54 = vor.u32 %v7197_v42, %v6050_v44  ;;  %v6497_v55 = vor.u32 %v7309_v46, %v6494_v47  ;;  %v7414_v57 = vld [vmem:[%s8037_s21 + $0x4d4] sm:$0xf] }
 0x14d   : > { %2478 = vmatpush.bf16.msra.mxu0 %v6325_v18  ;;  %v6721_v56 = vor.u32 %v7365_v50, %v6718_v51  ;;  %v6914_v58 = vld [vmem:[%s8037_s21 + $0x4ec] sm:$0xf0]  ;;  %v7470_v59 = vld [vmem:[%s8037_s21 + $0x694] sm:$0xf]  ;;  %v6056_v5 = vld [vmem:[%s8030_s2 + $0x20] sm:$0xf] }
 0x14e   : > { %2567 = vmatpush.bf16.msra.mxu1 %v6549_v22  ;;  %v6917_v60 = vor.u32 %v7414_v57, %v6914_v58  ;;  %v7138_v61 = vld [vmem:[%s8037_s21 + $0x6ac] sm:$0xf0]  ;;  %v7302_v62 = vld [vmem:[%s8037_s21 + $0x154] sm:$0xf]  ;;  %v7200_v7 = vld [vmem:[%s8030_s2 + $0x24] sm:$0xf] }
 0x14f   : > { %2656 = vmatpush.bf16.msra.mxu2 %v6773_v23  ;;  %v6466_v63 = vld [vmem:[%s8037_s21 + $0x16c] sm:$0xf0]  ;;  %v7141_v0 = vor.u32 %v7470_v59, %v7138_v61  ;;  %v7358_v2 = vld [vmem:[%s8037_s21 + $0x314] sm:$0xf]  ;;  %v6064_v9 = vld [vmem:[%s8030_s2 + $0x28] sm:$0xf] }
 0x150   : > { %2745 = vmatpush.bf16.msra.mxu3 %v6997_v27  ;;  %v6469_v1 = vor.u32 %v7302_v62, %v6466_v63  ;;  %v6690_v3 = vld [vmem:[%s8037_s21 + $0x32c] sm:$0xf0]  ;;  %v6058_v8 = vld [vmem:[%s8030_s2 + $0x30] sm:$0xf0]  ;;  %v7203_v10 = vld [vmem:[%s8030_s2 + $0x34] sm:$0xf0] }
 0x151   : > { %2479 = vmatpush.bf16.msra.mxu0 %v6297_v34  ;;  %v6693_v4 = vor.u32 %v7358_v2, %v6690_v3  ;;  %v7202_v6 = vld [vmem:[%s8030_s2 + $0x2c] sm:$0xf0]  ;;  %v7201_v11 = vld [vmem:[%s8030_s2 + $0x2c] sm:$0xf]  ;;  %v6066_v12 = vld [vmem:[%s8030_s2 + $0x38] sm:$0xf0]  ;;  %v8383_v14 = vor.u32 %v7200_v7, %v6058_v8  ;;  %v8385_v15 = vor.u32 %v7203_v10, %v6064_v9 }
 0x152   : > { %2568 = vmatpush.bf16.msra.mxu1 %v6521_v38  ;;  %v8381_v13 = vor.u32 %v7202_v6, %v6056_v5  ;;  %v8387_v16 = vor.u32 %v7201_v11, %v6066_v12  ;;  %v6072_v17 = vld [vmem:[%s8030_s2 + $0x40] sm:$0xf]  ;;  %v7206_v18 = vld [vmem:[%s8030_s2 + $0x4c] sm:$0xf0]  ;;  %v7204_v19 = vld [vmem:[%s8030_s2 + $0x44] sm:$0xf] }
 0x153   : > { %2657 = vmatpush.bf16.msra.mxu2 %v6745_v39  ;;  %v6074_v20 = vld [vmem:[%s8030_s2 + $0x50] sm:$0xf0]  ;;  %v6080_v21 = vld [vmem:[%s8030_s2 + $0x48] sm:$0xf]  ;;  %v7207_v22 = vld [vmem:[%s8030_s2 + $0x54] sm:$0xf0]  ;;  %v8401_v25 = vor.u32 %v7206_v18, %v6072_v17 }
 0x154   : > { %2746 = vmatpush.bf16.msra.mxu3 %v6969_v43  ;;  %2480 = vmatmul.bf16.vlgmr.msra.gmra.mxu0 %v8351_v48  ;;  %v7205_v23 = vld [vmem:[%s8030_s2 + $0x4c] sm:$0xf]  ;;  %v6082_v24 = vld [vmem:[%s8030_s2 + $0x58] sm:$0xf0]  ;;  %v8403_v26 = vor.u32 %v7204_v19, %v6074_v20  ;;  %v8405_v27 = vor.u32 %v7207_v22, %v6080_v21  ;;  %v6886_v30 = vld [vmem:[%s8037_s21 + $0x4b4] sm:$0xf0] }
 0x155   : > { %2569 = vmatmul.bf16.vlgmr.msra.gmra.mxu1 %v8355_v52  ;;  %2828 = vmatpush.bf16.msrb.mxu0 %v6497_v55  ;;  %v8407_v28 = vor.u32 %v7205_v23, %v6082_v24  ;;  %v7407_v29 = vld [vmem:[%s8037_s21 + $0x49c] sm:$0xf]  ;;  %v7110_v33 = vld [vmem:[%s8037_s21 + $0x674] sm:$0xf0]  ;;  %v6088_v41 = vld [vmem:[%s8030_s2 + $0x60] sm:$0xf] }
 0x156   : > { %2658 = vmatmul.bf16.vlgmr.msra.gmra.mxu2 %v8357_v53  ;;  %2917 = vmatpush.bf16.msrb.mxu1 %v6721_v56  ;;  %v7463_v31 = vld [vmem:[%s8037_s21 + $0x65c] sm:$0xf]  ;;  %v6889_v32 = vor.u32 %v7407_v29, %v6886_v30  ;;  %v6438_v35 = vld [vmem:[%s8037_s21 + $0x134] sm:$0xf0]  ;;  %v7210_v42 = vld [vmem:[%s8030_s2 + $0x6c] sm:$0xf0] }
 0x157   : > { %3006 = vmatpush.bf16.msrb.mxu2 %v6945_v45  ;;  %2747 = vmatmul.bf16.vlgmr.msra.gmra.mxu3 %v8359_v54  ;;  %v7295_v34 = vld [vmem:[%s8037_s21 + $0x11c] sm:$0xf]  ;;  %v7113_v36 = vor.u32 %v7463_v31, %v7110_v33  ;;  %v6662_v39 = vld [vmem:[%s8037_s21 + $0x2f4] sm:$0xf0]  ;;  %v7208_v43 = vld [vmem:[%s8030_s2 + $0x64] sm:$0xf]  ;;  %v8429_v50 = vor.u32 %v7210_v42, %v6088_v41 }
 0x158   : > { %3095 = vmatpush.bf16.msrb.mxu3 %v7169_v49  ;;  %v6441_v37 = vor.u32 %v7295_v34, %v6438_v35  ;;  %v7351_v38 = vld [vmem:[%s8037_s21 + $0x2dc] sm:$0xf]  ;;  %v6090_v44 = vld [vmem:[%s8030_s2 + $0x70] sm:$0xf0]  ;;  %v6096_v45 = vld [vmem:[%s8030_s2 + $0x68] sm:$0xf] }
 0x159   : > { %2829 = vmatpush.bf16.msrb.mxu0 %v6469_v1  ;;  %v6665_v40 = vor.u32 %v7351_v38, %v6662_v39  ;;  %v7211_v46 = vld [vmem:[%s8030_s2 + $0x74] sm:$0xf0]  ;;  %v7209_v47 = vld [vmem:[%s8030_s2 + $0x6c] sm:$0xf]  ;;  %v6098_v49 = vld [vmem:[%s8030_s2 + $0x78] sm:$0xf0]  ;;  %v8431_v51 = vor.u32 %v7208_v43, %v6090_v44 }
 0x15a   : > { %2918 = vmatpush.bf16.msrb.mxu1 %v6693_v4  ;;  %v8433_v55 = vor.u32 %v7211_v46, %v6096_v45  ;;  %v8435_v56 = vor.u32 %v7209_v47, %v6098_v49  ;;  %v6104_v57 = vld [vmem:[%s8030_s2 + $0x80] sm:$0xf]  ;;  %v7214_v58 = vld [vmem:[%s8030_s2 + $0x8c] sm:$0xf0]  ;;  %v7212_v59 = vld [vmem:[%s8030_s2 + $0x84] sm:$0xf] }
 0x15b   : > { %3007 = vmatpush.bf16.msrb.mxu2 %v6917_v60  ;;  %v6106_v60 = vld [vmem:[%s8030_s2 + $0x90] sm:$0xf0]  ;;  %v6112_v61 = vld [vmem:[%s8030_s2 + $0x88] sm:$0xf]  ;;  %v7215_v62 = vld [vmem:[%s8030_s2 + $0x94] sm:$0xf0]  ;;  %v8449_v1 = vor.u32 %v7214_v58, %v6104_v57 }
 0x15c   : > { %3096 = vmatpush.bf16.msrb.mxu3 %v7141_v0  ;;  %v7213_v63 = vld [vmem:[%s8030_s2 + $0x8c] sm:$0xf]  ;;  %v6114_v0 = vld [vmem:[%s8030_s2 + $0x98] sm:$0xf0]  ;;  %v8451_v2 = vor.u32 %v7212_v59, %v6106_v60  ;;  %v8453_v3 = vor.u32 %v7215_v62, %v6112_v61  ;;  %v7400_v5 = vld [vmem:[%s8037_s21 + $0x464] sm:$0xf] }
 0x15d   : > { %2830 = vmatpush.bf16.msrb.mxu0 %v6441_v37  ;;  %v8455_v4 = vor.u32 %v7213_v63, %v6114_v0  ;;  %v6858_v6 = vld [vmem:[%s8037_s21 + $0x47c] sm:$0xf0]  ;;  %v7456_v7 = vld [vmem:[%s8037_s21 + $0x624] sm:$0xf]  ;;  %v7218_v22 = vld [vmem:[%s8030_s2 + $0xac] sm:$0xf0] }
 0x15e   : > { %2919 = vmatpush.bf16.msrb.mxu1 %v6665_v40  ;;  %v6861_v8 = vor.u32 %v7400_v5, %v6858_v6  ;;  %v7082_v9 = vld [vmem:[%s8037_s21 + $0x63c] sm:$0xf0]  ;;  %v7288_v10 = vld [vmem:[%s8037_s21 + $0xe4] sm:$0xf]  ;;  %v6122_v24 = vld [vmem:[%s8030_s2 + $0xb0] sm:$0xf0] }
 0x15f   : > { %3008 = vmatpush.bf16.msrb.mxu2 %v6889_v32  ;;  %v6410_v11 = vld [vmem:[%s8037_s21 + $0xfc] sm:$0xf0]  ;;  %v7085_v12 = vor.u32 %v7456_v7, %v7082_v9  ;;  %v7344_v18 = vld [vmem:[%s8037_s21 + $0x2a4] sm:$0xf]  ;;  %v6128_v29 = vld [vmem:[%s8030_s2 + $0xa8] sm:$0xf] }
 0x160   : > { %3097 = vmatpush.bf16.msrb.mxu3 %v7113_v36  ;;  %v6413_v17 = vor.u32 %v7288_v10, %v6410_v11  ;;  %v6634_v19 = vld [vmem:[%s8037_s21 + $0x2bc] sm:$0xf0]  ;;  %v7216_v23 = vld [vmem:[%s8030_s2 + $0xa4] sm:$0xf]  ;;  %v7219_v30 = vld [vmem:[%s8030_s2 + $0xb4] sm:$0xf0] }
 0x161   : > { %v6637_v20 = vor.u32 %v7344_v18, %v6634_v19  ;;  %v6120_v21 = vld [vmem:[%s8030_s2 + $0xa0] sm:$0xf]  ;;  %v7217_v31 = vld [vmem:[%s8030_s2 + $0xac] sm:$0xf]  ;;  %v6130_v32 = vld [vmem:[%s8030_s2 + $0xb8] sm:$0xf0]  ;;  %v8479_v34 = vor.u32 %v7216_v23, %v6122_v24  ;;  %v8481_v35 = vor.u32 %v7219_v30, %v6128_v29 }
 0x162   : > { %2831 = vmatpush.bf16.msrb.mxu0 %v6413_v17  ;;  %v8477_v33 = vor.u32 %v7218_v22, %v6120_v21  ;;  %v8483_v36 = vor.u32 %v7217_v31, %v6130_v32  ;;  %v6136_v37 = vld [vmem:[%s8030_s2 + $0xc0] sm:$0xf]  ;;  %v7222_v38 = vld [vmem:[%s8030_s2 + $0xcc] sm:$0xf0]  ;;  %v7220_v39 = vld [vmem:[%s8030_s2 + $0xc4] sm:$0xf] }
 0x163   : > { %3009 = vmatpush.bf16.msrb.mxu2 %v6861_v8  ;;  %2920 = vmatpush.bf16.msrb.mxu1 %v6637_v20  ;;  %v6138_v40 = vld [vmem:[%s8030_s2 + $0xd0] sm:$0xf0]  ;;  %v6144_v41 = vld [vmem:[%s8030_s2 + $0xc8] sm:$0xf]  ;;  %v7223_v42 = vld [vmem:[%s8030_s2 + $0xd4] sm:$0xf0]  ;;  %v8497_v45 = vor.u32 %v7222_v38, %v6136_v37 }
 0x164   : > { %2485 = vmatmul.bf16.gmra.mxu0 %v8381_v13  ;;  %3098 = vmatpush.bf16.msrb.mxu3 %v7085_v12  ;;  %v7221_v43 = vld [vmem:[%s8030_s2 + $0xcc] sm:$0xf]  ;;  %v6146_v44 = vld [vmem:[%s8030_s2 + $0xd8] sm:$0xf0]  ;;  %v8499_v46 = vor.u32 %v7220_v39, %v6138_v40  ;;  %v8501_v47 = vor.u32 %v7223_v42, %v6144_v41  ;;  %v6830_v58 = vld [vmem:[%s8037_s21 + $0x444] sm:$0xf0] }
 0x165   : > { %2574 = vmatmul.bf16.gmra.mxu1 %v8383_v14  ;;  %v8503_v49 = vor.u32 %v7221_v43, %v6146_v44  ;;  %v7393_v57 = vld [vmem:[%s8037_s21 + $0x42c] sm:$0xf]  ;;  %v7054_v61 = vld [vmem:[%s8037_s21 + $0x604] sm:$0xf0]  ;;  %v6152_v63 = vld [vmem:[%s8030_s2 + $0xe0] sm:$0xf] }
 0x166   : > { %2663 = vmatmul.bf16.gmra.mxu2 %v8385_v15  ;;  %v7449_v59 = vld [vmem:[%s8037_s21 + $0x5ec] sm:$0xf]  ;;  %v6833_v60 = vor.u32 %v7393_v57, %v6830_v58  ;;  %v7226_v0 = vld [vmem:[%s8030_s2 + $0xec] sm:$0xf0]  ;;  %v7224_v5 = vld [vmem:[%s8030_s2 + $0xe4] sm:$0xf] }
 0x167   : > { %2752 = vmatmul.bf16.gmra.mxu3 %v8387_v16  ;;  %v7057_v62 = vor.u32 %v7449_v59, %v7054_v61  ;;  %v6154_v6 = vld [vmem:[%s8030_s2 + $0xf0] sm:$0xf0]  ;;  %v6160_v7 = vld [vmem:[%s8030_s2 + $0xe8] sm:$0xf]  ;;  %v7227_v8 = vld [vmem:[%s8030_s2 + $0xf4] sm:$0xf0]  ;;  %v8524_v18 = vor.u32 %v7226_v0, %v6152_v63 }
 0x168   : > { %3010 = vmatpush.bf16.msrb.mxu2 %v6833_v60  ;;  %v7225_v9 = vld [vmem:[%s8030_s2 + $0xec] sm:$0xf]  ;;  %v6162_v10 = vld [vmem:[%s8030_s2 + $0xf8] sm:$0xf0]  ;;  %v6382_v12 = vld [vmem:[%s8037_s21 + $0xc4] sm:$0xf0]  ;;  %v8527_v21 = vor.u32 %v7224_v5, %v6154_v6  ;;  %v8529_v22 = vor.u32 %v7227_v8, %v6160_v7 }
 0x169   : > { %3099 = vmatpush.bf16.msrb.mxu3 %v7057_v62  ;;  %v7281_v11 = vld [vmem:[%s8037_s21 + $0xac] sm:$0xf]  ;;  %v6606_v20 = vld [vmem:[%s8037_s21 + $0x284] sm:$0xf0]  ;;  %v8531_v24 = vor.u32 %v7225_v9, %v6162_v10  ;;  %v6168_v29 = vld [vmem:[%s8030_s2 + $0x100] sm:$0xf] }
 0x16a   : > { %v7337_v17 = vld [vmem:[%s8037_s21 + $0x26c] sm:$0xf]  ;;  %v6385_v19 = vor.u32 %v7281_v11, %v6382_v12  ;;  %v7230_v30 = vld [vmem:[%s8030_s2 + $0x10c] sm:$0xf0]  ;;  %v7228_v31 = vld [vmem:[%s8030_s2 + $0x104] sm:$0xf] }
 0x16b   : > { %v6609_v23 = vor.u32 %v7337_v17, %v6606_v20  ;;  %v6170_v32 = vld [vmem:[%s8030_s2 + $0x110] sm:$0xf0]  ;;  %v6176_v37 = vld [vmem:[%s8030_s2 + $0x108] sm:$0xf]  ;;  %v7231_v38 = vld [vmem:[%s8030_s2 + $0x114] sm:$0xf0]  ;;  %v8545_v41 = vor.u32 %v7230_v30, %v6168_v29 }
 0x16c   : > { %2832 = vmatpush.bf16.msrb.mxu0 %v6385_v19  ;;  %v7229_v39 = vld [vmem:[%s8030_s2 + $0x10c] sm:$0xf]  ;;  %v6178_v40 = vld [vmem:[%s8030_s2 + $0x118] sm:$0xf0]  ;;  %v8547_v43 = vor.u32 %v7228_v31, %v6170_v32  ;;  %v8549_v44 = vor.u32 %v7231_v38, %v6176_v37  ;;  %v7386_v60 = vld [vmem:[%s8037_s21 + $0x3f4] sm:$0xf] }
 0x16d   : > { %2921 = vmatpush.bf16.msrb.mxu1 %v6609_v23  ;;  %v8551_v58 = vor.u32 %v7229_v39, %v6178_v40  ;;  %v6802_v61 = vld [vmem:[%s8037_s21 + $0x40c] sm:$0xf0]  ;;  %v7442_v62 = vld [vmem:[%s8037_s21 + $0x5b4] sm:$0xf]  ;;  %v6184_v17 = vld [vmem:[%s8030_s2 + $0x120] sm:$0xf] }
 0x16e   : > { %v6805_v0 = vor.u32 %v7386_v60, %v6802_v61  ;;  %v7026_v5 = vld [vmem:[%s8037_s21 + $0x5cc] sm:$0xf0]  ;;  %v7232_v23 = vld [vmem:[%s8030_s2 + $0x124] sm:$0xf]  ;;  %v6186_v29 = vld [vmem:[%s8030_s2 + $0x130] sm:$0xf0] }
 0x16f   : > { %v7029_v9 = vor.u32 %v7442_v62, %v7026_v5  ;;  %v456_v10 = vld [vmem:[#allocation2 + $0x2b0] sm:$0xff]  ;;  %v6192_v30 = vld [vmem:[%s8030_s2 + $0x128] sm:$0xf]  ;;  %v7235_v31 = vld [vmem:[%s8030_s2 + $0x134] sm:$0xf0]  ;;  %v8575_v5 = vor.u32 %v7232_v23, %v6186_v29  ;;  %p7190_p1 = scmp.ne.s32.totalorder %s7823_s18, 2 }
 0x170   : > { %3011 = vmatpush.bf16.msrb.mxu2 %v6805_v0  ;;  %v7234_v19 = vld [vmem:[%s8030_s2 + $0x12c] sm:$0xf0]  ;;  %v7233_v32 = vld [vmem:[%s8030_s2 + $0x12c] sm:$0xf]  ;;  %v6194_v37 = vld [vmem:[%s8030_s2 + $0x138] sm:$0xf0] }
 0x171   : > { %3100 = vmatpush.bf16.msrb.mxu3 %v7029_v9  ;;  %v7274_v39 = vld [vmem:[%s8037_s21 + $0x74] sm:$0xf]  ;;  %v6354_v40 = vld [vmem:[%s8037_s21 + $0x8c] sm:$0xf0]  ;;  %9698 = vst [vmem:[#allocation20_spill] sm:$0xff] %v8575_v5  ;;  %v463_v9 = vld [vmem:[#allocation2 + $0x378] sm:$0xff] }
 0x172   : > { %v7330_v60 = vld [vmem:[%s8037_s21 + $0x234] sm:$0xf]  ;;  %v6578_v61 = vld [vmem:[%s8037_s21 + $0x24c] sm:$0xf0] }
 0x174   : > { %2490 = vmatmul.bf16.gmra.mxu0 %v8401_v25 }
 0x175   : > { %2579 = vmatmul.bf16.gmra.mxu1 %v8403_v26 }
 0x176   : > { %2668 = vmatmul.bf16.gmra.mxu2 %v8405_v27 }
 0x177   : > { %2757 = vmatmul.bf16.gmra.mxu3 %v8407_v28 }
 0x184   : > { %2495 = vmatmul.bf16.gmra.mxu0 %v8429_v50 }
 0x185   : > { %2584 = vmatmul.bf16.gmra.mxu1 %v8431_v51 }
 0x186   : > { %2673 = vmatmul.bf16.gmra.mxu2 %v8433_v55 }
 0x187   : > { %2762 = vmatmul.bf16.gmra.mxu3 %v8435_v56 }
 0x194   : > { %2500 = vmatmul.bf16.gmra.mxu0 %v8449_v1 }
 0x195   : > { %2589 = vmatmul.bf16.gmra.mxu1 %v8451_v2 }
 0x196   : > { %2678 = vmatmul.bf16.gmra.mxu2 %v8453_v3 }
 0x197   : > { %2767 = vmatmul.bf16.gmra.mxu3 %v8455_v4 }
 0x1a4   : > { %2505 = vmatmul.bf16.gmra.mxu0 %v8477_v33 }
 0x1a5   : > { %2594 = vmatmul.bf16.gmra.mxu1 %v8479_v34 }
 0x1a6   : > { %2683 = vmatmul.bf16.gmra.mxu2 %v8481_v35 }
 0x1a7   : > { %2772 = vmatmul.bf16.gmra.mxu3 %v8483_v36 }
 0x1b4   : > { %2510 = vmatmul.bf16.gmra.mxu0 %v8497_v45 }
 0x1b5   : > { %2599 = vmatmul.bf16.gmra.mxu1 %v8499_v46 }
 0x1b6   : > { %2688 = vmatmul.bf16.gmra.mxu2 %v8501_v47 }
 0x1b7   : > { %2777 = vmatmul.bf16.gmra.mxu3 %v8503_v49 }
 0x1c4   : > { %2515 = vmatmul.bf16.gmra.mxu0 %v8524_v18 }
 0x1c5   : > { %2604 = vmatmul.bf16.gmra.mxu1 %v8527_v21 }
 0x1c6   : > { %2693 = vmatmul.bf16.gmra.mxu2 %v8529_v22 }
 0x1c7   : > { %2782 = vmatmul.bf16.gmra.mxu3 %v8531_v24 }
 0x1d1   : > { %v2481_v42 = vpop.f32.mrf.mxu0 }
 0x1d2   : > { %v2570_v57 = vpop.f32.mrf.mxu1 }
 0x1d3   : > { %v2571_v59 = vadd.f32 %v2570_v57, %v2481_v42  ;;  %v8571_v57 = vor.u32 %v7234_v19, %v6184_v17 }
 0x1d4   : > { %2520 = vmatmul.bf16.gmra.mxu0 %v8545_v41 }
 0x1d5   : > { %2609 = vmatmul.bf16.gmra.mxu1 %v8547_v43 }
 0x1d6   : > { %2698 = vmatmul.bf16.gmra.mxu2 %v8549_v44 }
 0x1d7   : > { %2787 = vmatmul.bf16.gmra.mxu3 %v8551_v58 }
 0x1d9   : > { %v2659_v63 = vpop.f32.mrf.mxu2  ;;  %v2483_v8 = vpop.f32.mrf.mxu0 }
 0x1da   : > { %v2660_v6 = vadd.f32 %v2659_v63, %v2571_v59  ;;  %v2748_v7 = vpop.f32.mrf.mxu3  ;;  %v2572_v11 = vpop.f32.mrf.mxu1  ;;  %v6357_v59 = vor.u32 %v7274_v39, %v6354_v40  ;;  %v7238_v39 = vld [vmem:[%s8030_s2 + $0x14c] sm:$0xf0]  ;;  %v7236_v40 = vld [vmem:[%s8030_s2 + $0x144] sm:$0xf] }
 0x1db   : > { %v2573_v38 = vadd.f32 %v2572_v11, %v2483_v8 }
 0x1dc   : > { %v2749_v12 = vadd.f32 %v2748_v7, %v2660_v6  ;;  %v8577_v6 = vor.u32 %v7235_v31, %v6192_v30  ;;  %v6581_v7 = vor.u32 %v7330_v60, %v6578_v61  ;;  %2833 = vmatpush.bf16.msrb.mxu0 %v6357_v59  ;;  %v470_v30 = vld [vmem:[#allocation2 + $0x6d0] sm:$0xff]  ;;  %v6208_v59 = vld [vmem:[%s8030_s2 + $0x148] sm:$0xf]  ;;  %v7239_v60 = vld [vmem:[%s8030_s2 + $0x154] sm:$0xf0] }
 0x1de   : > { %v4964_v20 = vadd.f32 %v2749_v12, %v456_v10  ;;  %9699 = vst [vmem:[#allocation21_spill] sm:$0xff] %v8577_v6  ;;  %v8579_v12 = vor.u32 %v7233_v32, %v6194_v37  ;;  %2922 = vmatpush.bf16.msrb.mxu1 %v6581_v7 }
 0x1e0   : > { %5188 = vst [vmem:[#allocation2 + $0x2b0] sm:$0xff] %v4964_v20 }
 0x1e1   : > { %v2661_v42 = vpop.f32.mrf.mxu2  ;;  %v2486_v0 = vpop.f32.mrf.mxu0  ;;  %9700 = vst [vmem:[#allocation22_spill] sm:$0xff] %v8579_v12 }
 0x1e2   : > { %v2662_v62 = vadd.f32 %v2661_v42, %v2573_v38  ;;  %v2750_v63 = vpop.f32.mrf.mxu3  ;;  %v2575_v10 = vpop.f32.mrf.mxu1  ;;  %v6200_v38 = vld [vmem:[%s8030_s2 + $0x140] sm:$0xf]  ;;  %v6202_v42 = vld [vmem:[%s8030_s2 + $0x150] sm:$0xf0] }
 0x1e3   : > { %v2576_v17 = vadd.f32 %v2575_v10, %v2486_v0  ;;  %v8593_v7 = vor.u32 %v7238_v39, %v6200_v38 }
 0x1e4   : > { %v2751_v8 = vadd.f32 %v2750_v63, %v2662_v62  ;;  %2525 = vmatmul.bf16.gmra.mxu0 %v8571_v57  ;;  %v7237_v62 = vld [vmem:[%s8030_s2 + $0x14c] sm:$0xf]  ;;  %v6210_v63 = vld [vmem:[%s8030_s2 + $0x158] sm:$0xf0] }
 0x1e5   : > { %2614 = vmatmul.bf16.gmra.mxu1 %v8575_v5  ;;  %9701 = vst [vmem:[#allocation23_spill] sm:$0xff] %v8593_v7 }
 0x1e6   : > { %v4971_v11 = vadd.f32 %v2751_v8, %v463_v9  ;;  %2703 = vmatmul.bf16.gmra.mxu2 %v8577_v6  ;;  %v491_v6 = vld [vmem:[#allocation2 + $0x3d8] sm:$0xff] }
 0x1e7   : > { %2792 = vmatmul.bf16.gmra.mxu3 %v8579_v12 }
 0x1e8   : > { %5195 = vst [vmem:[#allocation2 + $0x378] sm:$0xff] %v4971_v11  ;;  %v8595_v11 = vor.u32 %v7236_v40, %v6202_v42  ;;  %v7435_v40 = vld [vmem:[%s8037_s21 + $0x57c] sm:$0xf]  ;;  %v6998_v42 = vld [vmem:[%s8037_s21 + $0x594] sm:$0xf0] }
 0x1e9   : > { %v2664_v19 = vpop.f32.mrf.mxu2  ;;  %v2488_v29 = vpop.f32.mrf.mxu0 }
 0x1ea   : > { %v2665_v20 = vadd.f32 %v2664_v19, %v2576_v17  ;;  %v2753_v23 = vpop.f32.mrf.mxu3  ;;  %v2577_v31 = vpop.f32.mrf.mxu1  ;;  %9702 = vst [vmem:[#allocation24_spill] sm:$0xff] %v8595_v11  ;;  %v8597_v17 = vor.u32 %v7239_v60, %v6208_v59  ;;  %v477_v19 = vld [vmem:[#allocation2 + $0x6d8] sm:$0xff] }
 0x1eb   : > { %v2578_v61 = vadd.f32 %v2577_v31, %v2488_v29 }
 0x1ec   : > { %v2754_v32 = vadd.f32 %v2753_v23, %v2665_v20  ;;  %9703 = vst [vmem:[#allocation25_spill] sm:$0xff] %v8597_v17  ;;  %v8599_v23 = vor.u32 %v7237_v62, %v6210_v63  ;;  %v7001_v62 = vor.u32 %v7435_v40, %v6998_v42  ;;  %v484_v63 = vld [vmem:[#allocation2 + $0xe0] sm:$0xff]  ;;  %v7267_v40 = vld [vmem:[%s8037_s21 + $0x3c] sm:$0xf]  ;;  %v6326_v42 = vld [vmem:[%s8037_s21 + $0x54] sm:$0xf0] }
 0x1ee   : > { %v4978_v37 = vadd.f32 %v2754_v32, %v470_v30  ;;  %9704 = vst [vmem:[#allocation26_spill] sm:$0xff] %v8599_v23  ;;  %v7379_v32 = vld [vmem:[%s8037_s21 + $0x3bc] sm:$0xf]  ;;  %3101 = vmatpush.bf16.msrb.mxu3 %v7001_v62 }
 0x1f0   : > { %5202 = vst [vmem:[#allocation2 + $0x6d0] sm:$0xff] %v4978_v37  ;;  %v6774_v37 = vld [vmem:[%s8037_s21 + $0x3d4] sm:$0xf0] }
 0x1f1   : > { %v2666_v0 = vpop.f32.mrf.mxu2  ;;  %v2491_v8 = vpop.f32.mrf.mxu0  ;;  %v6777_v39 = vor.u32 %v7379_v32, %v6774_v37  ;;  %v7241_v32 = vld [vmem:[%s8030_s2 + $0x16c] sm:$0xf]  ;;  %v6226_v37 = vld [vmem:[%s8030_s2 + $0x178] sm:$0xf0] }
 0x1f2   : > { %v2667_v9 = vadd.f32 %v2666_v0, %v2578_v61  ;;  %v2755_v10 = vpop.f32.mrf.mxu3  ;;  %v2580_v20 = vpop.f32.mrf.mxu1 }
 0x1f3   : > { %v2581_v31 = vadd.f32 %v2580_v20, %v2491_v8  ;;  %3012 = vmatpush.bf16.msrb.mxu2 %v6777_v39  ;;  %v7242_v8 = vld [vmem:[%s8030_s2 + $0x16c] sm:$0xf0]  ;;  %v7240_v20 = vld [vmem:[%s8030_s2 + $0x164] sm:$0xf]  ;;  %v6329_v39 = vor.u32 %v7267_v40, %v6326_v42  ;;  %v7245_v42 = vld [vmem:[%s8030_s2 + $0x18c] sm:$0xf] }
 0x1f4   : > { %v2756_v29 = vadd.f32 %v2755_v10, %v2667_v9  ;;  %2530 = vmatmul.bf16.gmra.mxu0 %v8593_v7  ;;  %v6216_v10 = vld [vmem:[%s8030_s2 + $0x160] sm:$0xf] }
 0x1f5   : > { %2619 = vmatmul.bf16.gmra.mxu1 %v8595_v11  ;;  %2834 = vmatpush.bf16.msrb.mxu0 %v6329_v39  ;;  %v6242_v39 = vld [vmem:[%s8030_s2 + $0x198] sm:$0xf0] }
 0x1f6   : > { %v4985_v30 = vadd.f32 %v2756_v29, %v477_v19  ;;  %2708 = vmatmul.bf16.gmra.mxu2 %v8597_v17  ;;  %v6218_v29 = vld [vmem:[%s8030_s2 + $0x170] sm:$0xf0]  ;;  %v8619_v17 = vor.u32 %v7242_v8, %v6216_v10 }
 0x1f7   : > { %2797 = vmatmul.bf16.gmra.mxu3 %v8599_v23 }
 0x1f8   : > { %5209 = vst [vmem:[#allocation2 + $0x6d8] sm:$0xff] %v4985_v30  ;;  %v6224_v30 = vld [vmem:[%s8030_s2 + $0x168] sm:$0xf] }
 0x1f9   : > { %v2669_v38 = vpop.f32.mrf.mxu2  ;;  %v2493_v61 = vpop.f32.mrf.mxu0  ;;  %9705 = vst [vmem:[#allocation27_spill] sm:$0xff] %v8619_v17 }
 0x1fa   : > { %v2670_v59 = vadd.f32 %v2669_v38, %v2581_v31  ;;  %v2758_v60 = vpop.f32.mrf.mxu3  ;;  %v2582_v0 = vpop.f32.mrf.mxu1  ;;  %v7243_v31 = vld [vmem:[%s8030_s2 + $0x174] sm:$0xf0] }
 0x1fb   : > { %v2583_v38 = vadd.f32 %v2582_v0, %v2493_v61 }
 0x1fc   : > { %v2759_v9 = vadd.f32 %v2758_v60, %v2670_v59  ;;  %v7323_v59 = vld [vmem:[%s8037_s21 + $0x1fc] sm:$0xf]  ;;  %v6550_v60 = vld [vmem:[%s8037_s21 + $0x214] sm:$0xf0] }
 0x1fd   : > { %v6553_v12 = vor.u32 %v7323_v59, %v6550_v60 }
 0x1fe   : > { %v4992_v19 = vadd.f32 %v2759_v9, %v484_v63  ;;  %v8623_v63 = vor.u32 %v7240_v20, %v6218_v29  ;;  %v8625_v9 = vor.u32 %v7243_v31, %v6224_v30  ;;  %v498_v20 = vld [vmem:[#allocation2 + $0x5d0] sm:$0xff]  ;;  %v7244_v31 = vld [vmem:[%s8030_s2 + $0x184] sm:$0xf] }
 0x1ff   : > { %2923 = vmatpush.bf16.msrb.mxu1 %v6553_v12  ;;  %v7246_v30 = vld [vmem:[%s8030_s2 + $0x18c] sm:$0xf0] }
 0x200   : > { %5216 = vst [vmem:[#allocation2 + $0xe0] sm:$0xff] %v4992_v19  ;;  %v8627_v19 = vor.u32 %v7241_v32, %v6226_v37  ;;  %v6234_v32 = vld [vmem:[%s8030_s2 + $0x190] sm:$0xf0]  ;;  %v6240_v37 = vld [vmem:[%s8030_s2 + $0x188] sm:$0xf] }
 0x201   : > { %v2671_v23 = vpop.f32.mrf.mxu2  ;;  %v2496_v7 = vpop.f32.mrf.mxu0  ;;  %9706 = vst [vmem:[#allocation28_spill] sm:$0xff] %v8623_v63 }
 0x202   : > { %v2672_v62 = vadd.f32 %v2671_v23, %v2583_v38  ;;  %v2760_v11 = vpop.f32.mrf.mxu3  ;;  %9707 = vst [vmem:[#allocation29_spill] sm:$0xff] %v8625_v9  ;;  %v2585_v5 = vpop.f32.mrf.mxu1  ;;  %v7247_v38 = vld [vmem:[%s8030_s2 + $0x194] sm:$0xf0] }
 0x203   : > { %9708 = vst [vmem:[#allocation30_spill] sm:$0xff] %v8627_v19  ;;  %v2586_v23 = vadd.f32 %v2585_v5, %v2496_v7  ;;  %v6232_v7 = vld [vmem:[%s8030_s2 + $0x180] sm:$0xf] }
 0x204   : > { %v2761_v61 = vadd.f32 %v2760_v11, %v2672_v62  ;;  %2535 = vmatmul.bf16.gmra.mxu0 %v8619_v17  ;;  %v8641_v60 = vor.u32 %v7246_v30, %v6232_v7  ;;  %v6746_v7 = vld [vmem:[%s8037_s21 + $0x39c] sm:$0xf0] }
 0x205   : > { %2624 = vmatmul.bf16.gmra.mxu1 %v8623_v63  ;;  %v519_v63 = vld [vmem:[#allocation2 + $0x340] sm:$0xff] }
 0x206   : > { %v4999_v0 = vadd.f32 %v2761_v61, %v491_v6  ;;  %2713 = vmatmul.bf16.gmra.mxu2 %v8625_v9  ;;  %9709 = vst [vmem:[#allocation31_spill] sm:$0xff] %v8641_v60 }
 0x207   : > { %2802 = vmatmul.bf16.gmra.mxu3 %v8627_v19 }
 0x208   : > { %5223 = vst [vmem:[#allocation2 + $0x3d8] sm:$0xff] %v4999_v0 }
 0x209   : > { %v2674_v10 = vpop.f32.mrf.mxu2  ;;  %v2498_v8 = vpop.f32.mrf.mxu0 }
 0x20a   : > { %v2675_v12 = vadd.f32 %v2674_v10, %v2586_v23  ;;  %v2763_v11 = vpop.f32.mrf.mxu3  ;;  %v2587_v6 = vpop.f32.mrf.mxu1  ;;  %v8643_v23 = vor.u32 %v7244_v31, %v6234_v32  ;;  %v8645_v10 = vor.u32 %v7247_v38, %v6240_v37  ;;  %v7428_v32 = vld [vmem:[%s8037_s21 + $0x544] sm:$0xf]  ;;  %v6970_v37 = vld [vmem:[%s8037_s21 + $0x55c] sm:$0xf0] }
 0x20b   : > { %v2588_v40 = vadd.f32 %v2587_v6, %v2498_v8 }
 0x20c   : > { %v2764_v29 = vadd.f32 %v2763_v11, %v2675_v12  ;;  %9710 = vst [vmem:[#allocation32_spill] sm:$0xff] %v8643_v23  ;;  %v505_v12 = vld [vmem:[#allocation2 + $0xb0] sm:$0xff] }
 0x20d   : > { %9711 = vst [vmem:[#allocation33_spill] sm:$0xff] %v8645_v10 }
 0x20e   : > { %v5006_v5 = vadd.f32 %v2764_v29, %v498_v20  ;;  %v8647_v20 = vor.u32 %v7245_v42, %v6242_v39  ;;  %v6973_v39 = vor.u32 %v7428_v32, %v6970_v37  ;;  %v7260_v37 = vld [vmem:[%s8037_s21 + $0x4] sm:$0xf] }
 0x210   : > { %5230 = vst [vmem:[#allocation2 + $0x5d0] sm:$0xff] %v5006_v5  ;;  %v7372_v5 = vld [vmem:[%s8037_s21 + $0x384] sm:$0xf]  ;;  %3102 = vmatpush.bf16.msrb.mxu3 %v6973_v39 }
 0x211   : > { %v2676_v59 = vpop.f32.mrf.mxu2  ;;  %v2501_v0 = vpop.f32.mrf.mxu0  ;;  %9712 = vst [vmem:[#allocation34_spill] sm:$0xff] %v8647_v20  ;;  %v6749_v31 = vor.u32 %v7372_v5, %v6746_v7  ;;  %v7251_v5 = vld [vmem:[%s8030_s2 + $0x1b4] sm:$0xf0]  ;;  %v7249_v7 = vld [vmem:[%s8030_s2 + $0x1ac] sm:$0xf] }
 0x212   : > { %v2677_v62 = vadd.f32 %v2676_v59, %v2588_v40  ;;  %v2765_v61 = vpop.f32.mrf.mxu3  ;;  %v2590_v11 = vpop.f32.mrf.mxu1  ;;  %v512_v59 = vld [vmem:[#allocation2 + $0x358] sm:$0xff] }
 0x213   : > { %v2591_v29 = vadd.f32 %v2590_v11, %v2501_v0  ;;  %3013 = vmatpush.bf16.msrb.mxu2 %v6749_v31  ;;  %v6248_v0 = vld [vmem:[%s8030_s2 + $0x1a0] sm:$0xf] }
 0x214   : > { %v2766_v8 = vadd.f32 %v2765_v61, %v2677_v62  ;;  %2540 = vmatmul.bf16.gmra.mxu0 %v8641_v60 }
 0x215   : > { %2629 = vmatmul.bf16.gmra.mxu1 %v8643_v23 }
 0x216   : > { %v5013_v6 = vadd.f32 %v2766_v8, %v505_v12  ;;  %2718 = vmatmul.bf16.gmra.mxu2 %v8645_v10  ;;  %v7250_v12 = vld [vmem:[%s8030_s2 + $0x1ac] sm:$0xf0]  ;;  %v7248_v8 = vld [vmem:[%s8030_s2 + $0x1a4] sm:$0xf] }
 0x217   : > { %2807 = vmatmul.bf16.gmra.mxu3 %v8647_v20  ;;  %v6298_v20 = vld [vmem:[%s8037_s21 + $0x1c] sm:$0xf0]  ;;  %v8667_v23 = vor.u32 %v7250_v12, %v6248_v0  ;;  %v526_v12 = vld [vmem:[#allocation2 + $0xb8] sm:$0xff] }
 0x218   : > { %5237 = vst [vmem:[#allocation2 + $0xb0] sm:$0xff] %v5013_v6  ;;  %v6250_v6 = vld [vmem:[%s8030_s2 + $0x1b0] sm:$0xf0]  ;;  %v6301_v31 = vor.u32 %v7260_v37, %v6298_v20  ;;  %v7253_v37 = vld [vmem:[%s8030_s2 + $0x1cc] sm:$0xf] }
 0x219   : > { %v2679_v30 = vpop.f32.mrf.mxu2  ;;  %v2503_v42 = vpop.f32.mrf.mxu0  ;;  %9713 = vst [vmem:[#allocation35_spill] sm:$0xff] %v8667_v23 }
 0x21a   : > { %v2680_v38 = vadd.f32 %v2679_v30, %v2591_v29  ;;  %v2768_v40 = vpop.f32.mrf.mxu3  ;;  %v2592_v62 = vpop.f32.mrf.mxu1  ;;  %v6256_v29 = vld [vmem:[%s8030_s2 + $0x1a8] sm:$0xf]  ;;  %v6258_v30 = vld [vmem:[%s8030_s2 + $0x1b8] sm:$0xf0]  ;;  %2835 = vmatpush.bf16.msrb.mxu0 %v6301_v31 }
 0x21b   : > { %v2593_v32 = vadd.f32 %v2592_v62, %v2503_v42  ;;  %v6274_v31 = vld [vmem:[%s8030_s2 + $0x1d8] sm:$0xf0] }
 0x21c   : > { %v2769_v61 = vadd.f32 %v2768_v40, %v2680_v38  ;;  %v7316_v38 = vld [vmem:[%s8037_s21 + $0x1c4] sm:$0xf]  ;;  %v6522_v40 = vld [vmem:[%s8037_s21 + $0x1dc] sm:$0xf0] }
 0x21d   : > { %v6525_v9 = vor.u32 %v7316_v38, %v6522_v40 }
 0x21e   : > { %v5020_v11 = vadd.f32 %v2769_v61, %v512_v59  ;;  %v8671_v59 = vor.u32 %v7248_v8, %v6250_v6  ;;  %v8673_v61 = vor.u32 %v7251_v5, %v6256_v29  ;;  %v7254_v6 = vld [vmem:[%s8030_s2 + $0x1cc] sm:$0xf0]  ;;  %v7252_v29 = vld [vmem:[%s8030_s2 + $0x1c4] sm:$0xf]  ;;  %v6266_v5 = vld [vmem:[%s8030_s2 + $0x1d0] sm:$0xf0] }
 0x21f   : > { %2924 = vmatpush.bf16.msrb.mxu1 %v6525_v9 }
 0x220   : > { %5244 = vst [vmem:[#allocation2 + $0x358] sm:$0xff] %v5020_v11  ;;  %v8675_v11 = vor.u32 %v7249_v7, %v6258_v30  ;;  %v6272_v7 = vld [vmem:[%s8030_s2 + $0x1c8] sm:$0xf]  ;;  %v7255_v30 = vld [vmem:[%s8030_s2 + $0x1d4] sm:$0xf0] }
 0x221   : > { %v2681_v10 = vpop.f32.mrf.mxu2  ;;  %v2506_v19 = vpop.f32.mrf.mxu0  ;;  %9714 = vst [vmem:[#allocation36_spill] sm:$0xff] %v8671_v59 }
 0x222   : > { %v2682_v39 = vadd.f32 %v2681_v10, %v2593_v32  ;;  %v2770_v60 = vpop.f32.mrf.mxu3  ;;  %9715 = vst [vmem:[#allocation37_spill] sm:$0xff] %v8673_v61  ;;  %v2595_v17 = vpop.f32.mrf.mxu1 }
 0x223   : > { %9716 = vst [vmem:[#allocation38_spill] sm:$0xff] %v8675_v11  ;;  %v2596_v10 = vadd.f32 %v2595_v17, %v2506_v19  ;;  %v6264_v19 = vld [vmem:[%s8030_s2 + $0x1c0] sm:$0xf] }
 0x224   : > { %v2771_v42 = vadd.f32 %v2770_v60, %v2682_v39  ;;  %2545 = vmatmul.bf16.gmra.mxu0 %v8667_v23  ;;  %v8689_v40 = vor.u32 %v7254_v6, %v6264_v19  ;;  %v7425_v19 = vld [vmem:[%s8037_s21 + $0x528] sm:$0xf0] }
 0x225   : > { %2634 = vmatmul.bf16.gmra.mxu1 %v8671_v59  ;;  %v547_v59 = vld [vmem:[#allocation2 + $0x180] sm:$0xff] }
 0x226   : > { %v5027_v20 = vadd.f32 %v2771_v42, %v519_v63  ;;  %2723 = vmatmul.bf16.gmra.mxu2 %v8673_v61  ;;  %9717 = vst [vmem:[#allocation39_spill] sm:$0xff] %v8689_v40 }
 0x227   : > { %2812 = vmatmul.bf16.gmra.mxu3 %v8675_v11 }
 0x228   : > { %5251 = vst [vmem:[#allocation2 + $0x340] sm:$0xff] %v5027_v20 }
 0x229   : > { %v2684_v62 = vpop.f32.mrf.mxu2  ;;  %v2508_v0 = vpop.f32.mrf.mxu0 }
 0x22a   : > { %v2685_v9 = vadd.f32 %v2684_v62, %v2596_v10  ;;  %v2773_v60 = vpop.f32.mrf.mxu3  ;;  %v2597_v63 = vpop.f32.mrf.mxu1  ;;  %v8691_v10 = vor.u32 %v7252_v29, %v6266_v5  ;;  %v8693_v62 = vor.u32 %v7255_v30, %v6272_v7  ;;  %v7172_v5 = vld [vmem:[%s8037_s21 + $0x6d0] sm:$0xf]  ;;  %v7481_v7 = vld [vmem:[%s8037_s21 + $0x6e8] sm:$0xf0] }
 0x22b   : > { %v2598_v32 = vadd.f32 %v2597_v63, %v2508_v0 }
 0x22c   : > { %v2774_v8 = vadd.f32 %v2773_v60, %v2685_v9  ;;  %9718 = vst [vmem:[#allocation40_spill] sm:$0xff] %v8691_v10  ;;  %v533_v9 = vld [vmem:[#allocation2 + $0x130] sm:$0xff] }
 0x22d   : > { %9719 = vst [vmem:[#allocation41_spill] sm:$0xff] %v8693_v62 }
 0x22e   : > { %v5034_v17 = vadd.f32 %v2774_v8, %v526_v12  ;;  %v8695_v12 = vor.u32 %v7253_v37, %v6274_v31  ;;  %v7173_v31 = vor.u32 %v7481_v7, %v7172_v5  ;;  %v6500_v7 = vld [vmem:[%s8037_s21 + $0x190] sm:$0xf] }
 0x230   : > { %5258 = vst [vmem:[#allocation2 + $0xb8] sm:$0xff] %v5034_v17  ;;  %v6948_v17 = vld [vmem:[%s8037_s21 + $0x510] sm:$0xf]  ;;  %3451 = vmatpush.bf16.msra.mxu3 %v7173_v31 }
 0x231   : > { %v2686_v38 = vpop.f32.mrf.mxu2  ;;  %v2511_v20 = vpop.f32.mrf.mxu0  ;;  %9720 = vst [vmem:[#allocation42_spill] sm:$0xff] %v8695_v12  ;;  %v6949_v29 = vor.u32 %v7425_v19, %v6948_v17  ;;  %v7259_v17 = vld [vmem:[%s8030_s2 + $0x1f4] sm:$0xf0]  ;;  %v7257_v19 = vld [vmem:[%s8030_s2 + $0x1ec] sm:$0xf] }
 0x232   : > { %v2687_v39 = vadd.f32 %v2686_v38, %v2598_v32  ;;  %v2775_v42 = vpop.f32.mrf.mxu3  ;;  %v2600_v60 = vpop.f32.mrf.mxu1  ;;  %v540_v38 = vld [vmem:[#allocation2 + $0x350] sm:$0xff] }
 0x233   : > { %v2601_v8 = vadd.f32 %v2600_v60, %v2511_v20  ;;  %3362 = vmatpush.bf16.msra.mxu2 %v6949_v29  ;;  %v6280_v20 = vld [vmem:[%s8030_s2 + $0x1e0] sm:$0xf] }
 0x234   : > { %v2776_v0 = vadd.f32 %v2775_v42, %v2687_v39  ;;  %2550 = vmatmul.bf16.gmra.mxu0 %v8689_v40 }
 0x235   : > { %2639 = vmatmul.bf16.gmra.mxu1 %v8691_v10 }
 0x236   : > { %v5041_v63 = vadd.f32 %v2776_v0, %v533_v9  ;;  %2728 = vmatmul.bf16.gmra.mxu2 %v8693_v62  ;;  %v7258_v9 = vld [vmem:[%s8030_s2 + $0x1ec] sm:$0xf0]  ;;  %v7256_v0 = vld [vmem:[%s8030_s2 + $0x1e4] sm:$0xf] }
 0x237   : > { %2817 = vmatmul.bf16.gmra.mxu3 %v8695_v12  ;;  %v7313_v12 = vld [vmem:[%s8037_s21 + $0x1a8] sm:$0xf0]  ;;  %v8715_v10 = vor.u32 %v7258_v9, %v6280_v20 }
 0x238   : > { %5265 = vst [vmem:[#allocation2 + $0x130] sm:$0xff] %v5041_v63  ;;  %v6282_v63 = vld [vmem:[%s8030_s2 + $0x1f0] sm:$0xf0]  ;;  %v6501_v29 = vor.u32 %v7313_v12, %v6500_v7 }
 0x239   : > { %v2689_v6 = vpop.f32.mrf.mxu2  ;;  %v2513_v37 = vpop.f32.mrf.mxu0 }
 0x23a   : > { %v2690_v30 = vadd.f32 %v2689_v6, %v2601_v8  ;;  %v2778_v32 = vpop.f32.mrf.mxu3  ;;  %v2602_v39 = vpop.f32.mrf.mxu1  ;;  %v6288_v8 = vld [vmem:[%s8030_s2 + $0x1e8] sm:$0xf]  ;;  %v6290_v6 = vld [vmem:[%s8030_s2 + $0x1f8] sm:$0xf0]  ;;  %3184 = vmatpush.bf16.msra.mxu0 %v6501_v29 }
 0x23b   : > { %v2603_v5 = vadd.f32 %v2602_v39, %v2513_v37 }
 0x23c   : > { %v2779_v42 = vadd.f32 %v2778_v32, %v2690_v30  ;;  %v6724_v30 = vld [vmem:[%s8037_s21 + $0x350] sm:$0xf]  ;;  %v7369_v32 = vld [vmem:[%s8037_s21 + $0x368] sm:$0xf0] }
 0x23d   : > { %v6725_v61 = vor.u32 %v7369_v32, %v6724_v30  ;;  %v6920_v32 = vld [vmem:[%s8037_s21 + $0x4d8] sm:$0xf] }
 0x23e   : > { %v5048_v60 = vadd.f32 %v2779_v42, %v540_v38  ;;  %v8719_v38 = vor.u32 %v7256_v0, %v6282_v63  ;;  %v8721_v42 = vor.u32 %v7259_v17, %v6288_v8  ;;  %v554_v63 = vld [vmem:[#allocation2 + $0x250] sm:$0xff] }
 0x23f   : > { %3273 = vmatpush.bf16.msra.mxu1 %v6725_v61 }
 0x240   : > { %5272 = vst [vmem:[#allocation2 + $0x350] sm:$0xff] %v5048_v60  ;;  %v8723_v60 = vor.u32 %v7257_v19, %v6290_v6  ;;  %v561_v6 = vld [vmem:[#allocation2 + $0x4f8] sm:$0xff] }
 0x241   : > { %v2691_v62 = vpop.f32.mrf.mxu2  ;;  %v2516_v11 = vpop.f32.mrf.mxu0 }
 0x242   : > { %v2692_v31 = vadd.f32 %v2691_v62, %v2603_v5  ;;  %v2780_v40 = vpop.f32.mrf.mxu3  ;;  %v2605_v23 = vpop.f32.mrf.mxu1 }
 0x243   : > { %v2606_v39 = vadd.f32 %v2605_v23, %v2516_v11 }
 0x244   : > { %v2781_v37 = vadd.f32 %v2780_v40, %v2692_v31  ;;  %2555 = vmatmul.bf16.gmra.mxu0 %v8715_v10  ;;  %v7418_v31 = vld [vmem:[%s8037_s21 + $0x4f0] sm:$0xf0] }
 0x245   : > { %2644 = vmatmul.bf16.gmra.mxu1 %v8719_v38 }
 0x246   : > { %v5055_v12 = vadd.f32 %v2781_v37, %v547_v59  ;;  %2733 = vmatmul.bf16.gmra.mxu2 %v8721_v42 }
 0x247   : > { %2822 = vmatmul.bf16.gmra.mxu3 %v8723_v60 }
 0x248   : > { %5279 = vst [vmem:[#allocation2 + $0x180] sm:$0xff] %v5055_v12  ;;  %v6921_v12 = vor.u32 %v7418_v31, %v6920_v32 }
 0x249   : > { %v2694_v62 = vpop.f32.mrf.mxu2  ;;  %v2518_v0 = vpop.f32.mrf.mxu0 }
 0x24a   : > { %v2695_v20 = vadd.f32 %v2694_v62, %v2606_v39  ;;  %v2783_v9 = vpop.f32.mrf.mxu3  ;;  %v2607_v8 = vpop.f32.mrf.mxu1  ;;  %v7144_v39 = vld [vmem:[%s8037_s21 + $0x698] sm:$0xf]  ;;  %v7474_v62 = vld [vmem:[%s8037_s21 + $0x6b0] sm:$0xf0]  ;;  %3363 = vmatpush.bf16.msra.mxu2 %v6921_v12 }
 0x24b   : > { %v2608_v61 = vadd.f32 %v2607_v8, %v2518_v0  ;;  %v568_v8 = vld [vmem:[#allocation2 + $0x678] sm:$0xff] }
 0x24c   : > { %v2784_v17 = vadd.f32 %v2783_v9, %v2695_v20 }
 0x24e   : > { %v5062_v40 = vadd.f32 %v2784_v17, %v554_v63  ;;  %v7145_v63 = vor.u32 %v7474_v62, %v7144_v39 }
 0x250   : > { %5286 = vst [vmem:[#allocation2 + $0x250] sm:$0xff] %v5062_v40  ;;  %3452 = vmatpush.bf16.msra.mxu3 %v7145_v63 }
 0x251   : > { %v2696_v23 = vpop.f32.mrf.mxu2  ;;  %v2521_v19 = vpop.f32.mrf.mxu0 }
 0x252   : > { %v2697_v59 = vadd.f32 %v2696_v23, %v2608_v61  ;;  %v2785_v11 = vpop.f32.mrf.mxu3  ;;  %v2610_v5 = vpop.f32.mrf.mxu1 }
 0x253   : > { %v2611_v30 = vadd.f32 %v2610_v5, %v2521_v19  ;;  %v6696_v5 = vld [vmem:[%s8037_s21 + $0x318] sm:$0xf] }
 0x254   : > { %v2786_v7 = vadd.f32 %v2785_v11, %v2697_v59  ;;  %2836 = vmatmul.bf16.vlgmr.msrb.gmra.mxu0 %v8351_v48  ;;  %v6472_v59 = vld [vmem:[%s8037_s21 + $0x158] sm:$0xf]  ;;  %v7306_v11 = vld [vmem:[%s8037_s21 + $0x170] sm:$0xf0] }
 0x255   : > { %2925 = vmatmul.bf16.vlgmr.msrb.gmra.mxu1 %v8355_v52 }
 0x256   : > { %v5069_v29 = vadd.f32 %v2786_v7, %v561_v6  ;;  %3014 = vmatmul.bf16.vlgmr.msrb.gmra.mxu2 %v8357_v53  ;;  %v6473_v6 = vor.u32 %v7306_v11, %v6472_v59  ;;  %v7362_v7 = vld [vmem:[%s8037_s21 + $0x330] sm:$0xf0] }
 0x257   : > { %3103 = vmatmul.bf16.vlgmr.msrb.gmra.mxu3 %v8359_v54  ;;  %v6697_v31 = vor.u32 %v7362_v7, %v6696_v5  ;;  %v589_v7 = vld [vmem:[#allocation2 + $0x560] sm:$0xff] }
 0x258   : > { %5293 = vst [vmem:[#allocation2 + $0x4f8] sm:$0xff] %v5069_v29  ;;  %3185 = vmatpush.bf16.msra.mxu0 %v6473_v6 }
 0x259   : > { %v2699_v37 = vpop.f32.mrf.mxu2  ;;  %v2523_v0 = vpop.f32.mrf.mxu0  ;;  %3274 = vmatpush.bf16.msra.mxu1 %v6697_v31 }
 0x25a   : > { %v2700_v20 = vadd.f32 %v2699_v37, %v2611_v30  ;;  %v2788_v9 = vpop.f32.mrf.mxu3  ;;  %v2612_v17 = vpop.f32.mrf.mxu1  ;;  %v575_v37 = vld [vmem:[#allocation2 + $0x308] sm:$0xff] }
 0x25b   : > { %v2613_v23 = vadd.f32 %v2612_v17, %v2523_v0  ;;  %v582_v17 = vld [vmem:[#allocation2 + $0x2e8] sm:$0xff] }
 0x25c   : > { %v2789_v40 = vadd.f32 %v2788_v9, %v2700_v20 }
 0x25e   : > { %v5076_v61 = vadd.f32 %v2789_v40, %v568_v8 }
 0x260   : > { %5300 = vst [vmem:[#allocation2 + $0x678] sm:$0xff] %v5076_v61 }
 0x261   : > { %v2701_v19 = vpop.f32.mrf.mxu2  ;;  %v2526_v32 = vpop.f32.mrf.mxu0 }
 0x262   : > { %v2702_v29 = vadd.f32 %v2701_v19, %v2613_v23  ;;  %v2790_v30 = vpop.f32.mrf.mxu3  ;;  %v2615_v39 = vpop.f32.mrf.mxu1 }
 0x263   : > { %v2616_v20 = vadd.f32 %v2615_v39, %v2526_v32  ;;  %v7411_v39 = vld [vmem:[%s8037_s21 + $0x4b8] sm:$0xf0] }
 0x264   : > { %v2791_v62 = vadd.f32 %v2790_v30, %v2702_v29  ;;  %2841 = vmatmul.bf16.gmra.mxu0 %v8381_v13 }
 0x265   : > { %2930 = vmatmul.bf16.gmra.mxu1 %v8383_v14 }
 0x266   : > { %v5083_v12 = vadd.f32 %v2791_v62, %v575_v37  ;;  %3019 = vmatmul.bf16.gmra.mxu2 %v8385_v15  ;;  %v6892_v37 = vld [vmem:[%s8037_s21 + $0x4a0] sm:$0xf] }
 0x267   : > { %3108 = vmatmul.bf16.gmra.mxu3 %v8387_v16 }
 0x268   : > { %5307 = vst [vmem:[#allocation2 + $0x308] sm:$0xff] %v5083_v12  ;;  %v6893_v12 = vor.u32 %v7411_v39, %v6892_v37 }
 0x269   : > { %v2704_v9 = vpop.f32.mrf.mxu2  ;;  %v2528_v8 = vpop.f32.mrf.mxu0 }
 0x26a   : > { %v2705_v0 = vadd.f32 %v2704_v9, %v2616_v20  ;;  %v2793_v63 = vpop.f32.mrf.mxu3  ;;  %v2617_v40 = vpop.f32.mrf.mxu1  ;;  %v7116_v20 = vld [vmem:[%s8037_s21 + $0x660] sm:$0xf]  ;;  %v7467_v9 = vld [vmem:[%s8037_s21 + $0x678] sm:$0xf0]  ;;  %3364 = vmatpush.bf16.msra.mxu2 %v6893_v12 }
 0x26b   : > { %v2618_v59 = vadd.f32 %v2617_v40, %v2528_v8  ;;  %v596_v40 = vld [vmem:[#allocation2 + $0x690] sm:$0xff] }
 0x26c   : > { %v2794_v61 = vadd.f32 %v2793_v63, %v2705_v0 }
 0x26e   : > { %v5090_v23 = vadd.f32 %v2794_v61, %v582_v17  ;;  %v7117_v17 = vor.u32 %v7467_v9, %v7116_v20 }
 0x270   : > { %5314 = vst [vmem:[#allocation2 + $0x2e8] sm:$0xff] %v5090_v23  ;;  %3453 = vmatpush.bf16.msra.mxu3 %v7117_v17 }
 0x271   : > { %v2706_v11 = vpop.f32.mrf.mxu2  ;;  %v2531_v5 = vpop.f32.mrf.mxu0 }
 0x272   : > { %v2707_v19 = vadd.f32 %v2706_v11, %v2618_v59  ;;  %v2795_v6 = vpop.f32.mrf.mxu3  ;;  %v2620_v29 = vpop.f32.mrf.mxu1 }
 0x273   : > { %v2621_v31 = vadd.f32 %v2620_v29, %v2531_v5  ;;  %v6668_v29 = vld [vmem:[%s8037_s21 + $0x2e0] sm:$0xf] }
 0x274   : > { %v2796_v30 = vadd.f32 %v2795_v6, %v2707_v19  ;;  %2846 = vmatmul.bf16.gmra.mxu0 %v8401_v25  ;;  %v6444_v19 = vld [vmem:[%s8037_s21 + $0x120] sm:$0xf]  ;;  %v7299_v6 = vld [vmem:[%s8037_s21 + $0x138] sm:$0xf0] }
 0x275   : > { %2935 = vmatmul.bf16.gmra.mxu1 %v8403_v26 }
 0x276   : > { %v5097_v32 = vadd.f32 %v2796_v30, %v589_v7  ;;  %3024 = vmatmul.bf16.gmra.mxu2 %v8405_v27  ;;  %v6445_v7 = vor.u32 %v7299_v6, %v6444_v19  ;;  %v7355_v30 = vld [vmem:[%s8037_s21 + $0x2f8] sm:$0xf0] }
 0x277   : > { %3113 = vmatmul.bf16.gmra.mxu3 %v8407_v28  ;;  %v6669_v39 = vor.u32 %v7355_v30, %v6668_v29  ;;  %v617_v30 = vld [vmem:[#allocation2 + $0x170] sm:$0xff] }
 0x278   : > { %5321 = vst [vmem:[#allocation2 + $0x560] sm:$0xff] %v5097_v32  ;;  %3186 = vmatpush.bf16.msra.mxu0 %v6445_v7 }
 0x279   : > { %v2709_v62 = vpop.f32.mrf.mxu2  ;;  %v2533_v8 = vpop.f32.mrf.mxu0  ;;  %3275 = vmatpush.bf16.msra.mxu1 %v6669_v39 }
 0x27a   : > { %v2710_v0 = vadd.f32 %v2709_v62, %v2621_v31  ;;  %v2798_v63 = vpop.f32.mrf.mxu3  ;;  %v2622_v61 = vpop.f32.mrf.mxu1  ;;  %v603_v62 = vld [vmem:[#allocation2] sm:$0xff] }
 0x27b   : > { %v2623_v11 = vadd.f32 %v2622_v61, %v2533_v8  ;;  %v610_v61 = vld [vmem:[#allocation2 + $0x5e0] sm:$0xff] }
 0x27c   : > { %v2799_v23 = vadd.f32 %v2798_v63, %v2710_v0 }
 0x27e   : > { %v5104_v59 = vadd.f32 %v2799_v23, %v596_v40 }
 0x280   : > { %5328 = vst [vmem:[#allocation2 + $0x690] sm:$0xff] %v5104_v59 }
 0x281   : > { %v2711_v5 = vpop.f32.mrf.mxu2  ;;  %v2536_v37 = vpop.f32.mrf.mxu0 }
 0x282   : > { %v2712_v32 = vadd.f32 %v2711_v5, %v2623_v11  ;;  %v2800_v31 = vpop.f32.mrf.mxu3  ;;  %v2625_v20 = vpop.f32.mrf.mxu1 }
 0x283   : > { %v2626_v0 = vadd.f32 %v2625_v20, %v2536_v37  ;;  %v7404_v20 = vld [vmem:[%s8037_s21 + $0x480] sm:$0xf0] }
 0x284   : > { %v2801_v9 = vadd.f32 %v2800_v31, %v2712_v32  ;;  %2851 = vmatmul.bf16.gmra.mxu0 %v8429_v50 }
 0x285   : > { %2940 = vmatmul.bf16.gmra.mxu1 %v8431_v51 }
 0x286   : > { %v5111_v12 = vadd.f32 %v2801_v9, %v603_v62  ;;  %3029 = vmatmul.bf16.gmra.mxu2 %v8433_v55  ;;  %v6864_v62 = vld [vmem:[%s8037_s21 + $0x468] sm:$0xf] }
 0x287   : > { %3118 = vmatmul.bf16.gmra.mxu3 %v8435_v56 }
 0x288   : > { %5335 = vst [vmem:[#allocation2] sm:$0xff] %v5111_v12  ;;  %v6865_v12 = vor.u32 %v7404_v20, %v6864_v62 }
 0x289   : > { %v2714_v63 = vpop.f32.mrf.mxu2  ;;  %v2538_v40 = vpop.f32.mrf.mxu0 }
 0x28a   : > { %v2715_v8 = vadd.f32 %v2714_v63, %v2626_v0  ;;  %v2803_v17 = vpop.f32.mrf.mxu3  ;;  %v2627_v23 = vpop.f32.mrf.mxu1  ;;  %v7088_v0 = vld [vmem:[%s8037_s21 + $0x628] sm:$0xf]  ;;  %v7460_v63 = vld [vmem:[%s8037_s21 + $0x640] sm:$0xf0]  ;;  %3365 = vmatpush.bf16.msra.mxu2 %v6865_v12 }
 0x28b   : > { %v2628_v19 = vadd.f32 %v2627_v23, %v2538_v40  ;;  %v624_v23 = vld [vmem:[#allocation2 + $0x540] sm:$0xff] }
 0x28c   : > { %v2804_v59 = vadd.f32 %v2803_v17, %v2715_v8 }
 0x28e   : > { %v5118_v11 = vadd.f32 %v2804_v59, %v610_v61  ;;  %v7089_v61 = vor.u32 %v7460_v63, %v7088_v0 }
 0x290   : > { %5342 = vst [vmem:[#allocation2 + $0x5e0] sm:$0xff] %v5118_v11  ;;  %3454 = vmatpush.bf16.msra.mxu3 %v7089_v61 }
 0x291   : > { %v2716_v6 = vpop.f32.mrf.mxu2  ;;  %v2541_v29 = vpop.f32.mrf.mxu0 }
 0x292   : > { %v2717_v5 = vadd.f32 %v2716_v6, %v2628_v19  ;;  %v2805_v7 = vpop.f32.mrf.mxu3  ;;  %v2630_v32 = vpop.f32.mrf.mxu1 }
 0x293   : > { %v2631_v39 = vadd.f32 %v2630_v32, %v2541_v29  ;;  %v6640_v32 = vld [vmem:[%s8037_s21 + $0x2a8] sm:$0xf] }
 0x294   : > { %v2806_v31 = vadd.f32 %v2805_v7, %v2717_v5  ;;  %2856 = vmatmul.bf16.gmra.mxu0 %v8449_v1  ;;  %v6416_v5 = vld [vmem:[%s8037_s21 + $0xe8] sm:$0xf]  ;;  %v7292_v7 = vld [vmem:[%s8037_s21 + $0x100] sm:$0xf0] }
 0x295   : > { %2945 = vmatmul.bf16.gmra.mxu1 %v8451_v2 }
 0x296   : > { %v5125_v37 = vadd.f32 %v2806_v31, %v617_v30  ;;  %3034 = vmatmul.bf16.gmra.mxu2 %v8453_v3  ;;  %v6417_v30 = vor.u32 %v7292_v7, %v6416_v5  ;;  %v7348_v31 = vld [vmem:[%s8037_s21 + $0x2c0] sm:$0xf0] }
 0x297   : > { %3123 = vmatmul.bf16.gmra.mxu3 %v8455_v4  ;;  %v6641_v20 = vor.u32 %v7348_v31, %v6640_v32  ;;  %v645_v31 = vld [vmem:[#allocation2 + $0x530] sm:$0xff] }
 0x298   : > { %5349 = vst [vmem:[#allocation2 + $0x170] sm:$0xff] %v5125_v37  ;;  %3187 = vmatpush.bf16.msra.mxu0 %v6417_v30 }
 0x299   : > { %v2719_v9 = vpop.f32.mrf.mxu2  ;;  %v2543_v40 = vpop.f32.mrf.mxu0  ;;  %3276 = vmatpush.bf16.msra.mxu1 %v6641_v20 }
 0x29a   : > { %v2720_v8 = vadd.f32 %v2719_v9, %v2631_v39  ;;  %v2808_v17 = vpop.f32.mrf.mxu3  ;;  %v2632_v59 = vpop.f32.mrf.mxu1  ;;  %v631_v9 = vld [vmem:[#allocation2 + $0x4a8] sm:$0xff] }
 0x29b   : > { %v2633_v6 = vadd.f32 %v2632_v59, %v2543_v40  ;;  %v638_v59 = vld [vmem:[#allocation2 + $0x468] sm:$0xff] }
 0x29c   : > { %v2809_v11 = vadd.f32 %v2808_v17, %v2720_v8 }
 0x29e   : > { %v5132_v19 = vadd.f32 %v2809_v11, %v624_v23 }
 0x2a0   : > { %5356 = vst [vmem:[#allocation2 + $0x540] sm:$0xff] %v5132_v19 }
 0x2a1   : > { %v2721_v29 = vpop.f32.mrf.mxu2  ;;  %v2546_v62 = vpop.f32.mrf.mxu0 }
 0x2a2   : > { %v2722_v37 = vadd.f32 %v2721_v29, %v2633_v6  ;;  %v2810_v39 = vpop.f32.mrf.mxu3  ;;  %v2635_v0 = vpop.f32.mrf.mxu1 }
 0x2a3   : > { %v2636_v8 = vadd.f32 %v2635_v0, %v2546_v62  ;;  %v7397_v0 = vld [vmem:[%s8037_s21 + $0x448] sm:$0xf0] }
 0x2a4   : > { %v2811_v63 = vadd.f32 %v2810_v39, %v2722_v37  ;;  %2861 = vmatmul.bf16.gmra.mxu0 %v8477_v33 }
 0x2a5   : > { %2950 = vmatmul.bf16.gmra.mxu1 %v8479_v34 }
 0x2a6   : > { %v5139_v12 = vadd.f32 %v2811_v63, %v631_v9  ;;  %3039 = vmatmul.bf16.gmra.mxu2 %v8481_v35  ;;  %v6836_v9 = vld [vmem:[%s8037_s21 + $0x430] sm:$0xf] }
 0x2a7   : > { %3128 = vmatmul.bf16.gmra.mxu3 %v8483_v36 }
 0x2a8   : > { %5363 = vst [vmem:[#allocation2 + $0x4a8] sm:$0xff] %v5139_v12  ;;  %v6837_v12 = vor.u32 %v7397_v0, %v6836_v9 }
 0x2a9   : > { %v2724_v17 = vpop.f32.mrf.mxu2  ;;  %v2548_v23 = vpop.f32.mrf.mxu0 }
 0x2aa   : > { %v2725_v40 = vadd.f32 %v2724_v17, %v2636_v8  ;;  %v2813_v61 = vpop.f32.mrf.mxu3  ;;  %v2637_v11 = vpop.f32.mrf.mxu1  ;;  %v7060_v8 = vld [vmem:[%s8037_s21 + $0x5f0] sm:$0xf]  ;;  %v7453_v17 = vld [vmem:[%s8037_s21 + $0x608] sm:$0xf0]  ;;  %3366 = vmatpush.bf16.msra.mxu2 %v6837_v12 }
 0x2ab   : > { %v2638_v5 = vadd.f32 %v2637_v11, %v2548_v23  ;;  %v652_v11 = vld [vmem:[#allocation2 + $0x508] sm:$0xff] }
 0x2ac   : > { %v2814_v19 = vadd.f32 %v2813_v61, %v2725_v40 }
 0x2ae   : > { %v5146_v6 = vadd.f32 %v2814_v19, %v638_v59  ;;  %v7061_v59 = vor.u32 %v7453_v17, %v7060_v8 }
 0x2b0   : > { %5370 = vst [vmem:[#allocation2 + $0x468] sm:$0xff] %v5146_v6  ;;  %3455 = vmatpush.bf16.msra.mxu3 %v7061_v59 }
 0x2b1   : > { %v2726_v7 = vpop.f32.mrf.mxu2  ;;  %v2551_v32 = vpop.f32.mrf.mxu0 }
 0x2b2   : > { %v2727_v29 = vadd.f32 %v2726_v7, %v2638_v5  ;;  %v2815_v30 = vpop.f32.mrf.mxu3  ;;  %v2640_v37 = vpop.f32.mrf.mxu1 }
 0x2b3   : > { %v2641_v20 = vadd.f32 %v2640_v37, %v2551_v32  ;;  %v6612_v37 = vld [vmem:[%s8037_s21 + $0x270] sm:$0xf] }
 0x2b4   : > { %v2816_v39 = vadd.f32 %v2815_v30, %v2727_v29  ;;  %2866 = vmatmul.bf16.gmra.mxu0 %v8497_v45  ;;  %v6388_v29 = vld [vmem:[%s8037_s21 + $0xb0] sm:$0xf]  ;;  %v7285_v30 = vld [vmem:[%s8037_s21 + $0xc8] sm:$0xf0] }
 0x2b5   : > { %2955 = vmatmul.bf16.gmra.mxu1 %v8499_v46 }
 0x2b6   : > { %v5153_v62 = vadd.f32 %v2816_v39, %v645_v31  ;;  %3044 = vmatmul.bf16.gmra.mxu2 %v8501_v47  ;;  %v6389_v31 = vor.u32 %v7285_v30, %v6388_v29  ;;  %v7341_v39 = vld [vmem:[%s8037_s21 + $0x288] sm:$0xf0] }
 0x2b7   : > { %3133 = vmatmul.bf16.gmra.mxu3 %v8503_v49  ;;  %v6613_v0 = vor.u32 %v7341_v39, %v6612_v37  ;;  %v673_v39 = vld [vmem:[#allocation2 + $0x628] sm:$0xff] }
 0x2b8   : > { %5377 = vst [vmem:[#allocation2 + $0x530] sm:$0xff] %v5153_v62  ;;  %3188 = vmatpush.bf16.msra.mxu0 %v6389_v31 }
 0x2b9   : > { %v2729_v63 = vpop.f32.mrf.mxu2  ;;  %v2553_v23 = vpop.f32.mrf.mxu0  ;;  %3277 = vmatpush.bf16.msra.mxu1 %v6613_v0 }
 0x2ba   : > { %v2730_v40 = vadd.f32 %v2729_v63, %v2641_v20  ;;  %v2818_v61 = vpop.f32.mrf.mxu3  ;;  %v2642_v19 = vpop.f32.mrf.mxu1  ;;  %v659_v63 = vld [vmem:[#allocation2 + $0x6c0] sm:$0xff] }
 0x2bb   : > { %v2643_v7 = vadd.f32 %v2642_v19, %v2553_v23  ;;  %v666_v19 = vld [vmem:[#allocation2 + $0x330] sm:$0xff] }
 0x2bc   : > { %v2819_v6 = vadd.f32 %v2818_v61, %v2730_v40 }
 0x2be   : > { %v5160_v5 = vadd.f32 %v2819_v6, %v652_v11 }
 0x2c0   : > { %5384 = vst [vmem:[#allocation2 + $0x508] sm:$0xff] %v5160_v5 }
 0x2c1   : > { %v2731_v32 = vpop.f32.mrf.mxu2  ;;  %v2556_v9 = vpop.f32.mrf.mxu0 }
 0x2c2   : > { %v2732_v62 = vadd.f32 %v2731_v32, %v2643_v7  ;;  %v2820_v20 = vpop.f32.mrf.mxu3  ;;  %v2645_v8 = vpop.f32.mrf.mxu1 }
 0x2c3   : > { %v2646_v40 = vadd.f32 %v2645_v8, %v2556_v9  ;;  %v7390_v8 = vld [vmem:[%s8037_s21 + $0x410] sm:$0xf0] }
 0x2c4   : > { %v2821_v17 = vadd.f32 %v2820_v20, %v2732_v62  ;;  %2871 = vmatmul.bf16.gmra.mxu0 %v8524_v18 }
 0x2c5   : > { %2960 = vmatmul.bf16.gmra.mxu1 %v8527_v21 }
 0x2c6   : > { %v5167_v12 = vadd.f32 %v2821_v17, %v659_v63  ;;  %3049 = vmatmul.bf16.gmra.mxu2 %v8529_v22  ;;  %v6808_v63 = vld [vmem:[%s8037_s21 + $0x3f8] sm:$0xf] }
 0x2c7   : > { %3138 = vmatmul.bf16.gmra.mxu3 %v8531_v24 }
 0x2c8   : > { %5391 = vst [vmem:[#allocation2 + $0x6c0] sm:$0xff] %v5167_v12  ;;  %v6809_v12 = vor.u32 %v7390_v8, %v6808_v63 }
 0x2c9   : > { %v2734_v61 = vpop.f32.mrf.mxu2  ;;  %v2558_v11 = vpop.f32.mrf.mxu0 }
 0x2ca   : > { %v2735_v23 = vadd.f32 %v2734_v61, %v2646_v40  ;;  %v2823_v59 = vpop.f32.mrf.mxu3  ;;  %v2647_v6 = vpop.f32.mrf.mxu1  ;;  %v7032_v40 = vld [vmem:[%s8037_s21 + $0x5b8] sm:$0xf]  ;;  %v7446_v61 = vld [vmem:[%s8037_s21 + $0x5d0] sm:$0xf0]  ;;  %3367 = vmatpush.bf16.msra.mxu2 %v6809_v12 }
 0x2cb   : > { %v2648_v29 = vadd.f32 %v2647_v6, %v2558_v11  ;;  %v457_v6 = vld [vmem:[#allocation2 + $0x3b0] sm:$0xff] }
 0x2cc   : > { %v2824_v5 = vadd.f32 %v2823_v59, %v2735_v23 }
 0x2ce   : > { %v5174_v7 = vadd.f32 %v2824_v5, %v666_v19  ;;  %v7033_v19 = vor.u32 %v7446_v61, %v7032_v40 }
 0x2d0   : > { %5398 = vst [vmem:[#allocation2 + $0x330] sm:$0xff] %v5174_v7  ;;  %3456 = vmatpush.bf16.msra.mxu3 %v7033_v19  ;;  %v9723_v19 = vld [vmem:[#allocation22_spill] sm:$0xff] }
 0x2d1   : > { %v2736_v30 = vpop.f32.mrf.mxu2  ;;  %v2837_v37 = vpop.f32.mrf.mxu0 }
 0x2d2   : > { %v2737_v32 = vadd.f32 %v2736_v30, %v2648_v29  ;;  %v2825_v31 = vpop.f32.mrf.mxu3  ;;  %v2926_v62 = vpop.f32.mrf.mxu1 }
 0x2d3   : > { %v2927_v0 = vadd.f32 %v2926_v62, %v2837_v37  ;;  %v6584_v62 = vld [vmem:[%s8037_s21 + $0x238] sm:$0xf] }
 0x2d4   : > { %v2826_v20 = vadd.f32 %v2825_v31, %v2737_v32  ;;  %2876 = vmatmul.bf16.gmra.mxu0 %v8545_v41  ;;  %v6360_v32 = vld [vmem:[%s8037_s21 + $0x78] sm:$0xf]  ;;  %v7278_v31 = vld [vmem:[%s8037_s21 + $0x90] sm:$0xf0] }
 0x2d5   : > { %2965 = vmatmul.bf16.gmra.mxu1 %v8547_v43 }
 0x2d6   : > { %v5181_v9 = vadd.f32 %v2826_v20, %v673_v39  ;;  %3054 = vmatmul.bf16.gmra.mxu2 %v8549_v44  ;;  %v6361_v39 = vor.u32 %v7278_v31, %v6360_v32  ;;  %v7334_v20 = vld [vmem:[%s8037_s21 + $0x250] sm:$0xf0] }
 0x2d7   : > { %3143 = vmatmul.bf16.gmra.mxu3 %v8551_v58  ;;  %v6585_v8 = vor.u32 %v7334_v20, %v6584_v62 }
 0x2d8   : > { %5405 = vst [vmem:[#allocation2 + $0x628] sm:$0xff] %v5181_v9  ;;  %3189 = vmatpush.bf16.msra.mxu0 %v6361_v39 }
 0x2d9   : > { %v3015_v17 = vpop.f32.mrf.mxu2  ;;  %v2839_v11 = vpop.f32.mrf.mxu0  ;;  %3278 = vmatpush.bf16.msra.mxu1 %v6585_v8 }
 0x2da   : > { %v3016_v23 = vadd.f32 %v3015_v17, %v2927_v0  ;;  %v3104_v59 = vpop.f32.mrf.mxu3  ;;  %v2928_v5 = vpop.f32.mrf.mxu1  ;;  %v464_v17 = vld [vmem:[#allocation2 + $0x108] sm:$0xff] }
 0x2db   : > { %v2929_v30 = vadd.f32 %v2928_v5, %v2839_v11  ;;  %v9722_v11 = vld [vmem:[#allocation21_spill] sm:$0xff] }
 0x2dc   : > { %v3105_v7 = vadd.f32 %v3104_v59, %v3016_v23  ;;  %v9721_v59 = vld [vmem:[#allocation20_spill] sm:$0xff] }
 0x2de   : > { %v4965_v29 = vadd.f32 %v3105_v7, %v457_v6 }
 0x2e0   : > { %5189 = vst [vmem:[#allocation2 + $0x3b0] sm:$0xff] %v4965_v29 }
 0x2e1   : > { %v3017_v37 = vpop.f32.mrf.mxu2  ;;  %v2842_v63 = vpop.f32.mrf.mxu0 }
 0x2e2   : > { %v3018_v9 = vadd.f32 %v3017_v37, %v2929_v30  ;;  %v3106_v0 = vpop.f32.mrf.mxu3  ;;  %v2931_v40 = vpop.f32.mrf.mxu1  ;;  %v471_v30 = vld [vmem:[#allocation2 + $0x320] sm:$0xff] }
 0x2e3   : > { %v2932_v23 = vadd.f32 %v2931_v40, %v2842_v63  ;;  %v478_v63 = vld [vmem:[#allocation2 + $0x670] sm:$0xff]  ;;  %v9724_v40 = vld [vmem:[#allocation23_spill] sm:$0xff] }
 0x2e4   : > { %v3107_v61 = vadd.f32 %v3106_v0, %v3018_v9  ;;  %2881 = vmatmul.bf16.gmra.mxu0 %v8571_v57 }
 0x2e5   : > { %2970 = vmatmul.bf16.gmra.mxu1 %v9721_v59  ;;  %v492_v59 = vld [vmem:[#allocation2 + $0x680] sm:$0xff] }
 0x2e6   : > { %v4972_v12 = vadd.f32 %v3107_v61, %v464_v17  ;;  %3059 = vmatmul.bf16.gmra.mxu2 %v9722_v11 }
 0x2e7   : > { %3148 = vmatmul.bf16.gmra.mxu3 %v9723_v19 }
 0x2e8   : > { %5196 = vst [vmem:[#allocation2 + $0x108] sm:$0xff] %v4972_v12 }
 0x2e9   : > { %v3020_v6 = vpop.f32.mrf.mxu2  ;;  %v2844_v29 = vpop.f32.mrf.mxu0 }
 0x2ea   : > { %v3021_v5 = vadd.f32 %v3020_v6, %v2932_v23  ;;  %v3109_v7 = vpop.f32.mrf.mxu3  ;;  %v2933_v32 = vpop.f32.mrf.mxu1  ;;  %v9725_v23 = vld [vmem:[#allocation24_spill] sm:$0xff]  ;;  %v9726_v6 = vld [vmem:[#allocation25_spill] sm:$0xff] }
 0x2eb   : > { %v2934_v39 = vadd.f32 %v2933_v32, %v2844_v29  ;;  %v7383_v29 = vld [vmem:[%s8037_s21 + $0x3d8] sm:$0xf0] }
 0x2ec   : > { %v3110_v31 = vadd.f32 %v3109_v7, %v3021_v5  ;;  %v9727_v5 = vld [vmem:[#allocation26_spill] sm:$0xff]  ;;  %v6780_v7 = vld [vmem:[%s8037_s21 + $0x3c0] sm:$0xf] }
 0x2ed   : > { %v6781_v32 = vor.u32 %v7383_v29, %v6780_v7 }
 0x2ee   : > { %v4979_v37 = vadd.f32 %v3110_v31, %v471_v30  ;;  %v7004_v31 = vld [vmem:[%s8037_s21 + $0x580] sm:$0xf] }
 0x2ef   : > { %3368 = vmatpush.bf16.msra.mxu2 %v6781_v32  ;;  %v9728_v32 = vld [vmem:[#allocation27_spill] sm:$0xff] }
 0x2f0   : > { %5203 = vst [vmem:[#allocation2 + $0x320] sm:$0xff] %v4979_v37  ;;  %v7439_v37 = vld [vmem:[%s8037_s21 + $0x598] sm:$0xf0] }
 0x2f1   : > { %v3022_v62 = vpop.f32.mrf.mxu2  ;;  %v2847_v0 = vpop.f32.mrf.mxu0 }
 0x2f2   : > { %v3023_v20 = vadd.f32 %v3022_v62, %v2934_v39  ;;  %v3111_v9 = vpop.f32.mrf.mxu3  ;;  %v2936_v8 = vpop.f32.mrf.mxu1 }
 0x2f3   : > { %v2937_v12 = vadd.f32 %v2936_v8, %v2847_v0  ;;  %v485_v0 = vld [vmem:[#allocation2 + $0x3a0] sm:$0xff] }
 0x2f4   : > { %v3112_v17 = vadd.f32 %v3111_v9, %v3023_v20  ;;  %2886 = vmatmul.bf16.gmra.mxu0 %v9724_v40  ;;  %v7005_v9 = vor.u32 %v7439_v37, %v7004_v31  ;;  %v7327_v40 = vld [vmem:[%s8037_s21 + $0x218] sm:$0xf0] }
 0x2f5   : > { %2975 = vmatmul.bf16.gmra.mxu1 %v9725_v23  ;;  %v6556_v23 = vld [vmem:[%s8037_s21 + $0x200] sm:$0xf] }
 0x2f6   : > { %v4986_v61 = vadd.f32 %v3112_v17, %v478_v63  ;;  %3064 = vmatmul.bf16.gmra.mxu2 %v9726_v6  ;;  %3457 = vmatpush.bf16.msra.mxu3 %v7005_v9  ;;  %v7271_v6 = vld [vmem:[%s8037_s21 + $0x58] sm:$0xf0]  ;;  %v6557_v11 = vor.u32 %v7327_v40, %v6556_v23  ;;  %v9730_v9 = vld [vmem:[#allocation29_spill] sm:$0xff]  ;;  %v499_v23 = vld [vmem:[#allocation2 + $0x4f0] sm:$0xff] }
 0x2f7   : > { %3153 = vmatmul.bf16.gmra.mxu3 %v9727_v5  ;;  %v6332_v5 = vld [vmem:[%s8037_s21 + $0x40] sm:$0xf] }
 0x2f8   : > { %5210 = vst [vmem:[#allocation2 + $0x670] sm:$0xff] %v4986_v61  ;;  %v6333_v29 = vor.u32 %v7271_v6, %v6332_v5  ;;  %3279 = vmatpush.bf16.msra.mxu1 %v6557_v11  ;;  %v9731_v6 = vld [vmem:[#allocation30_spill] sm:$0xff] }
 0x2f9   : > { %v3025_v30 = vpop.f32.mrf.mxu2  ;;  %v2849_v20 = vpop.f32.mrf.mxu0 }
 0x2fa   : > { %v3026_v39 = vadd.f32 %v3025_v30, %v2937_v12  ;;  %v3114_v62 = vpop.f32.mrf.mxu3  ;;  %v2938_v63 = vpop.f32.mrf.mxu1  ;;  %3190 = vmatpush.bf16.msra.mxu0 %v6333_v29 }
 0x2fb   : > { %v2939_v61 = vadd.f32 %v2938_v63, %v2849_v20  ;;  %v9729_v20 = vld [vmem:[#allocation28_spill] sm:$0xff] }
 0x2fc   : > { %v3115_v8 = vadd.f32 %v3114_v62, %v3026_v39 }
 0x2fe   : > { %v4993_v17 = vadd.f32 %v3115_v8, %v485_v0 }
 0x300   : > { %5217 = vst [vmem:[#allocation2 + $0x3a0] sm:$0xff] %v4993_v17 }
 0x301   : > { %v3027_v7 = vpop.f32.mrf.mxu2  ;;  %v2852_v19 = vpop.f32.mrf.mxu0 }
 0x302   : > { %v3028_v12 = vadd.f32 %v3027_v7, %v2939_v61  ;;  %v3116_v30 = vpop.f32.mrf.mxu3  ;;  %v2941_v31 = vpop.f32.mrf.mxu1 }
 0x303   : > { %v2942_v62 = vadd.f32 %v2941_v31, %v2852_v19 }
 0x304   : > { %v3117_v37 = vadd.f32 %v3116_v30, %v3028_v12  ;;  %2891 = vmatmul.bf16.gmra.mxu0 %v9728_v32  ;;  %v506_v12 = vld [vmem:[#allocation2 + $0x368] sm:$0xff]  ;;  %v520_v32 = vld [vmem:[#allocation2 + $0x6b0] sm:$0xff] }
 0x305   : > { %2980 = vmatmul.bf16.gmra.mxu1 %v9729_v20 }
 0x306   : > { %v5000_v39 = vadd.f32 %v3117_v37, %v492_v59  ;;  %3069 = vmatmul.bf16.gmra.mxu2 %v9730_v9  ;;  %v9732_v37 = vld [vmem:[#allocation31_spill] sm:$0xff] }
 0x307   : > { %3158 = vmatmul.bf16.gmra.mxu3 %v9731_v6  ;;  %v7320_v6 = vld [vmem:[%s8037_s21 + $0x1e0] sm:$0xf0] }
 0x308   : > { %5224 = vst [vmem:[#allocation2 + $0x680] sm:$0xff] %v5000_v39 }
 0x309   : > { %v3030_v5 = vpop.f32.mrf.mxu2  ;;  %v2854_v40 = vpop.f32.mrf.mxu0 }
 0x30a   : > { %v3031_v0 = vadd.f32 %v3030_v5, %v2942_v62  ;;  %v3119_v63 = vpop.f32.mrf.mxu3  ;;  %v2943_v8 = vpop.f32.mrf.mxu1  ;;  %v9733_v5 = vld [vmem:[#allocation32_spill] sm:$0xff] }
 0x30b   : > { %v2944_v11 = vadd.f32 %v2943_v8, %v2854_v40  ;;  %v6752_v40 = vld [vmem:[%s8037_s21 + $0x388] sm:$0xf] }
 0x30c   : > { %v3120_v17 = vadd.f32 %v3119_v63, %v3031_v0  ;;  %v9734_v0 = vld [vmem:[#allocation33_spill] sm:$0xff]  ;;  %v9735_v63 = vld [vmem:[#allocation34_spill] sm:$0xff] }
 0x30e   : > { %v5007_v61 = vadd.f32 %v3120_v17, %v499_v23  ;;  %v7376_v23 = vld [vmem:[%s8037_s21 + $0x3a0] sm:$0xf0] }
 0x30f   : > { %v6753_v17 = vor.u32 %v7376_v23, %v6752_v40 }
 0x310   : > { %5231 = vst [vmem:[#allocation2 + $0x4f0] sm:$0xff] %v5007_v61  ;;  %v6976_v61 = vld [vmem:[%s8037_s21 + $0x548] sm:$0xf] }
 0x311   : > { %v3032_v59 = vpop.f32.mrf.mxu2  ;;  %v2857_v29 = vpop.f32.mrf.mxu0  ;;  %3369 = vmatpush.bf16.msra.mxu2 %v6753_v17  ;;  %v9736_v17 = vld [vmem:[#allocation35_spill] sm:$0xff] }
 0x312   : > { %v3033_v19 = vadd.f32 %v3032_v59, %v2944_v11  ;;  %v3121_v7 = vpop.f32.mrf.mxu3  ;;  %v2946_v30 = vpop.f32.mrf.mxu1  ;;  %v7432_v11 = vld [vmem:[%s8037_s21 + $0x560] sm:$0xf0] }
 0x313   : > { %v2947_v62 = vadd.f32 %v2946_v30, %v2857_v29  ;;  %v6977_v29 = vor.u32 %v7432_v11, %v6976_v61 }
 0x314   : > { %v3122_v31 = vadd.f32 %v3121_v7, %v3033_v19  ;;  %2896 = vmatmul.bf16.gmra.mxu0 %v9732_v37  ;;  %v6528_v37 = vld [vmem:[%s8037_s21 + $0x1c8] sm:$0xf] }
 0x315   : > { %2985 = vmatmul.bf16.gmra.mxu1 %v9733_v5  ;;  %3458 = vmatpush.bf16.msra.mxu3 %v6977_v29  ;;  %v7264_v5 = vld [vmem:[%s8037_s21 + $0x20] sm:$0xf0]  ;;  %v6529_v20 = vor.u32 %v7320_v6, %v6528_v37  ;;  %v9738_v29 = vld [vmem:[#allocation37_spill] sm:$0xff] }
 0x316   : > { %v5014_v39 = vadd.f32 %v3122_v31, %v506_v12  ;;  %3074 = vmatmul.bf16.gmra.mxu2 %v9734_v0  ;;  %v513_v12 = vld [vmem:[#allocation2 + $0x68] sm:$0xff] }
 0x317   : > { %3163 = vmatmul.bf16.gmra.mxu3 %v9735_v63  ;;  %v6304_v0 = vld [vmem:[%s8037_s21 + $0x8] sm:$0xf]  ;;  %3280 = vmatpush.bf16.msra.mxu1 %v6529_v20 }
 0x318   : > { %5238 = vst [vmem:[#allocation2 + $0x368] sm:$0xff] %v5014_v39  ;;  %v6305_v23 = vor.u32 %v7264_v5, %v6304_v0  ;;  %v9739_v5 = vld [vmem:[#allocation38_spill] sm:$0xff]  ;;  %v527_v37 = vld [vmem:[#allocation2 + $0x128] sm:$0xff] }
 0x319   : > { %v3035_v8 = vpop.f32.mrf.mxu2  ;;  %v2859_v7 = vpop.f32.mrf.mxu0 }
 0x31a   : > { %v3036_v59 = vadd.f32 %v3035_v8, %v2947_v62  ;;  %v3124_v19 = vpop.f32.mrf.mxu3  ;;  %v2948_v30 = vpop.f32.mrf.mxu1  ;;  %3191 = vmatpush.bf16.msra.mxu0 %v6305_v23 }
 0x31b   : > { %v2949_v63 = vadd.f32 %v2948_v30, %v2859_v7  ;;  %v9737_v7 = vld [vmem:[#allocation36_spill] sm:$0xff] }
 0x31c   : > { %v3125_v31 = vadd.f32 %v3124_v19, %v3036_v59 }
 0x31e   : > { %v5021_v39 = vadd.f32 %v3125_v31, %v513_v12 }
 0x320   : > { %5245 = vst [vmem:[#allocation2 + $0x68] sm:$0xff] %v5021_v39 }
 0x321   : > { %v3037_v40 = vpop.f32.mrf.mxu2  ;;  %v2862_v9 = vpop.f32.mrf.mxu0 }
 0x322   : > { %v3038_v62 = vadd.f32 %v3037_v40, %v2949_v63  ;;  %v3126_v8 = vpop.f32.mrf.mxu3  ;;  %v2951_v61 = vpop.f32.mrf.mxu1 }
 0x323   : > { %v2952_v19 = vadd.f32 %v2951_v61, %v2862_v9 }
 0x324   : > { %v3127_v11 = vadd.f32 %v3126_v8, %v3038_v62  ;;  %2901 = vmatmul.bf16.gmra.mxu0 %v9736_v17  ;;  %v534_v62 = vld [vmem:[#allocation2 + $0x1e8] sm:$0xff]  ;;  %v548_v17 = vld [vmem:[#allocation2 + $0x438] sm:$0xff] }
 0x325   : > { %2990 = vmatmul.bf16.gmra.mxu1 %v9737_v7 }
 0x326   : > { %v5028_v59 = vadd.f32 %v3127_v11, %v520_v32  ;;  %3079 = vmatmul.bf16.gmra.mxu2 %v9738_v29  ;;  %v9740_v11 = vld [vmem:[#allocation39_spill] sm:$0xff] }
 0x327   : > { %3168 = vmatmul.bf16.gmra.mxu3 %v9739_v5  ;;  %v6726_v5 = vld [vmem:[%s8037_s21 + $0x36c] sm:$0xf0] }
 0x328   : > { %5252 = vst [vmem:[#allocation2 + $0x6b0] sm:$0xff] %v5028_v59 }
 0x329   : > { %v3040_v0 = vpop.f32.mrf.mxu2  ;;  %v2864_v6 = vpop.f32.mrf.mxu0 }
 0x32a   : > { %v3041_v63 = vadd.f32 %v3040_v0, %v2952_v19  ;;  %v3129_v12 = vpop.f32.mrf.mxu3  ;;  %v2953_v30 = vpop.f32.mrf.mxu1  ;;  %v9741_v0 = vld [vmem:[#allocation40_spill] sm:$0xff] }
 0x32b   : > { %v2954_v20 = vadd.f32 %v2953_v30, %v2864_v6  ;;  %v7422_v6 = vld [vmem:[%s8037_s21 + $0x514] sm:$0xf] }
 0x32c   : > { %v3130_v31 = vadd.f32 %v3129_v12, %v3041_v63  ;;  %v9742_v63 = vld [vmem:[#allocation41_spill] sm:$0xff]  ;;  %v9743_v12 = vld [vmem:[#allocation42_spill] sm:$0xff] }
 0x32e   : > { %v5035_v39 = vadd.f32 %v3130_v31, %v527_v37  ;;  %v6950_v37 = vld [vmem:[%s8037_s21 + $0x52c] sm:$0xf0] }
 0x32f   : > { %v6953_v31 = vor.u32 %v7422_v6, %v6950_v37 }
 0x330   : > { %5259 = vst [vmem:[#allocation2 + $0x128] sm:$0xff] %v5035_v39  ;;  %v7478_v39 = vld [vmem:[%s8037_s21 + $0x6d4] sm:$0xf] }
 0x331   : > { %v3042_v32 = vpop.f32.mrf.mxu2  ;;  %v2867_v23 = vpop.f32.mrf.mxu0  ;;  %3718 = vmatpush.bf16.msrb.mxu2 %v6953_v31 }
 0x332   : > { %v3043_v9 = vadd.f32 %v3042_v32, %v2954_v20  ;;  %v3131_v40 = vpop.f32.mrf.mxu3  ;;  %v2956_v8 = vpop.f32.mrf.mxu1  ;;  %v7174_v20 = vld [vmem:[%s8037_s21 + $0x6ec] sm:$0xf0] }
 0x333   : > { %v2957_v19 = vadd.f32 %v2956_v8, %v2867_v23  ;;  %v7177_v23 = vor.u32 %v7478_v39, %v7174_v20 }
 0x334   : > { %v3132_v61 = vadd.f32 %v3131_v40, %v3043_v9  ;;  %2906 = vmatmul.bf16.gmra.mxu0 %v9740_v11  ;;  %v7366_v11 = vld [vmem:[%s8037_s21 + $0x354] sm:$0xf] }
 0x335   : > { %2995 = vmatmul.bf16.gmra.mxu1 %v9741_v0  ;;  %3807 = vmatpush.bf16.msrb.mxu3 %v7177_v23  ;;  %v6502_v0 = vld [vmem:[%s8037_s21 + $0x1ac] sm:$0xf0]  ;;  %v6729_v7 = vor.u32 %v7366_v11, %v6726_v5  ;;  %v555_v11 = vld [vmem:[#allocation2 + $0x568] sm:$0xff] }
 0x336   : > { %v5042_v59 = vadd.f32 %v3132_v61, %v534_v62  ;;  %3084 = vmatmul.bf16.gmra.mxu2 %v9742_v63  ;;  %v541_v62 = vld [vmem:[#allocation2 + $0xf8] sm:$0xff]  ;;  %v7310_v63 = vld [vmem:[%s8037_s21 + $0x194] sm:$0xf] }
 0x337   : > { %3173 = vmatmul.bf16.gmra.mxu3 %v9743_v12  ;;  %v6505_v37 = vor.u32 %v7310_v63, %v6502_v0  ;;  %3629 = vmatpush.bf16.msrb.mxu1 %v6729_v7 }
 0x338   : > { %5266 = vst [vmem:[#allocation2 + $0x1e8] sm:$0xff] %v5042_v59 }
 0x339   : > { %v3045_v30 = vpop.f32.mrf.mxu2  ;;  %v2869_v40 = vpop.f32.mrf.mxu0  ;;  %3540 = vmatpush.bf16.msrb.mxu0 %v6505_v37 }
 0x33a   : > { %v3046_v32 = vadd.f32 %v3045_v30, %v2957_v19  ;;  %v3134_v9 = vpop.f32.mrf.mxu3  ;;  %v2958_v8 = vpop.f32.mrf.mxu1 }
 0x33b   : > { %v2959_v12 = vadd.f32 %v2958_v8, %v2869_v40 }
 0x33c   : > { %v3135_v61 = vadd.f32 %v3134_v9, %v3046_v32 }
 0x33e   : > { %v5049_v59 = vadd.f32 %v3135_v61, %v541_v62  ;;  %v562_v61 = vld [vmem:[#allocation2 + $0x288] sm:$0xff] }
 0x340   : > { %5273 = vst [vmem:[#allocation2 + $0xf8] sm:$0xff] %v5049_v59 }
 0x341   : > { %v3047_v6 = vpop.f32.mrf.mxu2  ;;  %v2872_v29 = vpop.f32.mrf.mxu0 }
 0x342   : > { %v3048_v19 = vadd.f32 %v3047_v6, %v2959_v12  ;;  %v3136_v30 = vpop.f32.mrf.mxu3  ;;  %v2961_v39 = vpop.f32.mrf.mxu1 }
 0x343   : > { %v2962_v32 = vadd.f32 %v2961_v39, %v2872_v29  ;;  %v6922_v39 = vld [vmem:[%s8037_s21 + $0x4f4] sm:$0xf0] }
 0x344   : > { %v3137_v20 = vadd.f32 %v3136_v30, %v3048_v19  ;;  %2911 = vmatmul.bf16.gmra.mxu0 %v8715_v10  ;;  %v7415_v30 = vld [vmem:[%s8037_s21 + $0x4dc] sm:$0xf] }
 0x345   : > { %3000 = vmatmul.bf16.gmra.mxu1 %v8719_v38 }
 0x346   : > { %v5056_v31 = vadd.f32 %v3137_v20, %v548_v17  ;;  %3089 = vmatmul.bf16.gmra.mxu2 %v8721_v42 }
 0x347   : > { %3178 = vmatmul.bf16.gmra.mxu3 %v8723_v60 }
 0x348   : > { %5280 = vst [vmem:[#allocation2 + $0x438] sm:$0xff] %v5056_v31  ;;  %v6925_v31 = vor.u32 %v7415_v30, %v6922_v39 }
 0x349   : > { %v3050_v0 = vpop.f32.mrf.mxu2  ;;  %v2874_v5 = vpop.f32.mrf.mxu0 }
 0x34a   : > { %v3051_v63 = vadd.f32 %v3050_v0, %v2962_v32  ;;  %v3139_v12 = vpop.f32.mrf.mxu3  ;;  %v2963_v9 = vpop.f32.mrf.mxu1  ;;  %v7471_v32 = vld [vmem:[%s8037_s21 + $0x69c] sm:$0xf]  ;;  %v7146_v0 = vld [vmem:[%s8037_s21 + $0x6b4] sm:$0xf0]  ;;  %3719 = vmatpush.bf16.msrb.mxu2 %v6925_v31 }
 0x34b   : > { %v2964_v7 = vadd.f32 %v2963_v9, %v2874_v5  ;;  %v569_v9 = vld [vmem:[#allocation2 + $0x200] sm:$0xff] }
 0x34c   : > { %v3140_v40 = vadd.f32 %v3139_v12, %v3051_v63 }
 0x34e   : > { %v5063_v23 = vadd.f32 %v3140_v40, %v555_v11  ;;  %v7149_v11 = vor.u32 %v7471_v32, %v7146_v0 }
 0x350   : > { %5287 = vst [vmem:[#allocation2 + $0x568] sm:$0xff] %v5063_v23  ;;  %3808 = vmatpush.bf16.msrb.mxu3 %v7149_v11 }
 0x351   : > { %v3052_v17 = vpop.f32.mrf.mxu2  ;;  %v2877_v8 = vpop.f32.mrf.mxu0 }
 0x352   : > { %v3053_v29 = vadd.f32 %v3052_v17, %v2964_v7  ;;  %v3141_v62 = vpop.f32.mrf.mxu3  ;;  %v2966_v59 = vpop.f32.mrf.mxu1 }
 0x353   : > { %v2967_v19 = vadd.f32 %v2966_v59, %v2877_v8  ;;  %v7359_v59 = vld [vmem:[%s8037_s21 + $0x31c] sm:$0xf] }
 0x354   : > { %v3142_v6 = vadd.f32 %v3141_v62, %v3053_v29  ;;  %3192 = vmatmul.bf16.vlgmr.msra.gmra.mxu0 %v8351_v48  ;;  %v7303_v29 = vld [vmem:[%s8037_s21 + $0x15c] sm:$0xf]  ;;  %v6474_v62 = vld [vmem:[%s8037_s21 + $0x174] sm:$0xf0] }
 0x355   : > { %3281 = vmatmul.bf16.vlgmr.msra.gmra.mxu1 %v8355_v52 }
 0x356   : > { %v5070_v37 = vadd.f32 %v3142_v6, %v562_v61  ;;  %3370 = vmatmul.bf16.vlgmr.msra.gmra.mxu2 %v8357_v53  ;;  %v6477_v61 = vor.u32 %v7303_v29, %v6474_v62  ;;  %v6698_v6 = vld [vmem:[%s8037_s21 + $0x334] sm:$0xf0] }
 0x357   : > { %3459 = vmatmul.bf16.vlgmr.msra.gmra.mxu3 %v8359_v54  ;;  %v6701_v39 = vor.u32 %v7359_v59, %v6698_v6  ;;  %v590_v6 = vld [vmem:[#allocation2 + $0x6c8] sm:$0xff] }
 0x358   : > { %5294 = vst [vmem:[#allocation2 + $0x288] sm:$0xff] %v5070_v37  ;;  %3541 = vmatpush.bf16.msrb.mxu0 %v6477_v61 }
 0x359   : > { %v3055_v20 = vpop.f32.mrf.mxu2  ;;  %v2879_v5 = vpop.f32.mrf.mxu0  ;;  %3630 = vmatpush.bf16.msrb.mxu1 %v6701_v39 }
 0x35a   : > { %v3056_v63 = vadd.f32 %v3055_v20, %v2967_v19  ;;  %v3144_v12 = vpop.f32.mrf.mxu3  ;;  %v2968_v40 = vpop.f32.mrf.mxu1  ;;  %v576_v20 = vld [vmem:[#allocation2 + $0x310] sm:$0xff] }
 0x35b   : > { %v2969_v17 = vadd.f32 %v2968_v40, %v2879_v5  ;;  %v583_v40 = vld [vmem:[#allocation2 + $0x6b8] sm:$0xff] }
 0x35c   : > { %v3145_v23 = vadd.f32 %v3144_v12, %v3056_v63 }
 0x35e   : > { %v5077_v7 = vadd.f32 %v3145_v23, %v569_v9 }
 0x360   : > { %5301 = vst [vmem:[#allocation2 + $0x200] sm:$0xff] %v5077_v7 }
 0x361   : > { %v3057_v8 = vpop.f32.mrf.mxu2  ;;  %v2882_v30 = vpop.f32.mrf.mxu0 }
 0x362   : > { %v3058_v37 = vadd.f32 %v3057_v8, %v2969_v17  ;;  %v3146_v19 = vpop.f32.mrf.mxu3  ;;  %v2971_v32 = vpop.f32.mrf.mxu1 }
 0x363   : > { %v2972_v63 = vadd.f32 %v2971_v32, %v2882_v30  ;;  %v6894_v32 = vld [vmem:[%s8037_s21 + $0x4bc] sm:$0xf0] }
 0x364   : > { %v3147_v0 = vadd.f32 %v3146_v19, %v3058_v37  ;;  %3197 = vmatmul.bf16.gmra.mxu0 %v8381_v13 }
 0x365   : > { %3286 = vmatmul.bf16.gmra.mxu1 %v8383_v14 }
 0x366   : > { %v5084_v31 = vadd.f32 %v3147_v0, %v576_v20  ;;  %3375 = vmatmul.bf16.gmra.mxu2 %v8385_v15  ;;  %v7408_v20 = vld [vmem:[%s8037_s21 + $0x4a4] sm:$0xf] }
 0x367   : > { %3464 = vmatmul.bf16.gmra.mxu3 %v8387_v16 }
 0x368   : > { %5308 = vst [vmem:[#allocation2 + $0x310] sm:$0xff] %v5084_v31  ;;  %v6897_v31 = vor.u32 %v7408_v20, %v6894_v32 }
 0x369   : > { %v3060_v12 = vpop.f32.mrf.mxu2  ;;  %v2884_v9 = vpop.f32.mrf.mxu0 }
 0x36a   : > { %v3061_v5 = vadd.f32 %v3060_v12, %v2972_v63  ;;  %v3149_v11 = vpop.f32.mrf.mxu3  ;;  %v2973_v23 = vpop.f32.mrf.mxu1  ;;  %v7464_v63 = vld [vmem:[%s8037_s21 + $0x664] sm:$0xf]  ;;  %v7118_v12 = vld [vmem:[%s8037_s21 + $0x67c] sm:$0xf0]  ;;  %3720 = vmatpush.bf16.msrb.mxu2 %v6897_v31 }
 0x36b   : > { %v2974_v29 = vadd.f32 %v2973_v23, %v2884_v9  ;;  %v597_v23 = vld [vmem:[#allocation2 + $0x658] sm:$0xff] }
 0x36c   : > { %v3150_v7 = vadd.f32 %v3149_v11, %v3061_v5 }
 0x36e   : > { %v5091_v17 = vadd.f32 %v3150_v7, %v583_v40  ;;  %v7121_v40 = vor.u32 %v7464_v63, %v7118_v12 }
 0x370   : > { %5315 = vst [vmem:[#allocation2 + $0x6b8] sm:$0xff] %v5091_v17  ;;  %3809 = vmatpush.bf16.msrb.mxu3 %v7121_v40 }
 0x371   : > { %v3062_v62 = vpop.f32.mrf.mxu2  ;;  %v2887_v59 = vpop.f32.mrf.mxu0 }
 0x372   : > { %v3063_v8 = vadd.f32 %v3062_v62, %v2974_v29  ;;  %v3151_v61 = vpop.f32.mrf.mxu3  ;;  %v2976_v37 = vpop.f32.mrf.mxu1 }
 0x373   : > { %v2977_v39 = vadd.f32 %v2976_v37, %v2887_v59  ;;  %v7352_v37 = vld [vmem:[%s8037_s21 + $0x2e4] sm:$0xf] }
 0x374   : > { %v3152_v19 = vadd.f32 %v3151_v61, %v3063_v8  ;;  %3202 = vmatmul.bf16.gmra.mxu0 %v8401_v25  ;;  %v7296_v8 = vld [vmem:[%s8037_s21 + $0x124] sm:$0xf]  ;;  %v6446_v61 = vld [vmem:[%s8037_s21 + $0x13c] sm:$0xf0] }
 0x375   : > { %3291 = vmatmul.bf16.gmra.mxu1 %v8403_v26 }
 0x376   : > { %v5098_v30 = vadd.f32 %v3152_v19, %v590_v6  ;;  %3380 = vmatmul.bf16.gmra.mxu2 %v8405_v27  ;;  %v6449_v6 = vor.u32 %v7296_v8, %v6446_v61  ;;  %v6670_v19 = vld [vmem:[%s8037_s21 + $0x2fc] sm:$0xf0] }
 0x377   : > { %3469 = vmatmul.bf16.gmra.mxu3 %v8407_v28  ;;  %v6673_v32 = vor.u32 %v7352_v37, %v6670_v19  ;;  %v618_v19 = vld [vmem:[#allocation2 + $0x1a8] sm:$0xff] }
 0x378   : > { %5322 = vst [vmem:[#allocation2 + $0x6c8] sm:$0xff] %v5098_v30  ;;  %3542 = vmatpush.bf16.msrb.mxu0 %v6449_v6 }
 0x379   : > { %v3065_v0 = vpop.f32.mrf.mxu2  ;;  %v2889_v9 = vpop.f32.mrf.mxu0  ;;  %3631 = vmatpush.bf16.msrb.mxu1 %v6673_v32 }
 0x37a   : > { %v3066_v5 = vadd.f32 %v3065_v0, %v2977_v39  ;;  %v3154_v11 = vpop.f32.mrf.mxu3  ;;  %v2978_v7 = vpop.f32.mrf.mxu1  ;;  %v604_v0 = vld [vmem:[#allocation2 + $0x2f0] sm:$0xff] }
 0x37b   : > { %v2979_v62 = vadd.f32 %v2978_v7, %v2889_v9  ;;  %v611_v7 = vld [vmem:[#allocation2 + $0x6e0] sm:$0xff] }
 0x37c   : > { %v3155_v17 = vadd.f32 %v3154_v11, %v3066_v5 }
 0x37e   : > { %v5105_v29 = vadd.f32 %v3155_v17, %v597_v23 }
 0x380   : > { %5329 = vst [vmem:[#allocation2 + $0x658] sm:$0xff] %v5105_v29 }
 0x381   : > { %v3067_v59 = vpop.f32.mrf.mxu2  ;;  %v2892_v20 = vpop.f32.mrf.mxu0 }
 0x382   : > { %v3068_v30 = vadd.f32 %v3067_v59, %v2979_v62  ;;  %v3156_v39 = vpop.f32.mrf.mxu3  ;;  %v2981_v63 = vpop.f32.mrf.mxu1 }
 0x383   : > { %v2982_v5 = vadd.f32 %v2981_v63, %v2892_v20  ;;  %v6866_v63 = vld [vmem:[%s8037_s21 + $0x484] sm:$0xf0] }
 0x384   : > { %v3157_v12 = vadd.f32 %v3156_v39, %v3068_v30  ;;  %3207 = vmatmul.bf16.gmra.mxu0 %v8429_v50 }
 0x385   : > { %3296 = vmatmul.bf16.gmra.mxu1 %v8431_v51 }
 0x386   : > { %v5112_v31 = vadd.f32 %v3157_v12, %v604_v0  ;;  %3385 = vmatmul.bf16.gmra.mxu2 %v8433_v55  ;;  %v7401_v0 = vld [vmem:[%s8037_s21 + $0x46c] sm:$0xf] }
 0x387   : > { %3474 = vmatmul.bf16.gmra.mxu3 %v8435_v56 }
 0x388   : > { %5336 = vst [vmem:[#allocation2 + $0x2f0] sm:$0xff] %v5112_v31  ;;  %v6869_v31 = vor.u32 %v7401_v0, %v6866_v63 }
 0x389   : > { %v3070_v11 = vpop.f32.mrf.mxu2  ;;  %v2894_v23 = vpop.f32.mrf.mxu0 }
 0x38a   : > { %v3071_v9 = vadd.f32 %v3070_v11, %v2982_v5  ;;  %v3159_v40 = vpop.f32.mrf.mxu3  ;;  %v2983_v17 = vpop.f32.mrf.mxu1  ;;  %v7457_v5 = vld [vmem:[%s8037_s21 + $0x62c] sm:$0xf]  ;;  %v7090_v11 = vld [vmem:[%s8037_s21 + $0x644] sm:$0xf0]  ;;  %3721 = vmatpush.bf16.msrb.mxu2 %v6869_v31 }
 0x38b   : > { %v2984_v8 = vadd.f32 %v2983_v17, %v2894_v23  ;;  %v625_v17 = vld [vmem:[#allocation2 + $0x698] sm:$0xff] }
 0x38c   : > { %v3160_v29 = vadd.f32 %v3159_v40, %v3071_v9 }
 0x38e   : > { %v5119_v62 = vadd.f32 %v3160_v29, %v611_v7  ;;  %v7093_v7 = vor.u32 %v7457_v5, %v7090_v11 }
 0x390   : > { %5343 = vst [vmem:[#allocation2 + $0x6e0] sm:$0xff] %v5119_v62  ;;  %3810 = vmatpush.bf16.msrb.mxu3 %v7093_v7 }
 0x391   : > { %v3072_v61 = vpop.f32.mrf.mxu2  ;;  %v2897_v37 = vpop.f32.mrf.mxu0 }
 0x392   : > { %v3073_v59 = vadd.f32 %v3072_v61, %v2984_v8  ;;  %v3161_v6 = vpop.f32.mrf.mxu3  ;;  %v2986_v30 = vpop.f32.mrf.mxu1 }
 0x393   : > { %v2987_v32 = vadd.f32 %v2986_v30, %v2897_v37  ;;  %v7345_v30 = vld [vmem:[%s8037_s21 + $0x2ac] sm:$0xf] }
 0x394   : > { %v3162_v39 = vadd.f32 %v3161_v6, %v3073_v59  ;;  %3212 = vmatmul.bf16.gmra.mxu0 %v8449_v1  ;;  %v7289_v59 = vld [vmem:[%s8037_s21 + $0xec] sm:$0xf]  ;;  %v6418_v6 = vld [vmem:[%s8037_s21 + $0x104] sm:$0xf0] }
 0x395   : > { %3301 = vmatmul.bf16.gmra.mxu1 %v8451_v2 }
 0x396   : > { %v5126_v20 = vadd.f32 %v3162_v39, %v618_v19  ;;  %3390 = vmatmul.bf16.gmra.mxu2 %v8453_v3  ;;  %v6421_v19 = vor.u32 %v7289_v59, %v6418_v6  ;;  %v6642_v39 = vld [vmem:[%s8037_s21 + $0x2c4] sm:$0xf0] }
 0x397   : > { %3479 = vmatmul.bf16.gmra.mxu3 %v8455_v4  ;;  %v6645_v63 = vor.u32 %v7345_v30, %v6642_v39  ;;  %v646_v39 = vld [vmem:[#allocation2 + $0x38] sm:$0xff] }
 0x398   : > { %5350 = vst [vmem:[#allocation2 + $0x1a8] sm:$0xff] %v5126_v20  ;;  %3543 = vmatpush.bf16.msrb.mxu0 %v6421_v19 }
 0x399   : > { %v3075_v12 = vpop.f32.mrf.mxu2  ;;  %v2899_v23 = vpop.f32.mrf.mxu0  ;;  %3632 = vmatpush.bf16.msrb.mxu1 %v6645_v63 }
 0x39a   : > { %v3076_v9 = vadd.f32 %v3075_v12, %v2987_v32  ;;  %v3164_v40 = vpop.f32.mrf.mxu3  ;;  %v2988_v29 = vpop.f32.mrf.mxu1  ;;  %v632_v12 = vld [vmem:[#allocation2 + $0x160] sm:$0xff] }
 0x39b   : > { %v2989_v61 = vadd.f32 %v2988_v29, %v2899_v23  ;;  %v639_v29 = vld [vmem:[#allocation2 + $0x40] sm:$0xff] }
 0x39c   : > { %v3165_v62 = vadd.f32 %v3164_v40, %v3076_v9 }
 0x39e   : > { %v5133_v8 = vadd.f32 %v3165_v62, %v625_v17 }
 0x3a0   : > { %5357 = vst [vmem:[#allocation2 + $0x698] sm:$0xff] %v5133_v8 }
 0x3a1   : > { %v3077_v37 = vpop.f32.mrf.mxu2  ;;  %v2902_v0 = vpop.f32.mrf.mxu0 }
 0x3a2   : > { %v3078_v20 = vadd.f32 %v3077_v37, %v2989_v61  ;;  %v3166_v32 = vpop.f32.mrf.mxu3  ;;  %v2991_v5 = vpop.f32.mrf.mxu1 }
 0x3a3   : > { %v2992_v9 = vadd.f32 %v2991_v5, %v2902_v0  ;;  %v6838_v5 = vld [vmem:[%s8037_s21 + $0x44c] sm:$0xf0] }
 0x3a4   : > { %v3167_v11 = vadd.f32 %v3166_v32, %v3078_v20  ;;  %3217 = vmatmul.bf16.gmra.mxu0 %v8477_v33 }
 0x3a5   : > { %3306 = vmatmul.bf16.gmra.mxu1 %v8479_v34 }
 0x3a6   : > { %v5140_v31 = vadd.f32 %v3167_v11, %v632_v12  ;;  %3395 = vmatmul.bf16.gmra.mxu2 %v8481_v35  ;;  %v7394_v12 = vld [vmem:[%s8037_s21 + $0x434] sm:$0xf] }
 0x3a7   : > { %3484 = vmatmul.bf16.gmra.mxu3 %v8483_v36 }
 0x3a8   : > { %5364 = vst [vmem:[#allocation2 + $0x160] sm:$0xff] %v5140_v31  ;;  %v6841_v31 = vor.u32 %v7394_v12, %v6838_v5 }
 0x3a9   : > { %v3080_v40 = vpop.f32.mrf.mxu2  ;;  %v2904_v17 = vpop.f32.mrf.mxu0 }
 0x3aa   : > { %v3081_v23 = vadd.f32 %v3080_v40, %v2992_v9  ;;  %v3169_v7 = vpop.f32.mrf.mxu3  ;;  %v2993_v62 = vpop.f32.mrf.mxu1  ;;  %v7450_v9 = vld [vmem:[%s8037_s21 + $0x5f4] sm:$0xf]  ;;  %v7062_v40 = vld [vmem:[%s8037_s21 + $0x60c] sm:$0xf0]  ;;  %3722 = vmatpush.bf16.msrb.mxu2 %v6841_v31 }
 0x3ab   : > { %v2994_v59 = vadd.f32 %v2993_v62, %v2904_v17  ;;  %v653_v62 = vld [vmem:[#allocation2 + $0x480] sm:$0xff] }
 0x3ac   : > { %v3170_v8 = vadd.f32 %v3169_v7, %v3081_v23 }
 0x3ae   : > { %v5147_v61 = vadd.f32 %v3170_v8, %v639_v29  ;;  %v7065_v29 = vor.u32 %v7450_v9, %v7062_v40 }
 0x3b0   : > { %5371 = vst [vmem:[#allocation2 + $0x40] sm:$0xff] %v5147_v61  ;;  %3811 = vmatpush.bf16.msrb.mxu3 %v7065_v29 }
 0x3b1   : > { %v3082_v6 = vpop.f32.mrf.mxu2  ;;  %v2907_v30 = vpop.f32.mrf.mxu0 }
 0x3b2   : > { %v3083_v37 = vadd.f32 %v3082_v6, %v2994_v59  ;;  %v3171_v19 = vpop.f32.mrf.mxu3  ;;  %v2996_v20 = vpop.f32.mrf.mxu1 }
 0x3b3   : > { %v2997_v63 = vadd.f32 %v2996_v20, %v2907_v30  ;;  %v7338_v20 = vld [vmem:[%s8037_s21 + $0x274] sm:$0xf] }
 0x3b4   : > { %v3172_v32 = vadd.f32 %v3171_v19, %v3083_v37  ;;  %3222 = vmatmul.bf16.gmra.mxu0 %v8497_v45  ;;  %v7282_v37 = vld [vmem:[%s8037_s21 + $0xb4] sm:$0xf]  ;;  %v6390_v19 = vld [vmem:[%s8037_s21 + $0xcc] sm:$0xf0] }
 0x3b5   : > { %3311 = vmatmul.bf16.gmra.mxu1 %v8499_v46 }
 0x3b6   : > { %v5154_v0 = vadd.f32 %v3172_v32, %v646_v39  ;;  %3400 = vmatmul.bf16.gmra.mxu2 %v8501_v47  ;;  %v6393_v39 = vor.u32 %v7282_v37, %v6390_v19  ;;  %v6614_v32 = vld [vmem:[%s8037_s21 + $0x28c] sm:$0xf0] }
 0x3b7   : > { %3489 = vmatmul.bf16.gmra.mxu3 %v8503_v49  ;;  %v6617_v5 = vor.u32 %v7338_v20, %v6614_v32  ;;  %v674_v32 = vld [vmem:[#allocation2 + $0x2e0] sm:$0xff] }
 0x3b8   : > { %5378 = vst [vmem:[#allocation2 + $0x38] sm:$0xff] %v5154_v0  ;;  %3544 = vmatpush.bf16.msrb.mxu0 %v6393_v39 }
 0x3b9   : > { %v3085_v11 = vpop.f32.mrf.mxu2  ;;  %v2909_v17 = vpop.f32.mrf.mxu0  ;;  %3633 = vmatpush.bf16.msrb.mxu1 %v6617_v5 }
 0x3ba   : > { %v3086_v23 = vadd.f32 %v3085_v11, %v2997_v63  ;;  %v3174_v7 = vpop.f32.mrf.mxu3  ;;  %v2998_v8 = vpop.f32.mrf.mxu1  ;;  %v660_v11 = vld [vmem:[#allocation2 + $0xc8] sm:$0xff] }
 0x3bb   : > { %v2999_v6 = vadd.f32 %v2998_v8, %v2909_v17  ;;  %v667_v8 = vld [vmem:[#allocation2 + $0x5b8] sm:$0xff] }
 0x3bc   : > { %v3175_v61 = vadd.f32 %v3174_v7, %v3086_v23 }
 0x3be   : > { %v5161_v59 = vadd.f32 %v3175_v61, %v653_v62 }
 0x3c0   : > { %5385 = vst [vmem:[#allocation2 + $0x480] sm:$0xff] %v5161_v59 }
 0x3c1   : > { %v3087_v30 = vpop.f32.mrf.mxu2  ;;  %v2912_v12 = vpop.f32.mrf.mxu0 }
 0x3c2   : > { %v3088_v0 = vadd.f32 %v3087_v30, %v2999_v6  ;;  %v3176_v63 = vpop.f32.mrf.mxu3  ;;  %v3001_v9 = vpop.f32.mrf.mxu1 }
 0x3c3   : > { %v3002_v23 = vadd.f32 %v3001_v9, %v2912_v12  ;;  %v6810_v9 = vld [vmem:[%s8037_s21 + $0x414] sm:$0xf0] }
 0x3c4   : > { %v3177_v40 = vadd.f32 %v3176_v63, %v3088_v0  ;;  %3227 = vmatmul.bf16.gmra.mxu0 %v8524_v18 }
 0x3c5   : > { %3316 = vmatmul.bf16.gmra.mxu1 %v8527_v21 }
 0x3c6   : > { %v5168_v31 = vadd.f32 %v3177_v40, %v660_v11  ;;  %3405 = vmatmul.bf16.gmra.mxu2 %v8529_v22  ;;  %v7387_v11 = vld [vmem:[%s8037_s21 + $0x3fc] sm:$0xf] }
 0x3c7   : > { %3494 = vmatmul.bf16.gmra.mxu3 %v8531_v24 }
 0x3c8   : > { %5392 = vst [vmem:[#allocation2 + $0xc8] sm:$0xff] %v5168_v31  ;;  %v6813_v31 = vor.u32 %v7387_v11, %v6810_v9 }
 0x3c9   : > { %v3090_v7 = vpop.f32.mrf.mxu2  ;;  %v2914_v62 = vpop.f32.mrf.mxu0 }
 0x3ca   : > { %v3091_v17 = vadd.f32 %v3090_v7, %v3002_v23  ;;  %v3179_v29 = vpop.f32.mrf.mxu3  ;;  %v3003_v61 = vpop.f32.mrf.mxu1  ;;  %v7443_v23 = vld [vmem:[%s8037_s21 + $0x5bc] sm:$0xf]  ;;  %v7034_v7 = vld [vmem:[%s8037_s21 + $0x5d4] sm:$0xf0]  ;;  %3723 = vmatpush.bf16.msrb.mxu2 %v6813_v31 }
 0x3cb   : > { %v3004_v37 = vadd.f32 %v3003_v61, %v2914_v62  ;;  %v458_v61 = vld [vmem:[#allocation2 + $0x4d8] sm:$0xff] }
 0x3cc   : > { %v3180_v59 = vadd.f32 %v3179_v29, %v3091_v17 }
 0x3ce   : > { %v5175_v6 = vadd.f32 %v3180_v59, %v667_v8  ;;  %v7037_v8 = vor.u32 %v7443_v23, %v7034_v7 }
 0x3d0   : > { %5399 = vst [vmem:[#allocation2 + $0x5b8] sm:$0xff] %v5175_v6  ;;  %3812 = vmatpush.bf16.msrb.mxu3 %v7037_v8  ;;  %v9746_v8 = vld [vmem:[#allocation22_spill] sm:$0xff] }
 0x3d1   : > { %v3092_v19 = vpop.f32.mrf.mxu2  ;;  %v3193_v20 = vpop.f32.mrf.mxu0 }
 0x3d2   : > { %v3093_v30 = vadd.f32 %v3092_v19, %v3004_v37  ;;  %v3181_v39 = vpop.f32.mrf.mxu3  ;;  %v3282_v0 = vpop.f32.mrf.mxu1 }
 0x3d3   : > { %v3283_v5 = vadd.f32 %v3282_v0, %v3193_v20  ;;  %v7331_v0 = vld [vmem:[%s8037_s21 + $0x23c] sm:$0xf] }
 0x3d4   : > { %v3182_v63 = vadd.f32 %v3181_v39, %v3093_v30  ;;  %3232 = vmatmul.bf16.gmra.mxu0 %v8545_v41  ;;  %v7275_v30 = vld [vmem:[%s8037_s21 + $0x7c] sm:$0xf]  ;;  %v6362_v39 = vld [vmem:[%s8037_s21 + $0x94] sm:$0xf0] }
 0x3d5   : > { %3321 = vmatmul.bf16.gmra.mxu1 %v8547_v43 }
 0x3d6   : > { %v5182_v12 = vadd.f32 %v3182_v63, %v674_v32  ;;  %3410 = vmatmul.bf16.gmra.mxu2 %v8549_v44  ;;  %v6365_v32 = vor.u32 %v7275_v30, %v6362_v39  ;;  %v6586_v63 = vld [vmem:[%s8037_s21 + $0x254] sm:$0xf0] }
 0x3d7   : > { %3499 = vmatmul.bf16.gmra.mxu3 %v8551_v58  ;;  %v6589_v9 = vor.u32 %v7331_v0, %v6586_v63 }
 0x3d8   : > { %5406 = vst [vmem:[#allocation2 + $0x2e0] sm:$0xff] %v5182_v12  ;;  %3545 = vmatpush.bf16.msrb.mxu0 %v6365_v32 }
 0x3d9   : > { %v3371_v40 = vpop.f32.mrf.mxu2  ;;  %v3195_v62 = vpop.f32.mrf.mxu0  ;;  %3634 = vmatpush.bf16.msrb.mxu1 %v6589_v9 }
 0x3da   : > { %v3372_v17 = vadd.f32 %v3371_v40, %v3283_v5  ;;  %v3460_v29 = vpop.f32.mrf.mxu3  ;;  %v3284_v59 = vpop.f32.mrf.mxu1  ;;  %v465_v40 = vld [vmem:[#allocation2 + $0x510] sm:$0xff] }
 0x3db   : > { %v3285_v19 = vadd.f32 %v3284_v59, %v3195_v62  ;;  %v9745_v62 = vld [vmem:[#allocation21_spill] sm:$0xff] }
 0x3dc   : > { %v3461_v6 = vadd.f32 %v3460_v29, %v3372_v17  ;;  %v9744_v29 = vld [vmem:[#allocation20_spill] sm:$0xff] }
 0x3de   : > { %v4966_v37 = vadd.f32 %v3461_v6, %v458_v61 }
 0x3e0   : > { %5190 = vst [vmem:[#allocation2 + $0x4d8] sm:$0xff] %v4966_v37 }
 0x3e1   : > { %v3373_v20 = vpop.f32.mrf.mxu2  ;;  %v3198_v11 = vpop.f32.mrf.mxu0 }
 0x3e2   : > { %v3374_v12 = vadd.f32 %v3373_v20, %v3285_v19  ;;  %v3462_v5 = vpop.f32.mrf.mxu3  ;;  %v3287_v23 = vpop.f32.mrf.mxu1  ;;  %v472_v19 = vld [vmem:[#allocation2 + $0x2c0] sm:$0xff] }
 0x3e3   : > { %v3288_v17 = vadd.f32 %v3287_v23, %v3198_v11  ;;  %v479_v11 = vld [vmem:[#allocation2 + $0x348] sm:$0xff]  ;;  %v9747_v23 = vld [vmem:[#allocation23_spill] sm:$0xff] }
 0x3e4   : > { %v3463_v7 = vadd.f32 %v3462_v5, %v3374_v12  ;;  %3237 = vmatmul.bf16.gmra.mxu0 %v8571_v57 }
 0x3e5   : > { %3326 = vmatmul.bf16.gmra.mxu1 %v9744_v29  ;;  %v493_v29 = vld [vmem:[#allocation2 + $0x3d0] sm:$0xff] }
 0x3e6   : > { %v4973_v31 = vadd.f32 %v3463_v7, %v465_v40  ;;  %3415 = vmatmul.bf16.gmra.mxu2 %v9745_v62 }
 0x3e7   : > { %3504 = vmatmul.bf16.gmra.mxu3 %v9746_v8 }
 0x3e8   : > { %5197 = vst [vmem:[#allocation2 + $0x510] sm:$0xff] %v4973_v31 }
 0x3e9   : > { %v3376_v61 = vpop.f32.mrf.mxu2  ;;  %v3200_v37 = vpop.f32.mrf.mxu0 }
 0x3ea   : > { %v3377_v59 = vadd.f32 %v3376_v61, %v3288_v17  ;;  %v3465_v6 = vpop.f32.mrf.mxu3  ;;  %v3289_v30 = vpop.f32.mrf.mxu1  ;;  %v9748_v17 = vld [vmem:[#allocation24_spill] sm:$0xff]  ;;  %v9749_v61 = vld [vmem:[#allocation25_spill] sm:$0xff] }
 0x3eb   : > { %v3290_v32 = vadd.f32 %v3289_v30, %v3200_v37  ;;  %v6782_v37 = vld [vmem:[%s8037_s21 + $0x3dc] sm:$0xf0] }
 0x3ec   : > { %v3466_v39 = vadd.f32 %v3465_v6, %v3377_v59  ;;  %v9750_v59 = vld [vmem:[#allocation26_spill] sm:$0xff]  ;;  %v7380_v6 = vld [vmem:[%s8037_s21 + $0x3c4] sm:$0xf] }
 0x3ed   : > { %v6785_v30 = vor.u32 %v7380_v6, %v6782_v37 }
 0x3ee   : > { %v4980_v20 = vadd.f32 %v3466_v39, %v472_v19  ;;  %v7436_v39 = vld [vmem:[%s8037_s21 + $0x584] sm:$0xf] }
 0x3ef   : > { %3724 = vmatpush.bf16.msrb.mxu2 %v6785_v30  ;;  %v9751_v30 = vld [vmem:[#allocation27_spill] sm:$0xff] }
 0x3f0   : > { %5204 = vst [vmem:[#allocation2 + $0x2c0] sm:$0xff] %v4980_v20  ;;  %v7006_v20 = vld [vmem:[%s8037_s21 + $0x59c] sm:$0xf0] }
 0x3f1   : > { %v3378_v0 = vpop.f32.mrf.mxu2  ;;  %v3203_v5 = vpop.f32.mrf.mxu0 }
 0x3f2   : > { %v3379_v63 = vadd.f32 %v3378_v0, %v3290_v32  ;;  %v3467_v12 = vpop.f32.mrf.mxu3  ;;  %v3292_v9 = vpop.f32.mrf.mxu1 }
 0x3f3   : > { %v3293_v31 = vadd.f32 %v3292_v9, %v3203_v5  ;;  %v486_v5 = vld [vmem:[#allocation2 + $0x538] sm:$0xff] }
 0x3f4   : > { %v3468_v40 = vadd.f32 %v3467_v12, %v3379_v63  ;;  %3242 = vmatmul.bf16.gmra.mxu0 %v9747_v23  ;;  %v7009_v12 = vor.u32 %v7436_v39, %v7006_v20  ;;  %v6558_v23 = vld [vmem:[%s8037_s21 + $0x21c] sm:$0xf0] }
 0x3f5   : > { %3331 = vmatmul.bf16.gmra.mxu1 %v9748_v17  ;;  %v7324_v17 = vld [vmem:[%s8037_s21 + $0x204] sm:$0xf] }
 0x3f6   : > { %v4987_v7 = vadd.f32 %v3468_v40, %v479_v11  ;;  %3420 = vmatmul.bf16.gmra.mxu2 %v9749_v61  ;;  %3813 = vmatpush.bf16.msrb.mxu3 %v7009_v12  ;;  %v6334_v61 = vld [vmem:[%s8037_s21 + $0x5c] sm:$0xf0]  ;;  %v6561_v62 = vor.u32 %v7324_v17, %v6558_v23  ;;  %v9753_v12 = vld [vmem:[#allocation29_spill] sm:$0xff]  ;;  %v500_v17 = vld [vmem:[#allocation2 + $0x610] sm:$0xff] }
 0x3f7   : > { %3509 = vmatmul.bf16.gmra.mxu3 %v9750_v59  ;;  %v7268_v59 = vld [vmem:[%s8037_s21 + $0x44] sm:$0xf] }
 0x3f8   : > { %5211 = vst [vmem:[#allocation2 + $0x348] sm:$0xff] %v4987_v7  ;;  %v6337_v37 = vor.u32 %v7268_v59, %v6334_v61  ;;  %3635 = vmatpush.bf16.msrb.mxu1 %v6561_v62  ;;  %v9754_v61 = vld [vmem:[#allocation30_spill] sm:$0xff] }
 0x3f9   : > { %v3381_v19 = vpop.f32.mrf.mxu2  ;;  %v3205_v63 = vpop.f32.mrf.mxu0 }
 0x3fa   : > { %v3382_v32 = vadd.f32 %v3381_v19, %v3293_v31  ;;  %v3470_v0 = vpop.f32.mrf.mxu3  ;;  %v3294_v11 = vpop.f32.mrf.mxu1  ;;  %3546 = vmatpush.bf16.msrb.mxu0 %v6337_v37 }
 0x3fb   : > { %v3295_v7 = vadd.f32 %v3294_v11, %v3205_v63  ;;  %v9752_v63 = vld [vmem:[#allocation28_spill] sm:$0xff] }
 0x3fc   : > { %v3471_v9 = vadd.f32 %v3470_v0, %v3382_v32 }
 0x3fe   : > { %v4994_v40 = vadd.f32 %v3471_v9, %v486_v5 }
 0x400   : > { %5218 = vst [vmem:[#allocation2 + $0x538] sm:$0xff] %v4994_v40 }
 0x401   : > { %v3383_v6 = vpop.f32.mrf.mxu2  ;;  %v3208_v8 = vpop.f32.mrf.mxu0 }
 0x402   : > { %v3384_v31 = vadd.f32 %v3383_v6, %v3295_v7  ;;  %v3472_v19 = vpop.f32.mrf.mxu3  ;;  %v3297_v39 = vpop.f32.mrf.mxu1 }
 0x403   : > { %v3298_v0 = vadd.f32 %v3297_v39, %v3208_v8 }
 0x404   : > { %v3473_v20 = vadd.f32 %v3472_v19, %v3384_v31  ;;  %3247 = vmatmul.bf16.gmra.mxu0 %v9751_v30  ;;  %v507_v31 = vld [vmem:[#allocation2 + $0x4b0] sm:$0xff]  ;;  %v521_v30 = vld [vmem:[#allocation2 + $0x2b8] sm:$0xff] }
 0x405   : > { %3336 = vmatmul.bf16.gmra.mxu1 %v9752_v63 }
 0x406   : > { %v5001_v32 = vadd.f32 %v3473_v20, %v493_v29  ;;  %3425 = vmatmul.bf16.gmra.mxu2 %v9753_v12  ;;  %v9755_v20 = vld [vmem:[#allocation31_spill] sm:$0xff] }
 0x407   : > { %3514 = vmatmul.bf16.gmra.mxu3 %v9754_v61  ;;  %v6530_v61 = vld [vmem:[%s8037_s21 + $0x1e4] sm:$0xf0] }
 0x408   : > { %5225 = vst [vmem:[#allocation2 + $0x3d0] sm:$0xff] %v5001_v32 }
 0x409   : > { %v3386_v59 = vpop.f32.mrf.mxu2  ;;  %v3210_v23 = vpop.f32.mrf.mxu0 }
 0x40a   : > { %v3387_v5 = vadd.f32 %v3386_v59, %v3298_v0  ;;  %v3475_v11 = vpop.f32.mrf.mxu3  ;;  %v3299_v9 = vpop.f32.mrf.mxu1  ;;  %v9756_v59 = vld [vmem:[#allocation32_spill] sm:$0xff] }
 0x40b   : > { %v3300_v62 = vadd.f32 %v3299_v9, %v3210_v23  ;;  %v7373_v23 = vld [vmem:[%s8037_s21 + $0x38c] sm:$0xf] }
 0x40c   : > { %v3476_v40 = vadd.f32 %v3475_v11, %v3387_v5  ;;  %v9757_v5 = vld [vmem:[#allocation33_spill] sm:$0xff]  ;;  %v9758_v11 = vld [vmem:[#allocation34_spill] sm:$0xff] }
 0x40e   : > { %v5008_v7 = vadd.f32 %v3476_v40, %v500_v17  ;;  %v6754_v17 = vld [vmem:[%s8037_s21 + $0x3a4] sm:$0xf0] }
 0x40f   : > { %v6757_v40 = vor.u32 %v7373_v23, %v6754_v17 }
 0x410   : > { %5232 = vst [vmem:[#allocation2 + $0x610] sm:$0xff] %v5008_v7  ;;  %v7429_v7 = vld [vmem:[%s8037_s21 + $0x54c] sm:$0xf] }
 0x411   : > { %v3388_v29 = vpop.f32.mrf.mxu2  ;;  %v3213_v37 = vpop.f32.mrf.mxu0  ;;  %3725 = vmatpush.bf16.msrb.mxu2 %v6757_v40  ;;  %v9759_v40 = vld [vmem:[#allocation35_spill] sm:$0xff] }
 0x412   : > { %v3389_v8 = vadd.f32 %v3388_v29, %v3300_v62  ;;  %v3477_v6 = vpop.f32.mrf.mxu3  ;;  %v3302_v19 = vpop.f32.mrf.mxu1  ;;  %v6978_v62 = vld [vmem:[%s8037_s21 + $0x564] sm:$0xf0] }
 0x413   : > { %v3303_v0 = vadd.f32 %v3302_v19, %v3213_v37  ;;  %v6981_v37 = vor.u32 %v7429_v7, %v6978_v62 }
 0x414   : > { %v3478_v39 = vadd.f32 %v3477_v6, %v3389_v8  ;;  %3252 = vmatmul.bf16.gmra.mxu0 %v9755_v20  ;;  %v7317_v20 = vld [vmem:[%s8037_s21 + $0x1cc] sm:$0xf] }
 0x415   : > { %3341 = vmatmul.bf16.gmra.mxu1 %v9756_v59  ;;  %3814 = vmatpush.bf16.msrb.mxu3 %v6981_v37  ;;  %v6306_v59 = vld [vmem:[%s8037_s21 + $0x24] sm:$0xf0]  ;;  %v6533_v63 = vor.u32 %v7317_v20, %v6530_v61 }
 0x416   : > { %v5015_v32 = vadd.f32 %v3478_v39, %v507_v31  ;;  %3430 = vmatmul.bf16.gmra.mxu2 %v9757_v5  ;;  %v514_v31 = vld [vmem:[#allocation2 + $0x188] sm:$0xff] }
 0x417   : > { %3519 = vmatmul.bf16.gmra.mxu3 %v9758_v11  ;;  %v7261_v5 = vld [vmem:[%s8037_s21 + $0xc] sm:$0xf]  ;;  %3636 = vmatpush.bf16.msrb.mxu1 %v6533_v63 }
 0x418   : > { %5239 = vst [vmem:[#allocation2 + $0x4b0] sm:$0xff] %v5015_v32  ;;  %v6309_v17 = vor.u32 %v7261_v5, %v6306_v59  ;;  %v9761_v37 = vld [vmem:[#allocation37_spill] sm:$0xff]  ;;  %v9762_v59 = vld [vmem:[#allocation38_spill] sm:$0xff] }
 0x419   : > { %v3391_v9 = vpop.f32.mrf.mxu2  ;;  %v3215_v6 = vpop.f32.mrf.mxu0  ;;  %v528_v20 = vld [vmem:[#allocation2 + $0x648] sm:$0xff] }
 0x41a   : > { %v3392_v29 = vadd.f32 %v3391_v9, %v3303_v0  ;;  %v3480_v8 = vpop.f32.mrf.mxu3  ;;  %v3304_v19 = vpop.f32.mrf.mxu1  ;;  %3547 = vmatpush.bf16.msrb.mxu0 %v6309_v17 }
 0x41b   : > { %v3305_v11 = vadd.f32 %v3304_v19, %v3215_v6  ;;  %v9760_v6 = vld [vmem:[#allocation36_spill] sm:$0xff] }
 0x41c   : > { %v3481_v39 = vadd.f32 %v3480_v8, %v3392_v29 }
 0x41e   : > { %v5022_v32 = vadd.f32 %v3481_v39, %v514_v31 }
 0x420   : > { %5246 = vst [vmem:[#allocation2 + $0x188] sm:$0xff] %v5022_v32 }
 0x421   : > { %v3393_v23 = vpop.f32.mrf.mxu2  ;;  %v3218_v12 = vpop.f32.mrf.mxu0 }
 0x422   : > { %v3394_v0 = vadd.f32 %v3393_v23, %v3305_v11  ;;  %v3482_v9 = vpop.f32.mrf.mxu3  ;;  %v3307_v7 = vpop.f32.mrf.mxu1 }
 0x423   : > { %v3308_v8 = vadd.f32 %v3307_v7, %v3218_v12 }
 0x424   : > { %v3483_v62 = vadd.f32 %v3482_v9, %v3394_v0  ;;  %3257 = vmatmul.bf16.gmra.mxu0 %v9759_v40  ;;  %v535_v0 = vld [vmem:[#allocation2 + $0x1f8] sm:$0xff] }
 0x425   : > { %3346 = vmatmul.bf16.gmra.mxu1 %v9760_v6  ;;  %v549_v40 = vld [vmem:[#allocation2 + $0x6f8] sm:$0xff] }
 0x426   : > { %v5029_v29 = vadd.f32 %v3483_v62, %v521_v30  ;;  %3435 = vmatmul.bf16.gmra.mxu2 %v9761_v37  ;;  %v9763_v62 = vld [vmem:[#allocation39_spill] sm:$0xff] }
 0x427   : > { %3524 = vmatmul.bf16.gmra.mxu3 %v9762_v59  ;;  %v7370_v59 = vld [vmem:[%s8037_s21 + $0x370] sm:$0xf0] }
 0x428   : > { %5253 = vst [vmem:[#allocation2 + $0x2b8] sm:$0xff] %v5029_v29 }
 0x429   : > { %v3396_v5 = vpop.f32.mrf.mxu2  ;;  %v3220_v61 = vpop.f32.mrf.mxu0 }
 0x42a   : > { %v3397_v11 = vadd.f32 %v3396_v5, %v3308_v8  ;;  %v3485_v31 = vpop.f32.mrf.mxu3  ;;  %v3309_v19 = vpop.f32.mrf.mxu1  ;;  %v9764_v5 = vld [vmem:[#allocation40_spill] sm:$0xff] }
 0x42b   : > { %v3310_v63 = vadd.f32 %v3309_v19, %v3220_v61  ;;  %v6956_v61 = vld [vmem:[%s8037_s21 + $0x518] sm:$0xf] }
 0x42c   : > { %v3486_v39 = vadd.f32 %v3485_v31, %v3397_v11  ;;  %v9765_v11 = vld [vmem:[#allocation41_spill] sm:$0xff]  ;;  %v9766_v31 = vld [vmem:[#allocation42_spill] sm:$0xff] }
 0x42e   : > { %v5036_v32 = vadd.f32 %v3486_v39, %v528_v20  ;;  %v7426_v20 = vld [vmem:[%s8037_s21 + $0x530] sm:$0xf0] }
 0x42f   : > { %v6957_v39 = vor.u32 %v7426_v20, %v6956_v61 }
 0x430   : > { %5260 = vst [vmem:[#allocation2 + $0x648] sm:$0xff] %v5036_v32  ;;  %v7180_v32 = vld [vmem:[%s8037_s21 + $0x6d8] sm:$0xf] }
 0x431   : > { %v3398_v30 = vpop.f32.mrf.mxu2  ;;  %v3223_v17 = vpop.f32.mrf.mxu0  ;;  %4074 = vmatpush.bf16.msra.mxu2 %v6957_v39 }
 0x432   : > { %v3399_v12 = vadd.f32 %v3398_v30, %v3310_v63  ;;  %v3487_v23 = vpop.f32.mrf.mxu3  ;;  %v3312_v9 = vpop.f32.mrf.mxu1  ;;  %v7482_v63 = vld [vmem:[%s8037_s21 + $0x6f0] sm:$0xf0] }
 0x433   : > { %v3313_v8 = vadd.f32 %v3312_v9, %v3223_v17  ;;  %v7181_v17 = vor.u32 %v7482_v63, %v7180_v32 }
 0x434   : > { %v3488_v7 = vadd.f32 %v3487_v23, %v3399_v12  ;;  %3262 = vmatmul.bf16.gmra.mxu0 %v9763_v62  ;;  %v6732_v62 = vld [vmem:[%s8037_s21 + $0x358] sm:$0xf] }
 0x435   : > { %3351 = vmatmul.bf16.gmra.mxu1 %v9764_v5  ;;  %4163 = vmatpush.bf16.msra.mxu3 %v7181_v17  ;;  %v7314_v5 = vld [vmem:[%s8037_s21 + $0x1b0] sm:$0xf0]  ;;  %v6733_v6 = vor.u32 %v7370_v59, %v6732_v62  ;;  %v556_v62 = vld [vmem:[#allocation2 + $0x3b8] sm:$0xff] }
 0x436   : > { %v5043_v29 = vadd.f32 %v3488_v7, %v535_v0  ;;  %3440 = vmatmul.bf16.gmra.mxu2 %v9765_v11  ;;  %v542_v0 = vld [vmem:[#allocation2 + $0x20] sm:$0xff]  ;;  %v6508_v11 = vld [vmem:[%s8037_s21 + $0x198] sm:$0xf] }
 0x437   : > { %3529 = vmatmul.bf16.gmra.mxu3 %v9766_v31  ;;  %v6509_v20 = vor.u32 %v7314_v5, %v6508_v11  ;;  %3985 = vmatpush.bf16.msra.mxu1 %v6733_v6 }
 0x438   : > { %5267 = vst [vmem:[#allocation2 + $0x1f8] sm:$0xff] %v5043_v29 }
 0x439   : > { %v3401_v19 = vpop.f32.mrf.mxu2  ;;  %v3225_v23 = vpop.f32.mrf.mxu0  ;;  %3896 = vmatpush.bf16.msra.mxu0 %v6509_v20 }
 0x43a   : > { %v3402_v30 = vadd.f32 %v3401_v19, %v3313_v8  ;;  %v3490_v12 = vpop.f32.mrf.mxu3  ;;  %v3314_v9 = vpop.f32.mrf.mxu1 }
 0x43b   : > { %v3315_v31 = vadd.f32 %v3314_v9, %v3225_v23 }
 0x43c   : > { %v3491_v7 = vadd.f32 %v3490_v12, %v3402_v30 }
 0x43e   : > { %v5050_v29 = vadd.f32 %v3491_v7, %v542_v0  ;;  %v563_v7 = vld [vmem:[#allocation2 + $0x1b0] sm:$0xff] }
 0x440   : > { %5274 = vst [vmem:[#allocation2 + $0x20] sm:$0xff] %v5050_v29 }
 0x441   : > { %v3403_v61 = vpop.f32.mrf.mxu2  ;;  %v3228_v37 = vpop.f32.mrf.mxu0 }
 0x442   : > { %v3404_v8 = vadd.f32 %v3403_v61, %v3315_v31  ;;  %v3492_v19 = vpop.f32.mrf.mxu3  ;;  %v3317_v32 = vpop.f32.mrf.mxu1 }
 0x443   : > { %v3318_v30 = vadd.f32 %v3317_v32, %v3228_v37  ;;  %v7419_v32 = vld [vmem:[%s8037_s21 + $0x4f8] sm:$0xf0] }
 0x444   : > { %v3493_v63 = vadd.f32 %v3492_v19, %v3404_v8  ;;  %3267 = vmatmul.bf16.gmra.mxu0 %v8715_v10  ;;  %v6928_v19 = vld [vmem:[%s8037_s21 + $0x4e0] sm:$0xf] }
 0x445   : > { %3356 = vmatmul.bf16.gmra.mxu1 %v8719_v38 }
 0x446   : > { %v5057_v39 = vadd.f32 %v3493_v63, %v549_v40  ;;  %3445 = vmatmul.bf16.gmra.mxu2 %v8721_v42 }
 0x447   : > { %3534 = vmatmul.bf16.gmra.mxu3 %v8723_v60 }
 0x448   : > { %5281 = vst [vmem:[#allocation2 + $0x6f8] sm:$0xff] %v5057_v39  ;;  %v6929_v39 = vor.u32 %v7419_v32, %v6928_v19 }
 0x449   : > { %v3406_v5 = vpop.f32.mrf.mxu2  ;;  %v3230_v59 = vpop.f32.mrf.mxu0 }
 0x44a   : > { %v3407_v11 = vadd.f32 %v3406_v5, %v3318_v30  ;;  %v3495_v31 = vpop.f32.mrf.mxu3  ;;  %v3319_v12 = vpop.f32.mrf.mxu1  ;;  %v7152_v30 = vld [vmem:[%s8037_s21 + $0x6a0] sm:$0xf]  ;;  %v7475_v5 = vld [vmem:[%s8037_s21 + $0x6b8] sm:$0xf0]  ;;  %4075 = vmatpush.bf16.msra.mxu2 %v6929_v39 }
 0x44b   : > { %v3320_v6 = vadd.f32 %v3319_v12, %v3230_v59  ;;  %v570_v12 = vld [vmem:[#allocation2 + $0x5a8] sm:$0xff] }
 0x44c   : > { %v3496_v23 = vadd.f32 %v3495_v31, %v3407_v11 }
 0x44e   : > { %v5064_v17 = vadd.f32 %v3496_v23, %v556_v62  ;;  %v7153_v62 = vor.u32 %v7475_v5, %v7152_v30 }
 0x450   : > { %5288 = vst [vmem:[#allocation2 + $0x3b8] sm:$0xff] %v5064_v17  ;;  %4164 = vmatpush.bf16.msra.mxu3 %v7153_v62 }
 0x451   : > { %v3408_v40 = vpop.f32.mrf.mxu2  ;;  %v3233_v9 = vpop.f32.mrf.mxu0 }
 0x452   : > { %v3409_v37 = vadd.f32 %v3408_v40, %v3320_v6  ;;  %v3497_v0 = vpop.f32.mrf.mxu3  ;;  %v3322_v29 = vpop.f32.mrf.mxu1 }
 0x453   : > { %v3323_v8 = vadd.f32 %v3322_v29, %v3233_v9  ;;  %v6704_v29 = vld [vmem:[%s8037_s21 + $0x320] sm:$0xf] }
 0x454   : > { %v3498_v61 = vadd.f32 %v3497_v0, %v3409_v37  ;;  %3548 = vmatmul.bf16.vlgmr.msrb.gmra.mxu0 %v8351_v48  ;;  %v6480_v37 = vld [vmem:[%s8037_s21 + $0x160] sm:$0xf]  ;;  %v7307_v0 = vld [vmem:[%s8037_s21 + $0x178] sm:$0xf0] }
 0x455   : > { %3637 = vmatmul.bf16.vlgmr.msrb.gmra.mxu1 %v8355_v52 }
 0x456   : > { %v5071_v20 = vadd.f32 %v3498_v61, %v563_v7  ;;  %3726 = vmatmul.bf16.vlgmr.msrb.gmra.mxu2 %v8357_v53  ;;  %v6481_v7 = vor.u32 %v7307_v0, %v6480_v37  ;;  %v7363_v61 = vld [vmem:[%s8037_s21 + $0x338] sm:$0xf0] }
 0x457   : > { %3815 = vmatmul.bf16.vlgmr.msrb.gmra.mxu3 %v8359_v54  ;;  %v6705_v32 = vor.u32 %v7363_v61, %v6704_v29  ;;  %v591_v61 = vld [vmem:[#allocation2 + $0x50] sm:$0xff] }
 0x458   : > { %5295 = vst [vmem:[#allocation2 + $0x1b0] sm:$0xff] %v5071_v20  ;;  %3897 = vmatpush.bf16.msra.mxu0 %v6481_v7 }
 0x459   : > { %v3411_v63 = vpop.f32.mrf.mxu2  ;;  %v3235_v59 = vpop.f32.mrf.mxu0  ;;  %3986 = vmatpush.bf16.msra.mxu1 %v6705_v32 }
 0x45a   : > { %v3412_v11 = vadd.f32 %v3411_v63, %v3323_v8  ;;  %v3500_v31 = vpop.f32.mrf.mxu3  ;;  %v3324_v23 = vpop.f32.mrf.mxu1  ;;  %v577_v63 = vld [vmem:[#allocation2 + $0x4c0] sm:$0xff] }
 0x45b   : > { %v3325_v40 = vadd.f32 %v3324_v23, %v3235_v59  ;;  %v584_v23 = vld [vmem:[#allocation2 + $0x120] sm:$0xff] }
 0x45c   : > { %v3501_v17 = vadd.f32 %v3500_v31, %v3412_v11 }
 0x45e   : > { %v5078_v6 = vadd.f32 %v3501_v17, %v570_v12 }
 0x460   : > { %5302 = vst [vmem:[#allocation2 + $0x5a8] sm:$0xff] %v5078_v6 }
 0x461   : > { %v3413_v9 = vpop.f32.mrf.mxu2  ;;  %v3238_v19 = vpop.f32.mrf.mxu0 }
 0x462   : > { %v3414_v20 = vadd.f32 %v3413_v9, %v3325_v40  ;;  %v3502_v8 = vpop.f32.mrf.mxu3  ;;  %v3327_v30 = vpop.f32.mrf.mxu1 }
 0x463   : > { %v3328_v11 = vadd.f32 %v3327_v30, %v3238_v19  ;;  %v7412_v30 = vld [vmem:[%s8037_s21 + $0x4c0] sm:$0xf0] }
 0x464   : > { %v3503_v5 = vadd.f32 %v3502_v8, %v3414_v20  ;;  %3553 = vmatmul.bf16.gmra.mxu0 %v8381_v13 }
 0x465   : > { %3642 = vmatmul.bf16.gmra.mxu1 %v8383_v14 }
 0x466   : > { %v5085_v39 = vadd.f32 %v3503_v5, %v577_v63  ;;  %3731 = vmatmul.bf16.gmra.mxu2 %v8385_v15  ;;  %v6900_v63 = vld [vmem:[%s8037_s21 + $0x4a8] sm:$0xf] }
 0x467   : > { %3820 = vmatmul.bf16.gmra.mxu3 %v8387_v16 }
 0x468   : > { %5309 = vst [vmem:[#allocation2 + $0x4c0] sm:$0xff] %v5085_v39  ;;  %v6901_v39 = vor.u32 %v7412_v30, %v6900_v63 }
 0x469   : > { %v3416_v31 = vpop.f32.mrf.mxu2  ;;  %v3240_v12 = vpop.f32.mrf.mxu0 }
 0x46a   : > { %v3417_v59 = vadd.f32 %v3416_v31, %v3328_v11  ;;  %v3505_v62 = vpop.f32.mrf.mxu3  ;;  %v3329_v17 = vpop.f32.mrf.mxu1  ;;  %v7124_v11 = vld [vmem:[%s8037_s21 + $0x668] sm:$0xf]  ;;  %v7468_v31 = vld [vmem:[%s8037_s21 + $0x680] sm:$0xf0]  ;;  %4076 = vmatpush.bf16.msra.mxu2 %v6901_v39 }
 0x46b   : > { %v3330_v37 = vadd.f32 %v3329_v17, %v3240_v12  ;;  %v598_v17 = vld [vmem:[#allocation2 + $0x238] sm:$0xff] }
 0x46c   : > { %v3506_v6 = vadd.f32 %v3505_v62, %v3417_v59 }
 0x46e   : > { %v5092_v40 = vadd.f32 %v3506_v6, %v584_v23  ;;  %v7125_v23 = vor.u32 %v7468_v31, %v7124_v11 }
 0x470   : > { %5316 = vst [vmem:[#allocation2 + $0x120] sm:$0xff] %v5092_v40  ;;  %4165 = vmatpush.bf16.msra.mxu3 %v7125_v23 }
 0x471   : > { %v3418_v0 = vpop.f32.mrf.mxu2  ;;  %v3243_v29 = vpop.f32.mrf.mxu0 }
 0x472   : > { %v3419_v9 = vadd.f32 %v3418_v0, %v3330_v37  ;;  %v3507_v7 = vpop.f32.mrf.mxu3  ;;  %v3332_v20 = vpop.f32.mrf.mxu1 }
 0x473   : > { %v3333_v32 = vadd.f32 %v3332_v20, %v3243_v29  ;;  %v6676_v20 = vld [vmem:[%s8037_s21 + $0x2e8] sm:$0xf] }
 0x474   : > { %v3508_v8 = vadd.f32 %v3507_v7, %v3419_v9  ;;  %3558 = vmatmul.bf16.gmra.mxu0 %v8401_v25  ;;  %v6452_v9 = vld [vmem:[%s8037_s21 + $0x128] sm:$0xf]  ;;  %v7300_v7 = vld [vmem:[%s8037_s21 + $0x140] sm:$0xf0] }
 0x475   : > { %3647 = vmatmul.bf16.gmra.mxu1 %v8403_v26 }
 0x476   : > { %v5099_v19 = vadd.f32 %v3508_v8, %v591_v61  ;;  %3736 = vmatmul.bf16.gmra.mxu2 %v8405_v27  ;;  %v6453_v61 = vor.u32 %v7300_v7, %v6452_v9  ;;  %v7356_v8 = vld [vmem:[%s8037_s21 + $0x300] sm:$0xf0] }
 0x477   : > { %3825 = vmatmul.bf16.gmra.mxu3 %v8407_v28  ;;  %v6677_v30 = vor.u32 %v7356_v8, %v6676_v20  ;;  %v619_v8 = vld [vmem:[#allocation2 + $0xd8] sm:$0xff] }
 0x478   : > { %5323 = vst [vmem:[#allocation2 + $0x50] sm:$0xff] %v5099_v19  ;;  %3898 = vmatpush.bf16.msra.mxu0 %v6453_v61 }
 0x479   : > { %v3421_v5 = vpop.f32.mrf.mxu2  ;;  %v3245_v12 = vpop.f32.mrf.mxu0  ;;  %3987 = vmatpush.bf16.msra.mxu1 %v6677_v30 }
 0x47a   : > { %v3422_v59 = vadd.f32 %v3421_v5, %v3333_v32  ;;  %v3510_v62 = vpop.f32.mrf.mxu3  ;;  %v3334_v6 = vpop.f32.mrf.mxu1  ;;  %v605_v5 = vld [vmem:[#allocation2 + $0x5c8] sm:$0xff] }
 0x47b   : > { %v3335_v0 = vadd.f32 %v3334_v6, %v3245_v12  ;;  %v612_v6 = vld [vmem:[#allocation2 + $0x78] sm:$0xff] }
 0x47c   : > { %v3511_v40 = vadd.f32 %v3510_v62, %v3422_v59 }
 0x47e   : > { %v5106_v37 = vadd.f32 %v3511_v40, %v598_v17 }
 0x480   : > { %5330 = vst [vmem:[#allocation2 + $0x238] sm:$0xff] %v5106_v37 }
 0x481   : > { %v3423_v29 = vpop.f32.mrf.mxu2  ;;  %v3248_v63 = vpop.f32.mrf.mxu0 }
 0x482   : > { %v3424_v19 = vadd.f32 %v3423_v29, %v3335_v0  ;;  %v3512_v32 = vpop.f32.mrf.mxu3  ;;  %v3337_v11 = vpop.f32.mrf.mxu1 }
 0x483   : > { %v3338_v59 = vadd.f32 %v3337_v11, %v3248_v63  ;;  %v7405_v11 = vld [vmem:[%s8037_s21 + $0x488] sm:$0xf0] }
 0x484   : > { %v3513_v31 = vadd.f32 %v3512_v32, %v3424_v19  ;;  %3563 = vmatmul.bf16.gmra.mxu0 %v8429_v50 }
 0x485   : > { %3652 = vmatmul.bf16.gmra.mxu1 %v8431_v51 }
 0x486   : > { %v5113_v39 = vadd.f32 %v3513_v31, %v605_v5  ;;  %3741 = vmatmul.bf16.gmra.mxu2 %v8433_v55  ;;  %v6872_v5 = vld [vmem:[%s8037_s21 + $0x470] sm:$0xf] }
 0x487   : > { %3830 = vmatmul.bf16.gmra.mxu3 %v8435_v56 }
 0x488   : > { %5337 = vst [vmem:[#allocation2 + $0x5c8] sm:$0xff] %v5113_v39  ;;  %v6873_v39 = vor.u32 %v7405_v11, %v6872_v5 }
 0x489   : > { %v3426_v62 = vpop.f32.mrf.mxu2  ;;  %v3250_v17 = vpop.f32.mrf.mxu0 }
 0x48a   : > { %v3427_v12 = vadd.f32 %v3426_v62, %v3338_v59  ;;  %v3515_v23 = vpop.f32.mrf.mxu3  ;;  %v3339_v40 = vpop.f32.mrf.mxu1  ;;  %v7096_v59 = vld [vmem:[%s8037_s21 + $0x630] sm:$0xf]  ;;  %v7461_v62 = vld [vmem:[%s8037_s21 + $0x648] sm:$0xf0]  ;;  %4077 = vmatpush.bf16.msra.mxu2 %v6873_v39 }
 0x48b   : > { %v3340_v9 = vadd.f32 %v3339_v40, %v3250_v17  ;;  %v626_v40 = vld [vmem:[#allocation2 + $0x458] sm:$0xff] }
 0x48c   : > { %v3516_v37 = vadd.f32 %v3515_v23, %v3427_v12 }
 0x48e   : > { %v5120_v0 = vadd.f32 %v3516_v37, %v612_v6  ;;  %v7097_v6 = vor.u32 %v7461_v62, %v7096_v59 }
 0x490   : > { %5344 = vst [vmem:[#allocation2 + $0x78] sm:$0xff] %v5120_v0  ;;  %4166 = vmatpush.bf16.msra.mxu3 %v7097_v6 }
 0x491   : > { %v3428_v7 = vpop.f32.mrf.mxu2  ;;  %v3253_v20 = vpop.f32.mrf.mxu0 }
 0x492   : > { %v3429_v29 = vadd.f32 %v3428_v7, %v3340_v9  ;;  %v3517_v61 = vpop.f32.mrf.mxu3  ;;  %v3342_v19 = vpop.f32.mrf.mxu1 }
 0x493   : > { %v3343_v30 = vadd.f32 %v3342_v19, %v3253_v20  ;;  %v6648_v19 = vld [vmem:[%s8037_s21 + $0x2b0] sm:$0xf] }
 0x494   : > { %v3518_v32 = vadd.f32 %v3517_v61, %v3429_v29  ;;  %3568 = vmatmul.bf16.gmra.mxu0 %v8449_v1  ;;  %v6424_v29 = vld [vmem:[%s8037_s21 + $0xf0] sm:$0xf]  ;;  %v7293_v61 = vld [vmem:[%s8037_s21 + $0x108] sm:$0xf0] }
 0x495   : > { %3657 = vmatmul.bf16.gmra.mxu1 %v8451_v2 }
 0x496   : > { %v5127_v63 = vadd.f32 %v3518_v32, %v619_v8  ;;  %3746 = vmatmul.bf16.gmra.mxu2 %v8453_v3  ;;  %v6425_v8 = vor.u32 %v7293_v61, %v6424_v29  ;;  %v7349_v32 = vld [vmem:[%s8037_s21 + $0x2c8] sm:$0xf0] }
 0x497   : > { %3835 = vmatmul.bf16.gmra.mxu3 %v8455_v4  ;;  %v6649_v11 = vor.u32 %v7349_v32, %v6648_v19  ;;  %v647_v32 = vld [vmem:[#allocation2 + $0x1d0] sm:$0xff] }
 0x498   : > { %5351 = vst [vmem:[#allocation2 + $0xd8] sm:$0xff] %v5127_v63  ;;  %3899 = vmatpush.bf16.msra.mxu0 %v6425_v8 }
 0x499   : > { %v3431_v31 = vpop.f32.mrf.mxu2  ;;  %v3255_v17 = vpop.f32.mrf.mxu0  ;;  %3988 = vmatpush.bf16.msra.mxu1 %v6649_v11 }
 0x49a   : > { %v3432_v12 = vadd.f32 %v3431_v31, %v3343_v30  ;;  %v3520_v23 = vpop.f32.mrf.mxu3  ;;  %v3344_v37 = vpop.f32.mrf.mxu1  ;;  %v633_v31 = vld [vmem:[#allocation2 + $0x300] sm:$0xff] }
 0x49b   : > { %v3345_v7 = vadd.f32 %v3344_v37, %v3255_v17  ;;  %v640_v37 = vld [vmem:[#allocation2 + $0x248] sm:$0xff] }
 0x49c   : > { %v3521_v0 = vadd.f32 %v3520_v23, %v3432_v12 }
 0x49e   : > { %v5134_v9 = vadd.f32 %v3521_v0, %v626_v40 }
 0x4a0   : > { %5358 = vst [vmem:[#allocation2 + $0x458] sm:$0xff] %v5134_v9 }
 0x4a1   : > { %v3433_v20 = vpop.f32.mrf.mxu2  ;;  %v3258_v5 = vpop.f32.mrf.mxu0 }
 0x4a2   : > { %v3434_v63 = vadd.f32 %v3433_v20, %v3345_v7  ;;  %v3522_v30 = vpop.f32.mrf.mxu3  ;;  %v3347_v59 = vpop.f32.mrf.mxu1 }
 0x4a3   : > { %v3348_v12 = vadd.f32 %v3347_v59, %v3258_v5  ;;  %v7398_v59 = vld [vmem:[%s8037_s21 + $0x450] sm:$0xf0] }
 0x4a4   : > { %v3523_v62 = vadd.f32 %v3522_v30, %v3434_v63  ;;  %3573 = vmatmul.bf16.gmra.mxu0 %v8477_v33 }
 0x4a5   : > { %3662 = vmatmul.bf16.gmra.mxu1 %v8479_v34 }
 0x4a6   : > { %v5141_v39 = vadd.f32 %v3523_v62, %v633_v31  ;;  %3751 = vmatmul.bf16.gmra.mxu2 %v8481_v35  ;;  %v6844_v31 = vld [vmem:[%s8037_s21 + $0x438] sm:$0xf] }
 0x4a7   : > { %3840 = vmatmul.bf16.gmra.mxu3 %v8483_v36 }
 0x4a8   : > { %5365 = vst [vmem:[#allocation2 + $0x300] sm:$0xff] %v5141_v39  ;;  %v6845_v39 = vor.u32 %v7398_v59, %v6844_v31 }
 0x4a9   : > { %v3436_v23 = vpop.f32.mrf.mxu2  ;;  %v3260_v40 = vpop.f32.mrf.mxu0 }
 0x4aa   : > { %v3437_v17 = vadd.f32 %v3436_v23, %v3348_v12  ;;  %v3525_v6 = vpop.f32.mrf.mxu3  ;;  %v3349_v0 = vpop.f32.mrf.mxu1  ;;  %v7068_v12 = vld [vmem:[%s8037_s21 + $0x5f8] sm:$0xf]  ;;  %v7454_v23 = vld [vmem:[%s8037_s21 + $0x610] sm:$0xf0]  ;;  %4078 = vmatpush.bf16.msra.mxu2 %v6845_v39 }
 0x4ab   : > { %v3350_v29 = vadd.f32 %v3349_v0, %v3260_v40  ;;  %v654_v0 = vld [vmem:[#allocation2 + $0x2c8] sm:$0xff] }
 0x4ac   : > { %v3526_v9 = vadd.f32 %v3525_v6, %v3437_v17 }
 0x4ae   : > { %v5148_v7 = vadd.f32 %v3526_v9, %v640_v37  ;;  %v7069_v37 = vor.u32 %v7454_v23, %v7068_v12 }
 0x4b0   : > { %5372 = vst [vmem:[#allocation2 + $0x248] sm:$0xff] %v5148_v7  ;;  %4167 = vmatpush.bf16.msra.mxu3 %v7069_v37 }
 0x4b1   : > { %v3438_v61 = vpop.f32.mrf.mxu2  ;;  %v3263_v19 = vpop.f32.mrf.mxu0 }
 0x4b2   : > { %v3439_v20 = vadd.f32 %v3438_v61, %v3350_v29  ;;  %v3527_v8 = vpop.f32.mrf.mxu3  ;;  %v3352_v63 = vpop.f32.mrf.mxu1 }
 0x4b3   : > { %v3353_v11 = vadd.f32 %v3352_v63, %v3263_v19  ;;  %v6620_v63 = vld [vmem:[%s8037_s21 + $0x278] sm:$0xf] }
 0x4b4   : > { %v3528_v30 = vadd.f32 %v3527_v8, %v3439_v20  ;;  %3578 = vmatmul.bf16.gmra.mxu0 %v8497_v45  ;;  %v6396_v20 = vld [vmem:[%s8037_s21 + $0xb8] sm:$0xf]  ;;  %v7286_v8 = vld [vmem:[%s8037_s21 + $0xd0] sm:$0xf0] }
 0x4b5   : > { %3667 = vmatmul.bf16.gmra.mxu1 %v8499_v46 }
 0x4b6   : > { %v5155_v5 = vadd.f32 %v3528_v30, %v647_v32  ;;  %3756 = vmatmul.bf16.gmra.mxu2 %v8501_v47  ;;  %v6397_v32 = vor.u32 %v7286_v8, %v6396_v20  ;;  %v7342_v30 = vld [vmem:[%s8037_s21 + $0x290] sm:$0xf0] }
 0x4b7   : > { %3845 = vmatmul.bf16.gmra.mxu3 %v8503_v49  ;;  %v6621_v59 = vor.u32 %v7342_v30, %v6620_v63  ;;  %v675_v30 = vld [vmem:[#allocation2 + $0x210] sm:$0xff] }
 0x4b8   : > { %5379 = vst [vmem:[#allocation2 + $0x1d0] sm:$0xff] %v5155_v5  ;;  %3900 = vmatpush.bf16.msra.mxu0 %v6397_v32 }
 0x4b9   : > { %v3441_v62 = vpop.f32.mrf.mxu2  ;;  %v3265_v40 = vpop.f32.mrf.mxu0  ;;  %3989 = vmatpush.bf16.msra.mxu1 %v6621_v59 }
 0x4ba   : > { %v3442_v17 = vadd.f32 %v3441_v62, %v3353_v11  ;;  %v3530_v6 = vpop.f32.mrf.mxu3  ;;  %v3354_v9 = vpop.f32.mrf.mxu1  ;;  %v661_v62 = vld [vmem:[#allocation2 + $0x1c8] sm:$0xff] }
 0x4bb   : > { %v3355_v61 = vadd.f32 %v3354_v9, %v3265_v40  ;;  %v668_v9 = vld [vmem:[#allocation2 + $0x198] sm:$0xff] }
 0x4bc   : > { %v3531_v7 = vadd.f32 %v3530_v6, %v3442_v17 }
 0x4be   : > { %v5162_v29 = vadd.f32 %v3531_v7, %v654_v0 }
 0x4c0   : > { %5386 = vst [vmem:[#allocation2 + $0x2c8] sm:$0xff] %v5162_v29 }
 0x4c1   : > { %v3443_v19 = vpop.f32.mrf.mxu2  ;;  %v3268_v31 = vpop.f32.mrf.mxu0 }
 0x4c2   : > { %v3444_v5 = vadd.f32 %v3443_v19, %v3355_v61  ;;  %v3532_v11 = vpop.f32.mrf.mxu3  ;;  %v3357_v12 = vpop.f32.mrf.mxu1 }
 0x4c3   : > { %v3358_v17 = vadd.f32 %v3357_v12, %v3268_v31  ;;  %v7391_v12 = vld [vmem:[%s8037_s21 + $0x418] sm:$0xf0] }
 0x4c4   : > { %v3533_v23 = vadd.f32 %v3532_v11, %v3444_v5  ;;  %3583 = vmatmul.bf16.gmra.mxu0 %v8524_v18 }
 0x4c5   : > { %3672 = vmatmul.bf16.gmra.mxu1 %v8527_v21 }
 0x4c6   : > { %v5169_v39 = vadd.f32 %v3533_v23, %v661_v62  ;;  %3761 = vmatmul.bf16.gmra.mxu2 %v8529_v22  ;;  %v6816_v62 = vld [vmem:[%s8037_s21 + $0x400] sm:$0xf] }
 0x4c7   : > { %3850 = vmatmul.bf16.gmra.mxu3 %v8531_v24 }
 0x4c8   : > { %5393 = vst [vmem:[#allocation2 + $0x1c8] sm:$0xff] %v5169_v39  ;;  %v6817_v39 = vor.u32 %v7391_v12, %v6816_v62 }
 0x4c9   : > { %v3446_v6 = vpop.f32.mrf.mxu2  ;;  %v3270_v0 = vpop.f32.mrf.mxu0 }
 0x4ca   : > { %v3447_v40 = vadd.f32 %v3446_v6, %v3358_v17  ;;  %v3535_v37 = vpop.f32.mrf.mxu3  ;;  %v3359_v7 = vpop.f32.mrf.mxu1  ;;  %v7040_v17 = vld [vmem:[%s8037_s21 + $0x5c0] sm:$0xf]  ;;  %v7447_v6 = vld [vmem:[%s8037_s21 + $0x5d8] sm:$0xf0]  ;;  %4079 = vmatpush.bf16.msra.mxu2 %v6817_v39 }
 0x4cb   : > { %v3360_v20 = vadd.f32 %v3359_v7, %v3270_v0  ;;  %v459_v7 = vld [vmem:[#allocation2 + $0x18] sm:$0xff] }
 0x4cc   : > { %v3536_v29 = vadd.f32 %v3535_v37, %v3447_v40 }
 0x4ce   : > { %v5176_v61 = vadd.f32 %v3536_v29, %v668_v9  ;;  %v7041_v9 = vor.u32 %v7447_v6, %v7040_v17 }
 0x4d0   : > { %5400 = vst [vmem:[#allocation2 + $0x198] sm:$0xff] %v5176_v61  ;;  %4168 = vmatpush.bf16.msra.mxu3 %v7041_v9  ;;  %v9769_v9 = vld [vmem:[#allocation22_spill] sm:$0xff] }
 0x4d1   : > { %v3448_v8 = vpop.f32.mrf.mxu2  ;;  %v3549_v63 = vpop.f32.mrf.mxu0 }
 0x4d2   : > { %v3449_v19 = vadd.f32 %v3448_v8, %v3360_v20  ;;  %v3537_v32 = vpop.f32.mrf.mxu3  ;;  %v3638_v5 = vpop.f32.mrf.mxu1 }
 0x4d3   : > { %v3639_v59 = vadd.f32 %v3638_v5, %v3549_v63  ;;  %v6592_v5 = vld [vmem:[%s8037_s21 + $0x240] sm:$0xf] }
 0x4d4   : > { %v3538_v11 = vadd.f32 %v3537_v32, %v3449_v19  ;;  %3588 = vmatmul.bf16.gmra.mxu0 %v8545_v41  ;;  %v6368_v19 = vld [vmem:[%s8037_s21 + $0x80] sm:$0xf]  ;;  %v7279_v32 = vld [vmem:[%s8037_s21 + $0x98] sm:$0xf0] }
 0x4d5   : > { %3677 = vmatmul.bf16.gmra.mxu1 %v8547_v43 }
 0x4d6   : > { %v5183_v31 = vadd.f32 %v3538_v11, %v675_v30  ;;  %3766 = vmatmul.bf16.gmra.mxu2 %v8549_v44  ;;  %v6369_v30 = vor.u32 %v7279_v32, %v6368_v19  ;;  %v7335_v11 = vld [vmem:[%s8037_s21 + $0x258] sm:$0xf0] }
 0x4d7   : > { %3855 = vmatmul.bf16.gmra.mxu3 %v8551_v58  ;;  %v6593_v12 = vor.u32 %v7335_v11, %v6592_v5 }
 0x4d8   : > { %5407 = vst [vmem:[#allocation2 + $0x210] sm:$0xff] %v5183_v31  ;;  %3901 = vmatpush.bf16.msra.mxu0 %v6369_v30 }
 0x4d9   : > { %v3727_v23 = vpop.f32.mrf.mxu2  ;;  %v3551_v0 = vpop.f32.mrf.mxu0  ;;  %3990 = vmatpush.bf16.msra.mxu1 %v6593_v12 }
 0x4da   : > { %v3728_v40 = vadd.f32 %v3727_v23, %v3639_v59  ;;  %v3816_v37 = vpop.f32.mrf.mxu3  ;;  %v3640_v29 = vpop.f32.mrf.mxu1  ;;  %v466_v23 = vld [vmem:[#allocation2 + $0x490] sm:$0xff] }
 0x4db   : > { %v3641_v8 = vadd.f32 %v3640_v29, %v3551_v0  ;;  %v9768_v0 = vld [vmem:[#allocation21_spill] sm:$0xff] }
 0x4dc   : > { %v3817_v61 = vadd.f32 %v3816_v37, %v3728_v40  ;;  %v9767_v37 = vld [vmem:[#allocation20_spill] sm:$0xff] }
 0x4de   : > { %v4967_v20 = vadd.f32 %v3817_v61, %v459_v7 }
 0x4e0   : > { %5191 = vst [vmem:[#allocation2 + $0x18] sm:$0xff] %v4967_v20 }
 0x4e1   : > { %v3729_v63 = vpop.f32.mrf.mxu2  ;;  %v3554_v62 = vpop.f32.mrf.mxu0 }
 0x4e2   : > { %v3730_v31 = vadd.f32 %v3729_v63, %v3641_v8  ;;  %v3818_v59 = vpop.f32.mrf.mxu3  ;;  %v3643_v17 = vpop.f32.mrf.mxu1  ;;  %v473_v8 = vld [vmem:[#allocation2 + $0x588] sm:$0xff] }
 0x4e3   : > { %v3644_v40 = vadd.f32 %v3643_v17, %v3554_v62  ;;  %v480_v62 = vld [vmem:[#allocation2 + $0x118] sm:$0xff] }
 0x4e4   : > { %v3819_v6 = vadd.f32 %v3818_v59, %v3730_v31  ;;  %3593 = vmatmul.bf16.gmra.mxu0 %v8571_v57  ;;  %v9770_v17 = vld [vmem:[#allocation23_spill] sm:$0xff] }
 0x4e5   : > { %3682 = vmatmul.bf16.gmra.mxu1 %v9767_v37  ;;  %v494_v37 = vld [vmem:[#allocation2 + $0x80] sm:$0xff] }
 0x4e6   : > { %v4974_v39 = vadd.f32 %v3819_v6, %v466_v23  ;;  %3771 = vmatmul.bf16.gmra.mxu2 %v9768_v0 }
 0x4e7   : > { %3860 = vmatmul.bf16.gmra.mxu3 %v9769_v9 }
 0x4e8   : > { %5198 = vst [vmem:[#allocation2 + $0x490] sm:$0xff] %v4974_v39 }
 0x4e9   : > { %v3732_v7 = vpop.f32.mrf.mxu2  ;;  %v3556_v20 = vpop.f32.mrf.mxu0 }
 0x4ea   : > { %v3733_v29 = vadd.f32 %v3732_v7, %v3644_v40  ;;  %v3821_v61 = vpop.f32.mrf.mxu3  ;;  %v3645_v19 = vpop.f32.mrf.mxu1  ;;  %v9771_v40 = vld [vmem:[#allocation24_spill] sm:$0xff]  ;;  %v9772_v7 = vld [vmem:[#allocation25_spill] sm:$0xff] }
 0x4eb   : > { %v3646_v30 = vadd.f32 %v3645_v19, %v3556_v20  ;;  %v7384_v20 = vld [vmem:[%s8037_s21 + $0x3e0] sm:$0xf0] }
 0x4ec   : > { %v3822_v32 = vadd.f32 %v3821_v61, %v3733_v29  ;;  %v9773_v29 = vld [vmem:[#allocation26_spill] sm:$0xff]  ;;  %v6788_v61 = vld [vmem:[%s8037_s21 + $0x3c8] sm:$0xf] }
 0x4ed   : > { %v6789_v19 = vor.u32 %v7384_v20, %v6788_v61 }
 0x4ee   : > { %v4981_v63 = vadd.f32 %v3822_v32, %v473_v8  ;;  %v7012_v32 = vld [vmem:[%s8037_s21 + $0x588] sm:$0xf] }
 0x4ef   : > { %4080 = vmatpush.bf16.msra.mxu2 %v6789_v19  ;;  %v9774_v19 = vld [vmem:[#allocation27_spill] sm:$0xff] }
 0x4f0   : > { %5205 = vst [vmem:[#allocation2 + $0x588] sm:$0xff] %v4981_v63  ;;  %v7440_v63 = vld [vmem:[%s8037_s21 + $0x5a0] sm:$0xf0] }
 0x4f1   : > { %v3734_v5 = vpop.f32.mrf.mxu2  ;;  %v3559_v59 = vpop.f32.mrf.mxu0 }
 0x4f2   : > { %v3735_v11 = vadd.f32 %v3734_v5, %v3646_v30  ;;  %v3823_v31 = vpop.f32.mrf.mxu3  ;;  %v3648_v12 = vpop.f32.mrf.mxu1 }
 0x4f3   : > { %v3649_v39 = vadd.f32 %v3648_v12, %v3559_v59  ;;  %v487_v59 = vld [vmem:[#allocation2 + $0x3c0] sm:$0xff] }
 0x4f4   : > { %v3824_v23 = vadd.f32 %v3823_v31, %v3735_v11  ;;  %3598 = vmatmul.bf16.gmra.mxu0 %v9770_v17  ;;  %v7013_v31 = vor.u32 %v7440_v63, %v7012_v32  ;;  %v7328_v17 = vld [vmem:[%s8037_s21 + $0x220] sm:$0xf0] }
 0x4f5   : > { %3687 = vmatmul.bf16.gmra.mxu1 %v9771_v40  ;;  %v6564_v40 = vld [vmem:[%s8037_s21 + $0x208] sm:$0xf] }
 0x4f6   : > { %v4988_v6 = vadd.f32 %v3824_v23, %v480_v62  ;;  %3776 = vmatmul.bf16.gmra.mxu2 %v9772_v7  ;;  %4169 = vmatpush.bf16.msra.mxu3 %v7013_v31  ;;  %v7272_v7 = vld [vmem:[%s8037_s21 + $0x60] sm:$0xf0]  ;;  %v6565_v0 = vor.u32 %v7328_v17, %v6564_v40  ;;  %v9776_v31 = vld [vmem:[#allocation29_spill] sm:$0xff] }
 0x4f7   : > { %3865 = vmatmul.bf16.gmra.mxu3 %v9773_v29  ;;  %v6340_v29 = vld [vmem:[%s8037_s21 + $0x48] sm:$0xf]  ;;  %v501_v40 = vld [vmem:[#allocation2 + $0x220] sm:$0xff] }
 0x4f8   : > { %5212 = vst [vmem:[#allocation2 + $0x118] sm:$0xff] %v4988_v6  ;;  %v6341_v20 = vor.u32 %v7272_v7, %v6340_v29  ;;  %3991 = vmatpush.bf16.msra.mxu1 %v6565_v0  ;;  %v9777_v7 = vld [vmem:[#allocation30_spill] sm:$0xff] }
 0x4f9   : > { %v3737_v8 = vpop.f32.mrf.mxu2  ;;  %v3561_v11 = vpop.f32.mrf.mxu0 }
 0x4fa   : > { %v3738_v30 = vadd.f32 %v3737_v8, %v3649_v39  ;;  %v3826_v5 = vpop.f32.mrf.mxu3  ;;  %v3650_v62 = vpop.f32.mrf.mxu1  ;;  %3902 = vmatpush.bf16.msra.mxu0 %v6341_v20 }
 0x4fb   : > { %v3651_v6 = vadd.f32 %v3650_v62, %v3561_v11  ;;  %v9775_v11 = vld [vmem:[#allocation28_spill] sm:$0xff] }
 0x4fc   : > { %v3827_v12 = vadd.f32 %v3826_v5, %v3738_v30 }
 0x4fe   : > { %v4995_v23 = vadd.f32 %v3827_v12, %v487_v59 }
 0x500   : > { %5219 = vst [vmem:[#allocation2 + $0x3c0] sm:$0xff] %v4995_v23 }
 0x501   : > { %v3739_v61 = vpop.f32.mrf.mxu2  ;;  %v3564_v9 = vpop.f32.mrf.mxu0 }
 0x502   : > { %v3740_v39 = vadd.f32 %v3739_v61, %v3651_v6  ;;  %v3828_v8 = vpop.f32.mrf.mxu3  ;;  %v3653_v32 = vpop.f32.mrf.mxu1 }
 0x503   : > { %v3654_v5 = vadd.f32 %v3653_v32, %v3564_v9 }
 0x504   : > { %v3829_v63 = vadd.f32 %v3828_v8, %v3740_v39  ;;  %3603 = vmatmul.bf16.gmra.mxu0 %v9774_v19  ;;  %v508_v39 = vld [vmem:[#allocation2 + $0x2d8] sm:$0xff]  ;;  %v522_v19 = vld [vmem:[#allocation2 + $0x5b0] sm:$0xff] }
 0x505   : > { %3692 = vmatmul.bf16.gmra.mxu1 %v9775_v11 }
 0x506   : > { %v5002_v30 = vadd.f32 %v3829_v63, %v494_v37  ;;  %3781 = vmatmul.bf16.gmra.mxu2 %v9776_v31  ;;  %v9778_v63 = vld [vmem:[#allocation31_spill] sm:$0xff] }
 0x507   : > { %3870 = vmatmul.bf16.gmra.mxu3 %v9777_v7  ;;  %v7321_v7 = vld [vmem:[%s8037_s21 + $0x1e8] sm:$0xf0] }
 0x508   : > { %5226 = vst [vmem:[#allocation2 + $0x80] sm:$0xff] %v5002_v30 }
 0x509   : > { %v3742_v29 = vpop.f32.mrf.mxu2  ;;  %v3566_v17 = vpop.f32.mrf.mxu0 }
 0x50a   : > { %v3743_v59 = vadd.f32 %v3742_v29, %v3654_v5  ;;  %v3831_v62 = vpop.f32.mrf.mxu3  ;;  %v3655_v12 = vpop.f32.mrf.mxu1  ;;  %v9779_v29 = vld [vmem:[#allocation32_spill] sm:$0xff] }
 0x50b   : > { %v3656_v0 = vadd.f32 %v3655_v12, %v3566_v17  ;;  %v6760_v17 = vld [vmem:[%s8037_s21 + $0x390] sm:$0xf] }
 0x50c   : > { %v3832_v23 = vadd.f32 %v3831_v62, %v3743_v59  ;;  %v9780_v59 = vld [vmem:[#allocation33_spill] sm:$0xff]  ;;  %v9781_v62 = vld [vmem:[#allocation34_spill] sm:$0xff] }
 0x50e   : > { %v5009_v6 = vadd.f32 %v3832_v23, %v501_v40  ;;  %v7377_v40 = vld [vmem:[%s8037_s21 + $0x3a8] sm:$0xf0] }
 0x50f   : > { %v6761_v23 = vor.u32 %v7377_v40, %v6760_v17 }
 0x510   : > { %5233 = vst [vmem:[#allocation2 + $0x220] sm:$0xff] %v5009_v6  ;;  %v6984_v6 = vld [vmem:[%s8037_s21 + $0x550] sm:$0xf] }
 0x511   : > { %v3744_v37 = vpop.f32.mrf.mxu2  ;;  %v3569_v20 = vpop.f32.mrf.mxu0  ;;  %4081 = vmatpush.bf16.msra.mxu2 %v6761_v23  ;;  %v9782_v23 = vld [vmem:[#allocation35_spill] sm:$0xff] }
 0x512   : > { %v3745_v9 = vadd.f32 %v3744_v37, %v3656_v0  ;;  %v3833_v61 = vpop.f32.mrf.mxu3  ;;  %v3658_v8 = vpop.f32.mrf.mxu1  ;;  %v7433_v0 = vld [vmem:[%s8037_s21 + $0x568] sm:$0xf0] }
 0x513   : > { %v3659_v5 = vadd.f32 %v3658_v8, %v3569_v20  ;;  %v6985_v20 = vor.u32 %v7433_v0, %v6984_v6 }
 0x514   : > { %v3834_v32 = vadd.f32 %v3833_v61, %v3745_v9  ;;  %3608 = vmatmul.bf16.gmra.mxu0 %v9778_v63  ;;  %v6536_v63 = vld [vmem:[%s8037_s21 + $0x1d0] sm:$0xf] }
 0x515   : > { %3697 = vmatmul.bf16.gmra.mxu1 %v9779_v29  ;;  %4170 = vmatpush.bf16.msra.mxu3 %v6985_v20  ;;  %v7265_v29 = vld [vmem:[%s8037_s21 + $0x28] sm:$0xf0]  ;;  %v6537_v11 = vor.u32 %v7321_v7, %v6536_v63  ;;  %v529_v63 = vld [vmem:[#allocation2 + $0x190] sm:$0xff] }
 0x516   : > { %v5016_v30 = vadd.f32 %v3834_v32, %v508_v39  ;;  %3786 = vmatmul.bf16.gmra.mxu2 %v9780_v59  ;;  %v515_v39 = vld [vmem:[#allocation2 + $0x640] sm:$0xff]  ;;  %v6312_v59 = vld [vmem:[%s8037_s21 + $0x10] sm:$0xf]  ;;  %v9784_v20 = vld [vmem:[#allocation37_spill] sm:$0xff] }
 0x517   : > { %3875 = vmatmul.bf16.gmra.mxu3 %v9781_v62  ;;  %v6313_v40 = vor.u32 %v7265_v29, %v6312_v59  ;;  %3992 = vmatpush.bf16.msra.mxu1 %v6537_v11  ;;  %v9785_v29 = vld [vmem:[#allocation38_spill] sm:$0xff] }
 0x518   : > { %5240 = vst [vmem:[#allocation2 + $0x2d8] sm:$0xff] %v5016_v30 }
 0x519   : > { %v3747_v12 = vpop.f32.mrf.mxu2  ;;  %v3571_v61 = vpop.f32.mrf.mxu0  ;;  %3903 = vmatpush.bf16.msra.mxu0 %v6313_v40 }
 0x51a   : > { %v3748_v37 = vadd.f32 %v3747_v12, %v3659_v5  ;;  %v3836_v9 = vpop.f32.mrf.mxu3  ;;  %v3660_v8 = vpop.f32.mrf.mxu1 }
 0x51b   : > { %v3661_v62 = vadd.f32 %v3660_v8, %v3571_v61  ;;  %v9783_v61 = vld [vmem:[#allocation36_spill] sm:$0xff] }
 0x51c   : > { %v3837_v32 = vadd.f32 %v3836_v9, %v3748_v37 }
 0x51e   : > { %v5023_v30 = vadd.f32 %v3837_v32, %v515_v39 }
 0x520   : > { %5247 = vst [vmem:[#allocation2 + $0x640] sm:$0xff] %v5023_v30 }
 0x521   : > { %v3749_v17 = vpop.f32.mrf.mxu2  ;;  %v3574_v31 = vpop.f32.mrf.mxu0 }
 0x522   : > { %v3750_v5 = vadd.f32 %v3749_v17, %v3661_v62  ;;  %v3838_v12 = vpop.f32.mrf.mxu3  ;;  %v3663_v6 = vpop.f32.mrf.mxu1 }
 0x523   : > { %v3664_v9 = vadd.f32 %v3663_v6, %v3574_v31 }
 0x524   : > { %v3839_v0 = vadd.f32 %v3838_v12, %v3750_v5  ;;  %3613 = vmatmul.bf16.gmra.mxu0 %v9782_v23  ;;  %v536_v5 = vld [vmem:[#allocation2 + $0x338] sm:$0xff] }
 0x525   : > { %3702 = vmatmul.bf16.gmra.mxu1 %v9783_v61  ;;  %v550_v23 = vld [vmem:[#allocation2 + $0x158] sm:$0xff] }
 0x526   : > { %v5030_v37 = vadd.f32 %v3839_v0, %v522_v19  ;;  %3791 = vmatmul.bf16.gmra.mxu2 %v9784_v20  ;;  %v9786_v0 = vld [vmem:[#allocation39_spill] sm:$0xff] }
 0x527   : > { %3880 = vmatmul.bf16.gmra.mxu3 %v9785_v29  ;;  %v6734_v29 = vld [vmem:[%s8037_s21 + $0x374] sm:$0xf0] }
 0x528   : > { %5254 = vst [vmem:[#allocation2 + $0x5b0] sm:$0xff] %v5030_v37 }
 0x529   : > { %v3752_v59 = vpop.f32.mrf.mxu2  ;;  %v3576_v7 = vpop.f32.mrf.mxu0 }
 0x52a   : > { %v3753_v62 = vadd.f32 %v3752_v59, %v3664_v9  ;;  %v3841_v39 = vpop.f32.mrf.mxu3  ;;  %v3665_v8 = vpop.f32.mrf.mxu1  ;;  %v9787_v59 = vld [vmem:[#allocation40_spill] sm:$0xff] }
 0x52b   : > { %v3666_v11 = vadd.f32 %v3665_v8, %v3576_v7  ;;  %v7423_v7 = vld [vmem:[%s8037_s21 + $0x51c] sm:$0xf] }
 0x52c   : > { %v3842_v32 = vadd.f32 %v3841_v39, %v3753_v62  ;;  %v9788_v62 = vld [vmem:[#allocation41_spill] sm:$0xff]  ;;  %v9789_v39 = vld [vmem:[#allocation42_spill] sm:$0xff] }
 0x52e   : > { %v5037_v30 = vadd.f32 %v3842_v32, %v529_v63  ;;  %v6958_v63 = vld [vmem:[%s8037_s21 + $0x534] sm:$0xf0] }
 0x52f   : > { %v6961_v32 = vor.u32 %v7423_v7, %v6958_v63 }
 0x530   : > { %5261 = vst [vmem:[#allocation2 + $0x190] sm:$0xff] %v5037_v30  ;;  %v7479_v30 = vld [vmem:[%s8037_s21 + $0x6dc] sm:$0xf] }
 0x531   : > { %v3754_v19 = vpop.f32.mrf.mxu2  ;;  %v3579_v40 = vpop.f32.mrf.mxu0  ;;  %4430 = vmatpush.bf16.msrb.mxu2 %v6961_v32 }
 0x532   : > { %v3755_v31 = vadd.f32 %v3754_v19, %v3666_v11  ;;  %v3843_v17 = vpop.f32.mrf.mxu3  ;;  %v3668_v12 = vpop.f32.mrf.mxu1  ;;  %v7182_v11 = vld [vmem:[%s8037_s21 + $0x6f4] sm:$0xf0] }
 0x533   : > { %v3669_v9 = vadd.f32 %v3668_v12, %v3579_v40  ;;  %v7185_v40 = vor.u32 %v7479_v30, %v7182_v11 }
 0x534   : > { %v3844_v6 = vadd.f32 %v3843_v17, %v3755_v31  ;;  %3618 = vmatmul.bf16.gmra.mxu0 %v9786_v0  ;;  %v7367_v0 = vld [vmem:[%s8037_s21 + $0x35c] sm:$0xf] }
 0x535   : > { %3707 = vmatmul.bf16.gmra.mxu1 %v9787_v59  ;;  %4519 = vmatpush.bf16.msrb.mxu3 %v7185_v40  ;;  %v6510_v59 = vld [vmem:[%s8037_s21 + $0x1b4] sm:$0xf0]  ;;  %v6737_v61 = vor.u32 %v7367_v0, %v6734_v29  ;;  %v557_v0 = vld [vmem:[#allocation2 + $0x268] sm:$0xff] }
 0x536   : > { %v5044_v37 = vadd.f32 %v3844_v6, %v536_v5  ;;  %3796 = vmatmul.bf16.gmra.mxu2 %v9788_v62  ;;  %v543_v5 = vld [vmem:[#allocation2 + $0x208] sm:$0xff]  ;;  %v7311_v62 = vld [vmem:[%s8037_s21 + $0x19c] sm:$0xf] }
 0x537   : > { %3885 = vmatmul.bf16.gmra.mxu3 %v9789_v39  ;;  %v6513_v63 = vor.u32 %v7311_v62, %v6510_v59  ;;  %4341 = vmatpush.bf16.msrb.mxu1 %v6737_v61 }
 0x538   : > { %5268 = vst [vmem:[#allocation2 + $0x338] sm:$0xff] %v5044_v37 }
 0x539   : > { %v3757_v8 = vpop.f32.mrf.mxu2  ;;  %v3581_v17 = vpop.f32.mrf.mxu0  ;;  %4252 = vmatpush.bf16.msrb.mxu0 %v6513_v63 }
 0x53a   : > { %v3758_v19 = vadd.f32 %v3757_v8, %v3669_v9  ;;  %v3846_v31 = vpop.f32.mrf.mxu3  ;;  %v3670_v12 = vpop.f32.mrf.mxu1 }
 0x53b   : > { %v3671_v39 = vadd.f32 %v3670_v12, %v3581_v17 }
 0x53c   : > { %v3847_v6 = vadd.f32 %v3846_v31, %v3758_v19 }
 0x53e   : > { %v5051_v37 = vadd.f32 %v3847_v6, %v543_v5  ;;  %v564_v6 = vld [vmem:[#allocation2 + $0x420] sm:$0xff] }
 0x540   : > { %5275 = vst [vmem:[#allocation2 + $0x208] sm:$0xff] %v5051_v37 }
 0x541   : > { %v3759_v7 = vpop.f32.mrf.mxu2  ;;  %v3584_v20 = vpop.f32.mrf.mxu0 }
 0x542   : > { %v3760_v9 = vadd.f32 %v3759_v7, %v3671_v39  ;;  %v3848_v8 = vpop.f32.mrf.mxu3  ;;  %v3673_v30 = vpop.f32.mrf.mxu1 }
 0x543   : > { %v3674_v19 = vadd.f32 %v3673_v30, %v3584_v20  ;;  %v6930_v30 = vld [vmem:[%s8037_s21 + $0x4fc] sm:$0xf0] }
 0x544   : > { %v3849_v11 = vadd.f32 %v3848_v8, %v3760_v9  ;;  %3623 = vmatmul.bf16.gmra.mxu0 %v8715_v10  ;;  %v7416_v8 = vld [vmem:[%s8037_s21 + $0x4e4] sm:$0xf] }
 0x545   : > { %3712 = vmatmul.bf16.gmra.mxu1 %v8719_v38 }
 0x546   : > { %v5058_v32 = vadd.f32 %v3849_v11, %v550_v23  ;;  %3801 = vmatmul.bf16.gmra.mxu2 %v8721_v42 }
 0x547   : > { %3890 = vmatmul.bf16.gmra.mxu3 %v8723_v60 }
 0x548   : > { %5282 = vst [vmem:[#allocation2 + $0x158] sm:$0xff] %v5058_v32  ;;  %v6933_v32 = vor.u32 %v7416_v8, %v6930_v30 }
 0x549   : > { %v3762_v59 = vpop.f32.mrf.mxu2  ;;  %v3586_v29 = vpop.f32.mrf.mxu0 }
 0x54a   : > { %v3763_v62 = vadd.f32 %v3762_v59, %v3674_v19  ;;  %v3851_v39 = vpop.f32.mrf.mxu3  ;;  %v3675_v31 = vpop.f32.mrf.mxu1  ;;  %v7472_v19 = vld [vmem:[%s8037_s21 + $0x6a4] sm:$0xf]  ;;  %v7154_v59 = vld [vmem:[%s8037_s21 + $0x6bc] sm:$0xf0]  ;;  %4431 = vmatpush.bf16.msrb.mxu2 %v6933_v32 }
 0x54b   : > { %v3676_v61 = vadd.f32 %v3675_v31, %v3586_v29  ;;  %v571_v31 = vld [vmem:[#allocation2 + $0x478] sm:$0xff] }
 0x54c   : > { %v3852_v17 = vadd.f32 %v3851_v39, %v3763_v62 }
 0x54e   : > { %v5065_v40 = vadd.f32 %v3852_v17, %v557_v0  ;;  %v7157_v0 = vor.u32 %v7472_v19, %v7154_v59 }
 0x550   : > { %5289 = vst [vmem:[#allocation2 + $0x268] sm:$0xff] %v5065_v40  ;;  %4520 = vmatpush.bf16.msrb.mxu3 %v7157_v0 }
 0x551   : > { %v3764_v23 = vpop.f32.mrf.mxu2  ;;  %v3589_v12 = vpop.f32.mrf.mxu0 }
 0x552   : > { %v3765_v20 = vadd.f32 %v3764_v23, %v3676_v61  ;;  %v3853_v5 = vpop.f32.mrf.mxu3  ;;  %v3678_v37 = vpop.f32.mrf.mxu1 }
 0x553   : > { %v3679_v9 = vadd.f32 %v3678_v37, %v3589_v12  ;;  %v7360_v37 = vld [vmem:[%s8037_s21 + $0x324] sm:$0xf] }
 0x554   : > { %v3854_v7 = vadd.f32 %v3853_v5, %v3765_v20  ;;  %3904 = vmatmul.bf16.vlgmr.msra.gmra.mxu0 %v8351_v48  ;;  %v7304_v20 = vld [vmem:[%s8037_s21 + $0x164] sm:$0xf]  ;;  %v6482_v5 = vld [vmem:[%s8037_s21 + $0x17c] sm:$0xf0] }
 0x555   : > { %3993 = vmatmul.bf16.vlgmr.msra.gmra.mxu1 %v8355_v52 }
 0x556   : > { %v5072_v63 = vadd.f32 %v3854_v7, %v564_v6  ;;  %4082 = vmatmul.bf16.vlgmr.msra.gmra.mxu2 %v8357_v53  ;;  %v6485_v6 = vor.u32 %v7304_v20, %v6482_v5  ;;  %v6706_v7 = vld [vmem:[%s8037_s21 + $0x33c] sm:$0xf0] }
 0x557   : > { %4171 = vmatmul.bf16.vlgmr.msra.gmra.mxu3 %v8359_v54  ;;  %v6709_v30 = vor.u32 %v7360_v37, %v6706_v7  ;;  %v592_v7 = vld [vmem:[#allocation2 + $0x6a8] sm:$0xff] }
 0x558   : > { %5296 = vst [vmem:[#allocation2 + $0x420] sm:$0xff] %v5072_v63  ;;  %4253 = vmatpush.bf16.msrb.mxu0 %v6485_v6 }
 0x559   : > { %v3767_v11 = vpop.f32.mrf.mxu2  ;;  %v3591_v29 = vpop.f32.mrf.mxu0  ;;  %4342 = vmatpush.bf16.msrb.mxu1 %v6709_v30 }
 0x55a   : > { %v3768_v62 = vadd.f32 %v3767_v11, %v3679_v9  ;;  %v3856_v39 = vpop.f32.mrf.mxu3  ;;  %v3680_v17 = vpop.f32.mrf.mxu1  ;;  %v578_v11 = vld [vmem:[#allocation2 + $0x2a0] sm:$0xff] }
 0x55b   : > { %v3681_v23 = vadd.f32 %v3680_v17, %v3591_v29  ;;  %v585_v17 = vld [vmem:[#allocation2 + $0x8] sm:$0xff] }
 0x55c   : > { %v3857_v40 = vadd.f32 %v3856_v39, %v3768_v62 }
 0x55e   : > { %v5079_v61 = vadd.f32 %v3857_v40, %v571_v31 }
 0x560   : > { %5303 = vst [vmem:[#allocation2 + $0x478] sm:$0xff] %v5079_v61 }
 0x561   : > { %v3769_v12 = vpop.f32.mrf.mxu2  ;;  %v3594_v8 = vpop.f32.mrf.mxu0 }
 0x562   : > { %v3770_v63 = vadd.f32 %v3769_v12, %v3681_v23  ;;  %v3858_v9 = vpop.f32.mrf.mxu3  ;;  %v3683_v19 = vpop.f32.mrf.mxu1 }
 0x563   : > { %v3684_v62 = vadd.f32 %v3683_v19, %v3594_v8  ;;  %v6902_v19 = vld [vmem:[%s8037_s21 + $0x4c4] sm:$0xf0] }
 0x564   : > { %v3859_v59 = vadd.f32 %v3858_v9, %v3770_v63  ;;  %3909 = vmatmul.bf16.gmra.mxu0 %v8381_v13 }
 0x565   : > { %3998 = vmatmul.bf16.gmra.mxu1 %v8383_v14 }
 0x566   : > { %v5086_v32 = vadd.f32 %v3859_v59, %v578_v11  ;;  %4087 = vmatmul.bf16.gmra.mxu2 %v8385_v15  ;;  %v7409_v11 = vld [vmem:[%s8037_s21 + $0x4ac] sm:$0xf] }
 0x567   : > { %4176 = vmatmul.bf16.gmra.mxu3 %v8387_v16 }
 0x568   : > { %5310 = vst [vmem:[#allocation2 + $0x2a0] sm:$0xff] %v5086_v32  ;;  %v6905_v32 = vor.u32 %v7409_v11, %v6902_v19 }
 0x569   : > { %v3772_v39 = vpop.f32.mrf.mxu2  ;;  %v3596_v31 = vpop.f32.mrf.mxu0 }
 0x56a   : > { %v3773_v29 = vadd.f32 %v3772_v39, %v3684_v62  ;;  %v3861_v0 = vpop.f32.mrf.mxu3  ;;  %v3685_v40 = vpop.f32.mrf.mxu1  ;;  %v7465_v62 = vld [vmem:[%s8037_s21 + $0x66c] sm:$0xf]  ;;  %v7126_v39 = vld [vmem:[%s8037_s21 + $0x684] sm:$0xf0]  ;;  %4432 = vmatpush.bf16.msrb.mxu2 %v6905_v32 }
 0x56b   : > { %v3686_v20 = vadd.f32 %v3685_v40, %v3596_v31  ;;  %v599_v40 = vld [vmem:[#allocation2 + $0x620] sm:$0xff] }
 0x56c   : > { %v3862_v61 = vadd.f32 %v3861_v0, %v3773_v29 }
 0x56e   : > { %v5093_v23 = vadd.f32 %v3862_v61, %v585_v17  ;;  %v7129_v17 = vor.u32 %v7465_v62, %v7126_v39 }
 0x570   : > { %5317 = vst [vmem:[#allocation2 + $0x8] sm:$0xff] %v5093_v23  ;;  %4521 = vmatpush.bf16.msrb.mxu3 %v7129_v17 }
 0x571   : > { %v3774_v5 = vpop.f32.mrf.mxu2  ;;  %v3599_v37 = vpop.f32.mrf.mxu0 }
 0x572   : > { %v3775_v12 = vadd.f32 %v3774_v5, %v3686_v20  ;;  %v3863_v6 = vpop.f32.mrf.mxu3  ;;  %v3688_v63 = vpop.f32.mrf.mxu1 }
 0x573   : > { %v3689_v30 = vadd.f32 %v3688_v63, %v3599_v37  ;;  %v7353_v63 = vld [vmem:[%s8037_s21 + $0x2ec] sm:$0xf] }
 0x574   : > { %v3864_v9 = vadd.f32 %v3863_v6, %v3775_v12  ;;  %3914 = vmatmul.bf16.gmra.mxu0 %v8401_v25  ;;  %v7297_v12 = vld [vmem:[%s8037_s21 + $0x12c] sm:$0xf]  ;;  %v6454_v6 = vld [vmem:[%s8037_s21 + $0x144] sm:$0xf0] }
 0x575   : > { %4003 = vmatmul.bf16.gmra.mxu1 %v8403_v26 }
 0x576   : > { %v5100_v8 = vadd.f32 %v3864_v9, %v592_v7  ;;  %4092 = vmatmul.bf16.gmra.mxu2 %v8405_v27  ;;  %v6457_v7 = vor.u32 %v7297_v12, %v6454_v6  ;;  %v6678_v9 = vld [vmem:[%s8037_s21 + $0x304] sm:$0xf0] }
 0x577   : > { %4181 = vmatmul.bf16.gmra.mxu3 %v8407_v28  ;;  %v6681_v19 = vor.u32 %v7353_v63, %v6678_v9  ;;  %v620_v9 = vld [vmem:[#allocation2 + $0x280] sm:$0xff] }
 0x578   : > { %5324 = vst [vmem:[#allocation2 + $0x6a8] sm:$0xff] %v5100_v8  ;;  %4254 = vmatpush.bf16.msrb.mxu0 %v6457_v7 }
 0x579   : > { %v3777_v59 = vpop.f32.mrf.mxu2  ;;  %v3601_v31 = vpop.f32.mrf.mxu0  ;;  %4343 = vmatpush.bf16.msrb.mxu1 %v6681_v19 }
 0x57a   : > { %v3778_v29 = vadd.f32 %v3777_v59, %v3689_v30  ;;  %v3866_v0 = vpop.f32.mrf.mxu3  ;;  %v3690_v61 = vpop.f32.mrf.mxu1  ;;  %v606_v59 = vld [vmem:[#allocation2 + $0x498] sm:$0xff] }
 0x57b   : > { %v3691_v5 = vadd.f32 %v3690_v61, %v3601_v31  ;;  %v613_v61 = vld [vmem:[#allocation2 + $0x580] sm:$0xff] }
 0x57c   : > { %v3867_v23 = vadd.f32 %v3866_v0, %v3778_v29 }
 0x57e   : > { %v5107_v20 = vadd.f32 %v3867_v23, %v599_v40 }
 0x580   : > { %5331 = vst [vmem:[#allocation2 + $0x620] sm:$0xff] %v5107_v20 }
 0x581   : > { %v3779_v37 = vpop.f32.mrf.mxu2  ;;  %v3604_v11 = vpop.f32.mrf.mxu0 }
 0x582   : > { %v3780_v8 = vadd.f32 %v3779_v37, %v3691_v5  ;;  %v3868_v30 = vpop.f32.mrf.mxu3  ;;  %v3693_v62 = vpop.f32.mrf.mxu1 }
 0x583   : > { %v3694_v29 = vadd.f32 %v3693_v62, %v3604_v11  ;;  %v6874_v62 = vld [vmem:[%s8037_s21 + $0x48c] sm:$0xf0] }
 0x584   : > { %v3869_v39 = vadd.f32 %v3868_v30, %v3780_v8  ;;  %3919 = vmatmul.bf16.gmra.mxu0 %v8429_v50 }
 0x585   : > { %4008 = vmatmul.bf16.gmra.mxu1 %v8431_v51 }
 0x586   : > { %v5114_v32 = vadd.f32 %v3869_v39, %v606_v59  ;;  %4097 = vmatmul.bf16.gmra.mxu2 %v8433_v55  ;;  %v7402_v59 = vld [vmem:[%s8037_s21 + $0x474] sm:$0xf] }
 0x587   : > { %4186 = vmatmul.bf16.gmra.mxu3 %v8435_v56 }
 0x588   : > { %5338 = vst [vmem:[#allocation2 + $0x498] sm:$0xff] %v5114_v32  ;;  %v6877_v32 = vor.u32 %v7402_v59, %v6874_v62 }
 0x589   : > { %v3782_v0 = vpop.f32.mrf.mxu2  ;;  %v3606_v40 = vpop.f32.mrf.mxu0 }
 0x58a   : > { %v3783_v31 = vadd.f32 %v3782_v0, %v3694_v29  ;;  %v3871_v17 = vpop.f32.mrf.mxu3  ;;  %v3695_v23 = vpop.f32.mrf.mxu1  ;;  %v7458_v29 = vld [vmem:[%s8037_s21 + $0x634] sm:$0xf]  ;;  %v7098_v0 = vld [vmem:[%s8037_s21 + $0x64c] sm:$0xf0]  ;;  %4433 = vmatpush.bf16.msrb.mxu2 %v6877_v32 }
 0x58b   : > { %v3696_v12 = vadd.f32 %v3695_v23, %v3606_v40  ;;  %v627_v23 = vld [vmem:[#allocation2 + $0x590] sm:$0xff] }
 0x58c   : > { %v3872_v20 = vadd.f32 %v3871_v17, %v3783_v31 }
 0x58e   : > { %v5121_v5 = vadd.f32 %v3872_v20, %v613_v61  ;;  %v7101_v61 = vor.u32 %v7458_v29, %v7098_v0 }
 0x590   : > { %5345 = vst [vmem:[#allocation2 + $0x580] sm:$0xff] %v5121_v5  ;;  %4522 = vmatpush.bf16.msrb.mxu3 %v7101_v61 }
 0x591   : > { %v3784_v6 = vpop.f32.mrf.mxu2  ;;  %v3609_v63 = vpop.f32.mrf.mxu0 }
 0x592   : > { %v3785_v37 = vadd.f32 %v3784_v6, %v3696_v12  ;;  %v3873_v7 = vpop.f32.mrf.mxu3  ;;  %v3698_v8 = vpop.f32.mrf.mxu1 }
 0x593   : > { %v3699_v19 = vadd.f32 %v3698_v8, %v3609_v63  ;;  %v7346_v8 = vld [vmem:[%s8037_s21 + $0x2b4] sm:$0xf] }
 0x594   : > { %v3874_v30 = vadd.f32 %v3873_v7, %v3785_v37  ;;  %3924 = vmatmul.bf16.gmra.mxu0 %v8449_v1  ;;  %v7290_v37 = vld [vmem:[%s8037_s21 + $0xf4] sm:$0xf]  ;;  %v6426_v7 = vld [vmem:[%s8037_s21 + $0x10c] sm:$0xf0] }
 0x595   : > { %4013 = vmatmul.bf16.gmra.mxu1 %v8451_v2 }
 0x596   : > { %v5128_v11 = vadd.f32 %v3874_v30, %v620_v9  ;;  %4102 = vmatmul.bf16.gmra.mxu2 %v8453_v3  ;;  %v6429_v9 = vor.u32 %v7290_v37, %v6426_v7  ;;  %v6650_v30 = vld [vmem:[%s8037_s21 + $0x2cc] sm:$0xf0] }
 0x597   : > { %4191 = vmatmul.bf16.gmra.mxu3 %v8455_v4  ;;  %v6653_v62 = vor.u32 %v7346_v8, %v6650_v30  ;;  %v648_v30 = vld [vmem:[#allocation2 + $0x638] sm:$0xff] }
 0x598   : > { %5352 = vst [vmem:[#allocation2 + $0x280] sm:$0xff] %v5128_v11  ;;  %4255 = vmatpush.bf16.msrb.mxu0 %v6429_v9 }
 0x599   : > { %v3787_v39 = vpop.f32.mrf.mxu2  ;;  %v3611_v40 = vpop.f32.mrf.mxu0  ;;  %4344 = vmatpush.bf16.msrb.mxu1 %v6653_v62 }
 0x59a   : > { %v3788_v31 = vadd.f32 %v3787_v39, %v3699_v19  ;;  %v3876_v17 = vpop.f32.mrf.mxu3  ;;  %v3700_v20 = vpop.f32.mrf.mxu1  ;;  %v634_v39 = vld [vmem:[#allocation2 + $0x290] sm:$0xff] }
 0x59b   : > { %v3701_v6 = vadd.f32 %v3700_v20, %v3611_v40  ;;  %v641_v20 = vld [vmem:[#allocation2 + $0x400] sm:$0xff] }
 0x59c   : > { %v3877_v5 = vadd.f32 %v3876_v17, %v3788_v31 }
 0x59e   : > { %v5135_v12 = vadd.f32 %v3877_v5, %v627_v23 }
 0x5a0   : > { %5359 = vst [vmem:[#allocation2 + $0x590] sm:$0xff] %v5135_v12 }
 0x5a1   : > { %v3789_v63 = vpop.f32.mrf.mxu2  ;;  %v3614_v59 = vpop.f32.mrf.mxu0 }
 0x5a2   : > { %v3790_v11 = vadd.f32 %v3789_v63, %v3701_v6  ;;  %v3878_v19 = vpop.f32.mrf.mxu3  ;;  %v3703_v29 = vpop.f32.mrf.mxu1 }
 0x5a3   : > { %v3704_v31 = vadd.f32 %v3703_v29, %v3614_v59  ;;  %v6846_v29 = vld [vmem:[%s8037_s21 + $0x454] sm:$0xf0] }
 0x5a4   : > { %v3879_v0 = vadd.f32 %v3878_v19, %v3790_v11  ;;  %3929 = vmatmul.bf16.gmra.mxu0 %v8477_v33 }
 0x5a5   : > { %4018 = vmatmul.bf16.gmra.mxu1 %v8479_v34 }
 0x5a6   : > { %v5142_v32 = vadd.f32 %v3879_v0, %v634_v39  ;;  %4107 = vmatmul.bf16.gmra.mxu2 %v8481_v35  ;;  %v7395_v39 = vld [vmem:[%s8037_s21 + $0x43c] sm:$0xf] }
 0x5a7   : > { %4196 = vmatmul.bf16.gmra.mxu3 %v8483_v36 }
 0x5a8   : > { %5366 = vst [vmem:[#allocation2 + $0x290] sm:$0xff] %v5142_v32  ;;  %v6849_v32 = vor.u32 %v7395_v39, %v6846_v29 }
 0x5a9   : > { %v3792_v17 = vpop.f32.mrf.mxu2  ;;  %v3616_v23 = vpop.f32.mrf.mxu0 }
 0x5aa   : > { %v3793_v40 = vadd.f32 %v3792_v17, %v3704_v31  ;;  %v3881_v61 = vpop.f32.mrf.mxu3  ;;  %v3705_v5 = vpop.f32.mrf.mxu1  ;;  %v7451_v31 = vld [vmem:[%s8037_s21 + $0x5fc] sm:$0xf]  ;;  %v7070_v17 = vld [vmem:[%s8037_s21 + $0x614] sm:$0xf0]  ;;  %4434 = vmatpush.bf16.msrb.mxu2 %v6849_v32 }
 0x5ab   : > { %v3706_v37 = vadd.f32 %v3705_v5, %v3616_v23  ;;  %v655_v5 = vld [vmem:[#allocation2 + $0x218] sm:$0xff] }
 0x5ac   : > { %v3882_v12 = vadd.f32 %v3881_v61, %v3793_v40 }
 0x5ae   : > { %v5149_v6 = vadd.f32 %v3882_v12, %v641_v20  ;;  %v7073_v20 = vor.u32 %v7451_v31, %v7070_v17 }
 0x5b0   : > { %5373 = vst [vmem:[#allocation2 + $0x400] sm:$0xff] %v5149_v6  ;;  %4523 = vmatpush.bf16.msrb.mxu3 %v7073_v20 }
 0x5b1   : > { %v3794_v7 = vpop.f32.mrf.mxu2  ;;  %v3619_v8 = vpop.f32.mrf.mxu0 }
 0x5b2   : > { %v3795_v63 = vadd.f32 %v3794_v7, %v3706_v37  ;;  %v3883_v9 = vpop.f32.mrf.mxu3  ;;  %v3708_v11 = vpop.f32.mrf.mxu1 }
 0x5b3   : > { %v3709_v62 = vadd.f32 %v3708_v11, %v3619_v8  ;;  %v7339_v11 = vld [vmem:[%s8037_s21 + $0x27c] sm:$0xf] }
 0x5b4   : > { %v3884_v19 = vadd.f32 %v3883_v9, %v3795_v63  ;;  %3934 = vmatmul.bf16.gmra.mxu0 %v8497_v45  ;;  %v7283_v63 = vld [vmem:[%s8037_s21 + $0xbc] sm:$0xf]  ;;  %v6398_v9 = vld [vmem:[%s8037_s21 + $0xd4] sm:$0xf0] }
 0x5b5   : > { %4023 = vmatmul.bf16.gmra.mxu1 %v8499_v46 }
 0x5b6   : > { %v5156_v59 = vadd.f32 %v3884_v19, %v648_v30  ;;  %4112 = vmatmul.bf16.gmra.mxu2 %v8501_v47  ;;  %v6401_v30 = vor.u32 %v7283_v63, %v6398_v9  ;;  %v6622_v19 = vld [vmem:[%s8037_s21 + $0x294] sm:$0xf0] }
 0x5b7   : > { %4201 = vmatmul.bf16.gmra.mxu3 %v8503_v49  ;;  %v6625_v29 = vor.u32 %v7339_v11, %v6622_v19  ;;  %v676_v19 = vld [vmem:[#allocation2 + $0x3e0] sm:$0xff] }
 0x5b8   : > { %5380 = vst [vmem:[#allocation2 + $0x638] sm:$0xff] %v5156_v59  ;;  %4256 = vmatpush.bf16.msrb.mxu0 %v6401_v30 }
 0x5b9   : > { %v3797_v0 = vpop.f32.mrf.mxu2  ;;  %v3621_v23 = vpop.f32.mrf.mxu0  ;;  %4345 = vmatpush.bf16.msrb.mxu1 %v6625_v29 }
 0x5ba   : > { %v3798_v40 = vadd.f32 %v3797_v0, %v3709_v62  ;;  %v3886_v61 = vpop.f32.mrf.mxu3  ;;  %v3710_v12 = vpop.f32.mrf.mxu1  ;;  %v662_v0 = vld [vmem:[#allocation2 + $0x4d0] sm:$0xff] }
 0x5bb   : > { %v3711_v7 = vadd.f32 %v3710_v12, %v3621_v23  ;;  %v669_v12 = vld [vmem:[#allocation2 + $0x258] sm:$0xff] }
 0x5bc   : > { %v3887_v6 = vadd.f32 %v3886_v61, %v3798_v40 }
 0x5be   : > { %v5163_v37 = vadd.f32 %v3887_v6, %v655_v5 }
 0x5c0   : > { %5387 = vst [vmem:[#allocation2 + $0x218] sm:$0xff] %v5163_v37 }
 0x5c1   : > { %v3799_v8 = vpop.f32.mrf.mxu2  ;;  %v3624_v39 = vpop.f32.mrf.mxu0 }
 0x5c2   : > { %v3800_v59 = vadd.f32 %v3799_v8, %v3711_v7  ;;  %v3888_v62 = vpop.f32.mrf.mxu3  ;;  %v3713_v31 = vpop.f32.mrf.mxu1 }
 0x5c3   : > { %v3714_v40 = vadd.f32 %v3713_v31, %v3624_v39  ;;  %v6818_v31 = vld [vmem:[%s8037_s21 + $0x41c] sm:$0xf0] }
 0x5c4   : > { %v3889_v17 = vadd.f32 %v3888_v62, %v3800_v59  ;;  %3939 = vmatmul.bf16.gmra.mxu0 %v8524_v18 }
 0x5c5   : > { %4028 = vmatmul.bf16.gmra.mxu1 %v8527_v21 }
 0x5c6   : > { %v5170_v32 = vadd.f32 %v3889_v17, %v662_v0  ;;  %4117 = vmatmul.bf16.gmra.mxu2 %v8529_v22  ;;  %v7388_v0 = vld [vmem:[%s8037_s21 + $0x404] sm:$0xf] }
 0x5c7   : > { %4206 = vmatmul.bf16.gmra.mxu3 %v8531_v24 }
 0x5c8   : > { %5394 = vst [vmem:[#allocation2 + $0x4d0] sm:$0xff] %v5170_v32  ;;  %v6821_v32 = vor.u32 %v7388_v0, %v6818_v31 }
 0x5c9   : > { %v3802_v61 = vpop.f32.mrf.mxu2  ;;  %v3626_v5 = vpop.f32.mrf.mxu0 }
 0x5ca   : > { %v3803_v23 = vadd.f32 %v3802_v61, %v3714_v40  ;;  %v3891_v20 = vpop.f32.mrf.mxu3  ;;  %v3715_v6 = vpop.f32.mrf.mxu1  ;;  %v7444_v40 = vld [vmem:[%s8037_s21 + $0x5c4] sm:$0xf]  ;;  %v7042_v61 = vld [vmem:[%s8037_s21 + $0x5dc] sm:$0xf0]  ;;  %4435 = vmatpush.bf16.msrb.mxu2 %v6821_v32 }
 0x5cb   : > { %v3716_v63 = vadd.f32 %v3715_v6, %v3626_v5  ;;  %v460_v6 = vld [vmem:[#allocation2 + $0x450] sm:$0xff] }
 0x5cc   : > { %v3892_v37 = vadd.f32 %v3891_v20, %v3803_v23 }
 0x5ce   : > { %v5177_v7 = vadd.f32 %v3892_v37, %v669_v12  ;;  %v7045_v12 = vor.u32 %v7444_v40, %v7042_v61 }
 0x5d0   : > { %5401 = vst [vmem:[#allocation2 + $0x258] sm:$0xff] %v5177_v7  ;;  %4524 = vmatpush.bf16.msrb.mxu3 %v7045_v12  ;;  %v9792_v12 = vld [vmem:[#allocation22_spill] sm:$0xff] }
 0x5d1   : > { %v3804_v9 = vpop.f32.mrf.mxu2  ;;  %v3905_v11 = vpop.f32.mrf.mxu0 }
 0x5d2   : > { %v3805_v8 = vadd.f32 %v3804_v9, %v3716_v63  ;;  %v3893_v30 = vpop.f32.mrf.mxu3  ;;  %v3994_v59 = vpop.f32.mrf.mxu1 }
 0x5d3   : > { %v3995_v29 = vadd.f32 %v3994_v59, %v3905_v11  ;;  %v7332_v59 = vld [vmem:[%s8037_s21 + $0x244] sm:$0xf] }
 0x5d4   : > { %v3894_v62 = vadd.f32 %v3893_v30, %v3805_v8  ;;  %3944 = vmatmul.bf16.gmra.mxu0 %v8545_v41  ;;  %v7276_v8 = vld [vmem:[%s8037_s21 + $0x84] sm:$0xf]  ;;  %v6370_v30 = vld [vmem:[%s8037_s21 + $0x9c] sm:$0xf0] }
 0x5d5   : > { %4033 = vmatmul.bf16.gmra.mxu1 %v8547_v43 }
 0x5d6   : > { %v5184_v39 = vadd.f32 %v3894_v62, %v676_v19  ;;  %4122 = vmatmul.bf16.gmra.mxu2 %v8549_v44  ;;  %v6373_v19 = vor.u32 %v7276_v8, %v6370_v30  ;;  %v6594_v62 = vld [vmem:[%s8037_s21 + $0x25c] sm:$0xf0] }
 0x5d7   : > { %4211 = vmatmul.bf16.gmra.mxu3 %v8551_v58  ;;  %v6597_v31 = vor.u32 %v7332_v59, %v6594_v62 }
 0x5d8   : > { %5408 = vst [vmem:[#allocation2 + $0x3e0] sm:$0xff] %v5184_v39  ;;  %4257 = vmatpush.bf16.msrb.mxu0 %v6373_v19 }
 0x5d9   : > { %v4083_v17 = vpop.f32.mrf.mxu2  ;;  %v3907_v5 = vpop.f32.mrf.mxu0  ;;  %4346 = vmatpush.bf16.msrb.mxu1 %v6597_v31 }
 0x5da   : > { %v4084_v23 = vadd.f32 %v4083_v17, %v3995_v29  ;;  %v4172_v20 = vpop.f32.mrf.mxu3  ;;  %v3996_v37 = vpop.f32.mrf.mxu1  ;;  %v467_v17 = vld [vmem:[#allocation2 + $0x318] sm:$0xff] }
 0x5db   : > { %v3997_v9 = vadd.f32 %v3996_v37, %v3907_v5  ;;  %v9791_v5 = vld [vmem:[#allocation21_spill] sm:$0xff] }
 0x5dc   : > { %v4173_v7 = vadd.f32 %v4172_v20, %v4084_v23  ;;  %v9790_v20 = vld [vmem:[#allocation20_spill] sm:$0xff] }
 0x5de   : > { %v4968_v63 = vadd.f32 %v4173_v7, %v460_v6 }
 0x5e0   : > { %5192 = vst [vmem:[#allocation2 + $0x450] sm:$0xff] %v4968_v63 }
 0x5e1   : > { %v4085_v11 = vpop.f32.mrf.mxu2  ;;  %v3910_v0 = vpop.f32.mrf.mxu0 }
 0x5e2   : > { %v4086_v39 = vadd.f32 %v4085_v11, %v3997_v9  ;;  %v4174_v29 = vpop.f32.mrf.mxu3  ;;  %v3999_v40 = vpop.f32.mrf.mxu1  ;;  %v474_v9 = vld [vmem:[#allocation2 + $0x598] sm:$0xff] }
 0x5e3   : > { %v4000_v23 = vadd.f32 %v3999_v40, %v3910_v0  ;;  %v481_v0 = vld [vmem:[#allocation2 + $0xa0] sm:$0xff]  ;;  %v9793_v40 = vld [vmem:[#allocation23_spill] sm:$0xff] }
 0x5e4   : > { %v4175_v61 = vadd.f32 %v4174_v29, %v4086_v39  ;;  %3949 = vmatmul.bf16.gmra.mxu0 %v8571_v57 }
 0x5e5   : > { %4038 = vmatmul.bf16.gmra.mxu1 %v9790_v20  ;;  %v495_v20 = vld [vmem:[#allocation2 + $0x6a0] sm:$0xff] }
 0x5e6   : > { %v4975_v32 = vadd.f32 %v4175_v61, %v467_v17  ;;  %4127 = vmatmul.bf16.gmra.mxu2 %v9791_v5 }
 0x5e7   : > { %4216 = vmatmul.bf16.gmra.mxu3 %v9792_v12 }
 0x5e8   : > { %5199 = vst [vmem:[#allocation2 + $0x318] sm:$0xff] %v4975_v32 }
 0x5e9   : > { %v4088_v6 = vpop.f32.mrf.mxu2  ;;  %v3912_v63 = vpop.f32.mrf.mxu0 }
 0x5ea   : > { %v4089_v37 = vadd.f32 %v4088_v6, %v4000_v23  ;;  %v4177_v7 = vpop.f32.mrf.mxu3  ;;  %v4001_v8 = vpop.f32.mrf.mxu1  ;;  %v9794_v23 = vld [vmem:[#allocation24_spill] sm:$0xff]  ;;  %v9795_v6 = vld [vmem:[#allocation25_spill] sm:$0xff] }
 0x5eb   : > { %v4002_v19 = vadd.f32 %v4001_v8, %v3912_v63  ;;  %v6790_v63 = vld [vmem:[%s8037_s21 + $0x3e4] sm:$0xf0] }
 0x5ec   : > { %v4178_v30 = vadd.f32 %v4177_v7, %v4089_v37  ;;  %v9796_v37 = vld [vmem:[#allocation26_spill] sm:$0xff]  ;;  %v7381_v7 = vld [vmem:[%s8037_s21 + $0x3cc] sm:$0xf] }
 0x5ed   : > { %v6793_v8 = vor.u32 %v7381_v7, %v6790_v63 }
 0x5ee   : > { %v4982_v11 = vadd.f32 %v4178_v30, %v474_v9  ;;  %v7437_v30 = vld [vmem:[%s8037_s21 + $0x58c] sm:$0xf] }
 0x5ef   : > { %4436 = vmatpush.bf16.msrb.mxu2 %v6793_v8  ;;  %v9797_v8 = vld [vmem:[#allocation27_spill] sm:$0xff] }
 0x5f0   : > { %5206 = vst [vmem:[#allocation2 + $0x598] sm:$0xff] %v4982_v11  ;;  %v7014_v11 = vld [vmem:[%s8037_s21 + $0x5a4] sm:$0xf0] }
 0x5f1   : > { %v4090_v59 = vpop.f32.mrf.mxu2  ;;  %v3915_v29 = vpop.f32.mrf.mxu0 }
 0x5f2   : > { %v4091_v62 = vadd.f32 %v4090_v59, %v4002_v19  ;;  %v4179_v39 = vpop.f32.mrf.mxu3  ;;  %v4004_v31 = vpop.f32.mrf.mxu1 }
 0x5f3   : > { %v4005_v32 = vadd.f32 %v4004_v31, %v3915_v29  ;;  %v488_v29 = vld [vmem:[#allocation2 + $0x5f8] sm:$0xff] }
 0x5f4   : > { %v4180_v17 = vadd.f32 %v4179_v39, %v4091_v62  ;;  %3954 = vmatmul.bf16.gmra.mxu0 %v9793_v40  ;;  %v7017_v39 = vor.u32 %v7437_v30, %v7014_v11  ;;  %v6566_v40 = vld [vmem:[%s8037_s21 + $0x224] sm:$0xf0] }
 0x5f5   : > { %4043 = vmatmul.bf16.gmra.mxu1 %v9794_v23  ;;  %v7325_v23 = vld [vmem:[%s8037_s21 + $0x20c] sm:$0xf] }
 0x5f6   : > { %v4989_v61 = vadd.f32 %v4180_v17, %v481_v0  ;;  %4132 = vmatmul.bf16.gmra.mxu2 %v9795_v6  ;;  %4525 = vmatpush.bf16.msrb.mxu3 %v7017_v39  ;;  %v6342_v6 = vld [vmem:[%s8037_s21 + $0x64] sm:$0xf0]  ;;  %v6569_v5 = vor.u32 %v7325_v23, %v6566_v40  ;;  %v502_v23 = vld [vmem:[#allocation2 + $0x58] sm:$0xff] }
 0x5f7   : > { %4221 = vmatmul.bf16.gmra.mxu3 %v9796_v37  ;;  %v7269_v37 = vld [vmem:[%s8037_s21 + $0x4c] sm:$0xf] }
 0x5f8   : > { %5213 = vst [vmem:[#allocation2 + $0xa0] sm:$0xff] %v4989_v61  ;;  %v6345_v63 = vor.u32 %v7269_v37, %v6342_v6  ;;  %4347 = vmatpush.bf16.msrb.mxu1 %v6569_v5  ;;  %v9799_v39 = vld [vmem:[#allocation29_spill] sm:$0xff]  ;;  %v9800_v6 = vld [vmem:[#allocation30_spill] sm:$0xff] }
 0x5f9   : > { %v4093_v9 = vpop.f32.mrf.mxu2  ;;  %v3917_v62 = vpop.f32.mrf.mxu0 }
 0x5fa   : > { %v4094_v19 = vadd.f32 %v4093_v9, %v4005_v32  ;;  %v4182_v59 = vpop.f32.mrf.mxu3  ;;  %v4006_v0 = vpop.f32.mrf.mxu1  ;;  %4258 = vmatpush.bf16.msrb.mxu0 %v6345_v63 }
 0x5fb   : > { %v4007_v61 = vadd.f32 %v4006_v0, %v3917_v62  ;;  %v9798_v62 = vld [vmem:[#allocation28_spill] sm:$0xff] }
 0x5fc   : > { %v4183_v31 = vadd.f32 %v4182_v59, %v4094_v19 }
 0x5fe   : > { %v4996_v17 = vadd.f32 %v4183_v31, %v488_v29 }
 0x600   : > { %5220 = vst [vmem:[#allocation2 + $0x5f8] sm:$0xff] %v4996_v17 }
 0x601   : > { %v4095_v7 = vpop.f32.mrf.mxu2  ;;  %v3920_v12 = vpop.f32.mrf.mxu0 }
 0x602   : > { %v4096_v32 = vadd.f32 %v4095_v7, %v4007_v61  ;;  %v4184_v9 = vpop.f32.mrf.mxu3  ;;  %v4009_v30 = vpop.f32.mrf.mxu1 }
 0x603   : > { %v4010_v59 = vadd.f32 %v4009_v30, %v3920_v12 }
 0x604   : > { %v4185_v11 = vadd.f32 %v4184_v9, %v4096_v32  ;;  %3959 = vmatmul.bf16.gmra.mxu0 %v9797_v8  ;;  %v509_v32 = vld [vmem:[#allocation2 + $0x410] sm:$0xff] }
 0x605   : > { %4048 = vmatmul.bf16.gmra.mxu1 %v9798_v62  ;;  %v523_v8 = vld [vmem:[#allocation2 + $0x6f0] sm:$0xff] }
 0x606   : > { %v5003_v19 = vadd.f32 %v4185_v11, %v495_v20  ;;  %4137 = vmatmul.bf16.gmra.mxu2 %v9799_v39  ;;  %v9801_v11 = vld [vmem:[#allocation31_spill] sm:$0xff] }
 0x607   : > { %4226 = vmatmul.bf16.gmra.mxu3 %v9800_v6  ;;  %v6538_v6 = vld [vmem:[%s8037_s21 + $0x1ec] sm:$0xf0] }
 0x608   : > { %5227 = vst [vmem:[#allocation2 + $0x6a0] sm:$0xff] %v5003_v19 }
 0x609   : > { %v4098_v37 = vpop.f32.mrf.mxu2  ;;  %v3922_v40 = vpop.f32.mrf.mxu0 }
 0x60a   : > { %v4099_v29 = vadd.f32 %v4098_v37, %v4010_v59  ;;  %v4187_v0 = vpop.f32.mrf.mxu3  ;;  %v4011_v31 = vpop.f32.mrf.mxu1  ;;  %v9802_v37 = vld [vmem:[#allocation32_spill] sm:$0xff] }
 0x60b   : > { %v4012_v5 = vadd.f32 %v4011_v31, %v3922_v40  ;;  %v7374_v40 = vld [vmem:[%s8037_s21 + $0x394] sm:$0xf] }
 0x60c   : > { %v4188_v17 = vadd.f32 %v4187_v0, %v4099_v29  ;;  %v9803_v29 = vld [vmem:[#allocation33_spill] sm:$0xff]  ;;  %v9804_v0 = vld [vmem:[#allocation34_spill] sm:$0xff] }
 0x60e   : > { %v5010_v61 = vadd.f32 %v4188_v17, %v502_v23  ;;  %v6762_v23 = vld [vmem:[%s8037_s21 + $0x3ac] sm:$0xf0] }
 0x60f   : > { %v6765_v17 = vor.u32 %v7374_v40, %v6762_v23 }
 0x610   : > { %5234 = vst [vmem:[#allocation2 + $0x58] sm:$0xff] %v5010_v61  ;;  %v7430_v61 = vld [vmem:[%s8037_s21 + $0x554] sm:$0xf] }
 0x611   : > { %v4100_v20 = vpop.f32.mrf.mxu2  ;;  %v3925_v63 = vpop.f32.mrf.mxu0  ;;  %4437 = vmatpush.bf16.msrb.mxu2 %v6765_v17  ;;  %v9805_v17 = vld [vmem:[#allocation35_spill] sm:$0xff] }
 0x612   : > { %v4101_v12 = vadd.f32 %v4100_v20, %v4012_v5  ;;  %v4189_v7 = vpop.f32.mrf.mxu3  ;;  %v4014_v9 = vpop.f32.mrf.mxu1  ;;  %v6986_v5 = vld [vmem:[%s8037_s21 + $0x56c] sm:$0xf0] }
 0x613   : > { %v4015_v59 = vadd.f32 %v4014_v9, %v3925_v63  ;;  %v6989_v63 = vor.u32 %v7430_v61, %v6986_v5 }
 0x614   : > { %v4190_v30 = vadd.f32 %v4189_v7, %v4101_v12  ;;  %3964 = vmatmul.bf16.gmra.mxu0 %v9801_v11  ;;  %v7318_v11 = vld [vmem:[%s8037_s21 + $0x1d4] sm:$0xf] }
 0x615   : > { %4053 = vmatmul.bf16.gmra.mxu1 %v9802_v37  ;;  %4526 = vmatpush.bf16.msrb.mxu3 %v6989_v63  ;;  %v6314_v37 = vld [vmem:[%s8037_s21 + $0x2c] sm:$0xf0]  ;;  %v6541_v62 = vor.u32 %v7318_v11, %v6538_v6  ;;  %v9807_v63 = vld [vmem:[#allocation37_spill] sm:$0xff] }
 0x616   : > { %v5017_v19 = vadd.f32 %v4190_v30, %v509_v32  ;;  %4142 = vmatmul.bf16.gmra.mxu2 %v9803_v29  ;;  %v516_v32 = vld [vmem:[#allocation2 + $0x528] sm:$0xff]  ;;  %v7262_v29 = vld [vmem:[%s8037_s21 + $0x14] sm:$0xf] }
 0x617   : > { %4231 = vmatmul.bf16.gmra.mxu3 %v9804_v0  ;;  %v6317_v23 = vor.u32 %v7262_v29, %v6314_v37  ;;  %4348 = vmatpush.bf16.msrb.mxu1 %v6541_v62  ;;  %v9808_v37 = vld [vmem:[#allocation38_spill] sm:$0xff]  ;;  %v530_v11 = vld [vmem:[#allocation2 + $0x88] sm:$0xff] }
 0x618   : > { %5241 = vst [vmem:[#allocation2 + $0x410] sm:$0xff] %v5017_v19 }
 0x619   : > { %v4103_v31 = vpop.f32.mrf.mxu2  ;;  %v3927_v7 = vpop.f32.mrf.mxu0  ;;  %4259 = vmatpush.bf16.msrb.mxu0 %v6317_v23 }
 0x61a   : > { %v4104_v20 = vadd.f32 %v4103_v31, %v4015_v59  ;;  %v4192_v12 = vpop.f32.mrf.mxu3  ;;  %v4016_v9 = vpop.f32.mrf.mxu1 }
 0x61b   : > { %v4017_v0 = vadd.f32 %v4016_v9, %v3927_v7  ;;  %v9806_v7 = vld [vmem:[#allocation36_spill] sm:$0xff] }
 0x61c   : > { %v4193_v30 = vadd.f32 %v4192_v12, %v4104_v20 }
 0x61e   : > { %v5024_v19 = vadd.f32 %v4193_v30, %v516_v32 }
 0x620   : > { %5248 = vst [vmem:[#allocation2 + $0x528] sm:$0xff] %v5024_v19 }
 0x621   : > { %v4105_v40 = vpop.f32.mrf.mxu2  ;;  %v3930_v39 = vpop.f32.mrf.mxu0 }
 0x622   : > { %v4106_v59 = vadd.f32 %v4105_v40, %v4017_v0  ;;  %v4194_v31 = vpop.f32.mrf.mxu3  ;;  %v4019_v61 = vpop.f32.mrf.mxu1 }
 0x623   : > { %v4020_v12 = vadd.f32 %v4019_v61, %v3930_v39 }
 0x624   : > { %v4195_v5 = vadd.f32 %v4194_v31, %v4106_v59  ;;  %3969 = vmatmul.bf16.gmra.mxu0 %v9805_v17  ;;  %v537_v59 = vld [vmem:[#allocation2 + $0x228] sm:$0xff]  ;;  %v551_v17 = vld [vmem:[#allocation2 + $0x5a0] sm:$0xff] }
 0x625   : > { %4058 = vmatmul.bf16.gmra.mxu1 %v9806_v7 }
 0x626   : > { %v5031_v20 = vadd.f32 %v4195_v5, %v523_v8  ;;  %4147 = vmatmul.bf16.gmra.mxu2 %v9807_v63  ;;  %v9809_v5 = vld [vmem:[#allocation39_spill] sm:$0xff] }
 0x627   : > { %4236 = vmatmul.bf16.gmra.mxu3 %v9808_v37  ;;  %v7371_v37 = vld [vmem:[%s8037_s21 + $0x378] sm:$0xf0] }
 0x628   : > { %5255 = vst [vmem:[#allocation2 + $0x6f0] sm:$0xff] %v5031_v20 }
 0x629   : > { %v4108_v29 = vpop.f32.mrf.mxu2  ;;  %v3932_v6 = vpop.f32.mrf.mxu0 }
 0x62a   : > { %v4109_v0 = vadd.f32 %v4108_v29, %v4020_v12  ;;  %v4197_v32 = vpop.f32.mrf.mxu3  ;;  %v4021_v9 = vpop.f32.mrf.mxu1  ;;  %v9810_v29 = vld [vmem:[#allocation40_spill] sm:$0xff] }
 0x62b   : > { %v4022_v62 = vadd.f32 %v4021_v9, %v3932_v6  ;;  %v6964_v6 = vld [vmem:[%s8037_s21 + $0x520] sm:$0xf] }
 0x62c   : > { %v4198_v30 = vadd.f32 %v4197_v32, %v4109_v0  ;;  %v9811_v0 = vld [vmem:[#allocation41_spill] sm:$0xff]  ;;  %v9812_v32 = vld [vmem:[#allocation42_spill] sm:$0xff] }
 0x62e   : > { %v5038_v19 = vadd.f32 %v4198_v30, %v530_v11  ;;  %v7427_v11 = vld [vmem:[%s8037_s21 + $0x538] sm:$0xf0] }
 0x62f   : > { %v6965_v30 = vor.u32 %v7427_v11, %v6964_v6 }
 0x630   : > { %5262 = vst [vmem:[#allocation2 + $0x88] sm:$0xff] %v5038_v19  ;;  %v7188_v19 = vld [vmem:[%s8037_s21 + $0x6e0] sm:$0xf] }
 0x631   : > { %v4110_v8 = vpop.f32.mrf.mxu2  ;;  %v3935_v23 = vpop.f32.mrf.mxu0  ;;  %4786 = vmatpush.bf16.msra.mxu2 %v6965_v30 }
 0x632   : > { %v4111_v39 = vadd.f32 %v4110_v8, %v4022_v62  ;;  %v4199_v40 = vpop.f32.mrf.mxu3  ;;  %v4024_v31 = vpop.f32.mrf.mxu1  ;;  %v7483_v62 = vld [vmem:[%s8037_s21 + $0x6f8] sm:$0xf0] }
 0x633   : > { %v4025_v12 = vadd.f32 %v4024_v31, %v3935_v23  ;;  %v7189_v23 = vor.u32 %v7483_v62, %v7188_v19 }
 0x634   : > { %v4200_v61 = vadd.f32 %v4199_v40, %v4111_v39  ;;  %3974 = vmatmul.bf16.gmra.mxu0 %v9809_v5  ;;  %v6740_v5 = vld [vmem:[%s8037_s21 + $0x360] sm:$0xf] }
 0x635   : > { %4063 = vmatmul.bf16.gmra.mxu1 %v9810_v29  ;;  %4875 = vmatpush.bf16.msra.mxu3 %v7189_v23  ;;  %v7315_v29 = vld [vmem:[%s8037_s21 + $0x1b8] sm:$0xf0]  ;;  %v6741_v7 = vor.u32 %v7371_v37, %v6740_v5  ;;  %v558_v5 = vld [vmem:[#allocation2 + $0x660] sm:$0xff] }
 0x636   : > { %v5045_v20 = vadd.f32 %v4200_v61, %v537_v59  ;;  %4152 = vmatmul.bf16.gmra.mxu2 %v9811_v0  ;;  %v544_v59 = vld [vmem:[#allocation2 + $0xd0] sm:$0xff]  ;;  %v6516_v0 = vld [vmem:[%s8037_s21 + $0x1a0] sm:$0xf] }
 0x637   : > { %4241 = vmatmul.bf16.gmra.mxu3 %v9812_v32  ;;  %v6517_v11 = vor.u32 %v7315_v29, %v6516_v0  ;;  %4697 = vmatpush.bf16.msra.mxu1 %v6741_v7 }
 0x638   : > { %5269 = vst [vmem:[#allocation2 + $0x228] sm:$0xff] %v5045_v20 }
 0x639   : > { %v4113_v9 = vpop.f32.mrf.mxu2  ;;  %v3937_v40 = vpop.f32.mrf.mxu0  ;;  %4608 = vmatpush.bf16.msra.mxu0 %v6517_v11 }
 0x63a   : > { %v4114_v8 = vadd.f32 %v4113_v9, %v4025_v12  ;;  %v4202_v39 = vpop.f32.mrf.mxu3  ;;  %v4026_v31 = vpop.f32.mrf.mxu1 }
 0x63b   : > { %v4027_v32 = vadd.f32 %v4026_v31, %v3937_v40 }
 0x63c   : > { %v4203_v61 = vadd.f32 %v4202_v39, %v4114_v8 }
 0x63e   : > { %v5052_v20 = vadd.f32 %v4203_v61, %v544_v59  ;;  %v565_v61 = vld [vmem:[#allocation2 + $0x178] sm:$0xff] }
 0x640   : > { %5276 = vst [vmem:[#allocation2 + $0xd0] sm:$0xff] %v5052_v20 }
 0x641   : > { %v4115_v6 = vpop.f32.mrf.mxu2  ;;  %v3940_v63 = vpop.f32.mrf.mxu0 }
 0x642   : > { %v4116_v12 = vadd.f32 %v4115_v6, %v4027_v32  ;;  %v4204_v9 = vpop.f32.mrf.mxu3  ;;  %v4029_v19 = vpop.f32.mrf.mxu1 }
 0x643   : > { %v4030_v8 = vadd.f32 %v4029_v19, %v3940_v63  ;;  %v7420_v19 = vld [vmem:[%s8037_s21 + $0x500] sm:$0xf0] }
 0x644   : > { %v4205_v62 = vadd.f32 %v4204_v9, %v4116_v12  ;;  %3979 = vmatmul.bf16.gmra.mxu0 %v8715_v10  ;;  %v6936_v9 = vld [vmem:[%s8037_s21 + $0x4e8] sm:$0xf] }
 0x645   : > { %4068 = vmatmul.bf16.gmra.mxu1 %v8719_v38 }
 0x646   : > { %v5059_v30 = vadd.f32 %v4205_v62, %v551_v17  ;;  %4157 = vmatmul.bf16.gmra.mxu2 %v8721_v42 }
 0x647   : > { %4246 = vmatmul.bf16.gmra.mxu3 %v8723_v60 }
 0x648   : > { %5283 = vst [vmem:[#allocation2 + $0x5a0] sm:$0xff] %v5059_v30  ;;  %v6937_v30 = vor.u32 %v7420_v19, %v6936_v9 }
 0x649   : > { %v4118_v29 = vpop.f32.mrf.mxu2  ;;  %v3942_v37 = vpop.f32.mrf.mxu0 }
 0x64a   : > { %v4119_v0 = vadd.f32 %v4118_v29, %v4030_v8  ;;  %v4207_v32 = vpop.f32.mrf.mxu3  ;;  %v4031_v39 = vpop.f32.mrf.mxu1  ;;  %v7160_v8 = vld [vmem:[%s8037_s21 + $0x6a8] sm:$0xf]  ;;  %v7476_v29 = vld [vmem:[%s8037_s21 + $0x6c0] sm:$0xf0]  ;;  %4787 = vmatpush.bf16.msra.mxu2 %v6937_v30 }
 0x64b   : > { %v4032_v7 = vadd.f32 %v4031_v39, %v3942_v37  ;;  %v572_v39 = vld [vmem:[#allocation2 + $0x388] sm:$0xff] }
 0x64c   : > { %v4208_v40 = vadd.f32 %v4207_v32, %v4119_v0 }
 0x64e   : > { %v5066_v23 = vadd.f32 %v4208_v40, %v558_v5  ;;  %v7161_v5 = vor.u32 %v7476_v29, %v7160_v8 }
 0x650   : > { %5290 = vst [vmem:[#allocation2 + $0x660] sm:$0xff] %v5066_v23  ;;  %4876 = vmatpush.bf16.msra.mxu3 %v7161_v5 }
 0x651   : > { %v4120_v17 = vpop.f32.mrf.mxu2  ;;  %v3945_v31 = vpop.f32.mrf.mxu0 }
 0x652   : > { %v4121_v63 = vadd.f32 %v4120_v17, %v4032_v7  ;;  %v4209_v59 = vpop.f32.mrf.mxu3  ;;  %v4034_v20 = vpop.f32.mrf.mxu1 }
 0x653   : > { %v4035_v12 = vadd.f32 %v4034_v20, %v3945_v31  ;;  %v6712_v20 = vld [vmem:[%s8037_s21 + $0x328] sm:$0xf] }
 0x654   : > { %v4210_v6 = vadd.f32 %v4209_v59, %v4121_v63  ;;  %4260 = vmatmul.bf16.vlgmr.msrb.gmra.mxu0 %v8351_v48  ;;  %v6488_v63 = vld [vmem:[%s8037_s21 + $0x168] sm:$0xf]  ;;  %v7308_v59 = vld [vmem:[%s8037_s21 + $0x180] sm:$0xf0] }
 0x655   : > { %4349 = vmatmul.bf16.vlgmr.msrb.gmra.mxu1 %v8355_v52 }
 0x656   : > { %v5073_v11 = vadd.f32 %v4210_v6, %v565_v61  ;;  %4438 = vmatmul.bf16.vlgmr.msrb.gmra.mxu2 %v8357_v53  ;;  %v6489_v61 = vor.u32 %v7308_v59, %v6488_v63  ;;  %v7364_v6 = vld [vmem:[%s8037_s21 + $0x340] sm:$0xf0] }
 0x657   : > { %4527 = vmatmul.bf16.vlgmr.msrb.gmra.mxu3 %v8359_v54  ;;  %v6713_v19 = vor.u32 %v7364_v6, %v6712_v20  ;;  %v593_v6 = vld [vmem:[#allocation2 + $0x4c8] sm:$0xff] }
 0x658   : > { %5297 = vst [vmem:[#allocation2 + $0x178] sm:$0xff] %v5073_v11  ;;  %4609 = vmatpush.bf16.msra.mxu0 %v6489_v61 }
 0x659   : > { %v4123_v62 = vpop.f32.mrf.mxu2  ;;  %v3947_v37 = vpop.f32.mrf.mxu0  ;;  %4698 = vmatpush.bf16.msra.mxu1 %v6713_v19 }
 0x65a   : > { %v4124_v0 = vadd.f32 %v4123_v62, %v4035_v12  ;;  %v4212_v32 = vpop.f32.mrf.mxu3  ;;  %v4036_v40 = vpop.f32.mrf.mxu1  ;;  %v579_v62 = vld [vmem:[#allocation2 + $0xe8] sm:$0xff] }
 0x65b   : > { %v4037_v17 = vadd.f32 %v4036_v40, %v3947_v37  ;;  %v586_v40 = vld [vmem:[#allocation2 + $0x4b8] sm:$0xff] }
 0x65c   : > { %v4213_v23 = vadd.f32 %v4212_v32, %v4124_v0 }
 0x65e   : > { %v5080_v7 = vadd.f32 %v4213_v23, %v572_v39 }
 0x660   : > { %5304 = vst [vmem:[#allocation2 + $0x388] sm:$0xff] %v5080_v7 }
 0x661   : > { %v4125_v31 = vpop.f32.mrf.mxu2  ;;  %v3950_v9 = vpop.f32.mrf.mxu0 }
 0x662   : > { %v4126_v11 = vadd.f32 %v4125_v31, %v4037_v17  ;;  %v4214_v12 = vpop.f32.mrf.mxu3  ;;  %v4039_v8 = vpop.f32.mrf.mxu1 }
 0x663   : > { %v4040_v0 = vadd.f32 %v4039_v8, %v3950_v9  ;;  %v7413_v8 = vld [vmem:[%s8037_s21 + $0x4c8] sm:$0xf0] }
 0x664   : > { %v4215_v29 = vadd.f32 %v4214_v12, %v4126_v11  ;;  %4265 = vmatmul.bf16.gmra.mxu0 %v8381_v13 }
 0x665   : > { %4354 = vmatmul.bf16.gmra.mxu1 %v8383_v14 }
 0x666   : > { %v5087_v30 = vadd.f32 %v4215_v29, %v579_v62  ;;  %4443 = vmatmul.bf16.gmra.mxu2 %v8385_v15  ;;  %v6908_v62 = vld [vmem:[%s8037_s21 + $0x4b0] sm:$0xf] }
 0x667   : > { %4532 = vmatmul.bf16.gmra.mxu3 %v8387_v16 }
 0x668   : > { %5311 = vst [vmem:[#allocation2 + $0xe8] sm:$0xff] %v5087_v30  ;;  %v6909_v30 = vor.u32 %v7413_v8, %v6908_v62 }
 0x669   : > { %v4128_v32 = vpop.f32.mrf.mxu2  ;;  %v3952_v39 = vpop.f32.mrf.mxu0 }
 0x66a   : > { %v4129_v37 = vadd.f32 %v4128_v32, %v4040_v0  ;;  %v4217_v5 = vpop.f32.mrf.mxu3  ;;  %v4041_v23 = vpop.f32.mrf.mxu1  ;;  %v7132_v0 = vld [vmem:[%s8037_s21 + $0x670] sm:$0xf]  ;;  %v7469_v32 = vld [vmem:[%s8037_s21 + $0x688] sm:$0xf0]  ;;  %4788 = vmatpush.bf16.msra.mxu2 %v6909_v30 }
 0x66b   : > { %v4042_v63 = vadd.f32 %v4041_v23, %v3952_v39  ;;  %v600_v23 = vld [vmem:[#allocation2 + $0x110] sm:$0xff] }
 0x66c   : > { %v4218_v7 = vadd.f32 %v4217_v5, %v4129_v37 }
 0x66e   : > { %v5094_v17 = vadd.f32 %v4218_v7, %v586_v40  ;;  %v7133_v40 = vor.u32 %v7469_v32, %v7132_v0 }
 0x670   : > { %5318 = vst [vmem:[#allocation2 + $0x4b8] sm:$0xff] %v5094_v17  ;;  %4877 = vmatpush.bf16.msra.mxu3 %v7133_v40 }
 0x671   : > { %v4130_v59 = vpop.f32.mrf.mxu2  ;;  %v3955_v20 = vpop.f32.mrf.mxu0 }
 0x672   : > { %v4131_v31 = vadd.f32 %v4130_v59, %v4042_v63  ;;  %v4219_v61 = vpop.f32.mrf.mxu3  ;;  %v4044_v11 = vpop.f32.mrf.mxu1 }
 0x673   : > { %v4045_v19 = vadd.f32 %v4044_v11, %v3955_v20  ;;  %v6684_v11 = vld [vmem:[%s8037_s21 + $0x2f0] sm:$0xf] }
 0x674   : > { %v4220_v12 = vadd.f32 %v4219_v61, %v4131_v31  ;;  %4270 = vmatmul.bf16.gmra.mxu0 %v8401_v25  ;;  %v6460_v31 = vld [vmem:[%s8037_s21 + $0x130] sm:$0xf]  ;;  %v7301_v61 = vld [vmem:[%s8037_s21 + $0x148] sm:$0xf0] }
 0x675   : > { %4359 = vmatmul.bf16.gmra.mxu1 %v8403_v26 }
 0x676   : > { %v5101_v9 = vadd.f32 %v4220_v12, %v593_v6  ;;  %4448 = vmatmul.bf16.gmra.mxu2 %v8405_v27  ;;  %v6461_v6 = vor.u32 %v7301_v61, %v6460_v31  ;;  %v7357_v12 = vld [vmem:[%s8037_s21 + $0x308] sm:$0xf0] }
 0x677   : > { %4537 = vmatmul.bf16.gmra.mxu3 %v8407_v28  ;;  %v6685_v8 = vor.u32 %v7357_v12, %v6684_v11  ;;  %v621_v12 = vld [vmem:[#allocation2 + $0x430] sm:$0xff] }
 0x678   : > { %5325 = vst [vmem:[#allocation2 + $0x4c8] sm:$0xff] %v5101_v9  ;;  %4610 = vmatpush.bf16.msra.mxu0 %v6461_v6 }
 0x679   : > { %v4133_v29 = vpop.f32.mrf.mxu2  ;;  %v3957_v39 = vpop.f32.mrf.mxu0  ;;  %4699 = vmatpush.bf16.msra.mxu1 %v6685_v8 }
 0x67a   : > { %v4134_v37 = vadd.f32 %v4133_v29, %v4045_v19  ;;  %v4222_v5 = vpop.f32.mrf.mxu3  ;;  %v4046_v7 = vpop.f32.mrf.mxu1  ;;  %v607_v29 = vld [vmem:[#allocation2 + $0x48] sm:$0xff] }
 0x67b   : > { %v4047_v59 = vadd.f32 %v4046_v7, %v3957_v39  ;;  %v614_v7 = vld [vmem:[#allocation2 + $0x668] sm:$0xff] }
 0x67c   : > { %v4223_v17 = vadd.f32 %v4222_v5, %v4134_v37 }
 0x67e   : > { %v5108_v63 = vadd.f32 %v4223_v17, %v600_v23 }
 0x680   : > { %5332 = vst [vmem:[#allocation2 + $0x110] sm:$0xff] %v5108_v63 }
 0x681   : > { %v4135_v20 = vpop.f32.mrf.mxu2  ;;  %v3960_v62 = vpop.f32.mrf.mxu0 }
 0x682   : > { %v4136_v9 = vadd.f32 %v4135_v20, %v4047_v59  ;;  %v4224_v19 = vpop.f32.mrf.mxu3  ;;  %v4049_v0 = vpop.f32.mrf.mxu1 }
 0x683   : > { %v4050_v37 = vadd.f32 %v4049_v0, %v3960_v62  ;;  %v7406_v0 = vld [vmem:[%s8037_s21 + $0x490] sm:$0xf0] }
 0x684   : > { %v4225_v32 = vadd.f32 %v4224_v19, %v4136_v9  ;;  %4275 = vmatmul.bf16.gmra.mxu0 %v8429_v50 }
 0x685   : > { %4364 = vmatmul.bf16.gmra.mxu1 %v8431_v51 }
 0x686   : > { %v5115_v30 = vadd.f32 %v4225_v32, %v607_v29  ;;  %4453 = vmatmul.bf16.gmra.mxu2 %v8433_v55  ;;  %v6880_v29 = vld [vmem:[%s8037_s21 + $0x478] sm:$0xf] }
 0x687   : > { %4542 = vmatmul.bf16.gmra.mxu3 %v8435_v56 }
 0x688   : > { %5339 = vst [vmem:[#allocation2 + $0x48] sm:$0xff] %v5115_v30  ;;  %v6881_v30 = vor.u32 %v7406_v0, %v6880_v29 }
 0x689   : > { %v4138_v5 = vpop.f32.mrf.mxu2  ;;  %v3962_v23 = vpop.f32.mrf.mxu0 }
 0x68a   : > { %v4139_v39 = vadd.f32 %v4138_v5, %v4050_v37  ;;  %v4227_v40 = vpop.f32.mrf.mxu3  ;;  %v4051_v17 = vpop.f32.mrf.mxu1  ;;  %v7104_v37 = vld [vmem:[%s8037_s21 + $0x638] sm:$0xf]  ;;  %v7462_v5 = vld [vmem:[%s8037_s21 + $0x650] sm:$0xf0]  ;;  %4789 = vmatpush.bf16.msra.mxu2 %v6881_v30 }
 0x68b   : > { %v4052_v31 = vadd.f32 %v4051_v17, %v3962_v23  ;;  %v628_v17 = vld [vmem:[#allocation2 + $0x30] sm:$0xff] }
 0x68c   : > { %v4228_v63 = vadd.f32 %v4227_v40, %v4139_v39 }
 0x68e   : > { %v5122_v59 = vadd.f32 %v4228_v63, %v614_v7  ;;  %v7105_v7 = vor.u32 %v7462_v5, %v7104_v37 }
 0x690   : > { %5346 = vst [vmem:[#allocation2 + $0x668] sm:$0xff] %v5122_v59  ;;  %4878 = vmatpush.bf16.msra.mxu3 %v7105_v7 }
 0x691   : > { %v4140_v61 = vpop.f32.mrf.mxu2  ;;  %v3965_v11 = vpop.f32.mrf.mxu0 }
 0x692   : > { %v4141_v20 = vadd.f32 %v4140_v61, %v4052_v31  ;;  %v4229_v6 = vpop.f32.mrf.mxu3  ;;  %v4054_v9 = vpop.f32.mrf.mxu1 }
 0x693   : > { %v4055_v8 = vadd.f32 %v4054_v9, %v3965_v11  ;;  %v6656_v9 = vld [vmem:[%s8037_s21 + $0x2b8] sm:$0xf] }
 0x694   : > { %v4230_v19 = vadd.f32 %v4229_v6, %v4141_v20  ;;  %4280 = vmatmul.bf16.gmra.mxu0 %v8449_v1  ;;  %v6432_v20 = vld [vmem:[%s8037_s21 + $0xf8] sm:$0xf]  ;;  %v7294_v6 = vld [vmem:[%s8037_s21 + $0x110] sm:$0xf0] }
 0x695   : > { %4369 = vmatmul.bf16.gmra.mxu1 %v8451_v2 }
 0x696   : > { %v5129_v62 = vadd.f32 %v4230_v19, %v621_v12  ;;  %4458 = vmatmul.bf16.gmra.mxu2 %v8453_v3  ;;  %v6433_v12 = vor.u32 %v7294_v6, %v6432_v20  ;;  %v7350_v19 = vld [vmem:[%s8037_s21 + $0x2d0] sm:$0xf0] }
 0x697   : > { %4547 = vmatmul.bf16.gmra.mxu3 %v8455_v4  ;;  %v6657_v0 = vor.u32 %v7350_v19, %v6656_v9  ;;  %v649_v19 = vld [vmem:[#allocation2 + $0x578] sm:$0xff] }
 0x698   : > { %5353 = vst [vmem:[#allocation2 + $0x430] sm:$0xff] %v5129_v62  ;;  %4611 = vmatpush.bf16.msra.mxu0 %v6433_v12 }
 0x699   : > { %v4143_v32 = vpop.f32.mrf.mxu2  ;;  %v3967_v23 = vpop.f32.mrf.mxu0  ;;  %4700 = vmatpush.bf16.msra.mxu1 %v6657_v0 }
 0x69a   : > { %v4144_v39 = vadd.f32 %v4143_v32, %v4055_v8  ;;  %v4232_v40 = vpop.f32.mrf.mxu3  ;;  %v4056_v63 = vpop.f32.mrf.mxu1  ;;  %v635_v32 = vld [vmem:[#allocation2 + $0x98] sm:$0xff] }
 0x69b   : > { %v4057_v61 = vadd.f32 %v4056_v63, %v3967_v23  ;;  %v642_v63 = vld [vmem:[#allocation2 + $0x2f8] sm:$0xff] }
 0x69c   : > { %v4233_v59 = vadd.f32 %v4232_v40, %v4144_v39 }
 0x69e   : > { %v5136_v31 = vadd.f32 %v4233_v59, %v628_v17 }
 0x6a0   : > { %5360 = vst [vmem:[#allocation2 + $0x30] sm:$0xff] %v5136_v31 }
 0x6a1   : > { %v4145_v11 = vpop.f32.mrf.mxu2  ;;  %v3970_v29 = vpop.f32.mrf.mxu0 }
 0x6a2   : > { %v4146_v62 = vadd.f32 %v4145_v11, %v4057_v61  ;;  %v4234_v8 = vpop.f32.mrf.mxu3  ;;  %v4059_v37 = vpop.f32.mrf.mxu1 }
 0x6a3   : > { %v4060_v39 = vadd.f32 %v4059_v37, %v3970_v29  ;;  %v7399_v37 = vld [vmem:[%s8037_s21 + $0x458] sm:$0xf0] }
 0x6a4   : > { %v4235_v5 = vadd.f32 %v4234_v8, %v4146_v62  ;;  %4285 = vmatmul.bf16.gmra.mxu0 %v8477_v33 }
 0x6a5   : > { %4374 = vmatmul.bf16.gmra.mxu1 %v8479_v34 }
 0x6a6   : > { %v5143_v30 = vadd.f32 %v4235_v5, %v635_v32  ;;  %4463 = vmatmul.bf16.gmra.mxu2 %v8481_v35  ;;  %v6852_v32 = vld [vmem:[%s8037_s21 + $0x440] sm:$0xf] }
 0x6a7   : > { %4552 = vmatmul.bf16.gmra.mxu3 %v8483_v36 }
 0x6a8   : > { %5367 = vst [vmem:[#allocation2 + $0x98] sm:$0xff] %v5143_v30  ;;  %v6853_v30 = vor.u32 %v7399_v37, %v6852_v32 }
 0x6a9   : > { %v4148_v40 = vpop.f32.mrf.mxu2  ;;  %v3972_v17 = vpop.f32.mrf.mxu0 }
 0x6aa   : > { %v4149_v23 = vadd.f32 %v4148_v40, %v4060_v39  ;;  %v4237_v7 = vpop.f32.mrf.mxu3  ;;  %v4061_v59 = vpop.f32.mrf.mxu1  ;;  %v7076_v39 = vld [vmem:[%s8037_s21 + $0x600] sm:$0xf]  ;;  %v7455_v40 = vld [vmem:[%s8037_s21 + $0x618] sm:$0xf0]  ;;  %4790 = vmatpush.bf16.msra.mxu2 %v6853_v30 }
 0x6ab   : > { %v4062_v20 = vadd.f32 %v4061_v59, %v3972_v17  ;;  %v656_v59 = vld [vmem:[#allocation2 + $0xc0] sm:$0xff] }
 0x6ac   : > { %v4238_v31 = vadd.f32 %v4237_v7, %v4149_v23 }
 0x6ae   : > { %v5150_v61 = vadd.f32 %v4238_v31, %v642_v63  ;;  %v7077_v63 = vor.u32 %v7455_v40, %v7076_v39 }
 0x6b0   : > { %5374 = vst [vmem:[#allocation2 + $0x2f8] sm:$0xff] %v5150_v61  ;;  %4879 = vmatpush.bf16.msra.mxu3 %v7077_v63 }
 0x6b1   : > { %v4150_v6 = vpop.f32.mrf.mxu2  ;;  %v3975_v9 = vpop.f32.mrf.mxu0 }
 0x6b2   : > { %v4151_v11 = vadd.f32 %v4150_v6, %v4062_v20  ;;  %v4239_v12 = vpop.f32.mrf.mxu3  ;;  %v4064_v62 = vpop.f32.mrf.mxu1 }
 0x6b3   : > { %v4065_v0 = vadd.f32 %v4064_v62, %v3975_v9  ;;  %v6628_v62 = vld [vmem:[%s8037_s21 + $0x280] sm:$0xf] }
 0x6b4   : > { %v4240_v8 = vadd.f32 %v4239_v12, %v4151_v11  ;;  %4290 = vmatmul.bf16.gmra.mxu0 %v8497_v45  ;;  %v6404_v11 = vld [vmem:[%s8037_s21 + $0xc0] sm:$0xf]  ;;  %v7287_v12 = vld [vmem:[%s8037_s21 + $0xd8] sm:$0xf0] }
 0x6b5   : > { %4379 = vmatmul.bf16.gmra.mxu1 %v8499_v46 }
 0x6b6   : > { %v5157_v29 = vadd.f32 %v4240_v8, %v649_v19  ;;  %4468 = vmatmul.bf16.gmra.mxu2 %v8501_v47  ;;  %v6405_v19 = vor.u32 %v7287_v12, %v6404_v11  ;;  %v7343_v8 = vld [vmem:[%s8037_s21 + $0x298] sm:$0xf0] }
 0x6b7   : > { %4557 = vmatmul.bf16.gmra.mxu3 %v8503_v49  ;;  %v6629_v37 = vor.u32 %v7343_v8, %v6628_v62  ;;  %v677_v8 = vld [vmem:[#allocation2 + $0x6e8] sm:$0xff] }
 0x6b8   : > { %5381 = vst [vmem:[#allocation2 + $0x578] sm:$0xff] %v5157_v29  ;;  %4612 = vmatpush.bf16.msra.mxu0 %v6405_v19 }
 0x6b9   : > { %v4153_v5 = vpop.f32.mrf.mxu2  ;;  %v3977_v17 = vpop.f32.mrf.mxu0  ;;  %4701 = vmatpush.bf16.msra.mxu1 %v6629_v37 }
 0x6ba   : > { %v4154_v23 = vadd.f32 %v4153_v5, %v4065_v0  ;;  %v4242_v7 = vpop.f32.mrf.mxu3  ;;  %v4066_v31 = vpop.f32.mrf.mxu1  ;;  %v663_v5 = vld [vmem:[#allocation2 + $0x2a8] sm:$0xff] }
 0x6bb   : > { %v4067_v6 = vadd.f32 %v4066_v31, %v3977_v17  ;;  %v670_v31 = vld [vmem:[#allocation2 + $0x558] sm:$0xff] }
 0x6bc   : > { %v4243_v61 = vadd.f32 %v4242_v7, %v4154_v23 }
 0x6be   : > { %v5164_v20 = vadd.f32 %v4243_v61, %v656_v59 }
 0x6c0   : > { %5388 = vst [vmem:[#allocation2 + $0xc0] sm:$0xff] %v5164_v20 }
 0x6c1   : > { %v4155_v9 = vpop.f32.mrf.mxu2  ;;  %v3980_v32 = vpop.f32.mrf.mxu0 }
 0x6c2   : > { %v4156_v29 = vadd.f32 %v4155_v9, %v4067_v6  ;;  %v4244_v0 = vpop.f32.mrf.mxu3  ;;  %v4069_v39 = vpop.f32.mrf.mxu1 }
 0x6c3   : > { %v4070_v23 = vadd.f32 %v4069_v39, %v3980_v32  ;;  %v7392_v39 = vld [vmem:[%s8037_s21 + $0x420] sm:$0xf0] }
 0x6c4   : > { %v4245_v40 = vadd.f32 %v4244_v0, %v4156_v29  ;;  %4295 = vmatmul.bf16.gmra.mxu0 %v8524_v18 }
 0x6c5   : > { %4384 = vmatmul.bf16.gmra.mxu1 %v8527_v21 }
 0x6c6   : > { %v5171_v30 = vadd.f32 %v4245_v40, %v663_v5  ;;  %4473 = vmatmul.bf16.gmra.mxu2 %v8529_v22  ;;  %v6824_v5 = vld [vmem:[%s8037_s21 + $0x408] sm:$0xf] }
 0x6c7   : > { %4562 = vmatmul.bf16.gmra.mxu3 %v8531_v24 }
 0x6c8   : > { %5395 = vst [vmem:[#allocation2 + $0x2a8] sm:$0xff] %v5171_v30  ;;  %v6825_v30 = vor.u32 %v7392_v39, %v6824_v5 }
 0x6c9   : > { %v4158_v7 = vpop.f32.mrf.mxu2  ;;  %v3982_v59 = vpop.f32.mrf.mxu0 }
 0x6ca   : > { %v4159_v17 = vadd.f32 %v4158_v7, %v4070_v23  ;;  %v4247_v63 = vpop.f32.mrf.mxu3  ;;  %v4071_v61 = vpop.f32.mrf.mxu1  ;;  %v7048_v23 = vld [vmem:[%s8037_s21 + $0x5c8] sm:$0xf]  ;;  %v7448_v7 = vld [vmem:[%s8037_s21 + $0x5e0] sm:$0xf0]  ;;  %4791 = vmatpush.bf16.msra.mxu2 %v6825_v30 }
 0x6cb   : > { %v4072_v11 = vadd.f32 %v4071_v61, %v3982_v59  ;;  %v461_v61 = vld [vmem:[#allocation2 + $0x328] sm:$0xff] }
 0x6cc   : > { %v4248_v20 = vadd.f32 %v4247_v63, %v4159_v17 }
 0x6ce   : > { %v5178_v6 = vadd.f32 %v4248_v20, %v670_v31  ;;  %v7049_v31 = vor.u32 %v7448_v7, %v7048_v23 }
 0x6d0   : > { %5402 = vst [vmem:[#allocation2 + $0x558] sm:$0xff] %v5178_v6  ;;  %4880 = vmatpush.bf16.msra.mxu3 %v7049_v31  ;;  %v9815_v31 = vld [vmem:[#allocation22_spill] sm:$0xff] }
 0x6d1   : > { %v4160_v12 = vpop.f32.mrf.mxu2  ;;  %v4261_v62 = vpop.f32.mrf.mxu0 }
 0x6d2   : > { %v4161_v9 = vadd.f32 %v4160_v12, %v4072_v11  ;;  %v4249_v19 = vpop.f32.mrf.mxu3  ;;  %v4350_v29 = vpop.f32.mrf.mxu1 }
 0x6d3   : > { %v4351_v37 = vadd.f32 %v4350_v29, %v4261_v62  ;;  %v6600_v29 = vld [vmem:[%s8037_s21 + $0x248] sm:$0xf] }
 0x6d4   : > { %v4250_v0 = vadd.f32 %v4249_v19, %v4161_v9  ;;  %4300 = vmatmul.bf16.gmra.mxu0 %v8545_v41  ;;  %v6376_v9 = vld [vmem:[%s8037_s21 + $0x88] sm:$0xf]  ;;  %v7280_v19 = vld [vmem:[%s8037_s21 + $0xa0] sm:$0xf0] }
 0x6d5   : > { %4389 = vmatmul.bf16.gmra.mxu1 %v8547_v43 }
 0x6d6   : > { %v5185_v32 = vadd.f32 %v4250_v0, %v677_v8  ;;  %4478 = vmatmul.bf16.gmra.mxu2 %v8549_v44  ;;  %v6377_v8 = vor.u32 %v7280_v19, %v6376_v9  ;;  %v7336_v0 = vld [vmem:[%s8037_s21 + $0x260] sm:$0xf0] }
 0x6d7   : > { %4567 = vmatmul.bf16.gmra.mxu3 %v8551_v58  ;;  %v6601_v39 = vor.u32 %v7336_v0, %v6600_v29 }
 0x6d8   : > { %5409 = vst [vmem:[#allocation2 + $0x6e8] sm:$0xff] %v5185_v32  ;;  %4613 = vmatpush.bf16.msra.mxu0 %v6377_v8 }
 0x6d9   : > { %v4439_v40 = vpop.f32.mrf.mxu2  ;;  %v4263_v59 = vpop.f32.mrf.mxu0  ;;  %4702 = vmatpush.bf16.msra.mxu1 %v6601_v39 }
 0x6da   : > { %v4440_v17 = vadd.f32 %v4439_v40, %v4351_v37  ;;  %v4528_v63 = vpop.f32.mrf.mxu3  ;;  %v4352_v20 = vpop.f32.mrf.mxu1  ;;  %v468_v40 = vld [vmem:[#allocation2 + $0x548] sm:$0xff] }
 0x6db   : > { %v4353_v12 = vadd.f32 %v4352_v20, %v4263_v59  ;;  %v9814_v59 = vld [vmem:[#allocation21_spill] sm:$0xff] }
 0x6dc   : > { %v4529_v6 = vadd.f32 %v4528_v63, %v4440_v17  ;;  %v9813_v63 = vld [vmem:[#allocation20_spill] sm:$0xff] }
 0x6de   : > { %v4969_v11 = vadd.f32 %v4529_v6, %v461_v61 }
 0x6e0   : > { %5193 = vst [vmem:[#allocation2 + $0x328] sm:$0xff] %v4969_v11 }
 0x6e1   : > { %v4441_v62 = vpop.f32.mrf.mxu2  ;;  %v4266_v5 = vpop.f32.mrf.mxu0 }
 0x6e2   : > { %v4442_v32 = vadd.f32 %v4441_v62, %v4353_v12  ;;  %v4530_v37 = vpop.f32.mrf.mxu3  ;;  %v4355_v23 = vpop.f32.mrf.mxu1  ;;  %v475_v12 = vld [vmem:[#allocation2 + $0x60] sm:$0xff] }
 0x6e3   : > { %v4356_v17 = vadd.f32 %v4355_v23, %v4266_v5  ;;  %v482_v5 = vld [vmem:[#allocation2 + $0x1a0] sm:$0xff]  ;;  %v9816_v23 = vld [vmem:[#allocation23_spill] sm:$0xff] }
 0x6e4   : > { %v4531_v7 = vadd.f32 %v4530_v37, %v4442_v32  ;;  %4305 = vmatmul.bf16.gmra.mxu0 %v8571_v57 }
 0x6e5   : > { %4394 = vmatmul.bf16.gmra.mxu1 %v9813_v63  ;;  %v496_v63 = vld [vmem:[#allocation2 + $0x90] sm:$0xff] }
 0x6e6   : > { %v4976_v30 = vadd.f32 %v4531_v7, %v468_v40  ;;  %4483 = vmatmul.bf16.gmra.mxu2 %v9814_v59 }
 0x6e7   : > { %4572 = vmatmul.bf16.gmra.mxu3 %v9815_v31 }
 0x6e8   : > { %5200 = vst [vmem:[#allocation2 + $0x548] sm:$0xff] %v4976_v30 }
 0x6e9   : > { %v4444_v61 = vpop.f32.mrf.mxu2  ;;  %v4268_v11 = vpop.f32.mrf.mxu0 }
 0x6ea   : > { %v4445_v20 = vadd.f32 %v4444_v61, %v4356_v17  ;;  %v4533_v6 = vpop.f32.mrf.mxu3  ;;  %v4357_v9 = vpop.f32.mrf.mxu1  ;;  %v9817_v17 = vld [vmem:[#allocation24_spill] sm:$0xff]  ;;  %v9818_v61 = vld [vmem:[#allocation25_spill] sm:$0xff] }
 0x6eb   : > { %v4358_v8 = vadd.f32 %v4357_v9, %v4268_v11  ;;  %v7385_v11 = vld [vmem:[%s8037_s21 + $0x3e8] sm:$0xf0] }
 0x6ec   : > { %v4534_v19 = vadd.f32 %v4533_v6, %v4445_v20  ;;  %v9819_v20 = vld [vmem:[#allocation26_spill] sm:$0xff] }
 0x6ed   : > { %v6796_v6 = vld [vmem:[%s8037_s21 + $0x3d0] sm:$0xf] }
 0x6ee   : > { %v4983_v62 = vadd.f32 %v4534_v19, %v475_v12  ;;  %v6797_v9 = vor.u32 %v7385_v11, %v6796_v6  ;;  %v7020_v19 = vld [vmem:[%s8037_s21 + $0x590] sm:$0xf] }
 0x6f0   : > { %5207 = vst [vmem:[#allocation2 + $0x60] sm:$0xff] %v4983_v62  ;;  %v7441_v62 = vld [vmem:[%s8037_s21 + $0x5a8] sm:$0xf0]  ;;  %4792 = vmatpush.bf16.msra.mxu2 %v6797_v9  ;;  %v9820_v9 = vld [vmem:[#allocation27_spill] sm:$0xff] }
 0x6f1   : > { %v4446_v29 = vpop.f32.mrf.mxu2  ;;  %v4271_v37 = vpop.f32.mrf.mxu0 }
 0x6f2   : > { %v4447_v0 = vadd.f32 %v4446_v29, %v4358_v8  ;;  %v4535_v32 = vpop.f32.mrf.mxu3  ;;  %v4360_v39 = vpop.f32.mrf.mxu1 }
 0x6f3   : > { %v4361_v30 = vadd.f32 %v4360_v39, %v4271_v37  ;;  %v489_v37 = vld [vmem:[#allocation2 + $0x4a0] sm:$0xff] }
 0x6f4   : > { %v4536_v40 = vadd.f32 %v4535_v32, %v4447_v0  ;;  %4310 = vmatmul.bf16.gmra.mxu0 %v9816_v23  ;;  %v7021_v32 = vor.u32 %v7441_v62, %v7020_v19  ;;  %v7329_v23 = vld [vmem:[%s8037_s21 + $0x228] sm:$0xf0] }
 0x6f5   : > { %4399 = vmatmul.bf16.gmra.mxu1 %v9817_v17  ;;  %v6572_v17 = vld [vmem:[%s8037_s21 + $0x210] sm:$0xf] }
 0x6f6   : > { %v4990_v7 = vadd.f32 %v4536_v40, %v482_v5  ;;  %4488 = vmatmul.bf16.gmra.mxu2 %v9818_v61  ;;  %4881 = vmatpush.bf16.msra.mxu3 %v7021_v32  ;;  %v7273_v61 = vld [vmem:[%s8037_s21 + $0x68] sm:$0xf0]  ;;  %v6573_v59 = vor.u32 %v7329_v23, %v6572_v17  ;;  %v503_v17 = vld [vmem:[#allocation2 + $0x3f0] sm:$0xff] }
 0x6f7   : > { %4577 = vmatmul.bf16.gmra.mxu3 %v9819_v20  ;;  %v6348_v20 = vld [vmem:[%s8037_s21 + $0x50] sm:$0xf]  ;;  %v9822_v32 = vld [vmem:[#allocation29_spill] sm:$0xff] }
 0x6f8   : > { %5214 = vst [vmem:[#allocation2 + $0x1a0] sm:$0xff] %v4990_v7  ;;  %v6349_v11 = vor.u32 %v7273_v61, %v6348_v20  ;;  %4703 = vmatpush.bf16.msra.mxu1 %v6573_v59  ;;  %v9823_v61 = vld [vmem:[#allocation30_spill] sm:$0xff] }
 0x6f9   : > { %v4449_v12 = vpop.f32.mrf.mxu2  ;;  %v4273_v0 = vpop.f32.mrf.mxu0 }
 0x6fa   : > { %v4450_v8 = vadd.f32 %v4449_v12, %v4361_v30  ;;  %v4538_v29 = vpop.f32.mrf.mxu3  ;;  %v4362_v5 = vpop.f32.mrf.mxu1  ;;  %4614 = vmatpush.bf16.msra.mxu0 %v6349_v11 }
 0x6fb   : > { %v4363_v7 = vadd.f32 %v4362_v5, %v4273_v0  ;;  %v9821_v0 = vld [vmem:[#allocation28_spill] sm:$0xff] }
 0x6fc   : > { %v4539_v39 = vadd.f32 %v4538_v29, %v4450_v8 }
 0x6fe   : > { %v4997_v40 = vadd.f32 %v4539_v39, %v489_v37 }
 0x700   : > { %5221 = vst [vmem:[#allocation2 + $0x4a0] sm:$0xff] %v4997_v40 }
 0x701   : > { %v4451_v6 = vpop.f32.mrf.mxu2  ;;  %v4276_v31 = vpop.f32.mrf.mxu0 }
 0x702   : > { %v4452_v30 = vadd.f32 %v4451_v6, %v4363_v7  ;;  %v4540_v12 = vpop.f32.mrf.mxu3  ;;  %v4365_v19 = vpop.f32.mrf.mxu1 }
 0x703   : > { %v4366_v29 = vadd.f32 %v4365_v19, %v4276_v31 }
 0x704   : > { %v4541_v62 = vadd.f32 %v4540_v12, %v4452_v30  ;;  %4315 = vmatmul.bf16.gmra.mxu0 %v9820_v9  ;;  %v510_v30 = vld [vmem:[#allocation2 + $0x408] sm:$0xff]  ;;  %v524_v9 = vld [vmem:[#allocation2 + $0x550] sm:$0xff] }
 0x705   : > { %4404 = vmatmul.bf16.gmra.mxu1 %v9821_v0 }
 0x706   : > { %v5004_v8 = vadd.f32 %v4541_v62, %v496_v63  ;;  %4493 = vmatmul.bf16.gmra.mxu2 %v9822_v32  ;;  %v9824_v62 = vld [vmem:[#allocation31_spill] sm:$0xff] }
 0x707   : > { %4582 = vmatmul.bf16.gmra.mxu3 %v9823_v61  ;;  %v7322_v61 = vld [vmem:[%s8037_s21 + $0x1f0] sm:$0xf0] }
 0x708   : > { %5228 = vst [vmem:[#allocation2 + $0x90] sm:$0xff] %v5004_v8 }
 0x709   : > { %v4454_v20 = vpop.f32.mrf.mxu2  ;;  %v4278_v23 = vpop.f32.mrf.mxu0 }
 0x70a   : > { %v4455_v37 = vadd.f32 %v4454_v20, %v4366_v29  ;;  %v4543_v5 = vpop.f32.mrf.mxu3  ;;  %v4367_v39 = vpop.f32.mrf.mxu1  ;;  %v9825_v20 = vld [vmem:[#allocation32_spill] sm:$0xff] }
 0x70b   : > { %v4368_v59 = vadd.f32 %v4367_v39, %v4278_v23  ;;  %v6768_v23 = vld [vmem:[%s8037_s21 + $0x398] sm:$0xf] }
 0x70c   : > { %v4544_v40 = vadd.f32 %v4543_v5, %v4455_v37  ;;  %v9826_v37 = vld [vmem:[#allocation33_spill] sm:$0xff]  ;;  %v9827_v5 = vld [vmem:[#allocation34_spill] sm:$0xff] }
 0x70e   : > { %v5011_v7 = vadd.f32 %v4544_v40, %v503_v17  ;;  %v7378_v17 = vld [vmem:[%s8037_s21 + $0x3b0] sm:$0xf0] }
 0x70f   : > { %v6769_v40 = vor.u32 %v7378_v17, %v6768_v23 }
 0x710   : > { %5235 = vst [vmem:[#allocation2 + $0x3f0] sm:$0xff] %v5011_v7  ;;  %v6992_v7 = vld [vmem:[%s8037_s21 + $0x558] sm:$0xf] }
 0x711   : > { %v4456_v63 = vpop.f32.mrf.mxu2  ;;  %v4281_v11 = vpop.f32.mrf.mxu0  ;;  %4793 = vmatpush.bf16.msra.mxu2 %v6769_v40  ;;  %v9828_v40 = vld [vmem:[#allocation35_spill] sm:$0xff] }
 0x712   : > { %v4457_v31 = vadd.f32 %v4456_v63, %v4368_v59  ;;  %v4545_v6 = vpop.f32.mrf.mxu3  ;;  %v4370_v12 = vpop.f32.mrf.mxu1  ;;  %v7434_v59 = vld [vmem:[%s8037_s21 + $0x570] sm:$0xf0] }
 0x713   : > { %v4371_v29 = vadd.f32 %v4370_v12, %v4281_v11  ;;  %v6993_v11 = vor.u32 %v7434_v59, %v6992_v7 }
 0x714   : > { %v4546_v19 = vadd.f32 %v4545_v6, %v4457_v31  ;;  %4320 = vmatmul.bf16.gmra.mxu0 %v9824_v62  ;;  %v6544_v62 = vld [vmem:[%s8037_s21 + $0x1d8] sm:$0xf] }
 0x715   : > { %4409 = vmatmul.bf16.gmra.mxu1 %v9825_v20  ;;  %4882 = vmatpush.bf16.msra.mxu3 %v6993_v11  ;;  %v7266_v20 = vld [vmem:[%s8037_s21 + $0x30] sm:$0xf0]  ;;  %v6545_v0 = vor.u32 %v7322_v61, %v6544_v62  ;;  %v9830_v11 = vld [vmem:[#allocation37_spill] sm:$0xff] }
 0x716   : > { %v5018_v8 = vadd.f32 %v4546_v19, %v510_v30  ;;  %4498 = vmatmul.bf16.gmra.mxu2 %v9826_v37  ;;  %v517_v30 = vld [vmem:[#allocation2 + $0x5d8] sm:$0xff]  ;;  %v531_v62 = vld [vmem:[#allocation2 + $0x148] sm:$0xff] }
 0x717   : > { %4587 = vmatmul.bf16.gmra.mxu3 %v9827_v5  ;;  %v6320_v37 = vld [vmem:[%s8037_s21 + $0x18] sm:$0xf]  ;;  %4704 = vmatpush.bf16.msra.mxu1 %v6545_v0 }
 0x718   : > { %5242 = vst [vmem:[#allocation2 + $0x408] sm:$0xff] %v5018_v8  ;;  %v6321_v17 = vor.u32 %v7266_v20, %v6320_v37  ;;  %v9831_v20 = vld [vmem:[#allocation38_spill] sm:$0xff] }
 0x719   : > { %v4459_v39 = vpop.f32.mrf.mxu2  ;;  %v4283_v6 = vpop.f32.mrf.mxu0 }
 0x71a   : > { %v4460_v63 = vadd.f32 %v4459_v39, %v4371_v29  ;;  %v4548_v31 = vpop.f32.mrf.mxu3  ;;  %v4372_v12 = vpop.f32.mrf.mxu1  ;;  %4615 = vmatpush.bf16.msra.mxu0 %v6321_v17 }
 0x71b   : > { %v4373_v5 = vadd.f32 %v4372_v12, %v4283_v6  ;;  %v9829_v6 = vld [vmem:[#allocation36_spill] sm:$0xff] }
 0x71c   : > { %v4549_v19 = vadd.f32 %v4548_v31, %v4460_v63 }
 0x71e   : > { %v5025_v8 = vadd.f32 %v4549_v19, %v517_v30 }
 0x720   : > { %5249 = vst [vmem:[#allocation2 + $0x5d8] sm:$0xff] %v5025_v8 }
 0x721   : > { %v4461_v23 = vpop.f32.mrf.mxu2  ;;  %v4286_v32 = vpop.f32.mrf.mxu0 }
 0x722   : > { %v4462_v29 = vadd.f32 %v4461_v23, %v4373_v5  ;;  %v4550_v39 = vpop.f32.mrf.mxu3  ;;  %v4375_v7 = vpop.f32.mrf.mxu1 }
 0x723   : > { %v4376_v31 = vadd.f32 %v4375_v7, %v4286_v32 }
 0x724   : > { %v4551_v59 = vadd.f32 %v4550_v39, %v4462_v29  ;;  %4325 = vmatmul.bf16.gmra.mxu0 %v9828_v40  ;;  %v538_v29 = vld [vmem:[#allocation2 + $0x428] sm:$0xff] }
 0x725   : > { %4414 = vmatmul.bf16.gmra.mxu1 %v9829_v6 }
 0x726   : > { %v5032_v63 = vadd.f32 %v4551_v59, %v524_v9  ;;  %4503 = vmatmul.bf16.gmra.mxu2 %v9830_v11  ;;  %v9832_v59 = vld [vmem:[#allocation39_spill] sm:$0xff]  ;;  %v9835_v11 = vld [vmem:[#allocation42_spill] sm:$0xff] }
 0x727   : > { %4592 = vmatmul.bf16.gmra.mxu3 %v9831_v20 }
 0x728   : > { %5256 = vst [vmem:[#allocation2 + $0x550] sm:$0xff] %v5032_v63 }
 0x729   : > { %v4464_v37 = vpop.f32.mrf.mxu2  ;;  %v4288_v61 = vpop.f32.mrf.mxu0 }
 0x72a   : > { %v4465_v5 = vadd.f32 %v4464_v37, %v4376_v31  ;;  %v4553_v30 = vpop.f32.mrf.mxu3  ;;  %v4377_v12 = vpop.f32.mrf.mxu1  ;;  %v9833_v31 = vld [vmem:[#allocation40_spill] sm:$0xff]  ;;  %v9834_v37 = vld [vmem:[#allocation41_spill] sm:$0xff] }
 0x72b   : > { %v4378_v0 = vadd.f32 %v4377_v12, %v4288_v61  ;;  %v545_v12 = vld [vmem:[#allocation2 + $0x1b8] sm:$0xff] }
 0x72c   : > { %v4554_v19 = vadd.f32 %v4553_v30, %v4465_v5 }
 0x72e   : > { %v5039_v8 = vadd.f32 %v4554_v19, %v531_v62 }
 0x730   : > { %5263 = vst [vmem:[#allocation2 + $0x148] sm:$0xff] %v5039_v8 }
 0x731   : > { %v4466_v23 = vpop.f32.mrf.mxu2  ;;  %v4291_v17 = vpop.f32.mrf.mxu0 }
 0x732   : > { %v4467_v9 = vadd.f32 %v4466_v23, %v4378_v0  ;;  %v4555_v32 = vpop.f32.mrf.mxu3  ;;  %v4380_v39 = vpop.f32.mrf.mxu1 }
 0x733   : > { %v4381_v20 = vadd.f32 %v4380_v39, %v4291_v17  ;;  %v552_v39 = vld [vmem:[#allocation2 + $0x230] sm:$0xff] }
 0x734   : > { %v4556_v7 = vadd.f32 %v4555_v32, %v4467_v9  ;;  %4330 = vmatmul.bf16.gmra.mxu0 %v9832_v59 }
 0x735   : > { %4419 = vmatmul.bf16.gmra.mxu1 %v9833_v31 }
 0x736   : > { %v5046_v63 = vadd.f32 %v4556_v7, %v538_v29  ;;  %4508 = vmatmul.bf16.gmra.mxu2 %v9834_v37 }
 0x737   : > { %4597 = vmatmul.bf16.gmra.mxu3 %v9835_v11 }
 0x738   : > { %5270 = vst [vmem:[#allocation2 + $0x428] sm:$0xff] %v5046_v63 }
 0x739   : > { %v4469_v5 = vpop.f32.mrf.mxu2  ;;  %v4293_v62 = vpop.f32.mrf.mxu0 }
 0x73a   : > { %v4470_v30 = vadd.f32 %v4469_v5, %v4381_v20  ;;  %v4558_v61 = vpop.f32.mrf.mxu3  ;;  %v4382_v19 = vpop.f32.mrf.mxu1 }
 0x73b   : > { %v4383_v23 = vadd.f32 %v4382_v19, %v4293_v62  ;;  %v559_v62 = vld [vmem:[#allocation2 + $0x28] sm:$0xff] }
 0x73c   : > { %v4559_v8 = vadd.f32 %v4558_v61, %v4470_v30 }
 0x73e   : > { %v5053_v0 = vadd.f32 %v4559_v8, %v545_v12 }
 0x740   : > { %5277 = vst [vmem:[#allocation2 + $0x1b8] sm:$0xff] %v5053_v0 }
 0x741   : > { %v4471_v9 = vpop.f32.mrf.mxu2  ;;  %v4296_v29 = vpop.f32.mrf.mxu0 }
 0x742   : > { %v4472_v32 = vadd.f32 %v4471_v9, %v4383_v23  ;;  %v4560_v17 = vpop.f32.mrf.mxu3  ;;  %v4385_v7 = vpop.f32.mrf.mxu1 }
 0x743   : > { %v4386_v11 = vadd.f32 %v4385_v7, %v4296_v29 }
 0x744   : > { %v4561_v37 = vadd.f32 %v4560_v17, %v4472_v32  ;;  %4335 = vmatmul.bf16.gmra.mxu0 %v8715_v10  ;;  %v566_v17 = vld [vmem:[#allocation2 + $0x390] sm:$0xff] }
 0x745   : > { %4424 = vmatmul.bf16.gmra.mxu1 %v8719_v38 }
 0x746   : > { %v5060_v63 = vadd.f32 %v4561_v37, %v552_v39  ;;  %4513 = vmatmul.bf16.gmra.mxu2 %v8721_v42 }
 0x747   : > { %4602 = vmatmul.bf16.gmra.mxu3 %v8723_v60 }
 0x748   : > { %5284 = vst [vmem:[#allocation2 + $0x230] sm:$0xff] %v5060_v63 }
 0x749   : > { %v4474_v20 = vpop.f32.mrf.mxu2  ;;  %v4298_v61 = vpop.f32.mrf.mxu0 }
 0x74a   : > { %v4475_v5 = vadd.f32 %v4474_v20, %v4386_v11  ;;  %v4563_v30 = vpop.f32.mrf.mxu3  ;;  %v4387_v12 = vpop.f32.mrf.mxu1 }
 0x74b   : > { %v4388_v0 = vadd.f32 %v4387_v12, %v4298_v61  ;;  %v573_v61 = vld [vmem:[#allocation2 + $0x3f8] sm:$0xff] }
 0x74c   : > { %v4564_v19 = vadd.f32 %v4563_v30, %v4475_v5 }
 0x74e   : > { %v5067_v8 = vadd.f32 %v4564_v19, %v559_v62 }
 0x750   : > { %5291 = vst [vmem:[#allocation2 + $0x28] sm:$0xff] %v5067_v8 }
 0x751   : > { %v4476_v23 = vpop.f32.mrf.mxu2  ;;  %v4301_v32 = vpop.f32.mrf.mxu0 }
 0x752   : > { %v4477_v37 = vadd.f32 %v4476_v23, %v4388_v0  ;;  %v4565_v9 = vpop.f32.mrf.mxu3  ;;  %v4390_v29 = vpop.f32.mrf.mxu1 }
 0x753   : > { %v4391_v63 = vadd.f32 %v4390_v29, %v4301_v32 }
 0x754   : > { %v4566_v39 = vadd.f32 %v4565_v9, %v4477_v37  ;;  %4616 = vmatmul.bf16.vlgmr.msra.gmra.mxu0 %v8351_v48 }
 0x755   : > { %4705 = vmatmul.bf16.vlgmr.msra.gmra.mxu1 %v8355_v52  ;;  %v580_v52 = vld [vmem:[#allocation2 + $0x100] sm:$0xff] }
 0x756   : > { %v5074_v7 = vadd.f32 %v4566_v39, %v566_v17  ;;  %4794 = vmatmul.bf16.vlgmr.msra.gmra.mxu2 %v8357_v53 }
 0x757   : > { %4883 = vmatmul.bf16.vlgmr.msra.gmra.mxu3 %v8359_v54 }
 0x758   : > { %5298 = vst [vmem:[#allocation2 + $0x390] sm:$0xff] %v5074_v7 }
 0x759   : > { %v4479_v11 = vpop.f32.mrf.mxu2  ;;  %v4303_v30 = vpop.f32.mrf.mxu0 }
 0x75a   : > { %v4480_v20 = vadd.f32 %v4479_v11, %v4391_v63  ;;  %v4568_v5 = vpop.f32.mrf.mxu3  ;;  %v4392_v62 = vpop.f32.mrf.mxu1  ;;  %v587_v63 = vld [vmem:[#allocation2 + $0x298] sm:$0xff] }
 0x75b   : > { %v4393_v8 = vadd.f32 %v4392_v62, %v4303_v30 }
 0x75c   : > { %v4569_v12 = vadd.f32 %v4568_v5, %v4480_v20 }
 0x75e   : > { %v5081_v19 = vadd.f32 %v4569_v12, %v573_v61 }
 0x760   : > { %5305 = vst [vmem:[#allocation2 + $0x3f8] sm:$0xff] %v5081_v19 }
 0x761   : > { %v4481_v48 = vpop.f32.mrf.mxu2  ;;  %v4306_v37 = vpop.f32.mrf.mxu0 }
 0x762   : > { %v4482_v0 = vadd.f32 %v4481_v48, %v4393_v8  ;;  %v4570_v23 = vpop.f32.mrf.mxu3  ;;  %v4395_v9 = vpop.f32.mrf.mxu1 }
 0x763   : > { %v4396_v32 = vadd.f32 %v4395_v9, %v4306_v37 }
 0x764   : > { %v4571_v53 = vadd.f32 %v4570_v23, %v4482_v0  ;;  %4621 = vmatmul.bf16.gmra.mxu0 %v8381_v13 }
 0x765   : > { %4710 = vmatmul.bf16.gmra.mxu1 %v8383_v14  ;;  %v594_v14 = vld [vmem:[#allocation2 + $0x360] sm:$0xff] }
 0x766   : > { %v5088_v54 = vadd.f32 %v4571_v53, %v580_v52  ;;  %4799 = vmatmul.bf16.gmra.mxu2 %v8385_v15  ;;  %v601_v52 = vld [vmem:[#allocation2 + $0x520] sm:$0xff] }
 0x767   : > { %4888 = vmatmul.bf16.gmra.mxu3 %v8387_v16 }
 0x768   : > { %5312 = vst [vmem:[#allocation2 + $0x100] sm:$0xff] %v5088_v54 }
 0x769   : > { %v4484_v17 = vpop.f32.mrf.mxu2  ;;  %v4308_v7 = vpop.f32.mrf.mxu0 }
 0x76a   : > { %v4485_v29 = vadd.f32 %v4484_v17, %v4396_v32  ;;  %v4573_v39 = vpop.f32.mrf.mxu3  ;;  %v4397_v11 = vpop.f32.mrf.mxu1 }
 0x76b   : > { %v4398_v30 = vadd.f32 %v4397_v11, %v4308_v7 }
 0x76c   : > { %v4574_v20 = vadd.f32 %v4573_v39, %v4485_v29 }
 0x76e   : > { %v5095_v5 = vadd.f32 %v4574_v20, %v587_v63 }
 0x770   : > { %5319 = vst [vmem:[#allocation2 + $0x298] sm:$0xff] %v5095_v5 }
 0x771   : > { %v4486_v13 = vpop.f32.mrf.mxu2  ;;  %v4311_v12 = vpop.f32.mrf.mxu0 }
 0x772   : > { %v4487_v61 = vadd.f32 %v4486_v13, %v4398_v30  ;;  %v4575_v62 = vpop.f32.mrf.mxu3  ;;  %v4400_v19 = vpop.f32.mrf.mxu1  ;;  %v615_v13 = vld [vmem:[#allocation2 + $0xf0] sm:$0xff] }
 0x773   : > { %v4401_v8 = vadd.f32 %v4400_v19, %v4311_v12 }
 0x774   : > { %v4576_v15 = vadd.f32 %v4575_v62, %v4487_v61  ;;  %4626 = vmatmul.bf16.gmra.mxu0 %v8401_v25 }
 0x775   : > { %4715 = vmatmul.bf16.gmra.mxu1 %v8403_v26  ;;  %v608_v26 = vld [vmem:[#allocation2 + $0x570] sm:$0xff] }
 0x776   : > { %v5102_v16 = vadd.f32 %v4576_v15, %v594_v14  ;;  %4804 = vmatmul.bf16.gmra.mxu2 %v8405_v27 }
 0x777   : > { %4893 = vmatmul.bf16.gmra.mxu3 %v8407_v28 }
 0x778   : > { %5326 = vst [vmem:[#allocation2 + $0x360] sm:$0xff] %v5102_v16 }
 0x779   : > { %v4489_v48 = vpop.f32.mrf.mxu2  ;;  %v4313_v37 = vpop.f32.mrf.mxu0 }
 0x77a   : > { %v4490_v0 = vadd.f32 %v4489_v48, %v4401_v8  ;;  %v4578_v23 = vpop.f32.mrf.mxu3  ;;  %v4402_v9 = vpop.f32.mrf.mxu1 }
 0x77b   : > { %v4403_v32 = vadd.f32 %v4402_v9, %v4313_v37  ;;  %v629_v9 = vld [vmem:[#allocation2 + $0x608] sm:$0xff] }
 0x77c   : > { %v4579_v53 = vadd.f32 %v4578_v23, %v4490_v0 }
 0x77e   : > { %v5109_v54 = vadd.f32 %v4579_v53, %v601_v52 }
 0x780   : > { %5333 = vst [vmem:[#allocation2 + $0x520] sm:$0xff] %v5109_v54 }
 0x781   : > { %v4491_v25 = vpop.f32.mrf.mxu2  ;;  %v4316_v39 = vpop.f32.mrf.mxu0 }
 0x782   : > { %v4492_v17 = vadd.f32 %v4491_v25, %v4403_v32  ;;  %v4580_v29 = vpop.f32.mrf.mxu3  ;;  %v4405_v7 = vpop.f32.mrf.mxu1 }
 0x783   : > { %v4406_v63 = vadd.f32 %v4405_v7, %v4316_v39 }
 0x784   : > { %v4581_v27 = vadd.f32 %v4580_v29, %v4492_v17  ;;  %4631 = vmatmul.bf16.gmra.mxu0 %v8429_v50 }
 0x785   : > { %4720 = vmatmul.bf16.gmra.mxu1 %v8431_v51  ;;  %v622_v51 = vld [vmem:[#allocation2 + $0x398] sm:$0xff] }
 0x786   : > { %v5116_v28 = vadd.f32 %v4581_v27, %v608_v26  ;;  %4809 = vmatmul.bf16.gmra.mxu2 %v8433_v55 }
 0x787   : > { %4898 = vmatmul.bf16.gmra.mxu3 %v8435_v56 }
 0x788   : > { %5340 = vst [vmem:[#allocation2 + $0x570] sm:$0xff] %v5116_v28 }
 0x789   : > { %v4494_v11 = vpop.f32.mrf.mxu2  ;;  %v4318_v30 = vpop.f32.mrf.mxu0 }
 0x78a   : > { %v4495_v20 = vadd.f32 %v4494_v11, %v4406_v63  ;;  %v4583_v5 = vpop.f32.mrf.mxu3  ;;  %v4407_v61 = vpop.f32.mrf.mxu1 }
 0x78b   : > { %v4408_v14 = vadd.f32 %v4407_v61, %v4318_v30 }
 0x78c   : > { %v4584_v62 = vadd.f32 %v4583_v5, %v4495_v20  ;;  %v643_v20 = vld [vmem:[#allocation2 + $0x3e8] sm:$0xff] }
 0x78e   : > { %v5123_v12 = vadd.f32 %v4584_v62, %v615_v13 }
 0x790   : > { %5347 = vst [vmem:[#allocation2 + $0xf0] sm:$0xff] %v5123_v12 }
 0x791   : > { %v4496_v50 = vpop.f32.mrf.mxu2  ;;  %v4321_v16 = vpop.f32.mrf.mxu0 }
 0x792   : > { %v4497_v19 = vadd.f32 %v4496_v50, %v4408_v14  ;;  %v4585_v15 = vpop.f32.mrf.mxu3  ;;  %v4410_v8 = vpop.f32.mrf.mxu1 }
 0x793   : > { %v4411_v48 = vadd.f32 %v4410_v8, %v4321_v16 }
 0x794   : > { %v4586_v55 = vadd.f32 %v4585_v15, %v4497_v19  ;;  %4636 = vmatmul.bf16.gmra.mxu0 %v8449_v1 }
 0x795   : > { %4725 = vmatmul.bf16.gmra.mxu1 %v8451_v2  ;;  %v636_v2 = vld [vmem:[#allocation2 + $0x518] sm:$0xff] }
 0x796   : > { %v5130_v56 = vadd.f32 %v4586_v55, %v622_v51  ;;  %4814 = vmatmul.bf16.gmra.mxu2 %v8453_v3  ;;  %v657_v55 = vld [vmem:[#allocation2 + $0x138] sm:$0xff] }
 0x797   : > { %4903 = vmatmul.bf16.gmra.mxu3 %v8455_v4 }
 0x798   : > { %5354 = vst [vmem:[#allocation2 + $0x398] sm:$0xff] %v5130_v56 }
 0x799   : > { %v4499_v0 = vpop.f32.mrf.mxu2  ;;  %v4323_v52 = vpop.f32.mrf.mxu0 }
 0x79a   : > { %v4500_v23 = vadd.f32 %v4499_v0, %v4411_v48  ;;  %v4588_v37 = vpop.f32.mrf.mxu3  ;;  %v4412_v53 = vpop.f32.mrf.mxu1 }
 0x79b   : > { %v4413_v25 = vadd.f32 %v4412_v53, %v4323_v52 }
 0x79c   : > { %v4589_v54 = vadd.f32 %v4588_v37, %v4500_v23 }
 0x79e   : > { %v5137_v32 = vadd.f32 %v4589_v54, %v629_v9 }
 0x7a0   : > { %5361 = vst [vmem:[#allocation2 + $0x608] sm:$0xff] %v5137_v32 }
 0x7a1   : > { %v4501_v1 = vpop.f32.mrf.mxu2  ;;  %v4326_v39 = vpop.f32.mrf.mxu0 }
 0x7a2   : > { %v4502_v17 = vadd.f32 %v4501_v1, %v4413_v25  ;;  %v4590_v29 = vpop.f32.mrf.mxu3  ;;  %v4415_v26 = vpop.f32.mrf.mxu1 }
 0x7a3   : > { %v4416_v7 = vadd.f32 %v4415_v26, %v4326_v39 }
 0x7a4   : > { %v4591_v3 = vadd.f32 %v4590_v29, %v4502_v17  ;;  %4641 = vmatmul.bf16.gmra.mxu0 %v8477_v33  ;;  %v671_v29 = vld [vmem:[#allocation2 + $0x600] sm:$0xff] }
 0x7a5   : > { %4730 = vmatmul.bf16.gmra.mxu1 %v8479_v34  ;;  %v650_v34 = vld [vmem:[#allocation2 + $0x140] sm:$0xff] }
 0x7a6   : > { %v5144_v4 = vadd.f32 %v4591_v3, %v636_v2  ;;  %4819 = vmatmul.bf16.gmra.mxu2 %v8481_v35 }
 0x7a7   : > { %4908 = vmatmul.bf16.gmra.mxu3 %v8483_v36 }
 0x7a8   : > { %5368 = vst [vmem:[#allocation2 + $0x518] sm:$0xff] %v5144_v4 }
 0x7a9   : > { %v4504_v27 = vpop.f32.mrf.mxu2  ;;  %v4328_v11 = vpop.f32.mrf.mxu0 }
 0x7aa   : > { %v4505_v28 = vadd.f32 %v4504_v27, %v4416_v7  ;;  %v4593_v63 = vpop.f32.mrf.mxu3  ;;  %v4417_v5 = vpop.f32.mrf.mxu1 }
 0x7ab   : > { %v4418_v61 = vadd.f32 %v4417_v5, %v4328_v11 }
 0x7ac   : > { %v4594_v30 = vadd.f32 %v4593_v63, %v4505_v28 }
 0x7ae   : > { %v5151_v13 = vadd.f32 %v4594_v30, %v643_v20 }
 0x7b0   : > { %5375 = vst [vmem:[#allocation2 + $0x3e8] sm:$0xff] %v5151_v13  ;;  %v462_v13 = vld [vmem:[#allocation2 + $0x440] sm:$0xff] }
 0x7b1   : > { %v4506_v33 = vpop.f32.mrf.mxu2  ;;  %v4331_v14 = vpop.f32.mrf.mxu0 }
 0x7b2   : > { %v4507_v62 = vadd.f32 %v4506_v33, %v4418_v61  ;;  %v4595_v12 = vpop.f32.mrf.mxu3  ;;  %v4420_v50 = vpop.f32.mrf.mxu1 }
 0x7b3   : > { %v4421_v19 = vadd.f32 %v4420_v50, %v4331_v14 }
 0x7b4   : > { %v4596_v35 = vadd.f32 %v4595_v12, %v4507_v62  ;;  %4646 = vmatmul.bf16.gmra.mxu0 %v8497_v45 }
 0x7b5   : > { %4735 = vmatmul.bf16.gmra.mxu1 %v8499_v46  ;;  %v664_v46 = vld [vmem:[#allocation2 + $0x470] sm:$0xff] }
 0x7b6   : > { %v5158_v36 = vadd.f32 %v4596_v35, %v650_v34  ;;  %4824 = vmatmul.bf16.gmra.mxu2 %v8501_v47 }
 0x7b7   : > { %4913 = vmatmul.bf16.gmra.mxu3 %v8503_v49 }
 0x7b8   : > { %5382 = vst [vmem:[#allocation2 + $0x140] sm:$0xff] %v5158_v36 }
 0x7b9   : > { %v4509_v15 = vpop.f32.mrf.mxu2  ;;  %v4333_v8 = vpop.f32.mrf.mxu0 }
 0x7ba   : > { %v4510_v16 = vadd.f32 %v4509_v15, %v4421_v19  ;;  %v4598_v51 = vpop.f32.mrf.mxu3  ;;  %v4422_v56 = vpop.f32.mrf.mxu1  ;;  %v9836_v19 = vld [vmem:[#allocation20_spill] sm:$0xff]  ;;  %v9837_v15 = vld [vmem:[#allocation21_spill] sm:$0xff] }
 0x7bb   : > { %v4423_v23 = vadd.f32 %v4422_v56, %v4333_v8 }
 0x7bc   : > { %v4599_v48 = vadd.f32 %v4598_v51, %v4510_v16  ;;  %v9838_v16 = vld [vmem:[#allocation22_spill] sm:$0xff] }
 0x7be   : > { %v5165_v0 = vadd.f32 %v4599_v48, %v657_v55  ;;  %v476_v48 = vld [vmem:[#allocation2 + $0x3c8] sm:$0xff] }
 0x7c0   : > { %5389 = vst [vmem:[#allocation2 + $0x138] sm:$0xff] %v5165_v0 }
 0x7c1   : > { %v4511_v45 = vpop.f32.mrf.mxu2  ;;  %v4336_v9 = vpop.f32.mrf.mxu0 }
 0x7c2   : > { %v4512_v37 = vadd.f32 %v4511_v45, %v4423_v23  ;;  %v4600_v52 = vpop.f32.mrf.mxu3  ;;  %v4425_v53 = vpop.f32.mrf.mxu1 }
 0x7c3   : > { %v4426_v54 = vadd.f32 %v4425_v53, %v4336_v9  ;;  %v483_v53 = vld [vmem:[#allocation2 + $0x260] sm:$0xff] }
 0x7c4   : > { %v4601_v47 = vadd.f32 %v4600_v52, %v4512_v37  ;;  %4651 = vmatmul.bf16.gmra.mxu0 %v8524_v18 }
 0x7c5   : > { %4740 = vmatmul.bf16.gmra.mxu1 %v8527_v21  ;;  %v678_v21 = vld [vmem:[#allocation2 + $0x1f0] sm:$0xff] }
 0x7c6   : > { %v5172_v49 = vadd.f32 %v4601_v47, %v664_v46  ;;  %4829 = vmatmul.bf16.gmra.mxu2 %v8529_v22 }
 0x7c7   : > { %4918 = vmatmul.bf16.gmra.mxu3 %v8531_v24 }
 0x7c8   : > { %5396 = vst [vmem:[#allocation2 + $0x470] sm:$0xff] %v5172_v49 }
 0x7c9   : > { %v4514_v32 = vpop.f32.mrf.mxu2  ;;  %v4338_v17 = vpop.f32.mrf.mxu0 }
 0x7ca   : > { %v4515_v25 = vadd.f32 %v4514_v32, %v4426_v54  ;;  %v4603_v1 = vpop.f32.mrf.mxu3  ;;  %v4427_v39 = vpop.f32.mrf.mxu1  ;;  %v9839_v54 = vld [vmem:[#allocation23_spill] sm:$0xff] }
 0x7cb   : > { %v4428_v3 = vadd.f32 %v4427_v39, %v4338_v17  ;;  %v9841_v17 = vld [vmem:[#allocation25_spill] sm:$0xff] }
 0x7cc   : > { %v4604_v2 = vadd.f32 %v4603_v1, %v4515_v25  ;;  %v9840_v1 = vld [vmem:[#allocation24_spill] sm:$0xff] }
 0x7ce   : > { %v5179_v26 = vadd.f32 %v4604_v2, %v671_v29  ;;  %v9842_v29 = vld [vmem:[#allocation26_spill] sm:$0xff] }
 0x7d0   : > { %5403 = vst [vmem:[#allocation2 + $0x600] sm:$0xff] %v5179_v26 }
 0x7d1   : > { %v4516_v18 = vpop.f32.mrf.mxu2  ;;  %v4617_v27 = vpop.f32.mrf.mxu0 }
 0x7d2   : > { %v4517_v4 = vadd.f32 %v4516_v18, %v4428_v3  ;;  %v4605_v7 = vpop.f32.mrf.mxu3  ;;  %v4706_v28 = vpop.f32.mrf.mxu1  ;;  %v490_v18 = vld [vmem:[#allocation2 + $0x4e8] sm:$0xff] }
 0x7d3   : > { %v4707_v63 = vadd.f32 %v4706_v28, %v4617_v27 }
 0x7d4   : > { %v4606_v22 = vadd.f32 %v4605_v7, %v4517_v4  ;;  %4656 = vmatmul.bf16.gmra.mxu0 %v8545_v41 }
 0x7d5   : > { %4745 = vmatmul.bf16.gmra.mxu1 %v8547_v43  ;;  %v469_v43 = vld [vmem:[#allocation2 + $0x500] sm:$0xff] }
 0x7d6   : > { %v5186_v24 = vadd.f32 %v4606_v22, %v678_v21  ;;  %4834 = vmatmul.bf16.gmra.mxu2 %v8549_v44 }
 0x7d7   : > { %4923 = vmatmul.bf16.gmra.mxu3 %v8551_v58 }
 0x7d8   : > { %5410 = vst [vmem:[#allocation2 + $0x1f0] sm:$0xff] %v5186_v24 }
 0x7d9   : > { %v4795_v11 = vpop.f32.mrf.mxu2  ;;  %v4619_v30 = vpop.f32.mrf.mxu0 }
 0x7da   : > { %v4796_v20 = vadd.f32 %v4795_v11, %v4707_v63  ;;  %v4884_v5 = vpop.f32.mrf.mxu3  ;;  %v4708_v61 = vpop.f32.mrf.mxu1  ;;  %v497_v11 = vld [vmem:[#allocation2 + $0x5c0] sm:$0xff] }
 0x7db   : > { %v4709_v12 = vadd.f32 %v4708_v61, %v4619_v30  ;;  %v9843_v30 = vld [vmem:[#allocation27_spill] sm:$0xff] }
 0x7dc   : > { %v4885_v33 = vadd.f32 %v4884_v5, %v4796_v20 }
 0x7de   : > { %v4970_v62 = vadd.f32 %v4885_v33, %v462_v13  ;;  %v9844_v33 = vld [vmem:[#allocation28_spill] sm:$0xff] }
 0x7e0   : > { %5194 = vst [vmem:[#allocation2 + $0x440] sm:$0xff] %v4970_v62  ;;  %v9845_v62 = vld [vmem:[#allocation29_spill] sm:$0xff] }
 0x7e1   : > { %v4797_v41 = vpop.f32.mrf.mxu2  ;;  %v4622_v50 = vpop.f32.mrf.mxu0 }
 0x7e2   : > { %v4798_v14 = vadd.f32 %v4797_v41, %v4709_v12  ;;  %v4886_v34 = vpop.f32.mrf.mxu3  ;;  %v4711_v35 = vpop.f32.mrf.mxu1  ;;  %v9846_v12 = vld [vmem:[#allocation30_spill] sm:$0xff] }
 0x7e3   : > { %v4712_v36 = vadd.f32 %v4711_v35, %v4622_v50 }
 0x7e4   : > { %v4887_v44 = vadd.f32 %v4886_v34, %v4798_v14  ;;  %4661 = vmatmul.bf16.gmra.mxu0 %v8571_v57 }
 0x7e5   : > { %4750 = vmatmul.bf16.gmra.mxu1 %v9836_v19 }
 0x7e6   : > { %v4977_v58 = vadd.f32 %v4887_v44, %v469_v43  ;;  %4839 = vmatmul.bf16.gmra.mxu2 %v9837_v15  ;;  %v504_v43 = vld [vmem:[#allocation2 + $0x5e8] sm:$0xff] }
 0x7e7   : > { %4928 = vmatmul.bf16.gmra.mxu3 %v9838_v16 }
 0x7e8   : > { %5201 = vst [vmem:[#allocation2 + $0x500] sm:$0xff] %v4977_v58 }
 0x7e9   : > { %v4800_v51 = vpop.f32.mrf.mxu2  ;;  %v4624_v56 = vpop.f32.mrf.mxu0 }
 0x7ea   : > { %v4801_v8 = vadd.f32 %v4800_v51, %v4712_v36  ;;  %v4889_v55 = vpop.f32.mrf.mxu3  ;;  %v4713_v0 = vpop.f32.mrf.mxu1 }
 0x7eb   : > { %v4714_v37 = vadd.f32 %v4713_v0, %v4624_v56 }
 0x7ec   : > { %v4890_v23 = vadd.f32 %v4889_v55, %v4801_v8  ;;  %v511_v8 = vld [vmem:[#allocation2 + $0x4e0] sm:$0xff] }
 0x7ee   : > { %v4984_v45 = vadd.f32 %v4890_v23, %v476_v48  ;;  %v9847_v48 = vld [vmem:[#allocation31_spill] sm:$0xff] }
 0x7f0   : > { %5208 = vst [vmem:[#allocation2 + $0x3c8] sm:$0xff] %v4984_v45  ;;  %v9848_v45 = vld [vmem:[#allocation32_spill] sm:$0xff] }
 0x7f1   : > { %v4802_v57 = vpop.f32.mrf.mxu2  ;;  %v4627_v46 = vpop.f32.mrf.mxu0 }
 0x7f2   : > { %v4803_v52 = vadd.f32 %v4802_v57, %v4714_v37  ;;  %v4891_v9 = vpop.f32.mrf.mxu3  ;;  %v4716_v47 = vpop.f32.mrf.mxu1  ;;  %v9849_v37 = vld [vmem:[#allocation33_spill] sm:$0xff]  ;;  %v9850_v57 = vld [vmem:[#allocation34_spill] sm:$0xff] }
 0x7f3   : > { %v4717_v25 = vadd.f32 %v4716_v47, %v4627_v46  ;;  %v518_v47 = vld [vmem:[#allocation2 + $0x650] sm:$0xff] }
 0x7f4   : > { %v4892_v49 = vadd.f32 %v4891_v9, %v4803_v52  ;;  %4666 = vmatmul.bf16.gmra.mxu0 %v9839_v54 }
 0x7f5   : > { %4755 = vmatmul.bf16.gmra.mxu1 %v9840_v1 }
 0x7f6   : > { %v4991_v32 = vadd.f32 %v4892_v49, %v483_v53  ;;  %4844 = vmatmul.bf16.gmra.mxu2 %v9841_v17 }
 0x7f7   : > { %4933 = vmatmul.bf16.gmra.mxu3 %v9842_v29 }
 0x7f8   : > { %5215 = vst [vmem:[#allocation2 + $0x260] sm:$0xff] %v4991_v32 }
 0x7f9   : > { %v4805_v39 = vpop.f32.mrf.mxu2  ;;  %v4629_v3 = vpop.f32.mrf.mxu0 }
 0x7fa   : > { %v4806_v2 = vadd.f32 %v4805_v39, %v4717_v25  ;;  %v4894_v26 = vpop.f32.mrf.mxu3  ;;  %v4718_v4 = vpop.f32.mrf.mxu1 }
 0x7fb   : > { %v4719_v21 = vadd.f32 %v4718_v4, %v4629_v3 }
 0x7fc   : > { %v4895_v7 = vadd.f32 %v4894_v26, %v4806_v2  ;;  %v525_v2 = vld [vmem:[#allocation2 + $0x688] sm:$0xff] }
 0x7fe   : > { %v4998_v27 = vadd.f32 %v4895_v7, %v490_v18  ;;  %v9851_v7 = vld [vmem:[#allocation37_spill] sm:$0xff] }
 0x800   : > { %5222 = vst [vmem:[#allocation2 + $0x4e8] sm:$0xff] %v4998_v27  ;;  %v9852_v27 = vld [vmem:[#allocation38_spill] sm:$0xff] }
 0x801   : > { %v4807_v28 = vpop.f32.mrf.mxu2  ;;  %v4632_v63 = vpop.f32.mrf.mxu0 }
 0x802   : > { %v4808_v22 = vadd.f32 %v4807_v28, %v4719_v21  ;;  %v4896_v24 = vpop.f32.mrf.mxu3  ;;  %v4721_v20 = vpop.f32.mrf.mxu1 }
 0x803   : > { %v4722_v61 = vadd.f32 %v4721_v20, %v4632_v63  ;;  %v532_v63 = vld [vmem:[#allocation2 + $0x630] sm:$0xff] }
 0x804   : > { %v4897_v5 = vadd.f32 %v4896_v24, %v4808_v22  ;;  %4671 = vmatmul.bf16.gmra.mxu0 %v9843_v30 }
 0x805   : > { %4760 = vmatmul.bf16.gmra.mxu1 %v9844_v33 }
 0x806   : > { %v5005_v13 = vadd.f32 %v4897_v5, %v497_v11  ;;  %4849 = vmatmul.bf16.gmra.mxu2 %v9845_v62 }
 0x807   : > { %4938 = vmatmul.bf16.gmra.mxu3 %v9846_v12 }
 0x808   : > { %5229 = vst [vmem:[#allocation2 + $0x5c0] sm:$0xff] %v5005_v13 }
 0x809   : > { %v4810_v41 = vpop.f32.mrf.mxu2  ;;  %v4634_v50 = vpop.f32.mrf.mxu0 }
 0x80a   : > { %v4811_v14 = vadd.f32 %v4810_v41, %v4722_v61  ;;  %v4899_v34 = vpop.f32.mrf.mxu3  ;;  %v4723_v35 = vpop.f32.mrf.mxu1 }
 0x80b   : > { %v4724_v36 = vadd.f32 %v4723_v35, %v4634_v50  ;;  %v9854_v50 = vld [vmem:[#allocation42_spill] sm:$0xff] }
 0x80c   : > { %v4900_v44 = vadd.f32 %v4899_v34, %v4811_v14  ;;  %v9853_v34 = vld [vmem:[#allocation41_spill] sm:$0xff] }
 0x80e   : > { %v5012_v58 = vadd.f32 %v4900_v44, %v504_v43 }
 0x810   : > { %5236 = vst [vmem:[#allocation2 + $0x5e8] sm:$0xff] %v5012_v58 }
 0x811   : > { %v4812_v19 = vpop.f32.mrf.mxu2  ;;  %v4637_v51 = vpop.f32.mrf.mxu0 }
 0x812   : > { %v4813_v15 = vadd.f32 %v4812_v19, %v4724_v36  ;;  %v4901_v16 = vpop.f32.mrf.mxu3  ;;  %v4726_v55 = vpop.f32.mrf.mxu1  ;;  %v546_v36 = vld [vmem:[#allocation2 + $0x1e0] sm:$0xff] }
 0x813   : > { %v4727_v23 = vadd.f32 %v4726_v55, %v4637_v51 }
 0x814   : > { %v4902_v56 = vadd.f32 %v4901_v16, %v4813_v15  ;;  %4676 = vmatmul.bf16.gmra.mxu0 %v9847_v48 }
 0x815   : > { %4765 = vmatmul.bf16.gmra.mxu1 %v9848_v45 }
 0x816   : > { %v5019_v0 = vadd.f32 %v4902_v56, %v511_v8  ;;  %4854 = vmatmul.bf16.gmra.mxu2 %v9849_v37 }
 0x817   : > { %4943 = vmatmul.bf16.gmra.mxu3 %v9850_v57 }
 0x818   : > { %5243 = vst [vmem:[#allocation2 + $0x4e0] sm:$0xff] %v5019_v0 }
 0x819   : > { %v4815_v52 = vpop.f32.mrf.mxu2  ;;  %v4639_v53 = vpop.f32.mrf.mxu0 }
 0x81a   : > { %v4816_v9 = vadd.f32 %v4815_v52, %v4727_v23  ;;  %v4904_v46 = vpop.f32.mrf.mxu3  ;;  %v4728_v49 = vpop.f32.mrf.mxu1 }
 0x81b   : > { %v4729_v25 = vadd.f32 %v4728_v49, %v4639_v53 }
 0x81c   : > { %v4905_v54 = vadd.f32 %v4904_v46, %v4816_v9  ;;  %v560_v46 = vld [vmem:[#allocation2 + $0x5f0] sm:$0xff] }
 0x81e   : > { %v5026_v32 = vadd.f32 %v4905_v54, %v518_v47 }
 0x820   : > { %5250 = vst [vmem:[#allocation2 + $0x650] sm:$0xff] %v5026_v32 }
 0x821   : > { %v4817_v1 = vpop.f32.mrf.mxu2  ;;  %v4642_v39 = vpop.f32.mrf.mxu0 }
 0x822   : > { %v4818_v17 = vadd.f32 %v4817_v1, %v4729_v25  ;;  %v4906_v29 = vpop.f32.mrf.mxu3  ;;  %v4731_v26 = vpop.f32.mrf.mxu1 }
 0x823   : > { %v4732_v4 = vadd.f32 %v4731_v26, %v4642_v39 }
 0x824   : > { %v4907_v3 = vadd.f32 %v4906_v29, %v4818_v17  ;;  %4681 = vmatmul.bf16.gmra.mxu0 %v9828_v40 }
 0x825   : > { %4770 = vmatmul.bf16.gmra.mxu1 %v9829_v6  ;;  %v539_v6 = vld [vmem:[#allocation2 + $0x270] sm:$0xff] }
 0x826   : > { %v5033_v18 = vadd.f32 %v4907_v3, %v525_v2  ;;  %4859 = vmatmul.bf16.gmra.mxu2 %v9851_v7 }
 0x827   : > { %4948 = vmatmul.bf16.gmra.mxu3 %v9852_v27 }
 0x828   : > { %5257 = vst [vmem:[#allocation2 + $0x688] sm:$0xff] %v5033_v18  ;;  %v574_v18 = vld [vmem:[#allocation2 + $0x370] sm:$0xff] }
 0x829   : > { %v4820_v21 = vpop.f32.mrf.mxu2  ;;  %v4644_v24 = vpop.f32.mrf.mxu0 }
 0x82a   : > { %v4821_v28 = vadd.f32 %v4820_v21, %v4732_v4  ;;  %v4909_v22 = vpop.f32.mrf.mxu3  ;;  %v4733_v11 = vpop.f32.mrf.mxu1 }
 0x82b   : > { %v4734_v30 = vadd.f32 %v4733_v11, %v4644_v24  ;;  %v581_v11 = vld [vmem:[#allocation2 + $0x380] sm:$0xff] }
 0x82c   : > { %v4910_v20 = vadd.f32 %v4909_v22, %v4821_v28 }
 0x82e   : > { %v5040_v5 = vadd.f32 %v4910_v20, %v532_v63 }
 0x830   : > { %5264 = vst [vmem:[#allocation2 + $0x630] sm:$0xff] %v5040_v5 }
 0x831   : > { %v4822_v40 = vpop.f32.mrf.mxu2  ;;  %v4647_v33 = vpop.f32.mrf.mxu0 }
 0x832   : > { %v4823_v13 = vadd.f32 %v4822_v40, %v4734_v30  ;;  %v4911_v61 = vpop.f32.mrf.mxu3  ;;  %v4736_v62 = vpop.f32.mrf.mxu1 }
 0x833   : > { %v4737_v14 = vadd.f32 %v4736_v62, %v4647_v33  ;;  %v588_v62 = vld [vmem:[#allocation2 + $0x448] sm:$0xff] }
 0x834   : > { %v4912_v12 = vadd.f32 %v4911_v61, %v4823_v13  ;;  %4686 = vmatmul.bf16.gmra.mxu0 %v9832_v59 }
 0x835   : > { %4775 = vmatmul.bf16.gmra.mxu1 %v9833_v31  ;;  %v553_v31 = vld [vmem:[#allocation2 + $0x418] sm:$0xff] }
 0x836   : > { %v5047_v41 = vadd.f32 %v4912_v12, %v539_v6  ;;  %4864 = vmatmul.bf16.gmra.mxu2 %v9853_v34 }
 0x837   : > { %4953 = vmatmul.bf16.gmra.mxu3 %v9854_v50 }
 0x838   : > { %5271 = vst [vmem:[#allocation2 + $0x270] sm:$0xff] %v5047_v41 }
 0x839   : > { %v4825_v43 = vpop.f32.mrf.mxu2  ;;  %v4649_v58 = vpop.f32.mrf.mxu0 }
 0x83a   : > { %v4826_v35 = vadd.f32 %v4825_v43, %v4737_v14  ;;  %v4914_v44 = vpop.f32.mrf.mxu3  ;;  %v4738_v19 = vpop.f32.mrf.mxu1 }
 0x83b   : > { %v4739_v51 = vadd.f32 %v4738_v19, %v4649_v58  ;;  %v595_v58 = vld [vmem:[#allocation2 + $0xa8] sm:$0xff] }
 0x83c   : > { %v4915_v15 = vadd.f32 %v4914_v44, %v4826_v35 }
 0x83e   : > { %v5054_v16 = vadd.f32 %v4915_v15, %v546_v36 }
 0x840   : > { %5278 = vst [vmem:[#allocation2 + $0x1e0] sm:$0xff] %v5054_v16 }
 0x841   : > { %v4827_v59 = vpop.f32.mrf.mxu2  ;;  %v4652_v56 = vpop.f32.mrf.mxu0 }
 0x842   : > { %v4828_v8 = vadd.f32 %v4827_v59, %v4739_v51  ;;  %v4916_v55 = vpop.f32.mrf.mxu3  ;;  %v4741_v48 = vpop.f32.mrf.mxu1 }
 0x843   : > { %v4742_v45 = vadd.f32 %v4741_v48, %v4652_v56  ;;  %v602_v56 = vld [vmem:[#allocation2 + $0x278] sm:$0xff] }
 0x844   : > { %v4917_v0 = vadd.f32 %v4916_v55, %v4828_v8  ;;  %4691 = vmatmul.bf16.gmra.mxu0 %v8715_v10 }
 0x845   : > { %4780 = vmatmul.bf16.gmra.mxu1 %v8719_v38  ;;  %v567_v38 = vld [vmem:[#allocation2 + $0x488] sm:$0xff] }
 0x846   : > { %v5061_v23 = vadd.f32 %v4917_v0, %v553_v31  ;;  %4869 = vmatmul.bf16.gmra.mxu2 %v8721_v42 }
 0x847   : > { %4958 = vmatmul.bf16.gmra.mxu3 %v8723_v60 }
 0x848   : > { %5285 = vst [vmem:[#allocation2 + $0x418] sm:$0xff] %v5061_v23 }
 0x849   : > { %v4830_v37 = vpop.f32.mrf.mxu2  ;;  %v4654_v9 = vpop.f32.mrf.mxu0 }
 0x84a   : > { %v4831_v57 = vadd.f32 %v4830_v37, %v4742_v45  ;;  %v4919_v52 = vpop.f32.mrf.mxu3  ;;  %v4743_v53 = vpop.f32.mrf.mxu1 }
 0x84b   : > { %v4744_v54 = vadd.f32 %v4743_v53, %v4654_v9  ;;  %v609_v9 = vld [vmem:[#allocation2 + $0x1d8] sm:$0xff] }
 0x84c   : > { %v4920_v47 = vadd.f32 %v4919_v52, %v4831_v57 }
 0x84e   : > { %v5068_v49 = vadd.f32 %v4920_v47, %v560_v46 }
 0x850   : > { %5292 = vst [vmem:[#allocation2 + $0x5f0] sm:$0xff] %v5068_v49 }
 0x851   : > { %v4832_v10 = vpop.f32.mrf.mxu2  ;;  %v4657_v1 = vpop.f32.mrf.mxu0 }
 0x852   : > { %v4833_v32 = vadd.f32 %v4832_v10, %v4744_v54  ;;  %v4921_v25 = vpop.f32.mrf.mxu3  ;;  %v4746_v17 = vpop.f32.mrf.mxu1 }
 0x853   : > { %v4747_v60 = vadd.f32 %v4746_v17, %v4657_v1  ;;  %v616_v1 = vld [vmem:[#allocation2 + $0x150] sm:$0xff] }
 0x854   : > { %v4922_v42 = vadd.f32 %v4921_v25, %v4833_v32 }
 0x856   : > { %v5075_v29 = vadd.f32 %v4922_v42, %v567_v38 }
 0x858   : > { %5299 = vst [vmem:[#allocation2 + $0x488] sm:$0xff] %v5075_v29 }
 0x859   : > { %v4835_v39 = vpop.f32.mrf.mxu2  ;;  %v4659_v3 = vpop.f32.mrf.mxu0 }
 0x85a   : > { %v4836_v2 = vadd.f32 %v4835_v39, %v4747_v60  ;;  %v4924_v26 = vpop.f32.mrf.mxu3  ;;  %v4748_v4 = vpop.f32.mrf.mxu1 }
 0x85b   : > { %v4749_v21 = vadd.f32 %v4748_v4, %v4659_v3  ;;  %v623_v3 = vld [vmem:[#allocation2 + $0x240] sm:$0xff] }
 0x85c   : > { %v4925_v7 = vadd.f32 %v4924_v26, %v4836_v2 }
 0x85e   : > { %v5082_v27 = vadd.f32 %v4925_v7, %v574_v18 }
 0x860   : > { %5306 = vst [vmem:[#allocation2 + $0x370] sm:$0xff] %v5082_v27 }
 0x861   : > { %v4837_v28 = vpop.f32.mrf.mxu2  ;;  %v4662_v63 = vpop.f32.mrf.mxu0 }
 0x862   : > { %v4838_v22 = vadd.f32 %v4837_v28, %v4749_v21  ;;  %v4926_v24 = vpop.f32.mrf.mxu3  ;;  %v4751_v20 = vpop.f32.mrf.mxu1 }
 0x863   : > { %v4752_v40 = vadd.f32 %v4751_v20, %v4662_v63  ;;  %v630_v63 = vld [vmem:[#allocation2 + $0x10] sm:$0xff] }
 0x864   : > { %v4927_v5 = vadd.f32 %v4926_v24, %v4838_v22 }
 0x866   : > { %v5089_v30 = vadd.f32 %v4927_v5, %v581_v11 }
 0x868   : > { %5313 = vst [vmem:[#allocation2 + $0x380] sm:$0xff] %v5089_v30 }
 0x869   : > { %v4840_v13 = vpop.f32.mrf.mxu2  ;;  %v4664_v6 = vpop.f32.mrf.mxu0 }
 0x86a   : > { %v4841_v61 = vadd.f32 %v4840_v13, %v4752_v40  ;;  %v4929_v33 = vpop.f32.mrf.mxu3  ;;  %v4753_v12 = vpop.f32.mrf.mxu1 }
 0x86b   : > { %v4754_v34 = vadd.f32 %v4753_v12, %v4664_v6  ;;  %v637_v6 = vld [vmem:[#allocation2 + $0x1c0] sm:$0xff] }
 0x86c   : > { %v4930_v41 = vadd.f32 %v4929_v33, %v4841_v61 }
 0x86e   : > { %v5096_v14 = vadd.f32 %v4930_v41, %v588_v62 }
 0x870   : > { %5320 = vst [vmem:[#allocation2 + $0x448] sm:$0xff] %v5096_v14 }
 0x871   : > { %v4842_v50 = vpop.f32.mrf.mxu2  ;;  %v4667_v44 = vpop.f32.mrf.mxu0 }
 0x872   : > { %v4843_v43 = vadd.f32 %v4842_v50, %v4754_v34  ;;  %v4931_v35 = vpop.f32.mrf.mxu3  ;;  %v4756_v36 = vpop.f32.mrf.mxu1 }
 0x873   : > { %v4757_v16 = vadd.f32 %v4756_v36, %v4667_v44  ;;  %v644_v44 = vld [vmem:[#allocation2 + $0x168] sm:$0xff] }
 0x874   : > { %v4932_v19 = vadd.f32 %v4931_v35, %v4843_v43 }
 0x876   : > { %v5103_v15 = vadd.f32 %v4932_v19, %v595_v58 }
 0x878   : > { %5327 = vst [vmem:[#allocation2 + $0xa8] sm:$0xff] %v5103_v15 }
 0x879   : > { %v4845_v51 = vpop.f32.mrf.mxu2  ;;  %v4669_v55 = vpop.f32.mrf.mxu0 }
 0x87a   : > { %v4846_v59 = vadd.f32 %v4845_v51, %v4757_v16  ;;  %v4934_v8 = vpop.f32.mrf.mxu3  ;;  %v4758_v31 = vpop.f32.mrf.mxu1 }
 0x87b   : > { %v4759_v23 = vadd.f32 %v4758_v31, %v4669_v55  ;;  %v651_v55 = vld [vmem:[#allocation2 + $0x3a8] sm:$0xff] }
 0x87c   : > { %v4935_v48 = vadd.f32 %v4934_v8, %v4846_v59 }
 0x87e   : > { %v5110_v0 = vadd.f32 %v4935_v48, %v602_v56 }
 0x880   : > { %5334 = vst [vmem:[#allocation2 + $0x278] sm:$0xff] %v5110_v0 }
 0x881   : > { %v4847_v45 = vpop.f32.mrf.mxu2  ;;  %v4672_v52 = vpop.f32.mrf.mxu0 }
 0x882   : > { %v4848_v37 = vadd.f32 %v4847_v45, %v4759_v23  ;;  %v4936_v57 = vpop.f32.mrf.mxu3  ;;  %v4761_v46 = vpop.f32.mrf.mxu1 }
 0x883   : > { %v4762_v49 = vadd.f32 %v4761_v46, %v4672_v52  ;;  %v658_v52 = vld [vmem:[#allocation2 + $0x70] sm:$0xff] }
 0x884   : > { %v4937_v53 = vadd.f32 %v4936_v57, %v4848_v37 }
 0x886   : > { %v5117_v47 = vadd.f32 %v4937_v53, %v609_v9 }
 0x888   : > { %5341 = vst [vmem:[#allocation2 + $0x1d8] sm:$0xff] %v5117_v47 }
 0x889   : > { %v4850_v54 = vpop.f32.mrf.mxu2  ;;  %v4674_v25 = vpop.f32.mrf.mxu0 }
 0x88a   : > { %v4851_v10 = vadd.f32 %v4850_v54, %v4762_v49  ;;  %v4939_v32 = vpop.f32.mrf.mxu3  ;;  %v4763_v38 = vpop.f32.mrf.mxu1 }
 0x88b   : > { %v4764_v29 = vadd.f32 %v4763_v38, %v4674_v25 }
 0x88c   : > { %v4940_v17 = vadd.f32 %v4939_v32, %v4851_v10  ;;  %v665_v32 = vld [vmem:[#allocation2 + $0x2d0] sm:$0xff] }
 0x88e   : > { %v5124_v42 = vadd.f32 %v4940_v17, %v616_v1 }
 0x890   : > { %5348 = vst [vmem:[#allocation2 + $0x150] sm:$0xff] %v5124_v42 }
 0x891   : > { %v4852_v60 = vpop.f32.mrf.mxu2  ;;  %v4677_v26 = vpop.f32.mrf.mxu0 }
 0x892   : > { %v4853_v39 = vadd.f32 %v4852_v60, %v4764_v29  ;;  %v4941_v2 = vpop.f32.mrf.mxu3  ;;  %v4766_v18 = vpop.f32.mrf.mxu1 }
 0x893   : > { %v4767_v27 = vadd.f32 %v4766_v18, %v4677_v26 }
 0x894   : > { %v4942_v4 = vadd.f32 %v4941_v2, %v4853_v39  ;;  %v672_v2 = vld [vmem:[#allocation2 + $0x618] sm:$0xff] }
 0x896   : > { %v5131_v7 = vadd.f32 %v4942_v4, %v623_v3 }
 0x898   : > { %5355 = vst [vmem:[#allocation2 + $0x240] sm:$0xff] %v5131_v7 }
 0x899   : > { %v4855_v21 = vpop.f32.mrf.mxu2  ;;  %v4679_v24 = vpop.f32.mrf.mxu0 }
 0x89a   : > { %v4856_v28 = vadd.f32 %v4855_v21, %v4767_v27  ;;  %v4944_v22 = vpop.f32.mrf.mxu3  ;;  %v4768_v11 = vpop.f32.mrf.mxu1 }
 0x89b   : > { %v4769_v30 = vadd.f32 %v4768_v11, %v4679_v24 }
 0x89c   : > { %v4945_v20 = vadd.f32 %v4944_v22, %v4856_v28  ;;  %v679_v28 = vld [vmem:[#allocation2 + $0x460] sm:$0xff] }
 0x89e   : > { %v5138_v5 = vadd.f32 %v4945_v20, %v630_v63 }
 0x8a0   : > { %5362 = vst [vmem:[#allocation2 + $0x10] sm:$0xff] %v5138_v5 }
 0x8a1   : > { %v4857_v40 = vpop.f32.mrf.mxu2  ;;  %v4682_v33 = vpop.f32.mrf.mxu0 }
 0x8a2   : > { %v4858_v13 = vadd.f32 %v4857_v40, %v4769_v30  ;;  %v4946_v61 = vpop.f32.mrf.mxu3  ;;  %v4771_v62 = vpop.f32.mrf.mxu1 }
 0x8a3   : > { %v4772_v14 = vadd.f32 %v4771_v62, %v4682_v33 }
 0x8a4   : > { %v4947_v12 = vadd.f32 %v4946_v61, %v4858_v13 }
 0x8a6   : > { %v5145_v41 = vadd.f32 %v4947_v12, %v637_v6 }
 0x8a8   : > { %5369 = vst [vmem:[#allocation2 + $0x1c0] sm:$0xff] %v5145_v41 }
 0x8a9   : > { %v4860_v34 = vpop.f32.mrf.mxu2  ;;  %v4684_v35 = vpop.f32.mrf.mxu0 }
 0x8aa   : > { %v4861_v50 = vadd.f32 %v4860_v34, %v4772_v14  ;;  %v4949_v43 = vpop.f32.mrf.mxu3  ;;  %v4773_v58 = vpop.f32.mrf.mxu1 }
 0x8ab   : > { %v4774_v15 = vadd.f32 %v4773_v58, %v4684_v35 }
 0x8ac   : > { %v4950_v36 = vadd.f32 %v4949_v43, %v4861_v50 }
 0x8ae   : > { %v5152_v19 = vadd.f32 %v4950_v36, %v644_v44 }
 0x8b0   : > { %5376 = vst [vmem:[#allocation2 + $0x168] sm:$0xff] %v5152_v19 }
 0x8b1   : > { %v4862_v16 = vpop.f32.mrf.mxu2  ;;  %v4687_v8 = vpop.f32.mrf.mxu0 }
 0x8b2   : > { %v4863_v51 = vadd.f32 %v4862_v16, %v4774_v15  ;;  %v4951_v59 = vpop.f32.mrf.mxu3  ;;  %v4776_v56 = vpop.f32.mrf.mxu1 }
 0x8b3   : > { %v4777_v0 = vadd.f32 %v4776_v56, %v4687_v8 }
 0x8b4   : > { %v4952_v31 = vadd.f32 %v4951_v59, %v4863_v51 }
 0x8b6   : > { %v5159_v48 = vadd.f32 %v4952_v31, %v651_v55 }
 0x8b8   : > { %5383 = vst [vmem:[#allocation2 + $0x3a8] sm:$0xff] %v5159_v48 }
 0x8b9   : > { %v4865_v23 = vpop.f32.mrf.mxu2  ;;  %v4689_v57 = vpop.f32.mrf.mxu0 }
 0x8ba   : > { %v4866_v45 = vadd.f32 %v4865_v23, %v4777_v0  ;;  %v4954_v37 = vpop.f32.mrf.mxu3  ;;  %v4778_v9 = vpop.f32.mrf.mxu1 }
 0x8bb   : > { %v4779_v47 = vadd.f32 %v4778_v9, %v4689_v57 }
 0x8bc   : > { %v4955_v46 = vadd.f32 %v4954_v37, %v4866_v45 }
 0x8be   : > { %v5166_v53 = vadd.f32 %v4955_v46, %v658_v52 }
 0x8c0   : > { %5390 = vst [vmem:[#allocation2 + $0x70] sm:$0xff] %v5166_v53 }
 0x8c1   : > { %v4867_v49 = vpop.f32.mrf.mxu2  ;;  %v4692_v25 = vpop.f32.mrf.mxu0 }
 0x8c2   : > { %v4868_v54 = vadd.f32 %v4867_v49, %v4779_v47  ;;  %v4956_v10 = vpop.f32.mrf.mxu3  ;;  %v4781_v1 = vpop.f32.mrf.mxu1 }
 0x8c3   : > { %v4782_v42 = vadd.f32 %v4781_v1, %v4692_v25 }
 0x8c4   : > { %v4957_v38 = vadd.f32 %v4956_v10, %v4868_v54 }
 0x8c6   : > { %v5173_v17 = vadd.f32 %v4957_v38, %v665_v32 }
 0x8c8   : > { %5397 = vst [vmem:[#allocation2 + $0x2d0] sm:$0xff] %v5173_v17 }
 0x8c9   : > { %v4870_v29 = vpop.f32.mrf.mxu2  ;;  %v4694_v3 = vpop.f32.mrf.mxu0 }
 0x8ca   : > { %v4871_v60 = vadd.f32 %v4870_v29, %v4782_v42  ;;  %v4959_v39 = vpop.f32.mrf.mxu3  ;;  %v4783_v18 = vpop.f32.mrf.mxu1 }
 0x8cb   : > { %v4784_v7 = vadd.f32 %v4783_v18, %v4694_v3 }
 0x8cc   : > { %v4960_v26 = vadd.f32 %v4959_v39, %v4871_v60 }
 0x8ce   : > { %v5180_v4 = vadd.f32 %v4960_v26, %v672_v2 }
 0x8d0   : > { %5404 = vst [vmem:[#allocation2 + $0x618] sm:$0xff] %v5180_v4 }
 0x8d1   : > { %v4872_v27 = vpop.f32.mrf.mxu2 }
 0x8d2   : > { %v4873_v21 = vadd.f32 %v4872_v27, %v4784_v7  ;;  %v4961_v22 = vpop.f32.mrf.mxu3 }
 0x8d4   : > { %v4962_v24 = vadd.f32 %v4961_v22, %v4873_v21  ;;  %5415 = sbr.rel (%p7190_p1) target bundleno = 2397 (0x95d), region = 44 }
 0x8d6   : > { %v5187_v63 = vadd.f32 %v4962_v24, %v679_v28 }
 0x8d8   : > { %5411 = vst [vmem:[#allocation2 + $0x460] sm:$0xff] %v5187_v63 }
 0x8d9   : > { %v5416_v11 = vld [vmem:[#allocation2 + $0x2b0] sm:$0xff]  ;;  %v5418_v5 = vld [vmem:[#allocation2 + $0x4d8] sm:$0xff]  ;;  %v5421_v61 = vld [vmem:[#allocation2 + $0x328] sm:$0xff] }
 0x8da   : > { %v5417_v20 = vld [vmem:[#allocation2 + $0x3b0] sm:$0xff]  ;;  %v5419_v40 = vld [vmem:[#allocation2 + $0x18] sm:$0xff]  ;;  %v5422_v62 = vld [vmem:[#allocation2 + $0x440] sm:$0xff] }
 0x8db   : > { %v5640_v30 = vpack.c.bf16 %v5417_v20, %v5416_v11  ;;  %v5420_v13 = vld [vmem:[#allocation2 + $0x450] sm:$0xff]  ;;  %v5641_v33 = vpack.c.bf16 %v5419_v40, %v5418_v5  ;;  %v5423_v12 = vld [vmem:[#allocation2 + $0x378] sm:$0xff]  ;;  %v5424_v41 = vld [vmem:[#allocation2 + $0x108] sm:$0xff]  ;;  %v5643_v14 = vpack.c.bf16 %v5422_v62, %v5422_v62 }
 0x8dc   : > { %v5642_v6 = vpack.c.bf16 %v5421_v61, %v5420_v13  ;;  %v5644_v34 = vpack.c.bf16 %v5424_v41, %v5423_v12  ;;  %v5425_v50 = vld [vmem:[#allocation2 + $0x510] sm:$0xff]  ;;  %v5427_v35 = vld [vmem:[#allocation2 + $0x318] sm:$0xff]  ;;  %v5428_v58 = vld [vmem:[#allocation2 + $0x548] sm:$0xff] }
 0x8dd   : > { %5768 = vst [vmem:[%s8046_s19] sm:$0xff] %v5640_v30  ;;  %v5426_v43 = vld [vmem:[#allocation2 + $0x490] sm:$0xff]  ;;  %v5429_v36 = vld [vmem:[#allocation2 + $0x500] sm:$0xff]  ;;  %v5646_v15 = vpack.c.bf16 %v5428_v58, %v5427_v35  ;;  %v5433_v59 = vld [vmem:[#allocation2 + $0x588] sm:$0xff] }
 0x8de   : > { %5769 = vst [vmem:[%s8046_s19 + $0x8] sm:$0xff] %v5641_v33  ;;  %v5645_v44 = vpack.c.bf16 %v5426_v43, %v5425_v50  ;;  %v5430_v19 = vld [vmem:[#allocation2 + $0x6d0] sm:$0xff]  ;;  %v5431_v16 = vld [vmem:[#allocation2 + $0x320] sm:$0xff]  ;;  %v5647_v8 = vpack.c.bf16 %v5429_v36, %v5429_v36  ;;  %v5434_v55 = vld [vmem:[#allocation2 + $0x598] sm:$0xff] }
 0x8df   : > { %5770 = vst [vmem:[%s8046_s19 + $0x10] sm:$0xff] %v5642_v6  ;;  %v5432_v51 = vld [vmem:[#allocation2 + $0x2c0] sm:$0xff]  ;;  %v5648_v31 = vpack.c.bf16 %v5431_v16, %v5430_v19  ;;  %v5436_v48 = vld [vmem:[#allocation2 + $0x3c8] sm:$0xff]  ;;  %v5437_v23 = vld [vmem:[#allocation2 + $0x6d8] sm:$0xff] }
 0x8e0   : > { %5771 = vst [vmem:[%s8046_s19 + $0x18] sm:$0xf] %v5643_v14  ;;  %v5435_v56 = vld [vmem:[#allocation2 + $0x60] sm:$0xff]  ;;  %v5649_v0 = vpack.c.bf16 %v5433_v59, %v5432_v51  ;;  %v5438_v45 = vld [vmem:[#allocation2 + $0x670] sm:$0xff]  ;;  %v5439_v57 = vld [vmem:[#allocation2 + $0x348] sm:$0xff]  ;;  %v5651_v9 = vpack.c.bf16 %v5436_v48, %v5436_v48 }
 0x8e1   : > { %5772 = vst [vmem:[%s8046_s19 + $0x1c] sm:$0xff] %v5644_v34  ;;  %v5650_v37 = vpack.c.bf16 %v5435_v56, %v5434_v55  ;;  %v5440_v52 = vld [vmem:[#allocation2 + $0x118] sm:$0xff]  ;;  %v5441_v46 = vld [vmem:[#allocation2 + $0xa0] sm:$0xff]  ;;  %v5652_v47 = vpack.c.bf16 %v5438_v45, %v5437_v23  ;;  %v5450_v39 = vld [vmem:[#allocation2 + $0x4e8] sm:$0xff] }
 0x8e2   : > { %5773 = vst [vmem:[%s8046_s19 + $0x24] sm:$0xff] %v5645_v44  ;;  %v5442_v53 = vld [vmem:[#allocation2 + $0x1a0] sm:$0xff]  ;;  %v5653_v54 = vpack.c.bf16 %v5440_v52, %v5439_v57  ;;  %v5446_v1 = vld [vmem:[#allocation2 + $0x538] sm:$0xff]  ;;  %v5453_v4 = vld [vmem:[#allocation2 + $0x3d0] sm:$0xff]  ;;  %v5659_v27 = vpack.c.bf16 %v5450_v39, %v5450_v39 }
 0x8e3   : > { %5774 = vst [vmem:[%s8046_s19 + $0x2c] sm:$0xff] %v5646_v15  ;;  %v5443_v49 = vld [vmem:[#allocation2 + $0x260] sm:$0xff]  ;;  %v5654_v25 = vpack.c.bf16 %v5442_v53, %v5441_v46  ;;  %v5448_v42 = vld [vmem:[#allocation2 + $0x5f8] sm:$0xff]  ;;  %v5456_v28 = vld [vmem:[#allocation2 + $0x90] sm:$0xff] }
 0x8e4   : > { %5775 = vst [vmem:[%s8046_s19 + $0x34] sm:$0xf] %v5647_v8  ;;  %v5444_v10 = vld [vmem:[#allocation2 + $0xe0] sm:$0xff]  ;;  %v5655_v17 = vpack.c.bf16 %v5443_v49, %v5443_v49  ;;  %v5451_v26 = vld [vmem:[#allocation2 + $0x3d8] sm:$0xff]  ;;  %v5458_v11 = vld [vmem:[#allocation2 + $0x5d0] sm:$0xff] }
 0x8e5   : > { %5776 = vst [vmem:[%s8046_s19 + $0x38] sm:$0xff] %v5648_v31  ;;  %v5445_v32 = vld [vmem:[#allocation2 + $0x3a0] sm:$0xff]  ;;  %v5459_v20 = vld [vmem:[#allocation2 + $0x4f0] sm:$0xff]  ;;  %v5462_v61 = vld [vmem:[#allocation2 + $0x58] sm:$0xff] }
 0x8e6   : > { %5777 = vst [vmem:[%s8046_s19 + $0x40] sm:$0xff] %v5649_v0  ;;  %v5447_v38 = vld [vmem:[#allocation2 + $0x3c0] sm:$0xff]  ;;  %v5656_v60 = vpack.c.bf16 %v5445_v32, %v5444_v10  ;;  %v5460_v30 = vld [vmem:[#allocation2 + $0x610] sm:$0xff]  ;;  %v5664_v6 = vpack.c.bf16 %v5459_v20, %v5458_v11  ;;  %v5464_v62 = vld [vmem:[#allocation2 + $0x5e8] sm:$0xff] }
 0x8e7   : > { %5778 = vst [vmem:[%s8046_s19 + $0x48] sm:$0xff] %v5650_v37  ;;  %v5449_v29 = vld [vmem:[#allocation2 + $0x4a0] sm:$0xff]  ;;  %v5657_v2 = vpack.c.bf16 %v5447_v38, %v5446_v1  ;;  %v5463_v33 = vld [vmem:[#allocation2 + $0x3f0] sm:$0xff]  ;;  %v5466_v14 = vld [vmem:[#allocation2 + $0x368] sm:$0xff]  ;;  %v5667_v35 = vpack.c.bf16 %v5464_v62, %v5464_v62 }
 0x8e8   : > { %5779 = vst [vmem:[%s8046_s19 + $0x50] sm:$0xf] %v5651_v9  ;;  %v5452_v3 = vld [vmem:[#allocation2 + $0x680] sm:$0xff]  ;;  %v5658_v18 = vpack.c.bf16 %v5449_v29, %v5448_v42  ;;  %v5465_v41 = vld [vmem:[#allocation2 + $0xb0] sm:$0xff]  ;;  %v5666_v34 = vpack.c.bf16 %v5463_v33, %v5462_v61  ;;  %v5468_v43 = vld [vmem:[#allocation2 + $0x2d8] sm:$0xff] }
 0x8e9   : > { %5780 = vst [vmem:[%s8046_s19 + $0x54] sm:$0xff] %v5652_v47  ;;  %v5454_v7 = vld [vmem:[#allocation2 + $0x80] sm:$0xff]  ;;  %v5660_v22 = vpack.c.bf16 %v5452_v3, %v5451_v26  ;;  %v5467_v50 = vld [vmem:[#allocation2 + $0x4b0] sm:$0xff]  ;;  %v5470_v58 = vld [vmem:[#allocation2 + $0x408] sm:$0xff]  ;;  %v5668_v36 = vpack.c.bf16 %v5466_v14, %v5465_v41 }
 0x8ea   : > { %5781 = vst [vmem:[%s8046_s19 + $0x5c] sm:$0xff] %v5653_v54  ;;  %v5455_v21 = vld [vmem:[#allocation2 + $0x6a0] sm:$0xff]  ;;  %v5661_v63 = vpack.c.bf16 %v5454_v7, %v5453_v4  ;;  %v5469_v44 = vld [vmem:[#allocation2 + $0x410] sm:$0xff]  ;;  %v5669_v15 = vpack.c.bf16 %v5468_v43, %v5467_v50  ;;  %v5472_v16 = vld [vmem:[#allocation2 + $0x358] sm:$0xff] }
 0x8eb   : > { %5782 = vst [vmem:[%s8046_s19 + $0x64] sm:$0xff] %v5654_v25  ;;  %v5457_v24 = vld [vmem:[#allocation2 + $0x5c0] sm:$0xff]  ;;  %v5662_v5 = vpack.c.bf16 %v5456_v28, %v5455_v21  ;;  %v5473_v51 = vld [vmem:[#allocation2 + $0x68] sm:$0xff]  ;;  %v5670_v59 = vpack.c.bf16 %v5470_v58, %v5469_v44  ;;  %v5477_v48 = vld [vmem:[#allocation2 + $0x5d8] sm:$0xff] }
 0x8ec   : > { %5783 = vst [vmem:[%s8046_s19 + $0x6c] sm:$0xf] %v5655_v17  ;;  %v5461_v40 = vld [vmem:[#allocation2 + $0x220] sm:$0xff]  ;;  %v5663_v13 = vpack.c.bf16 %v5457_v24, %v5457_v24  ;;  %v5474_v8 = vld [vmem:[#allocation2 + $0x188] sm:$0xff]  ;;  %v5672_v0 = vpack.c.bf16 %v5473_v51, %v5472_v16  ;;  %v5478_v23 = vld [vmem:[#allocation2 + $0x650] sm:$0xff] }
 0x8ed   : > { %5784 = vst [vmem:[%s8046_s19 + $0x70] sm:$0xff] %v5656_v60  ;;  %v5665_v12 = vpack.c.bf16 %v5461_v40, %v5460_v30  ;;  %v5471_v19 = vld [vmem:[#allocation2 + $0x4e0] sm:$0xff]  ;;  %v5476_v31 = vld [vmem:[#allocation2 + $0x528] sm:$0xff]  ;;  %v5480_v57 = vld [vmem:[#allocation2 + $0x6b0] sm:$0xff]  ;;  %v5675_v53 = vpack.c.bf16 %v5478_v23, %v5478_v23 }
 0x8ee   : > { %5785 = vst [vmem:[%s8046_s19 + $0x78] sm:$0xff] %v5657_v2  ;;  %v5475_v55 = vld [vmem:[#allocation2 + $0x640] sm:$0xff]  ;;  %v5671_v56 = vpack.c.bf16 %v5471_v19, %v5471_v19  ;;  %v5674_v52 = vpack.c.bf16 %v5477_v48, %v5476_v31  ;;  %v5481_v9 = vld [vmem:[#allocation2 + $0x2b8] sm:$0xff]  ;;  %v5482_v46 = vld [vmem:[#allocation2 + $0x5b0] sm:$0xff] }
 0x8ef   : > { %5786 = vst [vmem:[%s8046_s19 + $0x80] sm:$0xff] %v5658_v18  ;;  %v5673_v45 = vpack.c.bf16 %v5475_v55, %v5474_v8  ;;  %v5479_v37 = vld [vmem:[#allocation2 + $0x340] sm:$0xff]  ;;  %v5483_v47 = vld [vmem:[#allocation2 + $0x6f0] sm:$0xff]  ;;  %v5485_v10 = vld [vmem:[#allocation2 + $0x688] sm:$0xff]  ;;  %v5677_v32 = vpack.c.bf16 %v5482_v46, %v5481_v9 }
 0x8f0   : > { %5787 = vst [vmem:[%s8046_s19 + $0x88] sm:$0xf] %v5659_v27  ;;  %v5484_v49 = vld [vmem:[#allocation2 + $0x550] sm:$0xff]  ;;  %v5676_v54 = vpack.c.bf16 %v5480_v57, %v5479_v37  ;;  %v5486_v25 = vld [vmem:[#allocation2 + $0xb8] sm:$0xff]  ;;  %v5487_v1 = vld [vmem:[#allocation2 + $0x128] sm:$0xff]  ;;  %v5679_v29 = vpack.c.bf16 %v5485_v10, %v5485_v10 }
 0x8f1   : > { %5788 = vst [vmem:[%s8046_s19 + $0x8c] sm:$0xff] %v5660_v22  ;;  %v5678_v38 = vpack.c.bf16 %v5484_v49, %v5483_v47  ;;  %v5488_v17 = vld [vmem:[#allocation2 + $0x648] sm:$0xff]  ;;  %v5489_v42 = vld [vmem:[#allocation2 + $0x190] sm:$0xff]  ;;  %v5680_v2 = vpack.c.bf16 %v5487_v1, %v5486_v25  ;;  %v5495_v27 = vld [vmem:[#allocation2 + $0x1f8] sm:$0xff] }
 0x8f2   : > { %5789 = vst [vmem:[%s8046_s19 + $0x94] sm:$0xff] %v5661_v63  ;;  %v5490_v60 = vld [vmem:[#allocation2 + $0x88] sm:$0xff]  ;;  %v5492_v26 = vld [vmem:[#allocation2 + $0x630] sm:$0xff]  ;;  %v5681_v3 = vpack.c.bf16 %v5489_v42, %v5488_v17  ;;  %v5496_v21 = vld [vmem:[#allocation2 + $0x338] sm:$0xff] }
 0x8f3   : > { %5790 = vst [vmem:[%s8046_s19 + $0x9c] sm:$0xff] %v5662_v5  ;;  %v5491_v39 = vld [vmem:[#allocation2 + $0x148] sm:$0xff]  ;;  %v5493_v18 = vld [vmem:[#allocation2 + $0x130] sm:$0xff]  ;;  %v5683_v28 = vpack.c.bf16 %v5492_v26, %v5492_v26  ;;  %v5685_v20 = vpack.c.bf16 %v5496_v21, %v5495_v27  ;;  %v5501_v30 = vld [vmem:[#allocation2 + $0xf8] sm:$0xff] }
 0x8f4   : > { %5791 = vst [vmem:[%s8046_s19 + $0xa4] sm:$0xf] %v5663_v13  ;;  %v5494_v4 = vld [vmem:[#allocation2 + $0x1e8] sm:$0xff]  ;;  %v5682_v7 = vpack.c.bf16 %v5491_v39, %v5490_v60  ;;  %v5499_v11 = vld [vmem:[#allocation2 + $0x270] sm:$0xff]  ;;  %v5502_v13 = vld [vmem:[#allocation2 + $0x20] sm:$0xff] }
 0x8f5   : > { %5792 = vst [vmem:[%s8046_s19 + $0xa8] sm:$0xff] %v5664_v6  ;;  %v5497_v22 = vld [vmem:[#allocation2 + $0x228] sm:$0xff]  ;;  %v5684_v63 = vpack.c.bf16 %v5494_v4, %v5493_v18  ;;  %v5500_v5 = vld [vmem:[#allocation2 + $0x350] sm:$0xff]  ;;  %v5687_v33 = vpack.c.bf16 %v5499_v11, %v5499_v11  ;;  %v5505_v62 = vld [vmem:[#allocation2 + $0x1b8] sm:$0xff] }
 0x8f6   : > { %5793 = vst [vmem:[%s8046_s19 + $0xb0] sm:$0xff] %v5665_v12  ;;  %v5498_v24 = vld [vmem:[#allocation2 + $0x428] sm:$0xff]  ;;  %v5504_v6 = vld [vmem:[#allocation2 + $0xd0] sm:$0xff]  ;;  %v5688_v12 = vpack.c.bf16 %v5501_v30, %v5500_v5  ;;  %v5506_v41 = vld [vmem:[#allocation2 + $0x1e0] sm:$0xff] }
 0x8f7   : > { %5794 = vst [vmem:[%s8046_s19 + $0xb8] sm:$0xff] %v5666_v34  ;;  %v5686_v40 = vpack.c.bf16 %v5498_v24, %v5497_v22  ;;  %v5503_v61 = vld [vmem:[#allocation2 + $0x208] sm:$0xff]  ;;  %v5507_v34 = vld [vmem:[#allocation2 + $0x180] sm:$0xff]  ;;  %v5508_v50 = vld [vmem:[#allocation2 + $0x438] sm:$0xff]  ;;  %v5690_v43 = vpack.c.bf16 %v5505_v62, %v5504_v6  ;;  %v5691_v58 = vpack.c.bf16 %v5506_v41, %v5506_v41 }
 0x8f8   : > { %5795 = vst [vmem:[%s8046_s19 + $0xc0] sm:$0xf] %v5667_v35  ;;  %v5689_v14 = vpack.c.bf16 %v5503_v61, %v5502_v13  ;;  %v5509_v35 = vld [vmem:[#allocation2 + $0x6f8] sm:$0xff]  ;;  %v5512_v19 = vld [vmem:[#allocation2 + $0x230] sm:$0xff]  ;;  %v5515_v8 = vld [vmem:[#allocation2 + $0x568] sm:$0xff] }
 0x8f9   : > { %5796 = vst [vmem:[%s8046_s19 + $0xc4] sm:$0xff] %v5668_v36  ;;  %v5510_v44 = vld [vmem:[#allocation2 + $0x158] sm:$0xff]  ;;  %v5511_v36 = vld [vmem:[#allocation2 + $0x5a0] sm:$0xff]  ;;  %v5517_v31 = vld [vmem:[#allocation2 + $0x268] sm:$0xff] }
 0x8fa   : > { %5797 = vst [vmem:[%s8046_s19 + $0xcc] sm:$0xff] %v5669_v15  ;;  %v5692_v15 = vpack.c.bf16 %v5508_v50, %v5507_v34  ;;  %v5513_v16 = vld [vmem:[#allocation2 + $0x418] sm:$0xff]  ;;  %v5693_v51 = vpack.c.bf16 %v5510_v44, %v5509_v35  ;;  %v5694_v55 = vpack.c.bf16 %v5512_v19, %v5511_v36  ;;  %v5519_v23 = vld [vmem:[#allocation2 + $0x28] sm:$0xff]  ;;  %v5520_v37 = vld [vmem:[#allocation2 + $0x5f0] sm:$0xff] }
 0x8fb   : > { %5798 = vst [vmem:[%s8046_s19 + $0xd4] sm:$0xff] %v5670_v59  ;;  %v5514_v59 = vld [vmem:[#allocation2 + $0x250] sm:$0xff]  ;;  %v5695_v48 = vpack.c.bf16 %v5513_v16, %v5513_v16  ;;  %v5522_v9 = vld [vmem:[#allocation2 + $0x288] sm:$0xff]  ;;  %v5524_v47 = vld [vmem:[#allocation2 + $0x420] sm:$0xff]  ;;  %v5699_v49 = vpack.c.bf16 %v5520_v37, %v5520_v37 }
 0x8fc   : > { %5799 = vst [vmem:[%s8046_s19 + $0xdc] sm:$0xf] %v5671_v56  ;;  %v5516_v56 = vld [vmem:[#allocation2 + $0x3b8] sm:$0xff]  ;;  %v5526_v10 = vld [vmem:[#allocation2 + $0x390] sm:$0xff]  ;;  %v5527_v25 = vld [vmem:[#allocation2 + $0x488] sm:$0xff] }
 0x8fd   : > { %5800 = vst [vmem:[%s8046_s19 + $0xe0] sm:$0xff] %v5672_v0  ;;  %v5518_v0 = vld [vmem:[#allocation2 + $0x660] sm:$0xff]  ;;  %v5697_v57 = vpack.c.bf16 %v5517_v31, %v5516_v56  ;;  %v5531_v60 = vld [vmem:[#allocation2 + $0x478] sm:$0xff]  ;;  %v5703_v39 = vpack.c.bf16 %v5527_v25, %v5527_v25  ;;  %v5534_v18 = vld [vmem:[#allocation2 + $0x370] sm:$0xff] }
 0x8fe   : > { %5801 = vst [vmem:[%s8046_s19 + $0xe8] sm:$0xff] %v5673_v45  ;;  %v5696_v45 = vpack.c.bf16 %v5515_v8, %v5514_v59  ;;  %v5698_v46 = vpack.c.bf16 %v5519_v23, %v5518_v0  ;;  %v5529_v17 = vld [vmem:[#allocation2 + $0x200] sm:$0xff]  ;;  %v5533_v26 = vld [vmem:[#allocation2 + $0x3f8] sm:$0xff]  ;;  %v5536_v27 = vld [vmem:[#allocation2 + $0x310] sm:$0xff]  ;;  %v5707_v24 = vpack.c.bf16 %v5534_v18, %v5534_v18 }
 0x8ff   : > { %5802 = vst [vmem:[%s8046_s19 + $0xf0] sm:$0xff] %v5674_v52  ;;  %v5521_v52 = vld [vmem:[#allocation2 + $0x4f8] sm:$0xff]  ;;  %v5538_v22 = vld [vmem:[#allocation2 + $0x2a0] sm:$0xff]  ;;  %v5545_v6 = vld [vmem:[#allocation2 + $0x8] sm:$0xff] }
 0x900   : > { %5803 = vst [vmem:[%s8046_s19 + $0xf8] sm:$0xf] %v5675_v53  ;;  %v5523_v53 = vld [vmem:[#allocation2 + $0x1b0] sm:$0xff]  ;;  %v5540_v11 = vld [vmem:[#allocation2 + $0x100] sm:$0xff]  ;;  %v5543_v13 = vld [vmem:[#allocation2 + $0x6b8] sm:$0xff] }
 0x901   : > { %5804 = vst [vmem:[%s8046_s19 + $0xfc] sm:$0xff] %v5676_v54  ;;  %v5525_v54 = vld [vmem:[#allocation2 + $0x178] sm:$0xff]  ;;  %v5701_v1 = vpack.c.bf16 %v5524_v47, %v5523_v53  ;;  %v5541_v5 = vld [vmem:[#allocation2 + $0x380] sm:$0xff]  ;;  %v5548_v34 = vld [vmem:[#allocation2 + $0x448] sm:$0xff] }
 0x902   : > { %5805 = vst [vmem:[%s8046_s19 + $0x104] sm:$0xff] %v5677_v32  ;;  %v5700_v32 = vpack.c.bf16 %v5522_v9, %v5521_v52  ;;  %v5702_v42 = vpack.c.bf16 %v5526_v10, %v5525_v54  ;;  %v5711_v62 = vpack.c.bf16 %v5541_v5, %v5541_v5  ;;  %v5547_v41 = vld [vmem:[#allocation2 + $0x298] sm:$0xff]  ;;  %v5550_v35 = vld [vmem:[#allocation2 + $0x6c8] sm:$0xff]  ;;  %v5715_v19 = vpack.c.bf16 %v5548_v34, %v5548_v34  ;;  %v5554_v16 = vld [vmem:[#allocation2 + $0x360] sm:$0xff] }
 0x903   : > { %5806 = vst [vmem:[%s8046_s19 + $0x10c] sm:$0xff] %v5678_v38  ;;  %v5528_v38 = vld [vmem:[#allocation2 + $0x678] sm:$0xff]  ;;  %v5552_v36 = vld [vmem:[#allocation2 + $0x6a8] sm:$0xff]  ;;  %v5559_v0 = vld [vmem:[#allocation2 + $0x620] sm:$0xff] }
 0x904   : > { %5807 = vst [vmem:[%s8046_s19 + $0x114] sm:$0xf] %v5679_v29  ;;  %v5530_v29 = vld [vmem:[#allocation2 + $0x5a8] sm:$0xff]  ;;  %v5557_v56 = vld [vmem:[#allocation2 + $0x658] sm:$0xff]  ;;  %v5561_v37 = vld [vmem:[#allocation2 + $0x520] sm:$0xff] }
 0x905   : > { %5808 = vst [vmem:[%s8046_s19 + $0x118] sm:$0xff] %v5680_v2  ;;  %v5532_v2 = vld [vmem:[#allocation2 + $0x388] sm:$0xff]  ;;  %v5705_v4 = vpack.c.bf16 %v5531_v60, %v5530_v29  ;;  %v5562_v52 = vld [vmem:[#allocation2 + $0x278] sm:$0xff]  ;;  %v5564_v53 = vld [vmem:[#allocation2 + $0x2f0] sm:$0xff] }
 0x906   : > { %5809 = vst [vmem:[%s8046_s19 + $0x120] sm:$0xff] %v5681_v3  ;;  %v5704_v3 = vpack.c.bf16 %v5529_v17, %v5528_v38  ;;  %v5706_v21 = vpack.c.bf16 %v5533_v26, %v5532_v2  ;;  %v5555_v59 = vld [vmem:[#allocation2 + $0xa8] sm:$0xff]  ;;  %v5566_v54 = vld [vmem:[#allocation2 + $0x498] sm:$0xff]  ;;  %v5723_v10 = vpack.c.bf16 %v5562_v52, %v5562_v52  ;;  %v5568_v25 = vld [vmem:[#allocation2 + $0x570] sm:$0xff] }
 0x907   : > { %5810 = vst [vmem:[%s8046_s19 + $0x128] sm:$0xff] %v5682_v7  ;;  %v5535_v7 = vld [vmem:[#allocation2 + $0x308] sm:$0xff]  ;;  %v5719_v23 = vpack.c.bf16 %v5555_v59, %v5555_v59  ;;  %v5569_v38 = vld [vmem:[#allocation2 + $0x1d8] sm:$0xff]  ;;  %v5571_v29 = vld [vmem:[#allocation2 + $0x6e0] sm:$0xff] }
 0x908   : > { %5811 = vst [vmem:[%s8046_s19 + $0x130] sm:$0xf] %v5683_v28  ;;  %v5537_v28 = vld [vmem:[#allocation2 + $0x4c0] sm:$0xff]  ;;  %v5727_v26 = vpack.c.bf16 %v5569_v38, %v5569_v38  ;;  %v5575_v18 = vld [vmem:[#allocation2 + $0xf0] sm:$0xff]  ;;  %v5582_v5 = vld [vmem:[#allocation2 + $0x398] sm:$0xff] }
 0x909   : > { %5812 = vst [vmem:[%s8046_s19 + $0x134] sm:$0xff] %v5684_v63  ;;  %v5539_v63 = vld [vmem:[#allocation2 + $0xe8] sm:$0xff]  ;;  %v5709_v30 = vpack.c.bf16 %v5538_v22, %v5537_v28  ;;  %v5573_v2 = vld [vmem:[#allocation2 + $0x580] sm:$0xff]  ;;  %v5596_v59 = vld [vmem:[#allocation2 + $0x518] sm:$0xff] }
 0x90a   : > { %5813 = vst [vmem:[%s8046_s19 + $0x13c] sm:$0xff] %v5685_v20  ;;  %v5708_v20 = vpack.c.bf16 %v5536_v27, %v5535_v7  ;;  %v5710_v61 = vpack.c.bf16 %v5540_v11, %v5539_v63  ;;  %v5576_v7 = vld [vmem:[#allocation2 + $0x150] sm:$0xff]  ;;  %v5578_v28 = vld [vmem:[#allocation2 + $0x1a8] sm:$0xff]  ;;  %v5580_v63 = vld [vmem:[#allocation2 + $0x280] sm:$0xff] }
 0x90b   : > { %5814 = vst [vmem:[%s8046_s19 + $0x144] sm:$0xff] %v5686_v40  ;;  %v5542_v40 = vld [vmem:[#allocation2 + $0x2e8] sm:$0xff]  ;;  %v5731_v11 = vpack.c.bf16 %v5576_v7, %v5576_v7  ;;  %v5610_v38 = vld [vmem:[#allocation2 + $0x140] sm:$0xff]  ;;  %v5617_v7 = vld [vmem:[#allocation2 + $0x138] sm:$0xff] }
 0x90c   : > { %5815 = vst [vmem:[%s8046_s19 + $0x14c] sm:$0xf] %v5687_v33  ;;  %v5544_v33 = vld [vmem:[#allocation2 + $0x120] sm:$0xff]  ;;  %v5589_v34 = vld [vmem:[#allocation2 + $0x608] sm:$0xff] }
 0x90d   : > { %5816 = vst [vmem:[%s8046_s19 + $0x150] sm:$0xff] %v5688_v12  ;;  %v5546_v12 = vld [vmem:[#allocation2 + $0x4b8] sm:$0xff]  ;;  %v5713_v50 = vpack.c.bf16 %v5545_v6, %v5544_v33  ;;  %v5603_v52 = vld [vmem:[#allocation2 + $0x3e8] sm:$0xff] }
 0x90e   : > { %5817 = vst [vmem:[%s8046_s19 + $0x158] sm:$0xff] %v5689_v14  ;;  %v5712_v14 = vpack.c.bf16 %v5543_v13, %v5542_v40  ;;  %v5714_v44 = vpack.c.bf16 %v5547_v41, %v5546_v12  ;;  %v5583_v40 = vld [vmem:[#allocation2 + $0x240] sm:$0xff]  ;;  %v5585_v33 = vld [vmem:[#allocation2 + $0x698] sm:$0xff]  ;;  %v5587_v12 = vld [vmem:[#allocation2 + $0x590] sm:$0xff] }
 0x90f   : > { %5818 = vst [vmem:[%s8046_s19 + $0x160] sm:$0xff] %v5690_v43  ;;  %v5549_v43 = vld [vmem:[#allocation2 + $0x560] sm:$0xff]  ;;  %v5735_v41 = vpack.c.bf16 %v5583_v40, %v5583_v40  ;;  %v5624_v40 = vld [vmem:[#allocation2 + $0x470] sm:$0xff] }
 0x910   : > { %5819 = vst [vmem:[%s8046_s19 + $0x168] sm:$0xf] %v5691_v58  ;;  %v5551_v58 = vld [vmem:[#allocation2 + $0x50] sm:$0xff] }
 0x911   : > { %5820 = vst [vmem:[%s8046_s19 + $0x16c] sm:$0xff] %v5692_v15  ;;  %v5553_v15 = vld [vmem:[#allocation2 + $0x4c8] sm:$0xff]  ;;  %v5717_v8 = vpack.c.bf16 %v5552_v36, %v5551_v58  ;;  %v5592_v58 = vld [vmem:[#allocation2 + $0x160] sm:$0xff] }
 0x912   : > { %5821 = vst [vmem:[%s8046_s19 + $0x174] sm:$0xff] %v5693_v51  ;;  %v5716_v51 = vpack.c.bf16 %v5550_v35, %v5549_v43  ;;  %v5718_v31 = vpack.c.bf16 %v5554_v16, %v5553_v15  ;;  %v5590_v43 = vld [vmem:[#allocation2 + $0x10] sm:$0xff] }
 0x913   : > { %5822 = vst [vmem:[%s8046_s19 + $0x17c] sm:$0xff] %v5694_v55  ;;  %v5556_v55 = vld [vmem:[#allocation2 + $0x690] sm:$0xff]  ;;  %v5739_v16 = vpack.c.bf16 %v5590_v43, %v5590_v43  ;;  %v5631_v43 = vld [vmem:[#allocation2 + $0x600] sm:$0xff] }
 0x914   : > { %5823 = vst [vmem:[%s8046_s19 + $0x184] sm:$0xf] %v5695_v48  ;;  %v5558_v48 = vld [vmem:[#allocation2 + $0x238] sm:$0xff]  ;;  %v5594_v15 = vld [vmem:[#allocation2 + $0x290] sm:$0xff] }
 0x915   : > { %5824 = vst [vmem:[%s8046_s19 + $0x188] sm:$0xff] %v5696_v45  ;;  %v5560_v45 = vld [vmem:[#allocation2 + $0x110] sm:$0xff]  ;;  %v5721_v9 = vpack.c.bf16 %v5559_v0, %v5558_v48  ;;  %v5599_v48 = vld [vmem:[#allocation2 + $0x40] sm:$0xff] }
 0x916   : > { %5825 = vst [vmem:[%s8046_s19 + $0x190] sm:$0xff] %v5697_v57  ;;  %v5720_v57 = vpack.c.bf16 %v5557_v56, %v5556_v55  ;;  %v5722_v47 = vpack.c.bf16 %v5561_v37, %v5560_v45  ;;  %v5597_v55 = vld [vmem:[#allocation2 + $0x1c0] sm:$0xff] }
 0x917   : > { %5826 = vst [vmem:[%s8046_s19 + $0x198] sm:$0xff] %v5698_v46  ;;  %v5563_v46 = vld [vmem:[#allocation2] sm:$0xff]  ;;  %v5743_v37 = vpack.c.bf16 %v5597_v55, %v5597_v55  ;;  %v5638_v55 = vld [vmem:[#allocation2 + $0x1f0] sm:$0xff] }
 0x918   : > { %5827 = vst [vmem:[%s8046_s19 + $0x1a0] sm:$0xf] %v5699_v49  ;;  %v5565_v49 = vld [vmem:[#allocation2 + $0x5c8] sm:$0xff]  ;;  %v5601_v45 = vld [vmem:[#allocation2 + $0x400] sm:$0xff] }
 0x919   : > { %5828 = vst [vmem:[%s8046_s19 + $0x1a4] sm:$0xff] %v5700_v32  ;;  %v5567_v32 = vld [vmem:[#allocation2 + $0x48] sm:$0xff]  ;;  %v5725_v17 = vpack.c.bf16 %v5566_v54, %v5565_v49  ;;  %v5606_v49 = vld [vmem:[#allocation2 + $0x38] sm:$0xff] }
 0x91a   : > { %5829 = vst [vmem:[%s8046_s19 + $0x1ac] sm:$0xff] %v5701_v1  ;;  %v5724_v1 = vpack.c.bf16 %v5564_v53, %v5563_v46  ;;  %v5726_v60 = vpack.c.bf16 %v5568_v25, %v5567_v32  ;;  %v5604_v46 = vld [vmem:[#allocation2 + $0x168] sm:$0xff]  ;;  %v5608_v32 = vld [vmem:[#allocation2 + $0x638] sm:$0xff] }
 0x91b   : > { %5830 = vst [vmem:[%s8046_s19 + $0x1b4] sm:$0xff] %v5702_v42  ;;  %v5570_v42 = vld [vmem:[#allocation2 + $0x5e0] sm:$0xff]  ;;  %v5747_v25 = vpack.c.bf16 %v5604_v46, %v5604_v46 }
 0x91c   : > { %5831 = vst [vmem:[%s8046_s19 + $0x1bc] sm:$0xf] %v5703_v39  ;;  %v5572_v39 = vld [vmem:[#allocation2 + $0x78] sm:$0xff] }
 0x91d   : > { %5832 = vst [vmem:[%s8046_s19 + $0x1c0] sm:$0xff] %v5704_v3  ;;  %v5574_v3 = vld [vmem:[#allocation2 + $0x668] sm:$0xff]  ;;  %v5729_v27 = vpack.c.bf16 %v5573_v2, %v5572_v39  ;;  %v5613_v39 = vld [vmem:[#allocation2 + $0x480] sm:$0xff] }
 0x91e   : > { %5833 = vst [vmem:[%s8046_s19 + $0x1c8] sm:$0xff] %v5705_v4  ;;  %v5728_v4 = vpack.c.bf16 %v5571_v29, %v5570_v42  ;;  %v5730_v22 = vpack.c.bf16 %v5575_v18, %v5574_v3  ;;  %v5611_v42 = vld [vmem:[#allocation2 + $0x3a8] sm:$0xff]  ;;  %v5615_v3 = vld [vmem:[#allocation2 + $0x218] sm:$0xff] }
 0x91f   : > { %5834 = vst [vmem:[%s8046_s19 + $0x1d0] sm:$0xff] %v5706_v21  ;;  %v5577_v21 = vld [vmem:[#allocation2 + $0x170] sm:$0xff]  ;;  %v5751_v18 = vpack.c.bf16 %v5611_v42, %v5611_v42 }
 0x920   : > { %5835 = vst [vmem:[%s8046_s19 + $0x1d8] sm:$0xf] %v5707_v24  ;;  %v5579_v24 = vld [vmem:[#allocation2 + $0xd8] sm:$0xff] }
 0x921   : > { %5836 = vst [vmem:[%s8046_s19 + $0x1dc] sm:$0xff] %v5708_v20  ;;  %v5581_v20 = vld [vmem:[#allocation2 + $0x430] sm:$0xff]  ;;  %v5733_v13 = vpack.c.bf16 %v5580_v63, %v5579_v24  ;;  %v5620_v24 = vld [vmem:[#allocation2 + $0xc8] sm:$0xff] }
 0x922   : > { %5837 = vst [vmem:[%s8046_s19 + $0x1e4] sm:$0xff] %v5709_v30  ;;  %v5732_v30 = vpack.c.bf16 %v5578_v28, %v5577_v21  ;;  %v5734_v6 = vpack.c.bf16 %v5582_v5, %v5581_v20  ;;  %v5618_v21 = vld [vmem:[#allocation2 + $0x70] sm:$0xff] }
 0x923   : > { %5838 = vst [vmem:[%s8046_s19 + $0x1ec] sm:$0xff] %v5710_v61  ;;  %v5584_v61 = vld [vmem:[#allocation2 + $0x540] sm:$0xff]  ;;  %v5622_v20 = vld [vmem:[#allocation2 + $0x4d0] sm:$0xff]  ;;  %v5755_v5 = vpack.c.bf16 %v5618_v21, %v5618_v21 }
 0x924   : > { %5839 = vst [vmem:[%s8046_s19 + $0x1f4] sm:$0xf] %v5711_v62  ;;  %v5586_v62 = vld [vmem:[#allocation2 + $0x458] sm:$0xff] }
 0x925   : > { %5840 = vst [vmem:[%s8046_s19 + $0x1f8] sm:$0xff] %v5712_v14  ;;  %v5588_v14 = vld [vmem:[#allocation2 + $0x30] sm:$0xff]  ;;  %v5737_v35 = vpack.c.bf16 %v5587_v12, %v5586_v62  ;;  %v5627_v62 = vld [vmem:[#allocation2 + $0x5b8] sm:$0xff] }
 0x926   : > { %5841 = vst [vmem:[%s8046_s19 + $0x200] sm:$0xff] %v5713_v50  ;;  %v5736_v50 = vpack.c.bf16 %v5585_v33, %v5584_v61  ;;  %v5738_v36 = vpack.c.bf16 %v5589_v34, %v5588_v14  ;;  %v5625_v61 = vld [vmem:[#allocation2 + $0x2d0] sm:$0xff]  ;;  %v5629_v14 = vld [vmem:[#allocation2 + $0x258] sm:$0xff] }
 0x927   : > { %5842 = vst [vmem:[%s8046_s19 + $0x208] sm:$0xff] %v5714_v44  ;;  %v5591_v44 = vld [vmem:[#allocation2 + $0x4a8] sm:$0xff]  ;;  %v5759_v34 = vpack.c.bf16 %v5625_v61, %v5625_v61 }
 0x928   : > { %5843 = vst [vmem:[%s8046_s19 + $0x210] sm:$0xf] %v5715_v19  ;;  %v5593_v19 = vld [vmem:[#allocation2 + $0x300] sm:$0xff] }
 0x929   : > { %5844 = vst [vmem:[%s8046_s19 + $0x214] sm:$0xff] %v5716_v51  ;;  %v5595_v51 = vld [vmem:[#allocation2 + $0x98] sm:$0xff]  ;;  %v5741_v56 = vpack.c.bf16 %v5594_v15, %v5593_v19  ;;  %v5634_v19 = vld [vmem:[#allocation2 + $0x2e0] sm:$0xff] }
 0x92a   : > { %5845 = vst [vmem:[%s8046_s19 + $0x21c] sm:$0xff] %v5717_v8  ;;  %v5740_v8 = vpack.c.bf16 %v5592_v58, %v5591_v44  ;;  %v5742_v0 = vpack.c.bf16 %v5596_v59, %v5595_v51  ;;  %v5632_v44 = vld [vmem:[#allocation2 + $0x618] sm:$0xff]  ;;  %v5636_v51 = vld [vmem:[#allocation2 + $0x3e0] sm:$0xff] }
 0x92b   : > { %5846 = vst [vmem:[%s8046_s19 + $0x224] sm:$0xff] %v5718_v31  ;;  %v5598_v31 = vld [vmem:[#allocation2 + $0x468] sm:$0xff]  ;;  %v5763_v59 = vpack.c.bf16 %v5632_v44, %v5632_v44 }
 0x92c   : > { %5847 = vst [vmem:[%s8046_s19 + $0x22c] sm:$0xf] %v5719_v23  ;;  %v5600_v23 = vld [vmem:[#allocation2 + $0x248] sm:$0xff] }
 0x92d   : > { %5848 = vst [vmem:[%s8046_s19 + $0x230] sm:$0xff] %v5720_v57  ;;  %v5602_v57 = vld [vmem:[#allocation2 + $0x2f8] sm:$0xff]  ;;  %v5745_v53 = vpack.c.bf16 %v5601_v45, %v5600_v23 }
 0x92e   : > { %5849 = vst [vmem:[%s8046_s19 + $0x238] sm:$0xff] %v5721_v9  ;;  %v5744_v9 = vpack.c.bf16 %v5599_v48, %v5598_v31  ;;  %v5746_v54 = vpack.c.bf16 %v5603_v52, %v5602_v57  ;;  %v5639_v31 = vld [vmem:[#allocation2 + $0x460] sm:$0xff] }
 0x92f   : > { %5850 = vst [vmem:[%s8046_s19 + $0x240] sm:$0xff] %v5722_v47  ;;  %v5605_v47 = vld [vmem:[#allocation2 + $0x530] sm:$0xff]  ;;  %v5767_v23 = vpack.c.bf16 %v5639_v31, %v5639_v31 }
 0x930   : > { %5851 = vst [vmem:[%s8046_s19 + $0x248] sm:$0xf] %v5723_v10  ;;  %v5607_v10 = vld [vmem:[#allocation2 + $0x1d0] sm:$0xff] }
 0x931   : > { %5852 = vst [vmem:[%s8046_s19 + $0x24c] sm:$0xff] %v5724_v1  ;;  %v5609_v1 = vld [vmem:[#allocation2 + $0x578] sm:$0xff]  ;;  %v5749_v29 = vpack.c.bf16 %v5608_v32, %v5607_v10 }
 0x932   : > { %5853 = vst [vmem:[%s8046_s19 + $0x254] sm:$0xff] %v5725_v17  ;;  %v5748_v17 = vpack.c.bf16 %v5606_v49, %v5605_v47  ;;  %v5750_v2 = vpack.c.bf16 %v5610_v38, %v5609_v1 }
 0x933   : > { %5854 = vst [vmem:[%s8046_s19 + $0x25c] sm:$0xff] %v5726_v60  ;;  %v5612_v60 = vld [vmem:[#allocation2 + $0x508] sm:$0xff] }
 0x934   : > { %5855 = vst [vmem:[%s8046_s19 + $0x264] sm:$0xf] %v5727_v26  ;;  %v5614_v26 = vld [vmem:[#allocation2 + $0x2c8] sm:$0xff] }
 0x935   : > { %5856 = vst [vmem:[%s8046_s19 + $0x268] sm:$0xff] %v5728_v4  ;;  %v5616_v4 = vld [vmem:[#allocation2 + $0xc0] sm:$0xff]  ;;  %v5753_v28 = vpack.c.bf16 %v5615_v3, %v5614_v26 }
 0x936   : > { %5857 = vst [vmem:[%s8046_s19 + $0x270] sm:$0xff] %v5729_v27  ;;  %v5752_v27 = vpack.c.bf16 %v5613_v39, %v5612_v60  ;;  %v5754_v63 = vpack.c.bf16 %v5617_v7, %v5616_v4 }
 0x937   : > { %5858 = vst [vmem:[%s8046_s19 + $0x278] sm:$0xff] %v5730_v22  ;;  %v5619_v22 = vld [vmem:[#allocation2 + $0x6c0] sm:$0xff] }
 0x938   : > { %5859 = vst [vmem:[%s8046_s19 + $0x280] sm:$0xf] %v5731_v11  ;;  %v5621_v11 = vld [vmem:[#allocation2 + $0x1c8] sm:$0xff] }
 0x939   : > { %5860 = vst [vmem:[%s8046_s19 + $0x284] sm:$0xff] %v5732_v30  ;;  %v5623_v30 = vld [vmem:[#allocation2 + $0x2a8] sm:$0xff]  ;;  %v5757_v33 = vpack.c.bf16 %v5622_v20, %v5621_v11 }
 0x93a   : > { %5861 = vst [vmem:[%s8046_s19 + $0x28c] sm:$0xff] %v5733_v13  ;;  %v5756_v13 = vpack.c.bf16 %v5620_v24, %v5619_v22  ;;  %v5758_v12 = vpack.c.bf16 %v5624_v40, %v5623_v30 }
 0x93b   : > { %5862 = vst [vmem:[%s8046_s19 + $0x294] sm:$0xff] %v5734_v6  ;;  %v5626_v6 = vld [vmem:[#allocation2 + $0x330] sm:$0xff] }
 0x93c   : > { %5863 = vst [vmem:[%s8046_s19 + $0x29c] sm:$0xf] %v5735_v41  ;;  %v5628_v41 = vld [vmem:[#allocation2 + $0x198] sm:$0xff] }
 0x93d   : > { %5864 = vst [vmem:[%s8046_s19 + $0x2a0] sm:$0xff] %v5736_v50  ;;  %v5630_v50 = vld [vmem:[#allocation2 + $0x558] sm:$0xff]  ;;  %v5761_v58 = vpack.c.bf16 %v5629_v14, %v5628_v41 }
 0x93e   : > { %5865 = vst [vmem:[%s8046_s19 + $0x2a8] sm:$0xff] %v5737_v35  ;;  %v5760_v35 = vpack.c.bf16 %v5627_v62, %v5626_v6  ;;  %v5762_v15 = vpack.c.bf16 %v5631_v43, %v5630_v50 }
 0x93f   : > { %5866 = vst [vmem:[%s8046_s19 + $0x2b0] sm:$0xff] %v5738_v36  ;;  %v5633_v36 = vld [vmem:[#allocation2 + $0x628] sm:$0xff] }
 0x940   : > { %5867 = vst [vmem:[%s8046_s19 + $0x2b8] sm:$0xf] %v5739_v16  ;;  %v5635_v16 = vld [vmem:[#allocation2 + $0x210] sm:$0xff] }
 0x941   : > { %5868 = vst [vmem:[%s8046_s19 + $0x2bc] sm:$0xff] %v5740_v8  ;;  %v5637_v8 = vld [vmem:[#allocation2 + $0x6e8] sm:$0xff]  ;;  %v5765_v48 = vpack.c.bf16 %v5636_v51, %v5635_v16 }
 0x942   : > { %5869 = vst [vmem:[%s8046_s19 + $0x2c4] sm:$0xff] %v5741_v56  ;;  %v5764_v56 = vpack.c.bf16 %v5634_v19, %v5633_v36 }
 0x943   : > { %5870 = vst [vmem:[%s8046_s19 + $0x2cc] sm:$0xff] %v5742_v0  ;;  %v5766_v0 = vpack.c.bf16 %v5638_v55, %v5637_v8 }
 0x944   : > { %5871 = vst [vmem:[%s8046_s19 + $0x2d4] sm:$0xf] %v5743_v37 }
 0x945   : > { %5872 = vst [vmem:[%s8046_s19 + $0x2d8] sm:$0xff] %v5744_v9 }
 0x946   : > { %5873 = vst [vmem:[%s8046_s19 + $0x2e0] sm:$0xff] %v5745_v53 }
 0x947   : > { %5874 = vst [vmem:[%s8046_s19 + $0x2e8] sm:$0xff] %v5746_v54 }
 0x948   : > { %5875 = vst [vmem:[%s8046_s19 + $0x2f0] sm:$0xf] %v5747_v25 }
 0x949   : > { %5876 = vst [vmem:[%s8046_s19 + $0x2f4] sm:$0xff] %v5748_v17 }
 0x94a   : > { %5877 = vst [vmem:[%s8046_s19 + $0x2fc] sm:$0xff] %v5749_v29 }
 0x94b   : > { %5878 = vst [vmem:[%s8046_s19 + $0x304] sm:$0xff] %v5750_v2 }
 0x94c   : > { %5879 = vst [vmem:[%s8046_s19 + $0x30c] sm:$0xf] %v5751_v18 }
 0x94d   : > { %5880 = vst [vmem:[%s8046_s19 + $0x310] sm:$0xff] %v5752_v27 }
 0x94e   : > { %5881 = vst [vmem:[%s8046_s19 + $0x318] sm:$0xff] %v5753_v28 }
 0x94f   : > { %5882 = vst [vmem:[%s8046_s19 + $0x320] sm:$0xff] %v5754_v63 }
 0x950   : > { %5883 = vst [vmem:[%s8046_s19 + $0x328] sm:$0xf] %v5755_v5 }
 0x951   : > { %5884 = vst [vmem:[%s8046_s19 + $0x32c] sm:$0xff] %v5756_v13 }
 0x952   : > { %5885 = vst [vmem:[%s8046_s19 + $0x334] sm:$0xff] %v5757_v33 }
 0x953   : > { %5886 = vst [vmem:[%s8046_s19 + $0x33c] sm:$0xff] %v5758_v12 }
 0x954   : > { %5887 = vst [vmem:[%s8046_s19 + $0x344] sm:$0xf] %v5759_v34 }
 0x955   : > { %5888 = vst [vmem:[%s8046_s19 + $0x348] sm:$0xff] %v5760_v35 }
 0x956   : > { %5889 = vst [vmem:[%s8046_s19 + $0x350] sm:$0xff] %v5761_v58 }
 0x957   : > { %5890 = vst [vmem:[%s8046_s19 + $0x358] sm:$0xff] %v5762_v15 }
 0x958   : > { %5891 = vst [vmem:[%s8046_s19 + $0x360] sm:$0xf] %v5763_v59 }
 0x959   : > { %5892 = vst [vmem:[%s8046_s19 + $0x364] sm:$0xff] %v5764_v56 }
 0x95a   : > { %5893 = vst [vmem:[%s8046_s19 + $0x36c] sm:$0xff] %v5765_v48 }
 0x95b   : > { %5894 = vst [vmem:[%s8046_s19 + $0x374] sm:$0xff] %v5766_v0 }
 0x95c   : > { %5895 = vst [vmem:[%s8046_s19 + $0x37c] sm:$0xf] %v5767_v23 }
 0x95d PF: > { %s9855_s17 = sld [smem:[#allocation13_spill]]  ;;  %s5910_s30 = sshll.u32 %s8046_s19, 4  ;;  %s5911_s30 = int_to_ptr.vmem [resolvable:$true] %s5910_s30 }
 0x95e   : > { %s9856_s28 = sld [smem:[#allocation44_spill]]  ;;  %s5897_s4 = scalar_lea.sflag [#allocation5], %s221_s20 }
 0x963   : > { %s7489_s18 = smul.u32 896, %s9855_s17 }
 0x964   : > { %s7709_s15 = scalar_lea.hbm %s9856_s28, 1792 }
 0x965   : > { %s5909_s23 = scalar_lea.hbm %s9856_s28, %s7489_s18 }
 0x966   : > { %s5912_s27 = sshll.u32 %s5909_s23, 4  ;;  %s5913_s27 = int_to_ptr.hbm [resolvable:$true] %s5912_s27 }
 0x967   : > { %s7703_s24 = sshra.s32 %s5913_s27, 4  ;;  %s7704_s24 = int_to_ptr.hbm [resolvable:$true] %s7703_s24 }
 0x968   : > { %s7705_s7 = scalar_lea.hbm %s7704_s24, 896  ;;  %p7710_p8 = scmp.lt.s32.totalorder %s7704_s24, %s9856_s28 }
 0x969   : > { %p7706_p3 = scmp.ne.s32.totalorder %s7704_s24, %s7705_s7  ;;  %p7711_p9 = scmp.lt.s32.totalorder %s7709_s15, %s7705_s7 }
 0x96b   : > { %p7707_p4 = pnand %p7706_p3, %p8012_p12  ;;  %p7712_p10 = por %p7711_p9, %p7710_p8 }
 0x96d   : > { %p7708_p7 = pneg %p7707_p4 }
 0x96f   : > { %p7713_p11 = pnand %p7712_p10, %p7708_p7 }
 0x971   : > { %7716 = shalt.err (!%p7713_p11)
}
 0x972   : > { %s7847_s21 = smov 448   ;;  %s7848_s20 = smov 28  }
 0x973   : > { %7494 = dma.vmem_to_hbm [thread:$0]  (%p8012_p12), %s5911_s30, 14336, %s5913_s27, %s5897_s4, %s7847_s21, %s7847_s21, %s7848_s20  }
 0x974 PF: > { %p7508_p0 = scmp.ge.s32.totalorder %s7839_s22, 2  ;;  %s5927_s6 = sand.u32 1, %s7787_s9  }
 0x975   : > { %s5928_s19 = scalar_lea.sflag [#allocation5], %s5927_s6 }
 0x976   : > { %p7504_p2 = pnand %p7508_p0, %p8017_p5 }
 0x978   : > { %p7505_p6 = pneg %p7504_p2 }
 0x97a   : > { %7782 = dma.done.wait (%p7505_p6), %s5928_s19, 14336  }
 0x97b   : > { %7784 = vsyncadd (%p7505_p6), %s5928_s19, 4294952960  ;;  %s21_s22 = sadd.s32 1, %s7839_s22   ;;  %s9858_s26 = sld [smem:[#allocation19_spill]] }
 0x97c   : > { %p9576_p13 = scmp.ge.s32.totalorder %s21_s22, 8   ;;  %s9859_s18 = sld [smem:[#allocation12_spill]] }
 0x97d   : > { %s9860_s25 = sld [smem:[#allocation18_spill]]  ;;  %s9866_s9 = smov %s7791_s10 }
 0x97e   : > { %s9861_s30 = sld [smem:[#allocation14_spill]]  ;;  %s9867_s10 = smov %s7795_s11 }
 0x97f   : > { %s9862_s19 = sld [smem:[#allocation15_spill]]  ;;  %s9868_s11 = smov %s7964_s5 }
 0x980   : > { %s9863_s20 = sld [smem:[#allocation16_spill]]  ;;  %s9869_s12 = smov %s7803_s13 }
 0x981   : > { %s9864_s21 = sld [smem:[#allocation17_spill]]  ;;  %s9870_s13 = smov %s7807_s14 }
 0x982   : > { %s9871_s14 = smov %s9858_s26  ;;  %s9872_s15 = smov %s7815_s16 }
 0x983   : > { %s9873_s16 = smov %s9859_s18  ;;  %s9874_s17 = smov %s9860_s25 }
 0x984   : > { %s9875_s18 = smov %s9861_s30  ;;  %20 = sbr.rel (!%p9576_p13) target bundleno = 15 (0xf), region = 94 }
 0x989   :  { %5934 = vsyncpa [#allocation4], 1 }
 0x98a   :  { %5936 = vsyncpa [#allocation4 + $0x1], 1 }
 0x98b   :  { %5937 = vsyncpa [#allocation7], 1 }
 0x98c   :  { %5939 = vsyncpa [#allocation7 + $0x1], 1 }
 0x98d   :  { %5940 = vsyncpa [#allocation5], 1 }
 0x98e   :  { %5942 = vsyncpa [#allocation5 + $0x1], 1 }

</bundles_post_ra>
